<compile_context>
chip_gen: v7x
topology: tpu7x:2x2x1
jax: 0.10.0
libtpu: 0.0.40
codegen_flags: <defaults>
</compile_context>

<pallas_src>
import functools
import math

import numpy as np
import jax
import jax.numpy as jnp
from jax.experimental import pallas as pl
from jax.experimental.pallas import tpu as pltpu

# ----------------------------- configuration --------------------------------
B = 2                      # batch
IMG_C, IMG_H, IMG_W = 3, 32, 32
PATCH = 8
HE = IMG_H // PATCH        # 4  embedding height
WE = IMG_W // PATCH        # 4  embedding width
NPATCH = HE * WE           # 16 image tokens per sample
PATCH_DIM = IMG_C * PATCH * PATCH   # 192
D = 32                     # embedding dim
NUM_HEADS = 4
DH = D // NUM_HEADS        # 8
MLP_DIM = 64
PE_DIM = D // 2            # 16 random-fourier features
NUM_MASK_TOKENS = 4
NUM_OUT_TOKENS = 1 + NUM_MASK_TOKENS    # iou + mask tokens = 5
NUM_TOKENS = NUM_OUT_TOKENS + 2         # + 2 box-corner prompt tokens = 7
UP1_C, UP2_C = 16, 8       # upscaling channels
LOW_RES = HE * 4           # 16 -> low_res_masks are (B, 1, 16, 16)

NIMG = B * NPATCH          # 32 batch-stacked image tokens
NTOK = B * NUM_TOKENS      # 14 batch-stacked decoder tokens
NCRN = B * 2               # 4  batch-stacked box corners

ATTN_SCALE = 1.0 / math.sqrt(DH)
MXU_DTYPE = jnp.bfloat16   # bf16 MXU operands, f32 accumulation
LN_EPS = 1e-5              # PyTorch nn.LayerNorm default (token LNs)
LN2D_EPS = 1e-6            # SAM LayerNorm2d eps
NEG_INF = -1e9             # block-diagonal attention mask value

ATTN_NAMES = ("enc_attn", "dec_self", "dec_t2i", "dec_i2t", "dec_final")


# ------------------------------- fused kernel --------------------------------
def _medsam_kernel(wmap, fmap, patches_ref, corners_ref, wbuf_ref, fbuf_ref,
                   out_ref):
    # Static tile-aligned slices of the two packed parameter buffers, loaded
    # lazily at the point of use (keeps live ranges short).
    def W(name):
        o, r, c = wmap[name]
        return wbuf_ref[o:o + r, 0:c]          # bf16 MXU weight

    def F(name):
        o, r, c = fmap[name]
        return fbuf_ref[o:o + r, 0:c]          # f32 bias / LN / indicator / mask

    def mm(a, b):
        """MXU matmul: bf16 operands, f32 accumulation."""
        return jnp.dot(a.astype(MXU_DTYPE), b.astype(MXU_DTYPE),
                       preferred_element_type=jnp.float32)

    def mm_nt(a, b):
        """a @ b.T (contract last dims) without materializing a transpose."""
        return jax.lax.dot_general(
            a.astype(MXU_DTYPE), b.astype(MXU_DTYPE),
            dimension_numbers=(((1,), (1,)), ((), ())),
            preferred_element_type=jnp.float32)

    def mm_f32(a, b):
        """Exact f32 matmul (indicator reductions, positional encodings)."""
        return jnp.dot(a, b, preferred_element_type=jnp.float32)

    def ln(x, gname, bname, eps=LN_EPS):
        mu = jnp.mean(x, axis=-1, keepdims=True)
        var = jnp.mean((x - mu) ** 2, axis=-1, keepdims=True)
        return (x - mu) * jax.lax.rsqrt(var + eps) * F(gname) + F(bname)

    def attention(xq, xk, xv, name, mask):
        """Multi-head attention; block-diag mask keeps the 2 samples separate.
        The head concat is folded into per-head accumulated output projections."""
        wqkv = W(name + "_wqkv")               # (D, 3D)
        bqkv = F(name + "_bqkv")               # (1, 3D)
        q = mm(xq, wqkv[:, 0:D]) + bqkv[:, 0:D]
        k = mm(xk, wqkv[:, D:2 * D]) + bqkv[:, D:2 * D]
        v = mm(xv, wqkv[:, 2 * D:3 * D]) + bqkv[:, 2 * D:3 * D]
        wo = W(name + "_wo")                   # (D, D)
        o = None
        for h in range(NUM_HEADS):
            sl = slice(h * DH, (h + 1) * DH)
            s = mm_nt(q[:, sl], k[:, sl]) * ATTN_SCALE + mask
            s = s - jnp.max(s, axis=-1, keepdims=True)     # f32 softmax (v5e-safe)
            e = jnp.exp(s)
            p = e / jnp.sum(e, axis=-1, keepdims=True)
            oh = mm(mm(p, v[:, sl]), wo[sl, :])            # accumulate, no concat
            o = oh if o is None else o + oh
        return o + F(name + "_bo")

    # ---------------- image encoder (both samples stacked on sublanes) -------
    x = mm(patches_ref[...], W("patch_w")) + F("patch_b") + F("pos_embed2")
    h = ln(x, "enc_ln1_g", "enc_ln1_b")
    x = x + attention(h, h, h, "enc_attn", F("mask_enc"))
    h = ln(x, "enc_ln2_g", "enc_ln2_b")
    h = jax.nn.gelu(mm(h, W("enc_mlp_w1")) + F("enc_mlp_b1"))
    x = x + mm(h, W("enc_mlp_w2")) + F("enc_mlp_b2")
    img_emb = ln(x, "enc_neck_g", "enc_neck_b")                       # (32, D)

    # ---------------- prompt encoder -----------------------------------------
    # Random-Fourier corner PE; sin/cos fused via a lane-duplicated gauss and a
    # pi/2 phase (cos(x) = sin(x + pi/2)), so no lane concat.
    proj = mm_f32(corners_ref[...] * 2.0 - 1.0, F("gauss2")) * (2.0 * jnp.pi)
    corner_pe = jnp.sin(proj + F("pe_phase")) + F("pt_emb2")          # (4, D)
    pos_src = F("pos_src2")                    # (32, D) precomputed at init
    src = img_emb + F("no_mask")               # dense prompt = no-mask embedding

    # ---------------- mask decoder: two-way transformer -----------------------
    # tokens = [iou, mask0..3, corner0, corner1] per sample, batch-stacked.
    tokens = F("out_tokens2") + mm_f32(F("tok_place"), corner_pe)     # (14, D)
    queries, keys = tokens, src
    queries = ln(attention(queries, queries, queries, "dec_self", F("mask_tok")),
                 "n1_g", "n1_b")
    q = queries + tokens
    k = keys + pos_src
    queries = ln(queries + attention(q, k, keys, "dec_t2i", F("mask_t2i")),
                 "n2_g", "n2_b")
    h = jnp.maximum(mm(queries, W("dec_mlp_w1")) + F("dec_mlp_b1"), 0.0)
    mlp_out = mm(h, W("dec_mlp_w2")) + F("dec_mlp_b2")
    queries = ln(queries + mlp_out, "n3_g", "n3_b")
    q = queries + tokens
    k = keys + pos_src
    keys = ln(keys + attention(k, q, queries, "dec_i2t", F("mask_i2t")),
              "n4_g", "n4_b")

    q = queries + tokens
    k = keys + pos_src
    queries = ln(queries + attention(q, k, keys, "dec_final", F("mask_t2i")),
                 "nf_g", "nf_b")

    # ---------------- output upscaling (ConvTranspose2d k=2,s=2 as matmuls) ---
    y1 = mm(keys, W("up1_w")) + F("up1_b")                            # (32, 64)
    # LayerNorm2d over the UP1_C channels of each upsampled pixel via constant
    # indicator matmuls (f32 -- keep these exact).
    mu = mm_f32(y1, F("grp1_sum")) * (1.0 / UP1_C)                    # (32, 4)
    xc = y1 - mm_f32(mu, F("grp1_bcast"))
    var = mm_f32(xc * xc, F("grp1_sum")) * (1.0 / UP1_C)
    y1 = (xc * jax.lax.rsqrt(mm_f32(var, F("grp1_bcast")) + LN2D_EPS)
          * F("upln_g") + F("upln_b"))
    y1 = jax.nn.gelu(y1)
    y2 = jax.nn.gelu(mm(y1, W("up2_w_block")) + F("up2_b"))           # (32, 128)

    # ---------------- hypernetwork: mask token 0 of each sample ---------------
    # (multimask_output=False; IOU head and mask tokens 1..3 are dead code.)
    t0 = jnp.concatenate(
        [queries[1:2, :], queries[NUM_TOKENS + 1:NUM_TOKENS + 2, :]], axis=0)
    h0 = jnp.maximum(mm(t0, W("hyp_w1")) + F("hyp_b1"), 0.0)
    h0 = jnp.maximum(mm(h0, W("hyp_w2")) + F("hyp_b2"), 0.0)
    hyper = mm(h0, W("hyp_w3")) + F("hyp_b3")                         # (2, UP2_C)
    w_full = mm_f32(hyper, F("hyp_tile"))                             # (2, 128)
    w_rows = mm_f32(F("bcast_b"), w_full)                             # (32, 128)
    # mask[b*16+h*4+w, (dy,dx,dy2,dx2)] = sum_c2 hyper_b[c2] * y2[..., c2]
    out_ref[...] = mm_f32(y2 * w_rows, F("grp2_sum"))                 # (32, 16)


# ------------------------------- forward wrapper ------------------------------
def medsam_lite_forward(image, box_np, wbuf, fbuf, wmap, fmap):
    """image (B,3,32,32) NCHW, box_np (B,4) xyxy -> low_res_masks (B,1,16,16)."""
    patches = (image.astype(jnp.float32)
               .reshape(B, IMG_C, HE, PATCH, WE, PATCH)
               .transpose(0, 2, 4, 1, 3, 5)
               .reshape(NIMG, PATCH_DIM))                 # batch-stacked rows
    corners = ((box_np.astype(jnp.float32).reshape(NCRN, 2) + 0.5)
               / jnp.array([[IMG_W, IMG_H]], jnp.float32))

    bytes_accessed = int(patches.size * 4 + corners.size * 4 +
                         wbuf.size * 2 + fbuf.size * 4 + NIMG * 16 * 4)
    cost = pl.CostEstimate(flops=3_000_000, transcendentals=25_000,
                           bytes_accessed=bytes_accessed)

    masks_perm = pl.pallas_call(
        functools.partial(_medsam_kernel, wmap, fmap),
        out_shape=jax.ShapeDtypeStruct((NIMG, 16), jnp.float32),
        grid=(1,),
        in_specs=[
            pl.BlockSpec((NIMG, PATCH_DIM), lambda i: (0, 0)),
            pl.BlockSpec((NCRN, 2), lambda i: (0, 0)),
            pl.BlockSpec(wbuf.shape, lambda i: (0, 0)),
            pl.BlockSpec(fbuf.shape, lambda i: (0, 0)),
        ],
        out_specs=pl.BlockSpec((NIMG, 16), lambda i: (0, 0)),
        compiler_params=pltpu.CompilerParams(
            dimension_semantics=("arbitrary",)),
        cost_estimate=cost,
    )(patches, corners, wbuf, fbuf)

    # Undo the (h, w | dy, dx, dy2, dx2) pixel permutation of the fused deconv
    # layout -> (B, 1, 16, 16) low-res masks (tiny wrapper-side op).
    m = masks_perm.reshape(B, HE, WE, 2, 2, 2, 2)
    m = m.transpose(0, 1, 3, 5, 2, 4, 6).reshape(B, 1, LOW_RES, LOW_RES)
    return m
    # TODO(synk): postprocess_masks (bilinear F.interpolate) is not part of
    # forward() and is not implemented.


# --------------------------------- parameters ---------------------------------
def _deconv_cols(w_raw, cout):
    """(cin, cout*kh*kw) PyTorch-flat -> (cin, kh*kw*cout) lane-dense columns."""
    cin = w_raw.shape[0]
    return (w_raw.reshape(cin, cout, 2, 2).transpose(0, 2, 3, 1)
            .reshape(cin, 4 * cout))
    # TODO(synk): loading real PyTorch ConvTranspose2d weights requires this
    # exact (cin, cout, kh, kw) -> (cin, kh, kw, cout) permutation.


def _block_mask(nq, nk):
    """Block-diagonal additive mask keeping the B stacked samples independent."""
    qb = np.repeat(np.arange(B), nq)
    kb = np.repeat(np.arange(B), nk)
    return np.where(qb[:, None] == kb[None, :], 0.0, NEG_INF).astype(np.float32)


def _pack(entries, dtype, row_align):
    """Pack named 2D arrays into one (rows, 128) buffer; rows padded per entry
    to the dtype sublane tile so every in-kernel slice is tile-aligned."""
    offs, rows = {}, 0
    for name, a in entries:
        a = np.asarray(a)
        assert a.ndim == 2 and a.shape[1] <= 128, name
        offs[name] = (rows, a.shape[0], a.shape[1])
        rows += ((a.shape[0] + row_align - 1) // row_align) * row_align
    buf = np.zeros((rows, 128), np.float32)
    for name, a in entries:
        o, r, c = offs[name]
        buf[o:o + r, :c] = np.asarray(a, np.float32)
    return jnp.asarray(buf, dtype), offs


def init_params():
    key = jax.random.PRNGKey(42)
    keys = iter(jax.random.split(key, 64))

    def nrm(shape, scale=0.02):
        return np.asarray(scale * jax.random.normal(next(keys), shape), np.float32)

    def zeros(shape):
        return np.zeros(shape, np.float32)

    def ones(shape):
        return np.ones(shape, np.float32)

    w_entries, f_entries = [], []
    add_w = lambda n, a: w_entries.append((n, a))
    add_f = lambda n, a: f_entries.append((n, a))

    # ---- image encoder ----
    add_w("patch_w", nrm((PATCH_DIM, D)))
    add_f("patch_b", zeros((1, D)))
    pos_embed = nrm((NPATCH, D))
    add_f("pos_embed2", np.tile(pos_embed, (B, 1)))                   # (32, D)
    for g, b in [("enc_ln1_g", "enc_ln1_b"), ("enc_ln2_g", "enc_ln2_b"),
                 ("enc_neck_g", "enc_neck_b")]:
        add_f(g, ones((1, D))); add_f(b, zeros((1, D)))
    add_w("enc_mlp_w1", nrm((D, MLP_DIM))); add_f("enc_mlp_b1", zeros((1, MLP_DIM)))
    add_w("enc_mlp_w2", nrm((MLP_DIM, D))); add_f("enc_mlp_b2", zeros((1, D)))

    # ---- 5 attention blocks: fused QKV weight + output projection ----
    for name in ATTN_NAMES:
        add_w(name + "_wqkv", nrm((D, 3 * D)))
        add_f(name + "_bqkv", zeros((1, 3 * D)))
        add_w(name + "_wo", nrm((D, D)))
        add_f(name + "_bo", zeros((1, D)))

    # ---- decoder norms + MLP ----
    for g, b in [("n1_g", "n1_b"), ("n2_g", "n2_b"), ("n3_g", "n3_b"),
                 ("n4_g", "n4_b"), ("nf_g", "nf_b")]:
        add_f(g, ones((1, D))); add_f(b, zeros((1, D)))
    add_w("dec_mlp_w1", nrm((D, MLP_DIM))); add_f("dec_mlp_b1", zeros((1, MLP_DIM)))
    add_w("dec_mlp_w2", nrm((MLP_DIM, D))); add_f("dec_mlp_b2", zeros((1, D)))

    # ---- prompt encoder ----
    gauss = nrm((2, PE_DIM), scale=1.0)                    # f32: coord precision
    add_f("gauss2", np.concatenate([gauss, gauss], axis=1))            # (2, D)
    add_f("pe_phase", np.concatenate(
        [np.zeros((1, PE_DIM)), np.full((1, PE_DIM), np.pi / 2)],
        axis=1).astype(np.float32))                                     # (1, D)
    pt_emb = nrm((2, D))
    add_f("pt_emb2", np.tile(pt_emb, (B, 1)))                           # (4, D)
    add_f("no_mask", nrm((1, D)))
    # dense positional encoding of the image grid -- hoisted out of the kernel
    ys = (np.arange(HE, dtype=np.float32) + 0.5) / HE
    xs = (np.arange(WE, dtype=np.float32) + 0.5) / WE
    gy, gx = np.meshgrid(ys, xs, indexing="ij")
    coords = np.stack([gx, gy], axis=-1).reshape(NPATCH, 2)             # (x, y)
    proj = (coords * 2.0 - 1.0) @ gauss * (2.0 * np.pi)
    pos_src = np.concatenate([np.sin(proj), np.cos(proj)], axis=-1).astype(np.float32)
    add_f("pos_src2", np.tile(pos_src, (B, 1)))                         # (32, D)

    # ---- decoder output tokens + corner placement (batch-stacked) ----
    out_tokens = nrm((NUM_OUT_TOKENS, D))
    pad7 = np.concatenate([out_tokens, np.zeros((2, D), np.float32)], axis=0)
    add_f("out_tokens2", np.tile(pad7, (B, 1)))                         # (14, D)
    tok_place = np.zeros((NTOK, NCRN), np.float32)
    for b in range(B):
        tok_place[b * NUM_TOKENS + NUM_OUT_TOKENS, b * 2] = 1.0
        tok_place[b * NUM_TOKENS + NUM_OUT_TOKENS + 1, b * 2 + 1] = 1.0
    add_f("tok_place", tok_place)

    # ---- block-diagonal attention masks for the batch-stacked streams ----
    add_f("mask_enc", _block_mask(NPATCH, NPATCH))                      # (32, 32)
    add_f("mask_tok", _block_mask(NUM_TOKENS, NUM_TOKENS))              # (14, 14)
    add_f("mask_t2i", _block_mask(NUM_TOKENS, NPATCH))                  # (14, 32)
    add_f("mask_i2t", _block_mask(NPATCH, NUM_TOKENS))                  # (32, 14)

    # ---- upscaling path (ConvTranspose2d k=2,s=2 as lane-dense matmuls) ----
    up1_w = _deconv_cols(nrm((D, UP1_C * 4)), UP1_C)                    # (D, 64)
    up2_w = _deconv_cols(nrm((UP1_C, UP2_C * 4)), UP2_C)                # (16, 32)
    add_w("up1_w", up1_w)
    add_w("up2_w_block", np.kron(np.eye(4, dtype=np.float32), up2_w))   # (64, 128)
    add_f("up1_b", np.tile(zeros((UP1_C,)), 4)[None, :])                # (1, 64)
    add_f("upln_g", np.tile(ones((UP1_C,)), 4)[None, :])
    add_f("upln_b", np.tile(zeros((UP1_C,)), 4)[None, :])
    add_f("up2_b", np.tile(zeros((UP2_C,)), 16)[None, :])               # (1, 128)
    eye4 = np.eye(4, dtype=np.float32)
    eye16 = np.eye(16, dtype=np.float32)
    add_f("grp1_sum", np.kron(eye4, np.ones((UP1_C, 1), np.float32)))   # (64, 4)
    add_f("grp1_bcast", np.kron(eye4, np.ones((1, UP1_C), np.float32))) # (4, 64)
    add_f("grp2_sum", np.kron(eye16, np.ones((UP2_C, 1), np.float32)))  # (128, 16)
    add_f("hyp_tile", np.kron(np.ones((1, 16), np.float32),
                              np.eye(UP2_C, dtype=np.float32)))         # (8, 128)
    bcast_b = np.zeros((NIMG, B), np.float32)
    for b in range(B):
        bcast_b[b * NPATCH:(b + 1) * NPATCH, b] = 1.0
    add_f("bcast_b", bcast_b)                                           # (32, 2)

    # ---- hypernetwork MLP (mask token 0 only; IOU head is dead code) ----
    add_w("hyp_w1", nrm((D, D))); add_f("hyp_b1", zeros((1, D)))
    add_w("hyp_w2", nrm((D, D))); add_f("hyp_b2", zeros((1, D)))
    add_w("hyp_w3", nrm((D, UP2_C))); add_f("hyp_b3", zeros((1, UP2_C)))

    wbuf, wmap = _pack(w_entries, MXU_DTYPE, 16)   # bf16 tile: 16 sublanes
    fbuf, fmap = _pack(f_entries, jnp.float32, 8)  # f32 tile:  8 sublanes
    return wbuf, fbuf, wmap, fmap


# ------------------------------------ main -------------------------------------
if __name__ == "__main__":
    wbuf, fbuf, wmap, fmap = init_params()

    key = jax.random.PRNGKey(0)
    k_img, _ = jax.random.split(key)
    image = jax.random.normal(k_img, (B, IMG_C, IMG_H, IMG_W), dtype=jnp.float32)
    box_np = jnp.array([[4.0, 4.0, 28.0, 28.0],
                        [2.0, 6.0, 30.0, 26.0]], dtype=jnp.float32)   # (B, 4) xyxy

    fwd = jax.jit(lambda img, box, wb, fb:
                  medsam_lite_forward(img, box, wb, fb, wmap, fmap))
    low_res_masks = jax.block_until_ready(fwd(image, box_np, wbuf, fbuf))

    assert low_res_masks.shape == (B, 1, LOW_RES, LOW_RES)
    assert low_res_masks.dtype == jnp.float32
    assert bool(jnp.all(jnp.isfinite(low_res_masks)))
    print("KERNEL_OK")
</pallas_src>

<mosaic_0001>
module attributes {stable_mosaic.version = 11 : i64} {
  func.func @_medsam_kernel(%arg0: i32, %arg1: memref<32x192xf32, #tpu.memory_space<vmem>>, %arg2: memref<4x2xf32, #tpu.memory_space<vmem>>, %arg3: memref<896x128xbf16, #tpu.memory_space<vmem>>, %arg4: memref<768x128xf32, #tpu.memory_space<vmem>>, %arg5: memref<32x16xf32, #tpu.memory_space<vmem>>) attributes {dimension_semantics = [#tpu.dimension_semantics<arbitrary>], iteration_bounds = array<i64: 1>, scalar_prefetch = 0 : i64, scratch_operands = 0 : i64, tpu.core_type = #tpu.core_type<tc>, window_params = [{pipeline_mode = #tpu.pipeline_mode<synchronous>, transform_indices = @transform_0, window_bounds = array<i64: 32, 192>}, {pipeline_mode = #tpu.pipeline_mode<synchronous>, transform_indices = @transform_1, window_bounds = array<i64: 4, 2>}, {pipeline_mode = #tpu.pipeline_mode<synchronous>, transform_indices = @transform_2, window_bounds = array<i64: 896, 128>}, {pipeline_mode = #tpu.pipeline_mode<synchronous>, transform_indices = @transform_3, window_bounds = array<i64: 768, 128>}, {pipeline_mode = #tpu.pipeline_mode<synchronous>, transform_indices = @transform_4, window_bounds = array<i64: 32, 16>}]} {
    %c0 = arith.constant 0 : index
    %c0_0 = arith.constant 0 : index
    %0 = vector.load %arg1[%c0, %c0_0] : memref<32x192xf32, #tpu.memory_space<vmem>>, vector<32x192xf32>
    %c0_1 = arith.constant 0 : index
    %c0_2 = arith.constant 0 : index
    %1 = vector.load %arg3[%c0_1, %c0_2] : memref<896x128xbf16, #tpu.memory_space<vmem>>, vector<192x32xbf16>
    %2 = arith.truncf %0 : vector<32x192xf32> to vector<32x192xbf16>
    %cst = arith.constant dense<0.000000e+00> : vector<32x32xf32>
    %3 = tpu.matmul %2, %1, %cst {dimension_numbers = #tpu.dot_dimension_numbers<[1], [0], [0], [1], [0, 0, 1, 1], [], []>} : vector<32x192xbf16>, vector<192x32xbf16>, vector<32x32xf32> -> vector<32x32xf32>
    %c0_3 = arith.constant 0 : index
    %c0_4 = arith.constant 0 : index
    %4 = vector.load %arg4[%c0_3, %c0_4] : memref<768x128xf32, #tpu.memory_space<vmem>>, vector<1x32xf32>
    %5 = vector.broadcast %4 : vector<1x32xf32> to vector<32x32xf32>
    %6 = arith.addf %3, %5 : vector<32x32xf32>
    %c8 = arith.constant 8 : index
    %c0_5 = arith.constant 0 : index
    %7 = vector.load %arg4[%c8, %c0_5] : memref<768x128xf32, #tpu.memory_space<vmem>>, vector<32x32xf32>
    %8 = arith.addf %6, %7 : vector<32x32xf32>
    %cst_6 = arith.constant dense<0.000000e+00> : vector<32xf32>
    %9 = vector.multi_reduction <add>, %8, %cst_6 [1] : vector<32x32xf32> to vector<32xf32>
    %10 = vector.shape_cast %9 : vector<32xf32> to vector<32x1xf32>
    %cst_7 = arith.constant 3.200000e+01 : f32
    %11 = vector.broadcast %cst_7 : f32 to vector<32x1xf32>
    %12 = arith.divf %10, %11 : vector<32x1xf32>
    %13 = vector.broadcast %12 : vector<32x1xf32> to vector<32x32xf32>
    %14 = arith.subf %8, %13 : vector<32x32xf32>
    %15 = arith.mulf %14, %14 : vector<32x32xf32>
    %cst_8 = arith.constant dense<0.000000e+00> : vector<32xf32>
    %16 = vector.multi_reduction <add>, %15, %cst_8 [1] : vector<32x32xf32> to vector<32xf32>
    %17 = vector.shape_cast %16 : vector<32xf32> to vector<32x1xf32>
    %cst_9 = arith.constant 3.200000e+01 : f32
    %18 = vector.broadcast %cst_9 : f32 to vector<32x1xf32>
    %19 = arith.divf %17, %18 : vector<32x1xf32>
    %20 = vector.broadcast %12 : vector<32x1xf32> to vector<32x32xf32>
    %21 = arith.subf %8, %20 : vector<32x32xf32>
    %cst_10 = arith.constant 9.99999974E-6 : f32
    %22 = vector.broadcast %cst_10 : f32 to vector<32x1xf32>
    %23 = arith.addf %19, %22 : vector<32x1xf32>
    %24 = math.rsqrt %23 : vector<32x1xf32>
    %25 = vector.broadcast %24 : vector<32x1xf32> to vector<32x32xf32>
    %26 = arith.mulf %21, %25 : vector<32x32xf32>
    %c40 = arith.constant 40 : index
    %c0_11 = arith.constant 0 : index
    %27 = vector.load %arg4[%c40, %c0_11] : memref<768x128xf32, #tpu.memory_space<vmem>>, vector<1x32xf32>
    %28 = vector.broadcast %27 : vector<1x32xf32> to vector<32x32xf32>
    %29 = arith.mulf %26, %28 : vector<32x32xf32>
    %c48 = arith.constant 48 : index
    %c0_12 = arith.constant 0 : index
    %30 = vector.load %arg4[%c48, %c0_12] : memref<768x128xf32, #tpu.memory_space<vmem>>, vector<1x32xf32>
    %31 = vector.broadcast %30 : vector<1x32xf32> to vector<32x32xf32>
    %32 = arith.addf %29, %31 : vector<32x32xf32>
    %c376 = arith.constant 376 : index
    %c0_13 = arith.constant 0 : index
    %33 = vector.load %arg4[%c376, %c0_13] : memref<768x128xf32, #tpu.memory_space<vmem>>, vector<32x32xf32>
    %c288 = arith.constant 288 : index
    %c0_14 = arith.constant 0 : index
    %34 = vector.load %arg3[%c288, %c0_14] : memref<896x128xbf16, #tpu.memory_space<vmem>>, vector<32x96xbf16>
    %c104 = arith.constant 104 : index
    %c0_15 = arith.constant 0 : index
    %35 = vector.load %arg4[%c104, %c0_15] : memref<768x128xf32, #tpu.memory_space<vmem>>, vector<1x96xf32>
    %36 = vector.extract_strided_slice %34 {offsets = [0, 0], sizes = [32, 32], strides = [1, 1]} : vector<32x96xbf16> to vector<32x32xbf16>
    %37 = arith.truncf %32 : vector<32x32xf32> to vector<32x32xbf16>
    %cst_16 = arith.constant dense<0.000000e+00> : vector<32x32xf32>
    %38 = tpu.matmul %37, %36, %cst_16 {dimension_numbers = #tpu.dot_dimension_numbers<[1], [0], [0], [1], [0, 0, 1, 1], [], []>} : vector<32x32xbf16>, vector<32x32xbf16>, vector<32x32xf32> -> vector<32x32xf32>
    %39 = vector.extract_strided_slice %35 {offsets = [0, 0], sizes = [1, 32], strides = [1, 1]} : vector<1x96xf32> to vector<1x32xf32>
    %40 = vector.broadcast %39 : vector<1x32xf32> to vector<32x32xf32>
    %41 = arith.addf %38, %40 : vector<32x32xf32>
    %42 = vector.extract_strided_slice %34 {offsets = [0, 32], sizes = [32, 32], strides = [1, 1]} : vector<32x96xbf16> to vector<32x32xbf16>
    %43 = arith.truncf %32 : vector<32x32xf32> to vector<32x32xbf16>
    %cst_17 = arith.constant dense<0.000000e+00> : vector<32x32xf32>
    %44 = tpu.matmul %43, %42, %cst_17 {dimension_numbers = #tpu.dot_dimension_numbers<[1], [0], [0], [1], [0, 0, 1, 1], [], []>} : vector<32x32xbf16>, vector<32x32xbf16>, vector<32x32xf32> -> vector<32x32xf32>
    %45 = vector.extract_strided_slice %35 {offsets = [0, 32], sizes = [1, 32], strides = [1, 1]} : vector<1x96xf32> to vector<1x32xf32>
    %46 = vector.broadcast %45 : vector<1x32xf32> to vector<32x32xf32>
    %47 = arith.addf %44, %46 : vector<32x32xf32>
    %48 = vector.extract_strided_slice %34 {offsets = [0, 64], sizes = [32, 32], strides = [1, 1]} : vector<32x96xbf16> to vector<32x32xbf16>
    %49 = arith.truncf %32 : vector<32x32xf32> to vector<32x32xbf16>
    %cst_18 = arith.constant dense<0.000000e+00> : vector<32x32xf32>
    %50 = tpu.matmul %49, %48, %cst_18 {dimension_numbers = #tpu.dot_dimension_numbers<[1], [0], [0], [1], [0, 0, 1, 1], [], []>} : vector<32x32xbf16>, vector<32x32xbf16>, vector<32x32xf32> -> vector<32x32xf32>
    %51 = vector.extract_strided_slice %35 {offsets = [0, 64], sizes = [1, 32], strides = [1, 1]} : vector<1x96xf32> to vector<1x32xf32>
    %52 = vector.broadcast %51 : vector<1x32xf32> to vector<32x32xf32>
    %53 = arith.addf %50, %52 : vector<32x32xf32>
    %c320 = arith.constant 320 : index
    %c0_19 = arith.constant 0 : index
    %54 = vector.load %arg3[%c320, %c0_19] : memref<896x128xbf16, #tpu.memory_space<vmem>>, vector<32x32xbf16>
    %55 = vector.extract_strided_slice %41 {offsets = [0, 0], sizes = [32, 8], strides = [1, 1]} : vector<32x32xf32> to vector<32x8xf32>
    %56 = vector.extract_strided_slice %47 {offsets = [0, 0], sizes = [32, 8], strides = [1, 1]} : vector<32x32xf32> to vector<32x8xf32>
    %57 = arith.truncf %55 : vector<32x8xf32> to vector<32x8xbf16>
    %58 = arith.truncf %56 : vector<32x8xf32> to vector<32x8xbf16>
    %cst_20 = arith.constant dense<0.000000e+00> : vector<32x32xf32>
    %59 = tpu.matmul %57, %58, %cst_20 {dimension_numbers = #tpu.dot_dimension_numbers<[1], [1], [0], [0], [0, 0, 1, 0], [], []>} : vector<32x8xbf16>, vector<32x8xbf16>, vector<32x32xf32> -> vector<32x32xf32>
    %cst_21 = arith.constant 0.353553385 : f32
    %60 = vector.broadcast %cst_21 : f32 to vector<32x32xf32>
    %61 = arith.mulf %59, %60 : vector<32x32xf32>
    %62 = arith.addf %61, %33 : vector<32x32xf32>
    %cst_22 = arith.constant dense<0xFF800000> : vector<32xf32>
    %63 = vector.multi_reduction <maximumf>, %62, %cst_22 [1] : vector<32x32xf32> to vector<32xf32>
    %64 = vector.shape_cast %63 : vector<32xf32> to vector<32x1xf32>
    %65 = vector.broadcast %64 : vector<32x1xf32> to vector<32x32xf32>
    %66 = arith.subf %62, %65 : vector<32x32xf32>
    %67 = math.exp %66 : vector<32x32xf32>
    %cst_23 = arith.constant dense<0.000000e+00> : vector<32xf32>
    %68 = vector.multi_reduction <add>, %67, %cst_23 [1] : vector<32x32xf32> to vector<32xf32>
    %69 = vector.shape_cast %68 : vector<32xf32> to vector<32x1xf32>
    %70 = vector.broadcast %69 : vector<32x1xf32> to vector<32x32xf32>
    %71 = arith.divf %67, %70 : vector<32x32xf32>
    %72 = vector.extract_strided_slice %53 {offsets = [0, 0], sizes = [32, 8], strides = [1, 1]} : vector<32x32xf32> to vector<32x8xf32>
    %73 = arith.truncf %71 : vector<32x32xf32> to vector<32x32xbf16>
    %74 = arith.truncf %72 : vector<32x8xf32> to vector<32x8xbf16>
    %cst_24 = arith.constant dense<0.000000e+00> : vector<32x8xf32>
    %75 = tpu.matmul %73, %74, %cst_24 {dimension_numbers = #tpu.dot_dimension_numbers<[1], [0], [0], [1], [0, 0, 1, 1], [], []>} : vector<32x32xbf16>, vector<32x8xbf16>, vector<32x8xf32> -> vector<32x8xf32>
    %76 = vector.extract_strided_slice %54 {offsets = [0, 0], sizes = [8, 32], strides = [1, 1]} : vector<32x32xbf16> to vector<8x32xbf16>
    %77 = arith.truncf %75 : vector<32x8xf32> to vector<32x8xbf16>
    %cst_25 = arith.constant dense<0.000000e+00> : vector<32x32xf32>
    %78 = tpu.matmul %77, %76, %cst_25 {dimension_numbers = #tpu.dot_dimension_numbers<[1], [0], [0], [1], [0, 0, 1, 1], [], []>} : vector<32x8xbf16>, vector<8x32xbf16>, vector<32x32xf32> -> vector<32x32xf32>
    %79 = vector.extract_strided_slice %41 {offsets = [0, 8], sizes = [32, 8], strides = [1, 1]} : vector<32x32xf32> to vector<32x8xf32>
    %80 = vector.extract_strided_slice %47 {offsets = [0, 8], sizes = [32, 8], strides = [1, 1]} : vector<32x32xf32> to vector<32x8xf32>
    %81 = arith.truncf %79 : vector<32x8xf32> to vector<32x8xbf16>
    %82 = arith.truncf %80 : vector<32x8xf32> to vector<32x8xbf16>
    %cst_26 = arith.constant dense<0.000000e+00> : vector<32x32xf32>
    %83 = tpu.matmul %81, %82, %cst_26 {dimension_numbers = #tpu.dot_dimension_numbers<[1], [1], [0], [0], [0, 0, 1, 0], [], []>} : vector<32x8xbf16>, vector<32x8xbf16>, vector<32x32xf32> -> vector<32x32xf32>
    %cst_27 = arith.constant 0.353553385 : f32
    %84 = vector.broadcast %cst_27 : f32 to vector<32x32xf32>
    %85 = arith.mulf %83, %84 : vector<32x32xf32>
    %86 = arith.addf %85, %33 : vector<32x32xf32>
    %cst_28 = arith.constant dense<0xFF800000> : vector<32xf32>
    %87 = vector.multi_reduction <maximumf>, %86, %cst_28 [1] : vector<32x32xf32> to vector<32xf32>
    %88 = vector.shape_cast %87 : vector<32xf32> to vector<32x1xf32>
    %89 = vector.broadcast %88 : vector<32x1xf32> to vector<32x32xf32>
    %90 = arith.subf %86, %89 : vector<32x32xf32>
    %91 = math.exp %90 : vector<32x32xf32>
    %cst_29 = arith.constant dense<0.000000e+00> : vector<32xf32>
    %92 = vector.multi_reduction <add>, %91, %cst_29 [1] : vector<32x32xf32> to vector<32xf32>
    %93 = vector.shape_cast %92 : vector<32xf32> to vector<32x1xf32>
    %94 = vector.broadcast %93 : vector<32x1xf32> to vector<32x32xf32>
    %95 = arith.divf %91, %94 : vector<32x32xf32>
    %96 = vector.extract_strided_slice %53 {offsets = [0, 8], sizes = [32, 8], strides = [1, 1]} : vector<32x32xf32> to vector<32x8xf32>
    %97 = arith.truncf %95 : vector<32x32xf32> to vector<32x32xbf16>
    %98 = arith.truncf %96 : vector<32x8xf32> to vector<32x8xbf16>
    %cst_30 = arith.constant dense<0.000000e+00> : vector<32x8xf32>
    %99 = tpu.matmul %97, %98, %cst_30 {dimension_numbers = #tpu.dot_dimension_numbers<[1], [0], [0], [1], [0, 0, 1, 1], [], []>} : vector<32x32xbf16>, vector<32x8xbf16>, vector<32x8xf32> -> vector<32x8xf32>
    %100 = vector.extract_strided_slice %54 {offsets = [8, 0], sizes = [8, 32], strides = [1, 1]} : vector<32x32xbf16> to vector<8x32xbf16>
    %101 = arith.truncf %99 : vector<32x8xf32> to vector<32x8xbf16>
    %cst_31 = arith.constant dense<0.000000e+00> : vector<32x32xf32>
    %102 = tpu.matmul %101, %100, %cst_31 {dimension_numbers = #tpu.dot_dimension_numbers<[1], [0], [0], [1], [0, 0, 1, 1], [], []>} : vector<32x8xbf16>, vector<8x32xbf16>, vector<32x32xf32> -> vector<32x32xf32>
    %103 = arith.addf %78, %102 : vector<32x32xf32>
    %104 = vector.extract_strided_slice %41 {offsets = [0, 16], sizes = [32, 8], strides = [1, 1]} : vector<32x32xf32> to vector<32x8xf32>
    %105 = vector.extract_strided_slice %47 {offsets = [0, 16], sizes = [32, 8], strides = [1, 1]} : vector<32x32xf32> to vector<32x8xf32>
    %106 = arith.truncf %104 : vector<32x8xf32> to vector<32x8xbf16>
    %107 = arith.truncf %105 : vector<32x8xf32> to vector<32x8xbf16>
    %cst_32 = arith.constant dense<0.000000e+00> : vector<32x32xf32>
    %108 = tpu.matmul %106, %107, %cst_32 {dimension_numbers = #tpu.dot_dimension_numbers<[1], [1], [0], [0], [0, 0, 1, 0], [], []>} : vector<32x8xbf16>, vector<32x8xbf16>, vector<32x32xf32> -> vector<32x32xf32>
    %cst_33 = arith.constant 0.353553385 : f32
    %109 = vector.broadcast %cst_33 : f32 to vector<32x32xf32>
    %110 = arith.mulf %108, %109 : vector<32x32xf32>
    %111 = arith.addf %110, %33 : vector<32x32xf32>
    %cst_34 = arith.constant dense<0xFF800000> : vector<32xf32>
    %112 = vector.multi_reduction <maximumf>, %111, %cst_34 [1] : vector<32x32xf32> to vector<32xf32>
    %113 = vector.shape_cast %112 : vector<32xf32> to vector<32x1xf32>
    %114 = vector.broadcast %113 : vector<32x1xf32> to vector<32x32xf32>
    %115 = arith.subf %111, %114 : vector<32x32xf32>
    %116 = math.exp %115 : vector<32x32xf32>
    %cst_35 = arith.constant dense<0.000000e+00> : vector<32xf32>
    %117 = vector.multi_reduction <add>, %116, %cst_35 [1] : vector<32x32xf32> to vector<32xf32>
    %118 = vector.shape_cast %117 : vector<32xf32> to vector<32x1xf32>
    %119 = vector.broadcast %118 : vector<32x1xf32> to vector<32x32xf32>
    %120 = arith.divf %116, %119 : vector<32x32xf32>
    %121 = vector.extract_strided_slice %53 {offsets = [0, 16], sizes = [32, 8], strides = [1, 1]} : vector<32x32xf32> to vector<32x8xf32>
    %122 = arith.truncf %120 : vector<32x32xf32> to vector<32x32xbf16>
    %123 = arith.truncf %121 : vector<32x8xf32> to vector<32x8xbf16>
    %cst_36 = arith.constant dense<0.000000e+00> : vector<32x8xf32>
    %124 = tpu.matmul %122, %123, %cst_36 {dimension_numbers = #tpu.dot_dimension_numbers<[1], [0], [0], [1], [0, 0, 1, 1], [], []>} : vector<32x32xbf16>, vector<32x8xbf16>, vector<32x8xf32> -> vector<32x8xf32>
    %125 = vector.extract_strided_slice %54 {offsets = [16, 0], sizes = [8, 32], strides = [1, 1]} : vector<32x32xbf16> to vector<8x32xbf16>
    %126 = arith.truncf %124 : vector<32x8xf32> to vector<32x8xbf16>
    %cst_37 = arith.constant dense<0.000000e+00> : vector<32x32xf32>
    %127 = tpu.matmul %126, %125, %cst_37 {dimension_numbers = #tpu.dot_dimension_numbers<[1], [0], [0], [1], [0, 0, 1, 1], [], []>} : vector<32x8xbf16>, vector<8x32xbf16>, vector<32x32xf32> -> vector<32x32xf32>
    %128 = arith.addf %103, %127 : vector<32x32xf32>
    %129 = vector.extract_strided_slice %41 {offsets = [0, 24], sizes = [32, 8], strides = [1, 1]} : vector<32x32xf32> to vector<32x8xf32>
    %130 = vector.extract_strided_slice %47 {offsets = [0, 24], sizes = [32, 8], strides = [1, 1]} : vector<32x32xf32> to vector<32x8xf32>
    %131 = arith.truncf %129 : vector<32x8xf32> to vector<32x8xbf16>
    %132 = arith.truncf %130 : vector<32x8xf32> to vector<32x8xbf16>
    %cst_38 = arith.constant dense<0.000000e+00> : vector<32x32xf32>
    %133 = tpu.matmul %131, %132, %cst_38 {dimension_numbers = #tpu.dot_dimension_numbers<[1], [1], [0], [0], [0, 0, 1, 0], [], []>} : vector<32x8xbf16>, vector<32x8xbf16>, vector<32x32xf32> -> vector<32x32xf32>
    %cst_39 = arith.constant 0.353553385 : f32
    %134 = vector.broadcast %cst_39 : f32 to vector<32x32xf32>
    %135 = arith.mulf %133, %134 : vector<32x32xf32>
    %136 = arith.addf %135, %33 : vector<32x32xf32>
    %cst_40 = arith.constant dense<0xFF800000> : vector<32xf32>
    %137 = vector.multi_reduction <maximumf>, %136, %cst_40 [1] : vector<32x32xf32> to vector<32xf32>
    %138 = vector.shape_cast %137 : vector<32xf32> to vector<32x1xf32>
    %139 = vector.broadcast %138 : vector<32x1xf32> to vector<32x32xf32>
    %140 = arith.subf %136, %139 : vector<32x32xf32>
    %141 = math.exp %140 : vector<32x32xf32>
    %cst_41 = arith.constant dense<0.000000e+00> : vector<32xf32>
    %142 = vector.multi_reduction <add>, %141, %cst_41 [1] : vector<32x32xf32> to vector<32xf32>
    %143 = vector.shape_cast %142 : vector<32xf32> to vector<32x1xf32>
    %144 = vector.broadcast %143 : vector<32x1xf32> to vector<32x32xf32>
    %145 = arith.divf %141, %144 : vector<32x32xf32>
    %146 = vector.extract_strided_slice %53 {offsets = [0, 24], sizes = [32, 8], strides = [1, 1]} : vector<32x32xf32> to vector<32x8xf32>
    %147 = arith.truncf %145 : vector<32x32xf32> to vector<32x32xbf16>
    %148 = arith.truncf %146 : vector<32x8xf32> to vector<32x8xbf16>
    %cst_42 = arith.constant dense<0.000000e+00> : vector<32x8xf32>
    %149 = tpu.matmul %147, %148, %cst_42 {dimension_numbers = #tpu.dot_dimension_numbers<[1], [0], [0], [1], [0, 0, 1, 1], [], []>} : vector<32x32xbf16>, vector<32x8xbf16>, vector<32x8xf32> -> vector<32x8xf32>
    %150 = vector.extract_strided_slice %54 {offsets = [24, 0], sizes = [8, 32], strides = [1, 1]} : vector<32x32xbf16> to vector<8x32xbf16>
    %151 = arith.truncf %149 : vector<32x8xf32> to vector<32x8xbf16>
    %cst_43 = arith.constant dense<0.000000e+00> : vector<32x32xf32>
    %152 = tpu.matmul %151, %150, %cst_43 {dimension_numbers = #tpu.dot_dimension_numbers<[1], [0], [0], [1], [0, 0, 1, 1], [], []>} : vector<32x8xbf16>, vector<8x32xbf16>, vector<32x32xf32> -> vector<32x32xf32>
    %153 = arith.addf %128, %152 : vector<32x32xf32>
    %c112 = arith.constant 112 : index
    %c0_44 = arith.constant 0 : index
    %154 = vector.load %arg4[%c112, %c0_44] : memref<768x128xf32, #tpu.memory_space<vmem>>, vector<1x32xf32>
    %155 = vector.broadcast %154 : vector<1x32xf32> to vector<32x32xf32>
    %156 = arith.addf %153, %155 : vector<32x32xf32>
    %157 = arith.addf %8, %156 : vector<32x32xf32>
    %cst_45 = arith.constant dense<0.000000e+00> : vector<32xf32>
    %158 = vector.multi_reduction <add>, %157, %cst_45 [1] : vector<32x32xf32> to vector<32xf32>
    %159 = vector.shape_cast %158 : vector<32xf32> to vector<32x1xf32>
    %cst_46 = arith.constant 3.200000e+01 : f32
    %160 = vector.broadcast %cst_46 : f32 to vector<32x1xf32>
    %161 = arith.divf %159, %160 : vector<32x1xf32>
    %162 = vector.broadcast %161 : vector<32x1xf32> to vector<32x32xf32>
    %163 = arith.subf %157, %162 : vector<32x32xf32>
    %164 = arith.mulf %163, %163 : vector<32x32xf32>
    %cst_47 = arith.constant dense<0.000000e+00> : vector<32xf32>
    %165 = vector.multi_reduction <add>, %164, %cst_47 [1] : vector<32x32xf32> to vector<32xf32>
    %166 = vector.shape_cast %165 : vector<32xf32> to vector<32x1xf32>
    %cst_48 = arith.constant 3.200000e+01 : f32
    %167 = vector.broadcast %cst_48 : f32 to vector<32x1xf32>
    %168 = arith.divf %166, %167 : vector<32x1xf32>
    %169 = vector.broadcast %161 : vector<32x1xf32> to vector<32x32xf32>
    %170 = arith.subf %157, %169 : vector<32x32xf32>
    %cst_49 = arith.constant 9.99999974E-6 : f32
    %171 = vector.broadcast %cst_49 : f32 to vector<32x1xf32>
    %172 = arith.addf %168, %171 : vector<32x1xf32>
    %173 = math.rsqrt %172 : vector<32x1xf32>
    %174 = vector.broadcast %173 : vector<32x1xf32> to vector<32x32xf32>
    %175 = arith.mulf %170, %174 : vector<32x32xf32>
    %c56 = arith.constant 56 : index
    %c0_50 = arith.constant 0 : index
    %176 = vector.load %arg4[%c56, %c0_50] : memref<768x128xf32, #tpu.memory_space<vmem>>, vector<1x32xf32>
    %177 = vector.broadcast %176 : vector<1x32xf32> to vector<32x32xf32>
    %178 = arith.mulf %175, %177 : vector<32x32xf32>
    %c64 = arith.constant 64 : index
    %c0_51 = arith.constant 0 : index
    %179 = vector.load %arg4[%c64, %c0_51] : memref<768x128xf32, #tpu.memory_space<vmem>>, vector<1x32xf32>
    %180 = vector.broadcast %179 : vector<1x32xf32> to vector<32x32xf32>
    %181 = arith.addf %178, %180 : vector<32x32xf32>
    %c192 = arith.constant 192 : index
    %c0_52 = arith.constant 0 : index
    %182 = vector.load %arg3[%c192, %c0_52] : memref<896x128xbf16, #tpu.memory_space<vmem>>, vector<32x64xbf16>
    %183 = arith.truncf %181 : vector<32x32xf32> to vector<32x32xbf16>
    %cst_53 = arith.constant dense<0.000000e+00> : vector<32x64xf32>
    %184 = tpu.matmul %183, %182, %cst_53 {dimension_numbers = #tpu.dot_dimension_numbers<[1], [0], [0], [1], [0, 0, 1, 1], [], []>} : vector<32x32xbf16>, vector<32x64xbf16>, vector<32x64xf32> -> vector<32x64xf32>
    %c88 = arith.constant 88 : index
    %c0_54 = arith.constant 0 : index
    %185 = vector.load %arg4[%c88, %c0_54] : memref<768x128xf32, #tpu.memory_space<vmem>>, vector<1x64xf32>
    %186 = vector.broadcast %185 : vector<1x64xf32> to vector<32x64xf32>
    %187 = arith.addf %184, %186 : vector<32x64xf32>
    %188 = arith.mulf %187, %187 : vector<32x64xf32>
    %189 = arith.mulf %187, %188 : vector<32x64xf32>
    %cst_55 = arith.constant 4.471500e-02 : f32
    %190 = vector.broadcast %cst_55 : f32 to vector<32x64xf32>
    %191 = arith.mulf %190, %189 : vector<32x64xf32>
    %192 = arith.addf %187, %191 : vector<32x64xf32>
    %cst_56 = arith.constant 0.797884583 : f32
    %193 = vector.broadcast %cst_56 : f32 to vector<32x64xf32>
    %194 = arith.mulf %193, %192 : vector<32x64xf32>
    %195 = math.tanh %194 : vector<32x64xf32>
    %cst_57 = arith.constant 1.000000e+00 : f32
    %196 = vector.broadcast %cst_57 : f32 to vector<32x64xf32>
    %197 = arith.addf %196, %195 : vector<32x64xf32>
    %cst_58 = arith.constant 5.000000e-01 : f32
    %198 = vector.broadcast %cst_58 : f32 to vector<32x64xf32>
    %199 = arith.mulf %198, %197 : vector<32x64xf32>
    %200 = arith.mulf %187, %199 : vector<32x64xf32>
    %c224 = arith.constant 224 : index
    %c0_59 = arith.constant 0 : index
    %201 = vector.load %arg3[%c224, %c0_59] : memref<896x128xbf16, #tpu.memory_space<vmem>>, vector<64x32xbf16>
    %202 = arith.truncf %200 : vector<32x64xf32> to vector<32x64xbf16>
    %cst_60 = arith.constant dense<0.000000e+00> : vector<32x32xf32>
    %203 = tpu.matmul %202, %201, %cst_60 {dimension_numbers = #tpu.dot_dimension_numbers<[1], [0], [0], [1], [0, 0, 1, 1], [], []>} : vector<32x64xbf16>, vector<64x32xbf16>, vector<32x32xf32> -> vector<32x32xf32>
    %204 = arith.addf %157, %203 : vector<32x32xf32>
    %c96 = arith.constant 96 : index
    %c0_61 = arith.constant 0 : index
    %205 = vector.load %arg4[%c96, %c0_61] : memref<768x128xf32, #tpu.memory_space<vmem>>, vector<1x32xf32>
    %206 = vector.broadcast %205 : vector<1x32xf32> to vector<32x32xf32>
    %207 = arith.addf %204, %206 : vector<32x32xf32>
    %cst_62 = arith.constant dense<0.000000e+00> : vector<32xf32>
    %208 = vector.multi_reduction <add>, %207, %cst_62 [1] : vector<32x32xf32> to vector<32xf32>
    %209 = vector.shape_cast %208 : vector<32xf32> to vector<32x1xf32>
    %cst_63 = arith.constant 3.200000e+01 : f32
    %210 = vector.broadcast %cst_63 : f32 to vector<32x1xf32>
    %211 = arith.divf %209, %210 : vector<32x1xf32>
    %212 = vector.broadcast %211 : vector<32x1xf32> to vector<32x32xf32>
    %213 = arith.subf %207, %212 : vector<32x32xf32>
    %214 = arith.mulf %213, %213 : vector<32x32xf32>
    %cst_64 = arith.constant dense<0.000000e+00> : vector<32xf32>
    %215 = vector.multi_reduction <add>, %214, %cst_64 [1] : vector<32x32xf32> to vector<32xf32>
    %216 = vector.shape_cast %215 : vector<32xf32> to vector<32x1xf32>
    %cst_65 = arith.constant 3.200000e+01 : f32
    %217 = vector.broadcast %cst_65 : f32 to vector<32x1xf32>
    %218 = arith.divf %216, %217 : vector<32x1xf32>
    %219 = vector.broadcast %211 : vector<32x1xf32> to vector<32x32xf32>
    %220 = arith.subf %207, %219 : vector<32x32xf32>
    %cst_66 = arith.constant 9.99999974E-6 : f32
    %221 = vector.broadcast %cst_66 : f32 to vector<32x1xf32>
    %222 = arith.addf %218, %221 : vector<32x1xf32>
    %223 = math.rsqrt %222 : vector<32x1xf32>
    %224 = vector.broadcast %223 : vector<32x1xf32> to vector<32x32xf32>
    %225 = arith.mulf %220, %224 : vector<32x32xf32>
    %c72 = arith.constant 72 : index
    %c0_67 = arith.constant 0 : index
    %226 = vector.load %arg4[%c72, %c0_67] : memref<768x128xf32, #tpu.memory_space<vmem>>, vector<1x32xf32>
    %227 = vector.broadcast %226 : vector<1x32xf32> to vector<32x32xf32>
    %228 = arith.mulf %225, %227 : vector<32x32xf32>
    %c80 = arith.constant 80 : index
    %c0_68 = arith.constant 0 : index
    %229 = vector.load %arg4[%c80, %c0_68] : memref<768x128xf32, #tpu.memory_space<vmem>>, vector<1x32xf32>
    %230 = vector.broadcast %229 : vector<1x32xf32> to vector<32x32xf32>
    %231 = arith.addf %228, %230 : vector<32x32xf32>
    %c0_69 = arith.constant 0 : index
    %c0_70 = arith.constant 0 : index
    %232 = vector.load %arg2[%c0_69, %c0_70] : memref<4x2xf32, #tpu.memory_space<vmem>>, vector<4x2xf32>
    %cst_71 = arith.constant 2.000000e+00 : f32
    %233 = vector.broadcast %cst_71 : f32 to vector<4x2xf32>
    %234 = arith.mulf %232, %233 : vector<4x2xf32>
    %cst_72 = arith.constant 1.000000e+00 : f32
    %235 = vector.broadcast %cst_72 : f32 to vector<4x2xf32>
    %236 = arith.subf %234, %235 : vector<4x2xf32>
    %c280 = arith.constant 280 : index
    %c0_73 = arith.constant 0 : index
    %237 = vector.load %arg4[%c280, %c0_73] : memref<768x128xf32, #tpu.memory_space<vmem>>, vector<2x32xf32>
    %cst_74 = arith.constant dense<0.000000e+00> : vector<4x32xf32>
    %238 = tpu.matmul %236, %237, %cst_74 {dimension_numbers = #tpu.dot_dimension_numbers<[1], [0], [0], [1], [0, 0, 1, 1], [], []>} : vector<4x2xf32>, vector<2x32xf32>, vector<4x32xf32> -> vector<4x32xf32>
    %cst_75 = arith.constant 6.28318548 : f32
    %239 = vector.broadcast %cst_75 : f32 to vector<4x32xf32>
    %240 = arith.mulf %238, %239 : vector<4x32xf32>
    %c288_76 = arith.constant 288 : index
    %c0_77 = arith.constant 0 : index
    %241 = vector.load %arg4[%c288_76, %c0_77] : memref<768x128xf32, #tpu.memory_space<vmem>>, vector<1x32xf32>
    %242 = vector.broadcast %241 : vector<1x32xf32> to vector<4x32xf32>
    %243 = arith.addf %240, %242 : vector<4x32xf32>
    %244 = math.sin %243 : vector<4x32xf32>
    %c296 = arith.constant 296 : index
    %c0_78 = arith.constant 0 : index
    %245 = vector.load %arg4[%c296, %c0_78] : memref<768x128xf32, #tpu.memory_space<vmem>>, vector<4x32xf32>
    %246 = arith.addf %244, %245 : vector<4x32xf32>
    %c312 = arith.constant 312 : index
    %c0_79 = arith.constant 0 : index
    %247 = vector.load %arg4[%c312, %c0_79] : memref<768x128xf32, #tpu.memory_space<vmem>>, vector<32x32xf32>
    %c304 = arith.constant 304 : index
    %c0_80 = arith.constant 0 : index
    %248 = vector.load %arg4[%c304, %c0_80] : memref<768x128xf32, #tpu.memory_space<vmem>>, vector<1x32xf32>
    %249 = vector.broadcast %248 : vector<1x32xf32> to vector<32x32xf32>
    %250 = arith.addf %231, %249 : vector<32x32xf32>
    %c344 = arith.constant 344 : index
    %c0_81 = arith.constant 0 : index
    %251 = vector.load %arg4[%c344, %c0_81] : memref<768x128xf32, #tpu.memory_space<vmem>>, vector<14x32xf32>
    %c360 = arith.constant 360 : index
    %c0_82 = arith.constant 0 : index
    %252 = vector.load %arg4[%c360, %c0_82] : memref<768x128xf32, #tpu.memory_space<vmem>>, vector<14x4xf32>
    %cst_83 = arith.constant dense<0.000000e+00> : vector<14x32xf32>
    %253 = tpu.matmul %252, %246, %cst_83 {dimension_numbers = #tpu.dot_dimension_numbers<[1], [0], [0], [1], [0, 0, 1, 1], [], []>} : vector<14x4xf32>, vector<4x32xf32>, vector<14x32xf32> -> vector<14x32xf32>
    %254 = arith.addf %251, %253 : vector<14x32xf32>
    %c408 = arith.constant 408 : index
    %c0_84 = arith.constant 0 : index
    %255 = vector.load %arg4[%c408, %c0_84] : memref<768x128xf32, #tpu.memory_space<vmem>>, vector<14x14xf32>
    %c352 = arith.constant 352 : index
    %c0_85 = arith.constant 0 : index
    %256 = vector.load %arg3[%c352, %c0_85] : memref<896x128xbf16, #tpu.memory_space<vmem>>, vector<32x96xbf16>
    %c120 = arith.constant 120 : index
    %c0_86 = arith.constant 0 : index
    %257 = vector.load %arg4[%c120, %c0_86] : memref<768x128xf32, #tpu.memory_space<vmem>>, vector<1x96xf32>
    %258 = vector.extract_strided_slice %256 {offsets = [0, 0], sizes = [32, 32], strides = [1, 1]} : vector<32x96xbf16> to vector<32x32xbf16>
    %259 = arith.truncf %254 : vector<14x32xf32> to vector<14x32xbf16>
    %cst_87 = arith.constant dense<0.000000e+00> : vector<14x32xf32>
    %260 = tpu.matmul %259, %258, %cst_87 {dimension_numbers = #tpu.dot_dimension_numbers<[1], [0], [0], [1], [0, 0, 1, 1], [], []>} : vector<14x32xbf16>, vector<32x32xbf16>, vector<14x32xf32> -> vector<14x32xf32>
    %261 = vector.extract_strided_slice %257 {offsets = [0, 0], sizes = [1, 32], strides = [1, 1]} : vector<1x96xf32> to vector<1x32xf32>
    %262 = vector.broadcast %261 : vector<1x32xf32> to vector<14x32xf32>
    %263 = arith.addf %260, %262 : vector<14x32xf32>
    %264 = vector.extract_strided_slice %256 {offsets = [0, 32], sizes = [32, 32], strides = [1, 1]} : vector<32x96xbf16> to vector<32x32xbf16>
    %265 = arith.truncf %254 : vector<14x32xf32> to vector<14x32xbf16>
    %cst_88 = arith.constant dense<0.000000e+00> : vector<14x32xf32>
    %266 = tpu.matmul %265, %264, %cst_88 {dimension_numbers = #tpu.dot_dimension_numbers<[1], [0], [0], [1], [0, 0, 1, 1], [], []>} : vector<14x32xbf16>, vector<32x32xbf16>, vector<14x32xf32> -> vector<14x32xf32>
    %267 = vector.extract_strided_slice %257 {offsets = [0, 32], sizes = [1, 32], strides = [1, 1]} : vector<1x96xf32> to vector<1x32xf32>
    %268 = vector.broadcast %267 : vector<1x32xf32> to vector<14x32xf32>
    %269 = arith.addf %266, %268 : vector<14x32xf32>
    %270 = vector.extract_strided_slice %256 {offsets = [0, 64], sizes = [32, 32], strides = [1, 1]} : vector<32x96xbf16> to vector<32x32xbf16>
    %271 = arith.truncf %254 : vector<14x32xf32> to vector<14x32xbf16>
    %cst_89 = arith.constant dense<0.000000e+00> : vector<14x32xf32>
    %272 = tpu.matmul %271, %270, %cst_89 {dimension_numbers = #tpu.dot_dimension_numbers<[1], [0], [0], [1], [0, 0, 1, 1], [], []>} : vector<14x32xbf16>, vector<32x32xbf16>, vector<14x32xf32> -> vector<14x32xf32>
    %273 = vector.extract_strided_slice %257 {offsets = [0, 64], sizes = [1, 32], strides = [1, 1]} : vector<1x96xf32> to vector<1x32xf32>
    %274 = vector.broadcast %273 : vector<1x32xf32> to vector<14x32xf32>
    %275 = arith.addf %272, %274 : vector<14x32xf32>
    %c384 = arith.constant 384 : index
    %c0_90 = arith.constant 0 : index
    %276 = vector.load %arg3[%c384, %c0_90] : memref<896x128xbf16, #tpu.memory_space<vmem>>, vector<32x32xbf16>
    %277 = vector.extract_strided_slice %263 {offsets = [0, 0], sizes = [14, 8], strides = [1, 1]} : vector<14x32xf32> to vector<14x8xf32>
    %278 = vector.extract_strided_slice %269 {offsets = [0, 0], sizes = [14, 8], strides = [1, 1]} : vector<14x32xf32> to vector<14x8xf32>
    %279 = arith.truncf %277 : vector<14x8xf32> to vector<14x8xbf16>
    %280 = arith.truncf %278 : vector<14x8xf32> to vector<14x8xbf16>
    %cst_91 = arith.constant dense<0.000000e+00> : vector<14x14xf32>
    %281 = tpu.matmul %279, %280, %cst_91 {dimension_numbers = #tpu.dot_dimension_numbers<[1], [1], [0], [0], [0, 0, 1, 0], [], []>} : vector<14x8xbf16>, vector<14x8xbf16>, vector<14x14xf32> -> vector<14x14xf32>
    %cst_92 = arith.constant 0.353553385 : f32
    %282 = vector.broadcast %cst_92 : f32 to vector<14x14xf32>
    %283 = arith.mulf %281, %282 : vector<14x14xf32>
    %284 = arith.addf %283, %255 : vector<14x14xf32>
    %cst_93 = arith.constant dense<0xFF800000> : vector<14xf32>
    %285 = vector.multi_reduction <maximumf>, %284, %cst_93 [1] : vector<14x14xf32> to vector<14xf32>
    %286 = vector.shape_cast %285 : vector<14xf32> to vector<14x1xf32>
    %287 = vector.broadcast %286 : vector<14x1xf32> to vector<14x14xf32>
    %288 = arith.subf %284, %287 : vector<14x14xf32>
    %289 = math.exp %288 : vector<14x14xf32>
    %cst_94 = arith.constant dense<0.000000e+00> : vector<14xf32>
    %290 = vector.multi_reduction <add>, %289, %cst_94 [1] : vector<14x14xf32> to vector<14xf32>
    %291 = vector.shape_cast %290 : vector<14xf32> to vector<14x1xf32>
    %292 = vector.broadcast %291 : vector<14x1xf32> to vector<14x14xf32>
    %293 = arith.divf %289, %292 : vector<14x14xf32>
    %294 = vector.extract_strided_slice %275 {offsets = [0, 0], sizes = [14, 8], strides = [1, 1]} : vector<14x32xf32> to vector<14x8xf32>
    %295 = arith.truncf %293 : vector<14x14xf32> to vector<14x14xbf16>
    %296 = arith.truncf %294 : vector<14x8xf32> to vector<14x8xbf16>
    %cst_95 = arith.constant dense<0.000000e+00> : vector<14x8xf32>
    %297 = tpu.matmul %295, %296, %cst_95 {dimension_numbers = #tpu.dot_dimension_numbers<[1], [0], [0], [1], [0, 0, 1, 1], [], []>} : vector<14x14xbf16>, vector<14x8xbf16>, vector<14x8xf32> -> vector<14x8xf32>
    %298 = vector.extract_strided_slice %276 {offsets = [0, 0], sizes = [8, 32], strides = [1, 1]} : vector<32x32xbf16> to vector<8x32xbf16>
    %299 = arith.truncf %297 : vector<14x8xf32> to vector<14x8xbf16>
    %cst_96 = arith.constant dense<0.000000e+00> : vector<14x32xf32>
    %300 = tpu.matmul %299, %298, %cst_96 {dimension_numbers = #tpu.dot_dimension_numbers<[1], [0], [0], [1], [0, 0, 1, 1], [], []>} : vector<14x8xbf16>, vector<8x32xbf16>, vector<14x32xf32> -> vector<14x32xf32>
    %301 = vector.extract_strided_slice %263 {offsets = [0, 8], sizes = [14, 8], strides = [1, 1]} : vector<14x32xf32> to vector<14x8xf32>
    %302 = vector.extract_strided_slice %269 {offsets = [0, 8], sizes = [14, 8], strides = [1, 1]} : vector<14x32xf32> to vector<14x8xf32>
    %303 = arith.truncf %301 : vector<14x8xf32> to vector<14x8xbf16>
    %304 = arith.truncf %302 : vector<14x8xf32> to vector<14x8xbf16>
    %cst_97 = arith.constant dense<0.000000e+00> : vector<14x14xf32>
    %305 = tpu.matmul %303, %304, %cst_97 {dimension_numbers = #tpu.dot_dimension_numbers<[1], [1], [0], [0], [0, 0, 1, 0], [], []>} : vector<14x8xbf16>, vector<14x8xbf16>, vector<14x14xf32> -> vector<14x14xf32>
    %cst_98 = arith.constant 0.353553385 : f32
    %306 = vector.broadcast %cst_98 : f32 to vector<14x14xf32>
    %307 = arith.mulf %305, %306 : vector<14x14xf32>
    %308 = arith.addf %307, %255 : vector<14x14xf32>
    %cst_99 = arith.constant dense<0xFF800000> : vector<14xf32>
    %309 = vector.multi_reduction <maximumf>, %308, %cst_99 [1] : vector<14x14xf32> to vector<14xf32>
    %310 = vector.shape_cast %309 : vector<14xf32> to vector<14x1xf32>
    %311 = vector.broadcast %310 : vector<14x1xf32> to vector<14x14xf32>
    %312 = arith.subf %308, %311 : vector<14x14xf32>
    %313 = math.exp %312 : vector<14x14xf32>
    %cst_100 = arith.constant dense<0.000000e+00> : vector<14xf32>
    %314 = vector.multi_reduction <add>, %313, %cst_100 [1] : vector<14x14xf32> to vector<14xf32>
    %315 = vector.shape_cast %314 : vector<14xf32> to vector<14x1xf32>
    %316 = vector.broadcast %315 : vector<14x1xf32> to vector<14x14xf32>
    %317 = arith.divf %313, %316 : vector<14x14xf32>
    %318 = vector.extract_strided_slice %275 {offsets = [0, 8], sizes = [14, 8], strides = [1, 1]} : vector<14x32xf32> to vector<14x8xf32>
    %319 = arith.truncf %317 : vector<14x14xf32> to vector<14x14xbf16>
    %320 = arith.truncf %318 : vector<14x8xf32> to vector<14x8xbf16>
    %cst_101 = arith.constant dense<0.000000e+00> : vector<14x8xf32>
    %321 = tpu.matmul %319, %320, %cst_101 {dimension_numbers = #tpu.dot_dimension_numbers<[1], [0], [0], [1], [0, 0, 1, 1], [], []>} : vector<14x14xbf16>, vector<14x8xbf16>, vector<14x8xf32> -> vector<14x8xf32>
    %322 = vector.extract_strided_slice %276 {offsets = [8, 0], sizes = [8, 32], strides = [1, 1]} : vector<32x32xbf16> to vector<8x32xbf16>
    %323 = arith.truncf %321 : vector<14x8xf32> to vector<14x8xbf16>
    %cst_102 = arith.constant dense<0.000000e+00> : vector<14x32xf32>
    %324 = tpu.matmul %323, %322, %cst_102 {dimension_numbers = #tpu.dot_dimension_numbers<[1], [0], [0], [1], [0, 0, 1, 1], [], []>} : vector<14x8xbf16>, vector<8x32xbf16>, vector<14x32xf32> -> vector<14x32xf32>
    %325 = arith.addf %300, %324 : vector<14x32xf32>
    %326 = vector.extract_strided_slice %263 {offsets = [0, 16], sizes = [14, 8], strides = [1, 1]} : vector<14x32xf32> to vector<14x8xf32>
    %327 = vector.extract_strided_slice %269 {offsets = [0, 16], sizes = [14, 8], strides = [1, 1]} : vector<14x32xf32> to vector<14x8xf32>
    %328 = arith.truncf %326 : vector<14x8xf32> to vector<14x8xbf16>
    %329 = arith.truncf %327 : vector<14x8xf32> to vector<14x8xbf16>
    %cst_103 = arith.constant dense<0.000000e+00> : vector<14x14xf32>
    %330 = tpu.matmul %328, %329, %cst_103 {dimension_numbers = #tpu.dot_dimension_numbers<[1], [1], [0], [0], [0, 0, 1, 0], [], []>} : vector<14x8xbf16>, vector<14x8xbf16>, vector<14x14xf32> -> vector<14x14xf32>
    %cst_104 = arith.constant 0.353553385 : f32
    %331 = vector.broadcast %cst_104 : f32 to vector<14x14xf32>
    %332 = arith.mulf %330, %331 : vector<14x14xf32>
    %333 = arith.addf %332, %255 : vector<14x14xf32>
    %cst_105 = arith.constant dense<0xFF800000> : vector<14xf32>
    %334 = vector.multi_reduction <maximumf>, %333, %cst_105 [1] : vector<14x14xf32> to vector<14xf32>
    %335 = vector.shape_cast %334 : vector<14xf32> to vector<14x1xf32>
    %336 = vector.broadcast %335 : vector<14x1xf32> to vector<14x14xf32>
    %337 = arith.subf %333, %336 : vector<14x14xf32>
    %338 = math.exp %337 : vector<14x14xf32>
    %cst_106 = arith.constant dense<0.000000e+00> : vector<14xf32>
    %339 = vector.multi_reduction <add>, %338, %cst_106 [1] : vector<14x14xf32> to vector<14xf32>
    %340 = vector.shape_cast %339 : vector<14xf32> to vector<14x1xf32>
    %341 = vector.broadcast %340 : vector<14x1xf32> to vector<14x14xf32>
    %342 = arith.divf %338, %341 : vector<14x14xf32>
    %343 = vector.extract_strided_slice %275 {offsets = [0, 16], sizes = [14, 8], strides = [1, 1]} : vector<14x32xf32> to vector<14x8xf32>
    %344 = arith.truncf %342 : vector<14x14xf32> to vector<14x14xbf16>
    %345 = arith.truncf %343 : vector<14x8xf32> to vector<14x8xbf16>
    %cst_107 = arith.constant dense<0.000000e+00> : vector<14x8xf32>
    %346 = tpu.matmul %344, %345, %cst_107 {dimension_numbers = #tpu.dot_dimension_numbers<[1], [0], [0], [1], [0, 0, 1, 1], [], []>} : vector<14x14xbf16>, vector<14x8xbf16>, vector<14x8xf32> -> vector<14x8xf32>
    %347 = vector.extract_strided_slice %276 {offsets = [16, 0], sizes = [8, 32], strides = [1, 1]} : vector<32x32xbf16> to vector<8x32xbf16>
    %348 = arith.truncf %346 : vector<14x8xf32> to vector<14x8xbf16>
    %cst_108 = arith.constant dense<0.000000e+00> : vector<14x32xf32>
    %349 = tpu.matmul %348, %347, %cst_108 {dimension_numbers = #tpu.dot_dimension_numbers<[1], [0], [0], [1], [0, 0, 1, 1], [], []>} : vector<14x8xbf16>, vector<8x32xbf16>, vector<14x32xf32> -> vector<14x32xf32>
    %350 = arith.addf %325, %349 : vector<14x32xf32>
    %351 = vector.extract_strided_slice %263 {offsets = [0, 24], sizes = [14, 8], strides = [1, 1]} : vector<14x32xf32> to vector<14x8xf32>
    %352 = vector.extract_strided_slice %269 {offsets = [0, 24], sizes = [14, 8], strides = [1, 1]} : vector<14x32xf32> to vector<14x8xf32>
    %353 = arith.truncf %351 : vector<14x8xf32> to vector<14x8xbf16>
    %354 = arith.truncf %352 : vector<14x8xf32> to vector<14x8xbf16>
    %cst_109 = arith.constant dense<0.000000e+00> : vector<14x14xf32>
    %355 = tpu.matmul %353, %354, %cst_109 {dimension_numbers = #tpu.dot_dimension_numbers<[1], [1], [0], [0], [0, 0, 1, 0], [], []>} : vector<14x8xbf16>, vector<14x8xbf16>, vector<14x14xf32> -> vector<14x14xf32>
    %cst_110 = arith.constant 0.353553385 : f32
    %356 = vector.broadcast %cst_110 : f32 to vector<14x14xf32>
    %357 = arith.mulf %355, %356 : vector<14x14xf32>
    %358 = arith.addf %357, %255 : vector<14x14xf32>
    %cst_111 = arith.constant dense<0xFF800000> : vector<14xf32>
    %359 = vector.multi_reduction <maximumf>, %358, %cst_111 [1] : vector<14x14xf32> to vector<14xf32>
    %360 = vector.shape_cast %359 : vector<14xf32> to vector<14x1xf32>
    %361 = vector.broadcast %360 : vector<14x1xf32> to vector<14x14xf32>
    %362 = arith.subf %358, %361 : vector<14x14xf32>
    %363 = math.exp %362 : vector<14x14xf32>
    %cst_112 = arith.constant dense<0.000000e+00> : vector<14xf32>
    %364 = vector.multi_reduction <add>, %363, %cst_112 [1] : vector<14x14xf32> to vector<14xf32>
    %365 = vector.shape_cast %364 : vector<14xf32> to vector<14x1xf32>
    %366 = vector.broadcast %365 : vector<14x1xf32> to vector<14x14xf32>
    %367 = arith.divf %363, %366 : vector<14x14xf32>
    %368 = vector.extract_strided_slice %275 {offsets = [0, 24], sizes = [14, 8], strides = [1, 1]} : vector<14x32xf32> to vector<14x8xf32>
    %369 = arith.truncf %367 : vector<14x14xf32> to vector<14x14xbf16>
    %370 = arith.truncf %368 : vector<14x8xf32> to vector<14x8xbf16>
    %cst_113 = arith.constant dense<0.000000e+00> : vector<14x8xf32>
    %371 = tpu.matmul %369, %370, %cst_113 {dimension_numbers = #tpu.dot_dimension_numbers<[1], [0], [0], [1], [0, 0, 1, 1], [], []>} : vector<14x14xbf16>, vector<14x8xbf16>, vector<14x8xf32> -> vector<14x8xf32>
    %372 = vector.extract_strided_slice %276 {offsets = [24, 0], sizes = [8, 32], strides = [1, 1]} : vector<32x32xbf16> to vector<8x32xbf16>
    %373 = arith.truncf %371 : vector<14x8xf32> to vector<14x8xbf16>
    %cst_114 = arith.constant dense<0.000000e+00> : vector<14x32xf32>
    %374 = tpu.matmul %373, %372, %cst_114 {dimension_numbers = #tpu.dot_dimension_numbers<[1], [0], [0], [1], [0, 0, 1, 1], [], []>} : vector<14x8xbf16>, vector<8x32xbf16>, vector<14x32xf32> -> vector<14x32xf32>
    %375 = arith.addf %350, %374 : vector<14x32xf32>
    %c128 = arith.constant 128 : index
    %c0_115 = arith.constant 0 : index
    %376 = vector.load %arg4[%c128, %c0_115] : memref<768x128xf32, #tpu.memory_space<vmem>>, vector<1x32xf32>
    %377 = vector.broadcast %376 : vector<1x32xf32> to vector<14x32xf32>
    %378 = arith.addf %375, %377 : vector<14x32xf32>
    %cst_116 = arith.constant dense<0.000000e+00> : vector<14xf32>
    %379 = vector.multi_reduction <add>, %378, %cst_116 [1] : vector<14x32xf32> to vector<14xf32>
    %380 = vector.shape_cast %379 : vector<14xf32> to vector<14x1xf32>
    %cst_117 = arith.constant 3.200000e+01 : f32
    %381 = vector.broadcast %cst_117 : f32 to vector<14x1xf32>
    %382 = arith.divf %380, %381 : vector<14x1xf32>
    %383 = vector.broadcast %382 : vector<14x1xf32> to vector<14x32xf32>
    %384 = arith.subf %378, %383 : vector<14x32xf32>
    %385 = arith.mulf %384, %384 : vector<14x32xf32>
    %cst_118 = arith.constant dense<0.000000e+00> : vector<14xf32>
    %386 = vector.multi_reduction <add>, %385, %cst_118 [1] : vector<14x32xf32> to vector<14xf32>
    %387 = vector.shape_cast %386 : vector<14xf32> to vector<14x1xf32>
    %cst_119 = arith.constant 3.200000e+01 : f32
    %388 = vector.broadcast %cst_119 : f32 to vector<14x1xf32>
    %389 = arith.divf %387, %388 : vector<14x1xf32>
    %390 = vector.broadcast %382 : vector<14x1xf32> to vector<14x32xf32>
    %391 = arith.subf %378, %390 : vector<14x32xf32>
    %cst_120 = arith.constant 9.99999974E-6 : f32
    %392 = vector.broadcast %cst_120 : f32 to vector<14x1xf32>
    %393 = arith.addf %389, %392 : vector<14x1xf32>
    %394 = math.rsqrt %393 : vector<14x1xf32>
    %395 = vector.broadcast %394 : vector<14x1xf32> to vector<14x32xf32>
    %396 = arith.mulf %391, %395 : vector<14x32xf32>
    %c184 = arith.constant 184 : index
    %c0_121 = arith.constant 0 : index
    %397 = vector.load %arg4[%c184, %c0_121] : memref<768x128xf32, #tpu.memory_space<vmem>>, vector<1x32xf32>
    %398 = vector.broadcast %397 : vector<1x32xf32> to vector<14x32xf32>
    %399 = arith.mulf %396, %398 : vector<14x32xf32>
    %c192_122 = arith.constant 192 : index
    %c0_123 = arith.constant 0 : index
    %400 = vector.load %arg4[%c192_122, %c0_123] : memref<768x128xf32, #tpu.memory_space<vmem>>, vector<1x32xf32>
    %401 = vector.broadcast %400 : vector<1x32xf32> to vector<14x32xf32>
    %402 = arith.addf %399, %401 : vector<14x32xf32>
    %403 = arith.addf %402, %254 : vector<14x32xf32>
    %404 = arith.addf %250, %247 : vector<32x32xf32>
    %c424 = arith.constant 424 : index
    %c0_124 = arith.constant 0 : index
    %405 = vector.load %arg4[%c424, %c0_124] : memref<768x128xf32, #tpu.memory_space<vmem>>, vector<14x32xf32>
    %c416 = arith.constant 416 : index
    %c0_125 = arith.constant 0 : index
    %406 = vector.load %arg3[%c416, %c0_125] : memref<896x128xbf16, #tpu.memory_space<vmem>>, vector<32x96xbf16>
    %c136 = arith.constant 136 : index
    %c0_126 = arith.constant 0 : index
    %407 = vector.load %arg4[%c136, %c0_126] : memref<768x128xf32, #tpu.memory_space<vmem>>, vector<1x96xf32>
    %408 = vector.extract_strided_slice %406 {offsets = [0, 0], sizes = [32, 32], strides = [1, 1]} : vector<32x96xbf16> to vector<32x32xbf16>
    %409 = arith.truncf %403 : vector<14x32xf32> to vector<14x32xbf16>
    %cst_127 = arith.constant dense<0.000000e+00> : vector<14x32xf32>
    %410 = tpu.matmul %409, %408, %cst_127 {dimension_numbers = #tpu.dot_dimension_numbers<[1], [0], [0], [1], [0, 0, 1, 1], [], []>} : vector<14x32xbf16>, vector<32x32xbf16>, vector<14x32xf32> -> vector<14x32xf32>
    %411 = vector.extract_strided_slice %407 {offsets = [0, 0], sizes = [1, 32], strides = [1, 1]} : vector<1x96xf32> to vector<1x32xf32>
    %412 = vector.broadcast %411 : vector<1x32xf32> to vector<14x32xf32>
    %413 = arith.addf %410, %412 : vector<14x32xf32>
    %414 = vector.extract_strided_slice %406 {offsets = [0, 32], sizes = [32, 32], strides = [1, 1]} : vector<32x96xbf16> to vector<32x32xbf16>
    %415 = arith.truncf %404 : vector<32x32xf32> to vector<32x32xbf16>
    %cst_128 = arith.constant dense<0.000000e+00> : vector<32x32xf32>
    %416 = tpu.matmul %415, %414, %cst_128 {dimension_numbers = #tpu.dot_dimension_numbers<[1], [0], [0], [1], [0, 0, 1, 1], [], []>} : vector<32x32xbf16>, vector<32x32xbf16>, vector<32x32xf32> -> vector<32x32xf32>
    %417 = vector.extract_strided_slice %407 {offsets = [0, 32], sizes = [1, 32], strides = [1, 1]} : vector<1x96xf32> to vector<1x32xf32>
    %418 = vector.broadcast %417 : vector<1x32xf32> to vector<32x32xf32>
    %419 = arith.addf %416, %418 : vector<32x32xf32>
    %420 = vector.extract_strided_slice %406 {offsets = [0, 64], sizes = [32, 32], strides = [1, 1]} : vector<32x96xbf16> to vector<32x32xbf16>
    %421 = arith.truncf %250 : vector<32x32xf32> to vector<32x32xbf16>
    %cst_129 = arith.constant dense<0.000000e+00> : vector<32x32xf32>
    %422 = tpu.matmul %421, %420, %cst_129 {dimension_numbers = #tpu.dot_dimension_numbers<[1], [0], [0], [1], [0, 0, 1, 1], [], []>} : vector<32x32xbf16>, vector<32x32xbf16>, vector<32x32xf32> -> vector<32x32xf32>
    %423 = vector.extract_strided_slice %407 {offsets = [0, 64], sizes = [1, 32], strides = [1, 1]} : vector<1x96xf32> to vector<1x32xf32>
    %424 = vector.broadcast %423 : vector<1x32xf32> to vector<32x32xf32>
    %425 = arith.addf %422, %424 : vector<32x32xf32>
    %c448 = arith.constant 448 : index
    %c0_130 = arith.constant 0 : index
    %426 = vector.load %arg3[%c448, %c0_130] : memref<896x128xbf16, #tpu.memory_space<vmem>>, vector<32x32xbf16>
    %427 = vector.extract_strided_slice %413 {offsets = [0, 0], sizes = [14, 8], strides = [1, 1]} : vector<14x32xf32> to vector<14x8xf32>
    %428 = vector.extract_strided_slice %419 {offsets = [0, 0], sizes = [32, 8], strides = [1, 1]} : vector<32x32xf32> to vector<32x8xf32>
    %429 = arith.truncf %427 : vector<14x8xf32> to vector<14x8xbf16>
    %430 = arith.truncf %428 : vector<32x8xf32> to vector<32x8xbf16>
    %cst_131 = arith.constant dense<0.000000e+00> : vector<14x32xf32>
    %431 = tpu.matmul %429, %430, %cst_131 {dimension_numbers = #tpu.dot_dimension_numbers<[1], [1], [0], [0], [0, 0, 1, 0], [], []>} : vector<14x8xbf16>, vector<32x8xbf16>, vector<14x32xf32> -> vector<14x32xf32>
    %cst_132 = arith.constant 0.353553385 : f32
    %432 = vector.broadcast %cst_132 : f32 to vector<14x32xf32>
    %433 = arith.mulf %431, %432 : vector<14x32xf32>
    %434 = arith.addf %433, %405 : vector<14x32xf32>
    %cst_133 = arith.constant dense<0xFF800000> : vector<14xf32>
    %435 = vector.multi_reduction <maximumf>, %434, %cst_133 [1] : vector<14x32xf32> to vector<14xf32>
    %436 = vector.shape_cast %435 : vector<14xf32> to vector<14x1xf32>
    %437 = vector.broadcast %436 : vector<14x1xf32> to vector<14x32xf32>
    %438 = arith.subf %434, %437 : vector<14x32xf32>
    %439 = math.exp %438 : vector<14x32xf32>
    %cst_134 = arith.constant dense<0.000000e+00> : vector<14xf32>
    %440 = vector.multi_reduction <add>, %439, %cst_134 [1] : vector<14x32xf32> to vector<14xf32>
    %441 = vector.shape_cast %440 : vector<14xf32> to vector<14x1xf32>
    %442 = vector.broadcast %441 : vector<14x1xf32> to vector<14x32xf32>
    %443 = arith.divf %439, %442 : vector<14x32xf32>
    %444 = vector.extract_strided_slice %425 {offsets = [0, 0], sizes = [32, 8], strides = [1, 1]} : vector<32x32xf32> to vector<32x8xf32>
    %445 = arith.truncf %443 : vector<14x32xf32> to vector<14x32xbf16>
    %446 = arith.truncf %444 : vector<32x8xf32> to vector<32x8xbf16>
    %cst_135 = arith.constant dense<0.000000e+00> : vector<14x8xf32>
    %447 = tpu.matmul %445, %446, %cst_135 {dimension_numbers = #tpu.dot_dimension_numbers<[1], [0], [0], [1], [0, 0, 1, 1], [], []>} : vector<14x32xbf16>, vector<32x8xbf16>, vector<14x8xf32> -> vector<14x8xf32>
    %448 = vector.extract_strided_slice %426 {offsets = [0, 0], sizes = [8, 32], strides = [1, 1]} : vector<32x32xbf16> to vector<8x32xbf16>
    %449 = arith.truncf %447 : vector<14x8xf32> to vector<14x8xbf16>
    %cst_136 = arith.constant dense<0.000000e+00> : vector<14x32xf32>
    %450 = tpu.matmul %449, %448, %cst_136 {dimension_numbers = #tpu.dot_dimension_numbers<[1], [0], [0], [1], [0, 0, 1, 1], [], []>} : vector<14x8xbf16>, vector<8x32xbf16>, vector<14x32xf32> -> vector<14x32xf32>
    %451 = vector.extract_strided_slice %413 {offsets = [0, 8], sizes = [14, 8], strides = [1, 1]} : vector<14x32xf32> to vector<14x8xf32>
    %452 = vector.extract_strided_slice %419 {offsets = [0, 8], sizes = [32, 8], strides = [1, 1]} : vector<32x32xf32> to vector<32x8xf32>
    %453 = arith.truncf %451 : vector<14x8xf32> to vector<14x8xbf16>
    %454 = arith.truncf %452 : vector<32x8xf32> to vector<32x8xbf16>
    %cst_137 = arith.constant dense<0.000000e+00> : vector<14x32xf32>
    %455 = tpu.matmul %453, %454, %cst_137 {dimension_numbers = #tpu.dot_dimension_numbers<[1], [1], [0], [0], [0, 0, 1, 0], [], []>} : vector<14x8xbf16>, vector<32x8xbf16>, vector<14x32xf32> -> vector<14x32xf32>
    %cst_138 = arith.constant 0.353553385 : f32
    %456 = vector.broadcast %cst_138 : f32 to vector<14x32xf32>
    %457 = arith.mulf %455, %456 : vector<14x32xf32>
    %458 = arith.addf %457, %405 : vector<14x32xf32>
    %cst_139 = arith.constant dense<0xFF800000> : vector<14xf32>
    %459 = vector.multi_reduction <maximumf>, %458, %cst_139 [1] : vector<14x32xf32> to vector<14xf32>
    %460 = vector.shape_cast %459 : vector<14xf32> to vector<14x1xf32>
    %461 = vector.broadcast %460 : vector<14x1xf32> to vector<14x32xf32>
    %462 = arith.subf %458, %461 : vector<14x32xf32>
    %463 = math.exp %462 : vector<14x32xf32>
    %cst_140 = arith.constant dense<0.000000e+00> : vector<14xf32>
    %464 = vector.multi_reduction <add>, %463, %cst_140 [1] : vector<14x32xf32> to vector<14xf32>
    %465 = vector.shape_cast %464 : vector<14xf32> to vector<14x1xf32>
    %466 = vector.broadcast %465 : vector<14x1xf32> to vector<14x32xf32>
    %467 = arith.divf %463, %466 : vector<14x32xf32>
    %468 = vector.extract_strided_slice %425 {offsets = [0, 8], sizes = [32, 8], strides = [1, 1]} : vector<32x32xf32> to vector<32x8xf32>
    %469 = arith.truncf %467 : vector<14x32xf32> to vector<14x32xbf16>
    %470 = arith.truncf %468 : vector<32x8xf32> to vector<32x8xbf16>
    %cst_141 = arith.constant dense<0.000000e+00> : vector<14x8xf32>
    %471 = tpu.matmul %469, %470, %cst_141 {dimension_numbers = #tpu.dot_dimension_numbers<[1], [0], [0], [1], [0, 0, 1, 1], [], []>} : vector<14x32xbf16>, vector<32x8xbf16>, vector<14x8xf32> -> vector<14x8xf32>
    %472 = vector.extract_strided_slice %426 {offsets = [8, 0], sizes = [8, 32], strides = [1, 1]} : vector<32x32xbf16> to vector<8x32xbf16>
    %473 = arith.truncf %471 : vector<14x8xf32> to vector<14x8xbf16>
    %cst_142 = arith.constant dense<0.000000e+00> : vector<14x32xf32>
    %474 = tpu.matmul %473, %472, %cst_142 {dimension_numbers = #tpu.dot_dimension_numbers<[1], [0], [0], [1], [0, 0, 1, 1], [], []>} : vector<14x8xbf16>, vector<8x32xbf16>, vector<14x32xf32> -> vector<14x32xf32>
    %475 = arith.addf %450, %474 : vector<14x32xf32>
    %476 = vector.extract_strided_slice %413 {offsets = [0, 16], sizes = [14, 8], strides = [1, 1]} : vector<14x32xf32> to vector<14x8xf32>
    %477 = vector.extract_strided_slice %419 {offsets = [0, 16], sizes = [32, 8], strides = [1, 1]} : vector<32x32xf32> to vector<32x8xf32>
    %478 = arith.truncf %476 : vector<14x8xf32> to vector<14x8xbf16>
    %479 = arith.truncf %477 : vector<32x8xf32> to vector<32x8xbf16>
    %cst_143 = arith.constant dense<0.000000e+00> : vector<14x32xf32>
    %480 = tpu.matmul %478, %479, %cst_143 {dimension_numbers = #tpu.dot_dimension_numbers<[1], [1], [0], [0], [0, 0, 1, 0], [], []>} : vector<14x8xbf16>, vector<32x8xbf16>, vector<14x32xf32> -> vector<14x32xf32>
    %cst_144 = arith.constant 0.353553385 : f32
    %481 = vector.broadcast %cst_144 : f32 to vector<14x32xf32>
    %482 = arith.mulf %480, %481 : vector<14x32xf32>
    %483 = arith.addf %482, %405 : vector<14x32xf32>
    %cst_145 = arith.constant dense<0xFF800000> : vector<14xf32>
    %484 = vector.multi_reduction <maximumf>, %483, %cst_145 [1] : vector<14x32xf32> to vector<14xf32>
    %485 = vector.shape_cast %484 : vector<14xf32> to vector<14x1xf32>
    %486 = vector.broadcast %485 : vector<14x1xf32> to vector<14x32xf32>
    %487 = arith.subf %483, %486 : vector<14x32xf32>
    %488 = math.exp %487 : vector<14x32xf32>
    %cst_146 = arith.constant dense<0.000000e+00> : vector<14xf32>
    %489 = vector.multi_reduction <add>, %488, %cst_146 [1] : vector<14x32xf32> to vector<14xf32>
    %490 = vector.shape_cast %489 : vector<14xf32> to vector<14x1xf32>
    %491 = vector.broadcast %490 : vector<14x1xf32> to vector<14x32xf32>
    %492 = arith.divf %488, %491 : vector<14x32xf32>
    %493 = vector.extract_strided_slice %425 {offsets = [0, 16], sizes = [32, 8], strides = [1, 1]} : vector<32x32xf32> to vector<32x8xf32>
    %494 = arith.truncf %492 : vector<14x32xf32> to vector<14x32xbf16>
    %495 = arith.truncf %493 : vector<32x8xf32> to vector<32x8xbf16>
    %cst_147 = arith.constant dense<0.000000e+00> : vector<14x8xf32>
    %496 = tpu.matmul %494, %495, %cst_147 {dimension_numbers = #tpu.dot_dimension_numbers<[1], [0], [0], [1], [0, 0, 1, 1], [], []>} : vector<14x32xbf16>, vector<32x8xbf16>, vector<14x8xf32> -> vector<14x8xf32>
    %497 = vector.extract_strided_slice %426 {offsets = [16, 0], sizes = [8, 32], strides = [1, 1]} : vector<32x32xbf16> to vector<8x32xbf16>
    %498 = arith.truncf %496 : vector<14x8xf32> to vector<14x8xbf16>
    %cst_148 = arith.constant dense<0.000000e+00> : vector<14x32xf32>
    %499 = tpu.matmul %498, %497, %cst_148 {dimension_numbers = #tpu.dot_dimension_numbers<[1], [0], [0], [1], [0, 0, 1, 1], [], []>} : vector<14x8xbf16>, vector<8x32xbf16>, vector<14x32xf32> -> vector<14x32xf32>
    %500 = arith.addf %475, %499 : vector<14x32xf32>
    %501 = vector.extract_strided_slice %413 {offsets = [0, 24], sizes = [14, 8], strides = [1, 1]} : vector<14x32xf32> to vector<14x8xf32>
    %502 = vector.extract_strided_slice %419 {offsets = [0, 24], sizes = [32, 8], strides = [1, 1]} : vector<32x32xf32> to vector<32x8xf32>
    %503 = arith.truncf %501 : vector<14x8xf32> to vector<14x8xbf16>
    %504 = arith.truncf %502 : vector<32x8xf32> to vector<32x8xbf16>
    %cst_149 = arith.constant dense<0.000000e+00> : vector<14x32xf32>
    %505 = tpu.matmul %503, %504, %cst_149 {dimension_numbers = #tpu.dot_dimension_numbers<[1], [1], [0], [0], [0, 0, 1, 0], [], []>} : vector<14x8xbf16>, vector<32x8xbf16>, vector<14x32xf32> -> vector<14x32xf32>
    %cst_150 = arith.constant 0.353553385 : f32
    %506 = vector.broadcast %cst_150 : f32 to vector<14x32xf32>
    %507 = arith.mulf %505, %506 : vector<14x32xf32>
    %508 = arith.addf %507, %405 : vector<14x32xf32>
    %cst_151 = arith.constant dense<0xFF800000> : vector<14xf32>
    %509 = vector.multi_reduction <maximumf>, %508, %cst_151 [1] : vector<14x32xf32> to vector<14xf32>
    %510 = vector.shape_cast %509 : vector<14xf32> to vector<14x1xf32>
    %511 = vector.broadcast %510 : vector<14x1xf32> to vector<14x32xf32>
    %512 = arith.subf %508, %511 : vector<14x32xf32>
    %513 = math.exp %512 : vector<14x32xf32>
    %cst_152 = arith.constant dense<0.000000e+00> : vector<14xf32>
    %514 = vector.multi_reduction <add>, %513, %cst_152 [1] : vector<14x32xf32> to vector<14xf32>
    %515 = vector.shape_cast %514 : vector<14xf32> to vector<14x1xf32>
    %516 = vector.broadcast %515 : vector<14x1xf32> to vector<14x32xf32>
    %517 = arith.divf %513, %516 : vector<14x32xf32>
    %518 = vector.extract_strided_slice %425 {offsets = [0, 24], sizes = [32, 8], strides = [1, 1]} : vector<32x32xf32> to vector<32x8xf32>
    %519 = arith.truncf %517 : vector<14x32xf32> to vector<14x32xbf16>
    %520 = arith.truncf %518 : vector<32x8xf32> to vector<32x8xbf16>
    %cst_153 = arith.constant dense<0.000000e+00> : vector<14x8xf32>
    %521 = tpu.matmul %519, %520, %cst_153 {dimension_numbers = #tpu.dot_dimension_numbers<[1], [0], [0], [1], [0, 0, 1, 1], [], []>} : vector<14x32xbf16>, vector<32x8xbf16>, vector<14x8xf32> -> vector<14x8xf32>
    %522 = vector.extract_strided_slice %426 {offsets = [24, 0], sizes = [8, 32], strides = [1, 1]} : vector<32x32xbf16> to vector<8x32xbf16>
    %523 = arith.truncf %521 : vector<14x8xf32> to vector<14x8xbf16>
    %cst_154 = arith.constant dense<0.000000e+00> : vector<14x32xf32>
    %524 = tpu.matmul %523, %522, %cst_154 {dimension_numbers = #tpu.dot_dimension_numbers<[1], [0], [0], [1], [0, 0, 1, 1], [], []>} : vector<14x8xbf16>, vector<8x32xbf16>, vector<14x32xf32> -> vector<14x32xf32>
    %525 = arith.addf %500, %524 : vector<14x32xf32>
    %c144 = arith.constant 144 : index
    %c0_155 = arith.constant 0 : index
    %526 = vector.load %arg4[%c144, %c0_155] : memref<768x128xf32, #tpu.memory_space<vmem>>, vector<1x32xf32>
    %527 = vector.broadcast %526 : vector<1x32xf32> to vector<14x32xf32>
    %528 = arith.addf %525, %527 : vector<14x32xf32>
    %529 = arith.addf %402, %528 : vector<14x32xf32>
    %cst_156 = arith.constant dense<0.000000e+00> : vector<14xf32>
    %530 = vector.multi_reduction <add>, %529, %cst_156 [1] : vector<14x32xf32> to vector<14xf32>
    %531 = vector.shape_cast %530 : vector<14xf32> to vector<14x1xf32>
    %cst_157 = arith.constant 3.200000e+01 : f32
    %532 = vector.broadcast %cst_157 : f32 to vector<14x1xf32>
    %533 = arith.divf %531, %532 : vector<14x1xf32>
    %534 = vector.broadcast %533 : vector<14x1xf32> to vector<14x32xf32>
    %535 = arith.subf %529, %534 : vector<14x32xf32>
    %536 = arith.mulf %535, %535 : vector<14x32xf32>
    %cst_158 = arith.constant dense<0.000000e+00> : vector<14xf32>
    %537 = vector.multi_reduction <add>, %536, %cst_158 [1] : vector<14x32xf32> to vector<14xf32>
    %538 = vector.shape_cast %537 : vector<14xf32> to vector<14x1xf32>
    %cst_159 = arith.constant 3.200000e+01 : f32
    %539 = vector.broadcast %cst_159 : f32 to vector<14x1xf32>
    %540 = arith.divf %538, %539 : vector<14x1xf32>
    %541 = vector.broadcast %533 : vector<14x1xf32> to vector<14x32xf32>
    %542 = arith.subf %529, %541 : vector<14x32xf32>
    %cst_160 = arith.constant 9.99999974E-6 : f32
    %543 = vector.broadcast %cst_160 : f32 to vector<14x1xf32>
    %544 = arith.addf %540, %543 : vector<14x1xf32>
    %545 = math.rsqrt %544 : vector<14x1xf32>
    %546 = vector.broadcast %545 : vector<14x1xf32> to vector<14x32xf32>
    %547 = arith.mulf %542, %546 : vector<14x32xf32>
    %c200 = arith.constant 200 : index
    %c0_161 = arith.constant 0 : index
    %548 = vector.load %arg4[%c200, %c0_161] : memref<768x128xf32, #tpu.memory_space<vmem>>, vector<1x32xf32>
    %549 = vector.broadcast %548 : vector<1x32xf32> to vector<14x32xf32>
    %550 = arith.mulf %547, %549 : vector<14x32xf32>
    %c208 = arith.constant 208 : index
    %c0_162 = arith.constant 0 : index
    %551 = vector.load %arg4[%c208, %c0_162] : memref<768x128xf32, #tpu.memory_space<vmem>>, vector<1x32xf32>
    %552 = vector.broadcast %551 : vector<1x32xf32> to vector<14x32xf32>
    %553 = arith.addf %550, %552 : vector<14x32xf32>
    %c608 = arith.constant 608 : index
    %c0_163 = arith.constant 0 : index
    %554 = vector.load %arg3[%c608, %c0_163] : memref<896x128xbf16, #tpu.memory_space<vmem>>, vector<32x64xbf16>
    %555 = arith.truncf %553 : vector<14x32xf32> to vector<14x32xbf16>
    %cst_164 = arith.constant dense<0.000000e+00> : vector<14x64xf32>
    %556 = tpu.matmul %555, %554, %cst_164 {dimension_numbers = #tpu.dot_dimension_numbers<[1], [0], [0], [1], [0, 0, 1, 1], [], []>} : vector<14x32xbf16>, vector<32x64xbf16>, vector<14x64xf32> -> vector<14x64xf32>
    %c264 = arith.constant 264 : index
    %c0_165 = arith.constant 0 : index
    %557 = vector.load %arg4[%c264, %c0_165] : memref<768x128xf32, #tpu.memory_space<vmem>>, vector<1x64xf32>
    %558 = vector.broadcast %557 : vector<1x64xf32> to vector<14x64xf32>
    %559 = arith.addf %556, %558 : vector<14x64xf32>
    %cst_166 = arith.constant 0.000000e+00 : f32
    %560 = vector.broadcast %cst_166 : f32 to vector<14x64xf32>
    %561 = arith.maximumf %559, %560 : vector<14x64xf32>
    %c640 = arith.constant 640 : index
    %c0_167 = arith.constant 0 : index
    %562 = vector.load %arg3[%c640, %c0_167] : memref<896x128xbf16, #tpu.memory_space<vmem>>, vector<64x32xbf16>
    %563 = arith.truncf %561 : vector<14x64xf32> to vector<14x64xbf16>
    %cst_168 = arith.constant dense<0.000000e+00> : vector<14x32xf32>
    %564 = tpu.matmul %563, %562, %cst_168 {dimension_numbers = #tpu.dot_dimension_numbers<[1], [0], [0], [1], [0, 0, 1, 1], [], []>} : vector<14x64xbf16>, vector<64x32xbf16>, vector<14x32xf32> -> vector<14x32xf32>
    %c272 = arith.constant 272 : index
    %c0_169 = arith.constant 0 : index
    %565 = vector.load %arg4[%c272, %c0_169] : memref<768x128xf32, #tpu.memory_space<vmem>>, vector<1x32xf32>
    %566 = vector.broadcast %565 : vector<1x32xf32> to vector<14x32xf32>
    %567 = arith.addf %564, %566 : vector<14x32xf32>
    %568 = arith.addf %553, %567 : vector<14x32xf32>
    %cst_170 = arith.constant dense<0.000000e+00> : vector<14xf32>
    %569 = vector.multi_reduction <add>, %568, %cst_170 [1] : vector<14x32xf32> to vector<14xf32>
    %570 = vector.shape_cast %569 : vector<14xf32> to vector<14x1xf32>
    %cst_171 = arith.constant 3.200000e+01 : f32
    %571 = vector.broadcast %cst_171 : f32 to vector<14x1xf32>
    %572 = arith.divf %570, %571 : vector<14x1xf32>
    %573 = vector.broadcast %572 : vector<14x1xf32> to vector<14x32xf32>
    %574 = arith.subf %568, %573 : vector<14x32xf32>
    %575 = arith.mulf %574, %574 : vector<14x32xf32>
    %cst_172 = arith.constant dense<0.000000e+00> : vector<14xf32>
    %576 = vector.multi_reduction <add>, %575, %cst_172 [1] : vector<14x32xf32> to vector<14xf32>
    %577 = vector.shape_cast %576 : vector<14xf32> to vector<14x1xf32>
    %cst_173 = arith.constant 3.200000e+01 : f32
    %578 = vector.broadcast %cst_173 : f32 to vector<14x1xf32>
    %579 = arith.divf %577, %578 : vector<14x1xf32>
    %580 = vector.broadcast %572 : vector<14x1xf32> to vector<14x32xf32>
    %581 = arith.subf %568, %580 : vector<14x32xf32>
    %cst_174 = arith.constant 9.99999974E-6 : f32
    %582 = vector.broadcast %cst_174 : f32 to vector<14x1xf32>
    %583 = arith.addf %579, %582 : vector<14x1xf32>
    %584 = math.rsqrt %583 : vector<14x1xf32>
    %585 = vector.broadcast %584 : vector<14x1xf32> to vector<14x32xf32>
    %586 = arith.mulf %581, %585 : vector<14x32xf32>
    %c216 = arith.constant 216 : index
    %c0_175 = arith.constant 0 : index
    %587 = vector.load %arg4[%c216, %c0_175] : memref<768x128xf32, #tpu.memory_space<vmem>>, vector<1x32xf32>
    %588 = vector.broadcast %587 : vector<1x32xf32> to vector<14x32xf32>
    %589 = arith.mulf %586, %588 : vector<14x32xf32>
    %c224_176 = arith.constant 224 : index
    %c0_177 = arith.constant 0 : index
    %590 = vector.load %arg4[%c224_176, %c0_177] : memref<768x128xf32, #tpu.memory_space<vmem>>, vector<1x32xf32>
    %591 = vector.broadcast %590 : vector<1x32xf32> to vector<14x32xf32>
    %592 = arith.addf %589, %591 : vector<14x32xf32>
    %593 = arith.addf %592, %254 : vector<14x32xf32>
    %594 = arith.addf %250, %247 : vector<32x32xf32>
    %c440 = arith.constant 440 : index
    %c0_178 = arith.constant 0 : index
    %595 = vector.load %arg4[%c440, %c0_178] : memref<768x128xf32, #tpu.memory_space<vmem>>, vector<32x14xf32>
    %c480 = arith.constant 480 : index
    %c0_179 = arith.constant 0 : index
    %596 = vector.load %arg3[%c480, %c0_179] : memref<896x128xbf16, #tpu.memory_space<vmem>>, vector<32x96xbf16>
    %c152 = arith.constant 152 : index
    %c0_180 = arith.constant 0 : index
    %597 = vector.load %arg4[%c152, %c0_180] : memref<768x128xf32, #tpu.memory_space<vmem>>, vector<1x96xf32>
    %598 = vector.extract_strided_slice %596 {offsets = [0, 0], sizes = [32, 32], strides = [1, 1]} : vector<32x96xbf16> to vector<32x32xbf16>
    %599 = arith.truncf %594 : vector<32x32xf32> to vector<32x32xbf16>
    %cst_181 = arith.constant dense<0.000000e+00> : vector<32x32xf32>
    %600 = tpu.matmul %599, %598, %cst_181 {dimension_numbers = #tpu.dot_dimension_numbers<[1], [0], [0], [1], [0, 0, 1, 1], [], []>} : vector<32x32xbf16>, vector<32x32xbf16>, vector<32x32xf32> -> vector<32x32xf32>
    %601 = vector.extract_strided_slice %597 {offsets = [0, 0], sizes = [1, 32], strides = [1, 1]} : vector<1x96xf32> to vector<1x32xf32>
    %602 = vector.broadcast %601 : vector<1x32xf32> to vector<32x32xf32>
    %603 = arith.addf %600, %602 : vector<32x32xf32>
    %604 = vector.extract_strided_slice %596 {offsets = [0, 32], sizes = [32, 32], strides = [1, 1]} : vector<32x96xbf16> to vector<32x32xbf16>
    %605 = arith.truncf %593 : vector<14x32xf32> to vector<14x32xbf16>
    %cst_182 = arith.constant dense<0.000000e+00> : vector<14x32xf32>
    %606 = tpu.matmul %605, %604, %cst_182 {dimension_numbers = #tpu.dot_dimension_numbers<[1], [0], [0], [1], [0, 0, 1, 1], [], []>} : vector<14x32xbf16>, vector<32x32xbf16>, vector<14x32xf32> -> vector<14x32xf32>
    %607 = vector.extract_strided_slice %597 {offsets = [0, 32], sizes = [1, 32], strides = [1, 1]} : vector<1x96xf32> to vector<1x32xf32>
    %608 = vector.broadcast %607 : vector<1x32xf32> to vector<14x32xf32>
    %609 = arith.addf %606, %608 : vector<14x32xf32>
    %610 = vector.extract_strided_slice %596 {offsets = [0, 64], sizes = [32, 32], strides = [1, 1]} : vector<32x96xbf16> to vector<32x32xbf16>
    %611 = arith.truncf %592 : vector<14x32xf32> to vector<14x32xbf16>
    %cst_183 = arith.constant dense<0.000000e+00> : vector<14x32xf32>
    %612 = tpu.matmul %611, %610, %cst_183 {dimension_numbers = #tpu.dot_dimension_numbers<[1], [0], [0], [1], [0, 0, 1, 1], [], []>} : vector<14x32xbf16>, vector<32x32xbf16>, vector<14x32xf32> -> vector<14x32xf32>
    %613 = vector.extract_strided_slice %597 {offsets = [0, 64], sizes = [1, 32], strides = [1, 1]} : vector<1x96xf32> to vector<1x32xf32>
    %614 = vector.broadcast %613 : vector<1x32xf32> to vector<14x32xf32>
    %615 = arith.addf %612, %614 : vector<14x32xf32>
    %c512 = arith.constant 512 : index
    %c0_184 = arith.constant 0 : index
    %616 = vector.load %arg3[%c512, %c0_184] : memref<896x128xbf16, #tpu.memory_space<vmem>>, vector<32x32xbf16>
    %617 = vector.extract_strided_slice %603 {offsets = [0, 0], sizes = [32, 8], strides = [1, 1]} : vector<32x32xf32> to vector<32x8xf32>
    %618 = vector.extract_strided_slice %609 {offsets = [0, 0], sizes = [14, 8], strides = [1, 1]} : vector<14x32xf32> to vector<14x8xf32>
    %619 = arith.truncf %617 : vector<32x8xf32> to vector<32x8xbf16>
    %620 = arith.truncf %618 : vector<14x8xf32> to vector<14x8xbf16>
    %cst_185 = arith.constant dense<0.000000e+00> : vector<32x14xf32>
    %621 = tpu.matmul %619, %620, %cst_185 {dimension_numbers = #tpu.dot_dimension_numbers<[1], [1], [0], [0], [0, 0, 1, 0], [], []>} : vector<32x8xbf16>, vector<14x8xbf16>, vector<32x14xf32> -> vector<32x14xf32>
    %cst_186 = arith.constant 0.353553385 : f32
    %622 = vector.broadcast %cst_186 : f32 to vector<32x14xf32>
    %623 = arith.mulf %621, %622 : vector<32x14xf32>
    %624 = arith.addf %623, %595 : vector<32x14xf32>
    %cst_187 = arith.constant dense<0xFF800000> : vector<32xf32>
    %625 = vector.multi_reduction <maximumf>, %624, %cst_187 [1] : vector<32x14xf32> to vector<32xf32>
    %626 = vector.shape_cast %625 : vector<32xf32> to vector<32x1xf32>
    %627 = vector.broadcast %626 : vector<32x1xf32> to vector<32x14xf32>
    %628 = arith.subf %624, %627 : vector<32x14xf32>
    %629 = math.exp %628 : vector<32x14xf32>
    %cst_188 = arith.constant dense<0.000000e+00> : vector<32xf32>
    %630 = vector.multi_reduction <add>, %629, %cst_188 [1] : vector<32x14xf32> to vector<32xf32>
    %631 = vector.shape_cast %630 : vector<32xf32> to vector<32x1xf32>
    %632 = vector.broadcast %631 : vector<32x1xf32> to vector<32x14xf32>
    %633 = arith.divf %629, %632 : vector<32x14xf32>
    %634 = vector.extract_strided_slice %615 {offsets = [0, 0], sizes = [14, 8], strides = [1, 1]} : vector<14x32xf32> to vector<14x8xf32>
    %635 = arith.truncf %633 : vector<32x14xf32> to vector<32x14xbf16>
    %636 = arith.truncf %634 : vector<14x8xf32> to vector<14x8xbf16>
    %cst_189 = arith.constant dense<0.000000e+00> : vector<32x8xf32>
    %637 = tpu.matmul %635, %636, %cst_189 {dimension_numbers = #tpu.dot_dimension_numbers<[1], [0], [0], [1], [0, 0, 1, 1], [], []>} : vector<32x14xbf16>, vector<14x8xbf16>, vector<32x8xf32> -> vector<32x8xf32>
    %638 = vector.extract_strided_slice %616 {offsets = [0, 0], sizes = [8, 32], strides = [1, 1]} : vector<32x32xbf16> to vector<8x32xbf16>
    %639 = arith.truncf %637 : vector<32x8xf32> to vector<32x8xbf16>
    %cst_190 = arith.constant dense<0.000000e+00> : vector<32x32xf32>
    %640 = tpu.matmul %639, %638, %cst_190 {dimension_numbers = #tpu.dot_dimension_numbers<[1], [0], [0], [1], [0, 0, 1, 1], [], []>} : vector<32x8xbf16>, vector<8x32xbf16>, vector<32x32xf32> -> vector<32x32xf32>
    %641 = vector.extract_strided_slice %603 {offsets = [0, 8], sizes = [32, 8], strides = [1, 1]} : vector<32x32xf32> to vector<32x8xf32>
    %642 = vector.extract_strided_slice %609 {offsets = [0, 8], sizes = [14, 8], strides = [1, 1]} : vector<14x32xf32> to vector<14x8xf32>
    %643 = arith.truncf %641 : vector<32x8xf32> to vector<32x8xbf16>
    %644 = arith.truncf %642 : vector<14x8xf32> to vector<14x8xbf16>
    %cst_191 = arith.constant dense<0.000000e+00> : vector<32x14xf32>
    %645 = tpu.matmul %643, %644, %cst_191 {dimension_numbers = #tpu.dot_dimension_numbers<[1], [1], [0], [0], [0, 0, 1, 0], [], []>} : vector<32x8xbf16>, vector<14x8xbf16>, vector<32x14xf32> -> vector<32x14xf32>
    %cst_192 = arith.constant 0.353553385 : f32
    %646 = vector.broadcast %cst_192 : f32 to vector<32x14xf32>
    %647 = arith.mulf %645, %646 : vector<32x14xf32>
    %648 = arith.addf %647, %595 : vector<32x14xf32>
    %cst_193 = arith.constant dense<0xFF800000> : vector<32xf32>
    %649 = vector.multi_reduction <maximumf>, %648, %cst_193 [1] : vector<32x14xf32> to vector<32xf32>
    %650 = vector.shape_cast %649 : vector<32xf32> to vector<32x1xf32>
    %651 = vector.broadcast %650 : vector<32x1xf32> to vector<32x14xf32>
    %652 = arith.subf %648, %651 : vector<32x14xf32>
    %653 = math.exp %652 : vector<32x14xf32>
    %cst_194 = arith.constant dense<0.000000e+00> : vector<32xf32>
    %654 = vector.multi_reduction <add>, %653, %cst_194 [1] : vector<32x14xf32> to vector<32xf32>
    %655 = vector.shape_cast %654 : vector<32xf32> to vector<32x1xf32>
    %656 = vector.broadcast %655 : vector<32x1xf32> to vector<32x14xf32>
    %657 = arith.divf %653, %656 : vector<32x14xf32>
    %658 = vector.extract_strided_slice %615 {offsets = [0, 8], sizes = [14, 8], strides = [1, 1]} : vector<14x32xf32> to vector<14x8xf32>
    %659 = arith.truncf %657 : vector<32x14xf32> to vector<32x14xbf16>
    %660 = arith.truncf %658 : vector<14x8xf32> to vector<14x8xbf16>
    %cst_195 = arith.constant dense<0.000000e+00> : vector<32x8xf32>
    %661 = tpu.matmul %659, %660, %cst_195 {dimension_numbers = #tpu.dot_dimension_numbers<[1], [0], [0], [1], [0, 0, 1, 1], [], []>} : vector<32x14xbf16>, vector<14x8xbf16>, vector<32x8xf32> -> vector<32x8xf32>
    %662 = vector.extract_strided_slice %616 {offsets = [8, 0], sizes = [8, 32], strides = [1, 1]} : vector<32x32xbf16> to vector<8x32xbf16>
    %663 = arith.truncf %661 : vector<32x8xf32> to vector<32x8xbf16>
    %cst_196 = arith.constant dense<0.000000e+00> : vector<32x32xf32>
    %664 = tpu.matmul %663, %662, %cst_196 {dimension_numbers = #tpu.dot_dimension_numbers<[1], [0], [0], [1], [0, 0, 1, 1], [], []>} : vector<32x8xbf16>, vector<8x32xbf16>, vector<32x32xf32> -> vector<32x32xf32>
    %665 = arith.addf %640, %664 : vector<32x32xf32>
    %666 = vector.extract_strided_slice %603 {offsets = [0, 16], sizes = [32, 8], strides = [1, 1]} : vector<32x32xf32> to vector<32x8xf32>
    %667 = vector.extract_strided_slice %609 {offsets = [0, 16], sizes = [14, 8], strides = [1, 1]} : vector<14x32xf32> to vector<14x8xf32>
    %668 = arith.truncf %666 : vector<32x8xf32> to vector<32x8xbf16>
    %669 = arith.truncf %667 : vector<14x8xf32> to vector<14x8xbf16>
    %cst_197 = arith.constant dense<0.000000e+00> : vector<32x14xf32>
    %670 = tpu.matmul %668, %669, %cst_197 {dimension_numbers = #tpu.dot_dimension_numbers<[1], [1], [0], [0], [0, 0, 1, 0], [], []>} : vector<32x8xbf16>, vector<14x8xbf16>, vector<32x14xf32> -> vector<32x14xf32>
    %cst_198 = arith.constant 0.353553385 : f32
    %671 = vector.broadcast %cst_198 : f32 to vector<32x14xf32>
    %672 = arith.mulf %670, %671 : vector<32x14xf32>
    %673 = arith.addf %672, %595 : vector<32x14xf32>
    %cst_199 = arith.constant dense<0xFF800000> : vector<32xf32>
    %674 = vector.multi_reduction <maximumf>, %673, %cst_199 [1] : vector<32x14xf32> to vector<32xf32>
    %675 = vector.shape_cast %674 : vector<32xf32> to vector<32x1xf32>
    %676 = vector.broadcast %675 : vector<32x1xf32> to vector<32x14xf32>
    %677 = arith.subf %673, %676 : vector<32x14xf32>
    %678 = math.exp %677 : vector<32x14xf32>
    %cst_200 = arith.constant dense<0.000000e+00> : vector<32xf32>
    %679 = vector.multi_reduction <add>, %678, %cst_200 [1] : vector<32x14xf32> to vector<32xf32>
    %680 = vector.shape_cast %679 : vector<32xf32> to vector<32x1xf32>
    %681 = vector.broadcast %680 : vector<32x1xf32> to vector<32x14xf32>
    %682 = arith.divf %678, %681 : vector<32x14xf32>
    %683 = vector.extract_strided_slice %615 {offsets = [0, 16], sizes = [14, 8], strides = [1, 1]} : vector<14x32xf32> to vector<14x8xf32>
    %684 = arith.truncf %682 : vector<32x14xf32> to vector<32x14xbf16>
    %685 = arith.truncf %683 : vector<14x8xf32> to vector<14x8xbf16>
    %cst_201 = arith.constant dense<0.000000e+00> : vector<32x8xf32>
    %686 = tpu.matmul %684, %685, %cst_201 {dimension_numbers = #tpu.dot_dimension_numbers<[1], [0], [0], [1], [0, 0, 1, 1], [], []>} : vector<32x14xbf16>, vector<14x8xbf16>, vector<32x8xf32> -> vector<32x8xf32>
    %687 = vector.extract_strided_slice %616 {offsets = [16, 0], sizes = [8, 32], strides = [1, 1]} : vector<32x32xbf16> to vector<8x32xbf16>
    %688 = arith.truncf %686 : vector<32x8xf32> to vector<32x8xbf16>
    %cst_202 = arith.constant dense<0.000000e+00> : vector<32x32xf32>
    %689 = tpu.matmul %688, %687, %cst_202 {dimension_numbers = #tpu.dot_dimension_numbers<[1], [0], [0], [1], [0, 0, 1, 1], [], []>} : vector<32x8xbf16>, vector<8x32xbf16>, vector<32x32xf32> -> vector<32x32xf32>
    %690 = arith.addf %665, %689 : vector<32x32xf32>
    %691 = vector.extract_strided_slice %603 {offsets = [0, 24], sizes = [32, 8], strides = [1, 1]} : vector<32x32xf32> to vector<32x8xf32>
    %692 = vector.extract_strided_slice %609 {offsets = [0, 24], sizes = [14, 8], strides = [1, 1]} : vector<14x32xf32> to vector<14x8xf32>
    %693 = arith.truncf %691 : vector<32x8xf32> to vector<32x8xbf16>
    %694 = arith.truncf %692 : vector<14x8xf32> to vector<14x8xbf16>
    %cst_203 = arith.constant dense<0.000000e+00> : vector<32x14xf32>
    %695 = tpu.matmul %693, %694, %cst_203 {dimension_numbers = #tpu.dot_dimension_numbers<[1], [1], [0], [0], [0, 0, 1, 0], [], []>} : vector<32x8xbf16>, vector<14x8xbf16>, vector<32x14xf32> -> vector<32x14xf32>
    %cst_204 = arith.constant 0.353553385 : f32
    %696 = vector.broadcast %cst_204 : f32 to vector<32x14xf32>
    %697 = arith.mulf %695, %696 : vector<32x14xf32>
    %698 = arith.addf %697, %595 : vector<32x14xf32>
    %cst_205 = arith.constant dense<0xFF800000> : vector<32xf32>
    %699 = vector.multi_reduction <maximumf>, %698, %cst_205 [1] : vector<32x14xf32> to vector<32xf32>
    %700 = vector.shape_cast %699 : vector<32xf32> to vector<32x1xf32>
    %701 = vector.broadcast %700 : vector<32x1xf32> to vector<32x14xf32>
    %702 = arith.subf %698, %701 : vector<32x14xf32>
    %703 = math.exp %702 : vector<32x14xf32>
    %cst_206 = arith.constant dense<0.000000e+00> : vector<32xf32>
    %704 = vector.multi_reduction <add>, %703, %cst_206 [1] : vector<32x14xf32> to vector<32xf32>
    %705 = vector.shape_cast %704 : vector<32xf32> to vector<32x1xf32>
    %706 = vector.broadcast %705 : vector<32x1xf32> to vector<32x14xf32>
    %707 = arith.divf %703, %706 : vector<32x14xf32>
    %708 = vector.extract_strided_slice %615 {offsets = [0, 24], sizes = [14, 8], strides = [1, 1]} : vector<14x32xf32> to vector<14x8xf32>
    %709 = arith.truncf %707 : vector<32x14xf32> to vector<32x14xbf16>
    %710 = arith.truncf %708 : vector<14x8xf32> to vector<14x8xbf16>
    %cst_207 = arith.constant dense<0.000000e+00> : vector<32x8xf32>
    %711 = tpu.matmul %709, %710, %cst_207 {dimension_numbers = #tpu.dot_dimension_numbers<[1], [0], [0], [1], [0, 0, 1, 1], [], []>} : vector<32x14xbf16>, vector<14x8xbf16>, vector<32x8xf32> -> vector<32x8xf32>
    %712 = vector.extract_strided_slice %616 {offsets = [24, 0], sizes = [8, 32], strides = [1, 1]} : vector<32x32xbf16> to vector<8x32xbf16>
    %713 = arith.truncf %711 : vector<32x8xf32> to vector<32x8xbf16>
    %cst_208 = arith.constant dense<0.000000e+00> : vector<32x32xf32>
    %714 = tpu.matmul %713, %712, %cst_208 {dimension_numbers = #tpu.dot_dimension_numbers<[1], [0], [0], [1], [0, 0, 1, 1], [], []>} : vector<32x8xbf16>, vector<8x32xbf16>, vector<32x32xf32> -> vector<32x32xf32>
    %715 = arith.addf %690, %714 : vector<32x32xf32>
    %c160 = arith.constant 160 : index
    %c0_209 = arith.constant 0 : index
    %716 = vector.load %arg4[%c160, %c0_209] : memref<768x128xf32, #tpu.memory_space<vmem>>, vector<1x32xf32>
    %717 = vector.broadcast %716 : vector<1x32xf32> to vector<32x32xf32>
    %718 = arith.addf %715, %717 : vector<32x32xf32>
    %719 = arith.addf %250, %718 : vector<32x32xf32>
    %cst_210 = arith.constant dense<0.000000e+00> : vector<32xf32>
    %720 = vector.multi_reduction <add>, %719, %cst_210 [1] : vector<32x32xf32> to vector<32xf32>
    %721 = vector.shape_cast %720 : vector<32xf32> to vector<32x1xf32>
    %cst_211 = arith.constant 3.200000e+01 : f32
    %722 = vector.broadcast %cst_211 : f32 to vector<32x1xf32>
    %723 = arith.divf %721, %722 : vector<32x1xf32>
    %724 = vector.broadcast %723 : vector<32x1xf32> to vector<32x32xf32>
    %725 = arith.subf %719, %724 : vector<32x32xf32>
    %726 = arith.mulf %725, %725 : vector<32x32xf32>
    %cst_212 = arith.constant dense<0.000000e+00> : vector<32xf32>
    %727 = vector.multi_reduction <add>, %726, %cst_212 [1] : vector<32x32xf32> to vector<32xf32>
    %728 = vector.shape_cast %727 : vector<32xf32> to vector<32x1xf32>
    %cst_213 = arith.constant 3.200000e+01 : f32
    %729 = vector.broadcast %cst_213 : f32 to vector<32x1xf32>
    %730 = arith.divf %728, %729 : vector<32x1xf32>
    %731 = vector.broadcast %723 : vector<32x1xf32> to vector<32x32xf32>
    %732 = arith.subf %719, %731 : vector<32x32xf32>
    %cst_214 = arith.constant 9.99999974E-6 : f32
    %733 = vector.broadcast %cst_214 : f32 to vector<32x1xf32>
    %734 = arith.addf %730, %733 : vector<32x1xf32>
    %735 = math.rsqrt %734 : vector<32x1xf32>
    %736 = vector.broadcast %735 : vector<32x1xf32> to vector<32x32xf32>
    %737 = arith.mulf %732, %736 : vector<32x32xf32>
    %c232 = arith.constant 232 : index
    %c0_215 = arith.constant 0 : index
    %738 = vector.load %arg4[%c232, %c0_215] : memref<768x128xf32, #tpu.memory_space<vmem>>, vector<1x32xf32>
    %739 = vector.broadcast %738 : vector<1x32xf32> to vector<32x32xf32>
    %740 = arith.mulf %737, %739 : vector<32x32xf32>
    %c240 = arith.constant 240 : index
    %c0_216 = arith.constant 0 : index
    %741 = vector.load %arg4[%c240, %c0_216] : memref<768x128xf32, #tpu.memory_space<vmem>>, vector<1x32xf32>
    %742 = vector.broadcast %741 : vector<1x32xf32> to vector<32x32xf32>
    %743 = arith.addf %740, %742 : vector<32x32xf32>
    %744 = arith.addf %592, %254 : vector<14x32xf32>
    %745 = arith.addf %743, %247 : vector<32x32xf32>
    %c424_217 = arith.constant 424 : index
    %c0_218 = arith.constant 0 : index
    %746 = vector.load %arg4[%c424_217, %c0_218] : memref<768x128xf32, #tpu.memory_space<vmem>>, vector<14x32xf32>
    %c544 = arith.constant 544 : index
    %c0_219 = arith.constant 0 : index
    %747 = vector.load %arg3[%c544, %c0_219] : memref<896x128xbf16, #tpu.memory_space<vmem>>, vector<32x96xbf16>
    %c168 = arith.constant 168 : index
    %c0_220 = arith.constant 0 : index
    %748 = vector.load %arg4[%c168, %c0_220] : memref<768x128xf32, #tpu.memory_space<vmem>>, vector<1x96xf32>
    %749 = vector.extract_strided_slice %747 {offsets = [0, 0], sizes = [32, 32], strides = [1, 1]} : vector<32x96xbf16> to vector<32x32xbf16>
    %750 = arith.truncf %744 : vector<14x32xf32> to vector<14x32xbf16>
    %cst_221 = arith.constant dense<0.000000e+00> : vector<14x32xf32>
    %751 = tpu.matmul %750, %749, %cst_221 {dimension_numbers = #tpu.dot_dimension_numbers<[1], [0], [0], [1], [0, 0, 1, 1], [], []>} : vector<14x32xbf16>, vector<32x32xbf16>, vector<14x32xf32> -> vector<14x32xf32>
    %752 = vector.extract_strided_slice %748 {offsets = [0, 0], sizes = [1, 32], strides = [1, 1]} : vector<1x96xf32> to vector<1x32xf32>
    %753 = vector.broadcast %752 : vector<1x32xf32> to vector<14x32xf32>
    %754 = arith.addf %751, %753 : vector<14x32xf32>
    %755 = vector.extract_strided_slice %747 {offsets = [0, 32], sizes = [32, 32], strides = [1, 1]} : vector<32x96xbf16> to vector<32x32xbf16>
    %756 = arith.truncf %745 : vector<32x32xf32> to vector<32x32xbf16>
    %cst_222 = arith.constant dense<0.000000e+00> : vector<32x32xf32>
    %757 = tpu.matmul %756, %755, %cst_222 {dimension_numbers = #tpu.dot_dimension_numbers<[1], [0], [0], [1], [0, 0, 1, 1], [], []>} : vector<32x32xbf16>, vector<32x32xbf16>, vector<32x32xf32> -> vector<32x32xf32>
    %758 = vector.extract_strided_slice %748 {offsets = [0, 32], sizes = [1, 32], strides = [1, 1]} : vector<1x96xf32> to vector<1x32xf32>
    %759 = vector.broadcast %758 : vector<1x32xf32> to vector<32x32xf32>
    %760 = arith.addf %757, %759 : vector<32x32xf32>
    %761 = vector.extract_strided_slice %747 {offsets = [0, 64], sizes = [32, 32], strides = [1, 1]} : vector<32x96xbf16> to vector<32x32xbf16>
    %762 = arith.truncf %743 : vector<32x32xf32> to vector<32x32xbf16>
    %cst_223 = arith.constant dense<0.000000e+00> : vector<32x32xf32>
    %763 = tpu.matmul %762, %761, %cst_223 {dimension_numbers = #tpu.dot_dimension_numbers<[1], [0], [0], [1], [0, 0, 1, 1], [], []>} : vector<32x32xbf16>, vector<32x32xbf16>, vector<32x32xf32> -> vector<32x32xf32>
    %764 = vector.extract_strided_slice %748 {offsets = [0, 64], sizes = [1, 32], strides = [1, 1]} : vector<1x96xf32> to vector<1x32xf32>
    %765 = vector.broadcast %764 : vector<1x32xf32> to vector<32x32xf32>
    %766 = arith.addf %763, %765 : vector<32x32xf32>
    %c576 = arith.constant 576 : index
    %c0_224 = arith.constant 0 : index
    %767 = vector.load %arg3[%c576, %c0_224] : memref<896x128xbf16, #tpu.memory_space<vmem>>, vector<32x32xbf16>
    %768 = vector.extract_strided_slice %754 {offsets = [0, 0], sizes = [14, 8], strides = [1, 1]} : vector<14x32xf32> to vector<14x8xf32>
    %769 = vector.extract_strided_slice %760 {offsets = [0, 0], sizes = [32, 8], strides = [1, 1]} : vector<32x32xf32> to vector<32x8xf32>
    %770 = arith.truncf %768 : vector<14x8xf32> to vector<14x8xbf16>
    %771 = arith.truncf %769 : vector<32x8xf32> to vector<32x8xbf16>
    %cst_225 = arith.constant dense<0.000000e+00> : vector<14x32xf32>
    %772 = tpu.matmul %770, %771, %cst_225 {dimension_numbers = #tpu.dot_dimension_numbers<[1], [1], [0], [0], [0, 0, 1, 0], [], []>} : vector<14x8xbf16>, vector<32x8xbf16>, vector<14x32xf32> -> vector<14x32xf32>
    %cst_226 = arith.constant 0.353553385 : f32
    %773 = vector.broadcast %cst_226 : f32 to vector<14x32xf32>
    %774 = arith.mulf %772, %773 : vector<14x32xf32>
    %775 = arith.addf %774, %746 : vector<14x32xf32>
    %cst_227 = arith.constant dense<0xFF800000> : vector<14xf32>
    %776 = vector.multi_reduction <maximumf>, %775, %cst_227 [1] : vector<14x32xf32> to vector<14xf32>
    %777 = vector.shape_cast %776 : vector<14xf32> to vector<14x1xf32>
    %778 = vector.broadcast %777 : vector<14x1xf32> to vector<14x32xf32>
    %779 = arith.subf %775, %778 : vector<14x32xf32>
    %780 = math.exp %779 : vector<14x32xf32>
    %cst_228 = arith.constant dense<0.000000e+00> : vector<14xf32>
    %781 = vector.multi_reduction <add>, %780, %cst_228 [1] : vector<14x32xf32> to vector<14xf32>
    %782 = vector.shape_cast %781 : vector<14xf32> to vector<14x1xf32>
    %783 = vector.broadcast %782 : vector<14x1xf32> to vector<14x32xf32>
    %784 = arith.divf %780, %783 : vector<14x32xf32>
    %785 = vector.extract_strided_slice %766 {offsets = [0, 0], sizes = [32, 8], strides = [1, 1]} : vector<32x32xf32> to vector<32x8xf32>
    %786 = arith.truncf %784 : vector<14x32xf32> to vector<14x32xbf16>
    %787 = arith.truncf %785 : vector<32x8xf32> to vector<32x8xbf16>
    %cst_229 = arith.constant dense<0.000000e+00> : vector<14x8xf32>
    %788 = tpu.matmul %786, %787, %cst_229 {dimension_numbers = #tpu.dot_dimension_numbers<[1], [0], [0], [1], [0, 0, 1, 1], [], []>} : vector<14x32xbf16>, vector<32x8xbf16>, vector<14x8xf32> -> vector<14x8xf32>
    %789 = vector.extract_strided_slice %767 {offsets = [0, 0], sizes = [8, 32], strides = [1, 1]} : vector<32x32xbf16> to vector<8x32xbf16>
    %790 = arith.truncf %788 : vector<14x8xf32> to vector<14x8xbf16>
    %cst_230 = arith.constant dense<0.000000e+00> : vector<14x32xf32>
    %791 = tpu.matmul %790, %789, %cst_230 {dimension_numbers = #tpu.dot_dimension_numbers<[1], [0], [0], [1], [0, 0, 1, 1], [], []>} : vector<14x8xbf16>, vector<8x32xbf16>, vector<14x32xf32> -> vector<14x32xf32>
    %792 = vector.extract_strided_slice %754 {offsets = [0, 8], sizes = [14, 8], strides = [1, 1]} : vector<14x32xf32> to vector<14x8xf32>
    %793 = vector.extract_strided_slice %760 {offsets = [0, 8], sizes = [32, 8], strides = [1, 1]} : vector<32x32xf32> to vector<32x8xf32>
    %794 = arith.truncf %792 : vector<14x8xf32> to vector<14x8xbf16>
    %795 = arith.truncf %793 : vector<32x8xf32> to vector<32x8xbf16>
    %cst_231 = arith.constant dense<0.000000e+00> : vector<14x32xf32>
    %796 = tpu.matmul %794, %795, %cst_231 {dimension_numbers = #tpu.dot_dimension_numbers<[1], [1], [0], [0], [0, 0, 1, 0], [], []>} : vector<14x8xbf16>, vector<32x8xbf16>, vector<14x32xf32> -> vector<14x32xf32>
    %cst_232 = arith.constant 0.353553385 : f32
    %797 = vector.broadcast %cst_232 : f32 to vector<14x32xf32>
    %798 = arith.mulf %796, %797 : vector<14x32xf32>
    %799 = arith.addf %798, %746 : vector<14x32xf32>
    %cst_233 = arith.constant dense<0xFF800000> : vector<14xf32>
    %800 = vector.multi_reduction <maximumf>, %799, %cst_233 [1] : vector<14x32xf32> to vector<14xf32>
    %801 = vector.shape_cast %800 : vector<14xf32> to vector<14x1xf32>
    %802 = vector.broadcast %801 : vector<14x1xf32> to vector<14x32xf32>
    %803 = arith.subf %799, %802 : vector<14x32xf32>
    %804 = math.exp %803 : vector<14x32xf32>
    %cst_234 = arith.constant dense<0.000000e+00> : vector<14xf32>
    %805 = vector.multi_reduction <add>, %804, %cst_234 [1] : vector<14x32xf32> to vector<14xf32>
    %806 = vector.shape_cast %805 : vector<14xf32> to vector<14x1xf32>
    %807 = vector.broadcast %806 : vector<14x1xf32> to vector<14x32xf32>
    %808 = arith.divf %804, %807 : vector<14x32xf32>
    %809 = vector.extract_strided_slice %766 {offsets = [0, 8], sizes = [32, 8], strides = [1, 1]} : vector<32x32xf32> to vector<32x8xf32>
    %810 = arith.truncf %808 : vector<14x32xf32> to vector<14x32xbf16>
    %811 = arith.truncf %809 : vector<32x8xf32> to vector<32x8xbf16>
    %cst_235 = arith.constant dense<0.000000e+00> : vector<14x8xf32>
    %812 = tpu.matmul %810, %811, %cst_235 {dimension_numbers = #tpu.dot_dimension_numbers<[1], [0], [0], [1], [0, 0, 1, 1], [], []>} : vector<14x32xbf16>, vector<32x8xbf16>, vector<14x8xf32> -> vector<14x8xf32>
    %813 = vector.extract_strided_slice %767 {offsets = [8, 0], sizes = [8, 32], strides = [1, 1]} : vector<32x32xbf16> to vector<8x32xbf16>
    %814 = arith.truncf %812 : vector<14x8xf32> to vector<14x8xbf16>
    %cst_236 = arith.constant dense<0.000000e+00> : vector<14x32xf32>
    %815 = tpu.matmul %814, %813, %cst_236 {dimension_numbers = #tpu.dot_dimension_numbers<[1], [0], [0], [1], [0, 0, 1, 1], [], []>} : vector<14x8xbf16>, vector<8x32xbf16>, vector<14x32xf32> -> vector<14x32xf32>
    %816 = arith.addf %791, %815 : vector<14x32xf32>
    %817 = vector.extract_strided_slice %754 {offsets = [0, 16], sizes = [14, 8], strides = [1, 1]} : vector<14x32xf32> to vector<14x8xf32>
    %818 = vector.extract_strided_slice %760 {offsets = [0, 16], sizes = [32, 8], strides = [1, 1]} : vector<32x32xf32> to vector<32x8xf32>
    %819 = arith.truncf %817 : vector<14x8xf32> to vector<14x8xbf16>
    %820 = arith.truncf %818 : vector<32x8xf32> to vector<32x8xbf16>
    %cst_237 = arith.constant dense<0.000000e+00> : vector<14x32xf32>
    %821 = tpu.matmul %819, %820, %cst_237 {dimension_numbers = #tpu.dot_dimension_numbers<[1], [1], [0], [0], [0, 0, 1, 0], [], []>} : vector<14x8xbf16>, vector<32x8xbf16>, vector<14x32xf32> -> vector<14x32xf32>
    %cst_238 = arith.constant 0.353553385 : f32
    %822 = vector.broadcast %cst_238 : f32 to vector<14x32xf32>
    %823 = arith.mulf %821, %822 : vector<14x32xf32>
    %824 = arith.addf %823, %746 : vector<14x32xf32>
    %cst_239 = arith.constant dense<0xFF800000> : vector<14xf32>
    %825 = vector.multi_reduction <maximumf>, %824, %cst_239 [1] : vector<14x32xf32> to vector<14xf32>
    %826 = vector.shape_cast %825 : vector<14xf32> to vector<14x1xf32>
    %827 = vector.broadcast %826 : vector<14x1xf32> to vector<14x32xf32>
    %828 = arith.subf %824, %827 : vector<14x32xf32>
    %829 = math.exp %828 : vector<14x32xf32>
    %cst_240 = arith.constant dense<0.000000e+00> : vector<14xf32>
    %830 = vector.multi_reduction <add>, %829, %cst_240 [1] : vector<14x32xf32> to vector<14xf32>
    %831 = vector.shape_cast %830 : vector<14xf32> to vector<14x1xf32>
    %832 = vector.broadcast %831 : vector<14x1xf32> to vector<14x32xf32>
    %833 = arith.divf %829, %832 : vector<14x32xf32>
    %834 = vector.extract_strided_slice %766 {offsets = [0, 16], sizes = [32, 8], strides = [1, 1]} : vector<32x32xf32> to vector<32x8xf32>
    %835 = arith.truncf %833 : vector<14x32xf32> to vector<14x32xbf16>
    %836 = arith.truncf %834 : vector<32x8xf32> to vector<32x8xbf16>
    %cst_241 = arith.constant dense<0.000000e+00> : vector<14x8xf32>
    %837 = tpu.matmul %835, %836, %cst_241 {dimension_numbers = #tpu.dot_dimension_numbers<[1], [0], [0], [1], [0, 0, 1, 1], [], []>} : vector<14x32xbf16>, vector<32x8xbf16>, vector<14x8xf32> -> vector<14x8xf32>
    %838 = vector.extract_strided_slice %767 {offsets = [16, 0], sizes = [8, 32], strides = [1, 1]} : vector<32x32xbf16> to vector<8x32xbf16>
    %839 = arith.truncf %837 : vector<14x8xf32> to vector<14x8xbf16>
    %cst_242 = arith.constant dense<0.000000e+00> : vector<14x32xf32>
    %840 = tpu.matmul %839, %838, %cst_242 {dimension_numbers = #tpu.dot_dimension_numbers<[1], [0], [0], [1], [0, 0, 1, 1], [], []>} : vector<14x8xbf16>, vector<8x32xbf16>, vector<14x32xf32> -> vector<14x32xf32>
    %841 = arith.addf %816, %840 : vector<14x32xf32>
    %842 = vector.extract_strided_slice %754 {offsets = [0, 24], sizes = [14, 8], strides = [1, 1]} : vector<14x32xf32> to vector<14x8xf32>
    %843 = vector.extract_strided_slice %760 {offsets = [0, 24], sizes = [32, 8], strides = [1, 1]} : vector<32x32xf32> to vector<32x8xf32>
    %844 = arith.truncf %842 : vector<14x8xf32> to vector<14x8xbf16>
    %845 = arith.truncf %843 : vector<32x8xf32> to vector<32x8xbf16>
    %cst_243 = arith.constant dense<0.000000e+00> : vector<14x32xf32>
    %846 = tpu.matmul %844, %845, %cst_243 {dimension_numbers = #tpu.dot_dimension_numbers<[1], [1], [0], [0], [0, 0, 1, 0], [], []>} : vector<14x8xbf16>, vector<32x8xbf16>, vector<14x32xf32> -> vector<14x32xf32>
    %cst_244 = arith.constant 0.353553385 : f32
    %847 = vector.broadcast %cst_244 : f32 to vector<14x32xf32>
    %848 = arith.mulf %846, %847 : vector<14x32xf32>
    %849 = arith.addf %848, %746 : vector<14x32xf32>
    %cst_245 = arith.constant dense<0xFF800000> : vector<14xf32>
    %850 = vector.multi_reduction <maximumf>, %849, %cst_245 [1] : vector<14x32xf32> to vector<14xf32>
    %851 = vector.shape_cast %850 : vector<14xf32> to vector<14x1xf32>
    %852 = vector.broadcast %851 : vector<14x1xf32> to vector<14x32xf32>
    %853 = arith.subf %849, %852 : vector<14x32xf32>
    %854 = math.exp %853 : vector<14x32xf32>
    %cst_246 = arith.constant dense<0.000000e+00> : vector<14xf32>
    %855 = vector.multi_reduction <add>, %854, %cst_246 [1] : vector<14x32xf32> to vector<14xf32>
    %856 = vector.shape_cast %855 : vector<14xf32> to vector<14x1xf32>
    %857 = vector.broadcast %856 : vector<14x1xf32> to vector<14x32xf32>
    %858 = arith.divf %854, %857 : vector<14x32xf32>
    %859 = vector.extract_strided_slice %766 {offsets = [0, 24], sizes = [32, 8], strides = [1, 1]} : vector<32x32xf32> to vector<32x8xf32>
    %860 = arith.truncf %858 : vector<14x32xf32> to vector<14x32xbf16>
    %861 = arith.truncf %859 : vector<32x8xf32> to vector<32x8xbf16>
    %cst_247 = arith.constant dense<0.000000e+00> : vector<14x8xf32>
    %862 = tpu.matmul %860, %861, %cst_247 {dimension_numbers = #tpu.dot_dimension_numbers<[1], [0], [0], [1], [0, 0, 1, 1], [], []>} : vector<14x32xbf16>, vector<32x8xbf16>, vector<14x8xf32> -> vector<14x8xf32>
    %863 = vector.extract_strided_slice %767 {offsets = [24, 0], sizes = [8, 32], strides = [1, 1]} : vector<32x32xbf16> to vector<8x32xbf16>
    %864 = arith.truncf %862 : vector<14x8xf32> to vector<14x8xbf16>
    %cst_248 = arith.constant dense<0.000000e+00> : vector<14x32xf32>
    %865 = tpu.matmul %864, %863, %cst_248 {dimension_numbers = #tpu.dot_dimension_numbers<[1], [0], [0], [1], [0, 0, 1, 1], [], []>} : vector<14x8xbf16>, vector<8x32xbf16>, vector<14x32xf32> -> vector<14x32xf32>
    %866 = arith.addf %841, %865 : vector<14x32xf32>
    %c176 = arith.constant 176 : index
    %c0_249 = arith.constant 0 : index
    %867 = vector.load %arg4[%c176, %c0_249] : memref<768x128xf32, #tpu.memory_space<vmem>>, vector<1x32xf32>
    %868 = vector.broadcast %867 : vector<1x32xf32> to vector<14x32xf32>
    %869 = arith.addf %866, %868 : vector<14x32xf32>
    %870 = arith.addf %592, %869 : vector<14x32xf32>
    %cst_250 = arith.constant dense<0.000000e+00> : vector<14xf32>
    %871 = vector.multi_reduction <add>, %870, %cst_250 [1] : vector<14x32xf32> to vector<14xf32>
    %872 = vector.shape_cast %871 : vector<14xf32> to vector<14x1xf32>
    %cst_251 = arith.constant 3.200000e+01 : f32
    %873 = vector.broadcast %cst_251 : f32 to vector<14x1xf32>
    %874 = arith.divf %872, %873 : vector<14x1xf32>
    %875 = vector.broadcast %874 : vector<14x1xf32> to vector<14x32xf32>
    %876 = arith.subf %870, %875 : vector<14x32xf32>
    %877 = arith.mulf %876, %876 : vector<14x32xf32>
    %cst_252 = arith.constant dense<0.000000e+00> : vector<14xf32>
    %878 = vector.multi_reduction <add>, %877, %cst_252 [1] : vector<14x32xf32> to vector<14xf32>
    %879 = vector.shape_cast %878 : vector<14xf32> to vector<14x1xf32>
    %cst_253 = arith.constant 3.200000e+01 : f32
    %880 = vector.broadcast %cst_253 : f32 to vector<14x1xf32>
    %881 = arith.divf %879, %880 : vector<14x1xf32>
    %882 = vector.broadcast %874 : vector<14x1xf32> to vector<14x32xf32>
    %883 = arith.subf %870, %882 : vector<14x32xf32>
    %cst_254 = arith.constant 9.99999974E-6 : f32
    %884 = vector.broadcast %cst_254 : f32 to vector<14x1xf32>
    %885 = arith.addf %881, %884 : vector<14x1xf32>
    %886 = math.rsqrt %885 : vector<14x1xf32>
    %887 = vector.broadcast %886 : vector<14x1xf32> to vector<14x32xf32>
    %888 = arith.mulf %883, %887 : vector<14x32xf32>
    %c248 = arith.constant 248 : index
    %c0_255 = arith.constant 0 : index
    %889 = vector.load %arg4[%c248, %c0_255] : memref<768x128xf32, #tpu.memory_space<vmem>>, vector<1x32xf32>
    %890 = vector.broadcast %889 : vector<1x32xf32> to vector<14x32xf32>
    %891 = arith.mulf %888, %890 : vector<14x32xf32>
    %c256 = arith.constant 256 : index
    %c0_256 = arith.constant 0 : index
    %892 = vector.load %arg4[%c256, %c0_256] : memref<768x128xf32, #tpu.memory_space<vmem>>, vector<1x32xf32>
    %893 = vector.broadcast %892 : vector<1x32xf32> to vector<14x32xf32>
    %894 = arith.addf %891, %893 : vector<14x32xf32>
    %c704 = arith.constant 704 : index
    %c0_257 = arith.constant 0 : index
    %895 = vector.load %arg3[%c704, %c0_257] : memref<896x128xbf16, #tpu.memory_space<vmem>>, vector<32x64xbf16>
    %896 = arith.truncf %743 : vector<32x32xf32> to vector<32x32xbf16>
    %cst_258 = arith.constant dense<0.000000e+00> : vector<32x64xf32>
    %897 = tpu.matmul %896, %895, %cst_258 {dimension_numbers = #tpu.dot_dimension_numbers<[1], [0], [0], [1], [0, 0, 1, 1], [], []>} : vector<32x32xbf16>, vector<32x64xbf16>, vector<32x64xf32> -> vector<32x64xf32>
    %c472 = arith.constant 472 : index
    %c0_259 = arith.constant 0 : index
    %898 = vector.load %arg4[%c472, %c0_259] : memref<768x128xf32, #tpu.memory_space<vmem>>, vector<1x64xf32>
    %899 = vector.broadcast %898 : vector<1x64xf32> to vector<32x64xf32>
    %900 = arith.addf %897, %899 : vector<32x64xf32>
    %c504 = arith.constant 504 : index
    %c0_260 = arith.constant 0 : index
    %901 = vector.load %arg4[%c504, %c0_260] : memref<768x128xf32, #tpu.memory_space<vmem>>, vector<64x4xf32>
    %cst_261 = arith.constant dense<0.000000e+00> : vector<32x4xf32>
    %902 = tpu.matmul %900, %901, %cst_261 {dimension_numbers = #tpu.dot_dimension_numbers<[1], [0], [0], [1], [0, 0, 1, 1], [], []>} : vector<32x64xf32>, vector<64x4xf32>, vector<32x4xf32> -> vector<32x4xf32>
    %cst_262 = arith.constant 6.250000e-02 : f32
    %903 = vector.broadcast %cst_262 : f32 to vector<32x4xf32>
    %904 = arith.mulf %902, %903 : vector<32x4xf32>
    %c568 = arith.constant 568 : index
    %c0_263 = arith.constant 0 : index
    %905 = vector.load %arg4[%c568, %c0_263] : memref<768x128xf32, #tpu.memory_space<vmem>>, vector<4x64xf32>
    %cst_264 = arith.constant dense<0.000000e+00> : vector<32x64xf32>
    %906 = tpu.matmul %904, %905, %cst_264 {dimension_numbers = #tpu.dot_dimension_numbers<[1], [0], [0], [1], [0, 0, 1, 1], [], []>} : vector<32x4xf32>, vector<4x64xf32>, vector<32x64xf32> -> vector<32x64xf32>
    %907 = arith.subf %900, %906 : vector<32x64xf32>
    %908 = arith.mulf %907, %907 : vector<32x64xf32>
    %c504_265 = arith.constant 504 : index
    %c0_266 = arith.constant 0 : index
    %909 = vector.load %arg4[%c504_265, %c0_266] : memref<768x128xf32, #tpu.memory_space<vmem>>, vector<64x4xf32>
    %cst_267 = arith.constant dense<0.000000e+00> : vector<32x4xf32>
    %910 = tpu.matmul %908, %909, %cst_267 {dimension_numbers = #tpu.dot_dimension_numbers<[1], [0], [0], [1], [0, 0, 1, 1], [], []>} : vector<32x64xf32>, vector<64x4xf32>, vector<32x4xf32> -> vector<32x4xf32>
    %cst_268 = arith.constant 6.250000e-02 : f32
    %911 = vector.broadcast %cst_268 : f32 to vector<32x4xf32>
    %912 = arith.mulf %910, %911 : vector<32x4xf32>
    %c568_269 = arith.constant 568 : index
    %c0_270 = arith.constant 0 : index
    %913 = vector.load %arg4[%c568_269, %c0_270] : memref<768x128xf32, #tpu.memory_space<vmem>>, vector<4x64xf32>
    %cst_271 = arith.constant dense<0.000000e+00> : vector<32x64xf32>
    %914 = tpu.matmul %912, %913, %cst_271 {dimension_numbers = #tpu.dot_dimension_numbers<[1], [0], [0], [1], [0, 0, 1, 1], [], []>} : vector<32x4xf32>, vector<4x64xf32>, vector<32x64xf32> -> vector<32x64xf32>
    %cst_272 = arith.constant 9.99999997E-7 : f32
    %915 = vector.broadcast %cst_272 : f32 to vector<32x64xf32>
    %916 = arith.addf %914, %915 : vector<32x64xf32>
    %917 = math.rsqrt %916 : vector<32x64xf32>
    %918 = arith.mulf %907, %917 : vector<32x64xf32>
    %c480_273 = arith.constant 480 : index
    %c0_274 = arith.constant 0 : index
    %919 = vector.load %arg4[%c480_273, %c0_274] : memref<768x128xf32, #tpu.memory_space<vmem>>, vector<1x64xf32>
    %920 = vector.broadcast %919 : vector<1x64xf32> to vector<32x64xf32>
    %921 = arith.mulf %918, %920 : vector<32x64xf32>
    %c488 = arith.constant 488 : index
    %c0_275 = arith.constant 0 : index
    %922 = vector.load %arg4[%c488, %c0_275] : memref<768x128xf32, #tpu.memory_space<vmem>>, vector<1x64xf32>
    %923 = vector.broadcast %922 : vector<1x64xf32> to vector<32x64xf32>
    %924 = arith.addf %921, %923 : vector<32x64xf32>
    %925 = arith.mulf %924, %924 : vector<32x64xf32>
    %926 = arith.mulf %924, %925 : vector<32x64xf32>
    %cst_276 = arith.constant 4.471500e-02 : f32
    %927 = vector.broadcast %cst_276 : f32 to vector<32x64xf32>
    %928 = arith.mulf %927, %926 : vector<32x64xf32>
    %929 = arith.addf %924, %928 : vector<32x64xf32>
    %cst_277 = arith.constant 0.797884583 : f32
    %930 = vector.broadcast %cst_277 : f32 to vector<32x64xf32>
    %931 = arith.mulf %930, %929 : vector<32x64xf32>
    %932 = math.tanh %931 : vector<32x64xf32>
    %cst_278 = arith.constant 1.000000e+00 : f32
    %933 = vector.broadcast %cst_278 : f32 to vector<32x64xf32>
    %934 = arith.addf %933, %932 : vector<32x64xf32>
    %cst_279 = arith.constant 5.000000e-01 : f32
    %935 = vector.broadcast %cst_279 : f32 to vector<32x64xf32>
    %936 = arith.mulf %935, %934 : vector<32x64xf32>
    %937 = arith.mulf %924, %936 : vector<32x64xf32>
    %c736 = arith.constant 736 : index
    %c0_280 = arith.constant 0 : index
    %938 = vector.load %arg3[%c736, %c0_280] : memref<896x128xbf16, #tpu.memory_space<vmem>>, vector<64x128xbf16>
    %939 = arith.truncf %937 : vector<32x64xf32> to vector<32x64xbf16>
    %cst_281 = arith.constant dense<0.000000e+00> : vector<32x128xf32>
    %940 = tpu.matmul %939, %938, %cst_281 {dimension_numbers = #tpu.dot_dimension_numbers<[1], [0], [0], [1], [0, 0, 1, 1], [], []>} : vector<32x64xbf16>, vector<64x128xbf16>, vector<32x128xf32> -> vector<32x128xf32>
    %c496 = arith.constant 496 : index
    %c0_282 = arith.constant 0 : index
    %941 = vector.load %arg4[%c496, %c0_282] : memref<768x128xf32, #tpu.memory_space<vmem>>, vector<1x128xf32>
    %942 = vector.broadcast %941 : vector<1x128xf32> to vector<32x128xf32>
    %943 = arith.addf %940, %942 : vector<32x128xf32>
    %944 = arith.mulf %943, %943 : vector<32x128xf32>
    %945 = arith.mulf %943, %944 : vector<32x128xf32>
    %cst_283 = arith.constant 4.471500e-02 : f32
    %946 = vector.broadcast %cst_283 : f32 to vector<32x128xf32>
    %947 = arith.mulf %946, %945 : vector<32x128xf32>
    %948 = arith.addf %943, %947 : vector<32x128xf32>
    %cst_284 = arith.constant 0.797884583 : f32
    %949 = vector.broadcast %cst_284 : f32 to vector<32x128xf32>
    %950 = arith.mulf %949, %948 : vector<32x128xf32>
    %951 = math.tanh %950 : vector<32x128xf32>
    %cst_285 = arith.constant 1.000000e+00 : f32
    %952 = vector.broadcast %cst_285 : f32 to vector<32x128xf32>
    %953 = arith.addf %952, %951 : vector<32x128xf32>
    %cst_286 = arith.constant 5.000000e-01 : f32
    %954 = vector.broadcast %cst_286 : f32 to vector<32x128xf32>
    %955 = arith.mulf %954, %953 : vector<32x128xf32>
    %956 = arith.mulf %943, %955 : vector<32x128xf32>
    %957 = vector.extract_strided_slice %894 {offsets = [1, 0], sizes = [1, 32], strides = [1, 1]} : vector<14x32xf32> to vector<1x32xf32>
    %958 = vector.extract_strided_slice %894 {offsets = [8, 0], sizes = [1, 32], strides = [1, 1]} : vector<14x32xf32> to vector<1x32xf32>
    %959 = tpu.concatenate %957, %958 in 0 : vector<1x32xf32>, vector<1x32xf32> -> vector<2x32xf32>
    %c800 = arith.constant 800 : index
    %c0_287 = arith.constant 0 : index
    %960 = vector.load %arg3[%c800, %c0_287] : memref<896x128xbf16, #tpu.memory_space<vmem>>, vector<32x32xbf16>
    %961 = arith.truncf %959 : vector<2x32xf32> to vector<2x32xbf16>
    %cst_288 = arith.constant dense<0.000000e+00> : vector<2x32xf32>
    %962 = tpu.matmul %961, %960, %cst_288 {dimension_numbers = #tpu.dot_dimension_numbers<[1], [0], [0], [1], [0, 0, 1, 1], [], []>} : vector<2x32xbf16>, vector<32x32xbf16>, vector<2x32xf32> -> vector<2x32xf32>
    %c744 = arith.constant 744 : index
    %c0_289 = arith.constant 0 : index
    %963 = vector.load %arg4[%c744, %c0_289] : memref<768x128xf32, #tpu.memory_space<vmem>>, vector<1x32xf32>
    %964 = vector.broadcast %963 : vector<1x32xf32> to vector<2x32xf32>
    %965 = arith.addf %962, %964 : vector<2x32xf32>
    %cst_290 = arith.constant 0.000000e+00 : f32
    %966 = vector.broadcast %cst_290 : f32 to vector<2x32xf32>
    %967 = arith.maximumf %965, %966 : vector<2x32xf32>
    %c832 = arith.constant 832 : index
    %c0_291 = arith.constant 0 : index
    %968 = vector.load %arg3[%c832, %c0_291] : memref<896x128xbf16, #tpu.memory_space<vmem>>, vector<32x32xbf16>
    %969 = arith.truncf %967 : vector<2x32xf32> to vector<2x32xbf16>
    %cst_292 = arith.constant dense<0.000000e+00> : vector<2x32xf32>
    %970 = tpu.matmul %969, %968, %cst_292 {dimension_numbers = #tpu.dot_dimension_numbers<[1], [0], [0], [1], [0, 0, 1, 1], [], []>} : vector<2x32xbf16>, vector<32x32xbf16>, vector<2x32xf32> -> vector<2x32xf32>
    %c752 = arith.constant 752 : index
    %c0_293 = arith.constant 0 : index
    %971 = vector.load %arg4[%c752, %c0_293] : memref<768x128xf32, #tpu.memory_space<vmem>>, vector<1x32xf32>
    %972 = vector.broadcast %971 : vector<1x32xf32> to vector<2x32xf32>
    %973 = arith.addf %970, %972 : vector<2x32xf32>
    %cst_294 = arith.constant 0.000000e+00 : f32
    %974 = vector.broadcast %cst_294 : f32 to vector<2x32xf32>
    %975 = arith.maximumf %973, %974 : vector<2x32xf32>
    %c864 = arith.constant 864 : index
    %c0_295 = arith.constant 0 : index
    %976 = vector.load %arg3[%c864, %c0_295] : memref<896x128xbf16, #tpu.memory_space<vmem>>, vector<32x8xbf16>
    %977 = arith.truncf %975 : vector<2x32xf32> to vector<2x32xbf16>
    %cst_296 = arith.constant dense<0.000000e+00> : vector<2x8xf32>
    %978 = tpu.matmul %977, %976, %cst_296 {dimension_numbers = #tpu.dot_dimension_numbers<[1], [0], [0], [1], [0, 0, 1, 1], [], []>} : vector<2x32xbf16>, vector<32x8xbf16>, vector<2x8xf32> -> vector<2x8xf32>
    %c760 = arith.constant 760 : index
    %c0_297 = arith.constant 0 : index
    %979 = vector.load %arg4[%c760, %c0_297] : memref<768x128xf32, #tpu.memory_space<vmem>>, vector<1x8xf32>
    %980 = vector.broadcast %979 : vector<1x8xf32> to vector<2x8xf32>
    %981 = arith.addf %978, %980 : vector<2x8xf32>
    %c704_298 = arith.constant 704 : index
    %c0_299 = arith.constant 0 : index
    %982 = vector.load %arg4[%c704_298, %c0_299] : memref<768x128xf32, #tpu.memory_space<vmem>>, vector<8x128xf32>
    %cst_300 = arith.constant dense<0.000000e+00> : vector<2x128xf32>
    %983 = tpu.matmul %981, %982, %cst_300 {dimension_numbers = #tpu.dot_dimension_numbers<[1], [0], [0], [1], [0, 0, 1, 1], [], []>} : vector<2x8xf32>, vector<8x128xf32>, vector<2x128xf32> -> vector<2x128xf32>
    %c712 = arith.constant 712 : index
    %c0_301 = arith.constant 0 : index
    %984 = vector.load %arg4[%c712, %c0_301] : memref<768x128xf32, #tpu.memory_space<vmem>>, vector<32x2xf32>
    %cst_302 = arith.constant dense<0.000000e+00> : vector<32x128xf32>
    %985 = tpu.matmul %984, %983, %cst_302 {dimension_numbers = #tpu.dot_dimension_numbers<[1], [0], [0], [1], [0, 0, 1, 1], [], []>} : vector<32x2xf32>, vector<2x128xf32>, vector<32x128xf32> -> vector<32x128xf32>
    %986 = arith.mulf %956, %985 : vector<32x128xf32>
    %c576_303 = arith.constant 576 : index
    %c0_304 = arith.constant 0 : index
    %987 = vector.load %arg4[%c576_303, %c0_304] : memref<768x128xf32, #tpu.memory_space<vmem>>, vector<128x16xf32>
    %cst_305 = arith.constant dense<0.000000e+00> : vector<32x16xf32>
    %988 = tpu.matmul %986, %987, %cst_305 {dimension_numbers = #tpu.dot_dimension_numbers<[1], [0], [0], [1], [0, 0, 1, 1], [], []>} : vector<32x128xf32>, vector<128x16xf32>, vector<32x16xf32> -> vector<32x16xf32>
    %c0_306 = arith.constant 0 : index
    %c0_307 = arith.constant 0 : index
    %989 = vector.load %arg5[%c0_306, %c0_307] : memref<32x16xf32, #tpu.memory_space<vmem>>, vector<32x16xf32>
    tpu.vector_store %arg5[%c0_306, %c0_307], %988 {strides = array<i32>} : memref<32x16xf32, #tpu.memory_space<vmem>>, vector<32x16xf32>,
    return
  }
  func.func @transform_0(%arg0: i32) -> (i32, i32) {
    %c0_i32 = arith.constant 0 : i32
    %c0_i32_0 = arith.constant 0 : i32
    %c0_i32_1 = arith.constant 0 : i32
    return %c0_i32, %c0_i32_0 : i32, i32
  }
  func.func @transform_1(%arg0: i32) -> (i32, i32) {
    %c0_i32 = arith.constant 0 : i32
    %c0_i32_0 = arith.constant 0 : i32
    %c0_i32_1 = arith.constant 0 : i32
    return %c0_i32, %c0_i32_0 : i32, i32
  }
  func.func @transform_2(%arg0: i32) -> (i32, i32) {
    %c0_i32 = arith.constant 0 : i32
    %c0_i32_0 = arith.constant 0 : i32
    %c0_i32_1 = arith.constant 0 : i32
    return %c0_i32, %c0_i32_0 : i32, i32
  }
  func.func @transform_3(%arg0: i32) -> (i32, i32) {
    %c0_i32 = arith.constant 0 : i32
    %c0_i32_0 = arith.constant 0 : i32
    %c0_i32_1 = arith.constant 0 : i32
    return %c0_i32, %c0_i32_0 : i32, i32
  }
  func.func @transform_4(%arg0: i32) -> (i32, i32) {
    %c0_i32 = arith.constant 0 : i32
    %c0_i32_0 = arith.constant 0 : i32
    %c0_i32_1 = arith.constant 0 : i32
    return %c0_i32, %c0_i32_0 : i32, i32
  }
}

</mosaic_0001>

<bundles_post_ra>
// kernel: _lambda_.1
= control target key start
LH: loop header
LB: loop body
LE: loop exit
PB: predicated region body
PF: predicated region fallthrough
CT: control target
= control target key end

     0   :  { %v9402_v0 = vmov 0   ;;  %vm131_vm0 = vcmask 523264   ;;  %vm195_vm1 = vcmask 261120   ;;  %s9403_s16 = smov 96   ;;  %s9404_s19 = smov 64   ;;  %vm474_vm2 = vcmask 64512   ;;  %s11287_s2 = inlined_call_operand.vmem [shape: bf16[896,128], index: 2, kind: input, shape index: {}]   ;;  %s11288_s0 = inlined_call_operand.vmem [shape: f32[32,192], index: 0, kind: input, shape index: {}]   ;;  %s11289_s3 = inlined_call_operand.vmem [shape: f32[768,128], index: 3, kind: input, shape index: {}]   ;;  %s11290_s1 = inlined_call_operand.vmem [shape: f32[4,2], index: 1, kind: input, shape index: {}]   ;;  %s11291_s4 = inlined_call_operand.vmem [shape: f32[32,16], index: 4, kind: output, shape index: {}]  }
   0x1   :  { %138 = vmatprep.subr.bf16.mxu0 %v9402_v0  ;;  %v9042_v1 = vld [vmem:[%s11287_s2] sm:$0xff]   ;;  %v9043_v2 = vld [vmem:[%s11287_s2 + $0x8] sm:$0xff]   ;;  %v9044_v3 = vld [vmem:[%s11287_s2 + $0x10] sm:$0xff]   ;;  %s9405_s24 = smov 120   ;;  %s9406_s25 = smov 112   ;;  %vm847_vm3 = vcmask 1043456  }
   0x2   :  { %139 = vmatpush1.bf16.msra.mxu0 %v9042_v1  ;;  %v9045_v4 = vld [vmem:[%s11287_s2 + $0x18] sm:$0xff]   ;;  %v19_v5 = vld [vmem:[%s11288_s0 + $0x8] sm:$0xff]  ;;  %v9046_v8 = vld [vmem:[%s11287_s2 + $0x20] sm:$0xff]   ;;  %s9407_s8 = smov 104   ;;  %vm1831_vm4 = vcmask 1041408   ;;  %vm9409_vm5 = vmmov 0  }
   0x3   :  { %140 = vmatprep.subr.bf16.mxu0 %v9402_v0  ;;  %v21_v6 = vld [vmem:[%s11288_s0 + $0x18] sm:$0xff]  ;;  %v9047_v9 = vld [vmem:[%s11287_s2 + $0x28] sm:$0xff]   ;;  %v9048_v10 = vld [vmem:[%s11287_s2 + $0x30] sm:$0xff]   ;;  %vm1827_vm6 = vcmask 15360  }
   0x4   :  { %v51_v7 = vpack.c.bf16 %v21_v6, %v19_v5  ;;  %v9049_v11 = vld [vmem:[%s11287_s2 + $0x38] sm:$0xff]   ;;  %v9050_v12 = vld [vmem:[%s11287_s2 + $0x40] sm:$0xff]   ;;  %v9051_v13 = vld [vmem:[%s11287_s2 + $0x48] sm:$0xff]  }
   0x5   :  { %v9052_v14 = vld [vmem:[%s11287_s2 + $0x50] sm:$0xff]   ;;  %v9053_v15 = vld [vmem:[%s11287_s2 + $0x58] sm:$0xff]   ;;  %v18_v16 = vld [vmem:[%s11288_s0] sm:$0xff] }
   0x6   :  { %141 = vmatpush1.bf16.msra.mxu0 %v9043_v2  ;;  %7626 = vmatprep.mubr.msk.bf16.mxu0 %vm131_vm0, %v51_v7  ;;  %v20_v17 = vld [vmem:[%s11288_s0 + $0x10] sm:$0xff]  ;;  %v23_v18 = vld [vmem:[%s11288_s0 + $0x28] sm:$0xff]  ;;  %v25_v19 = vld [vmem:[%s11288_s0 + $0x38] sm:$0xff] }
   0x7   :  { %142 = vmatprep.subr.bf16.mxu0 %v9402_v0  ;;  %v50_v20 = vpack.c.bf16 %v20_v17, %v18_v16  ;;  %v53_v21 = vpack.c.bf16 %v25_v19, %v23_v18  ;;  %v22_v22 = vld [vmem:[%s11288_s0 + $0x20] sm:$0xff]  ;;  %v24_v23 = vld [vmem:[%s11288_s0 + $0x30] sm:$0xff]  ;;  %v187_v27 = vld [vmem:[%s11289_s3 + $0x8] sm:$0xff] }
   0x8   :  { %v52_v24 = vpack.c.bf16 %v24_v23, %v22_v22  ;;  %v7613_v25 = vld [vmem:[%s11289_s3] ss:$0 sm:$0xff]  ;;  %v188_v31 = vld [vmem:[%s11289_s3 + $0x10] sm:$0xff]  ;;  %v189_v38 = vld [vmem:[%s11289_s3 + $0x18] sm:$0xff] }
   0x9   :  { %v190_v43 = vld [vmem:[%s11289_s3 + $0x20] sm:$0xff]  ;;  %v9054_v50 = vld [vmem:[%s11287_s2 + $0x90] sm:$0xff]   ;;  %v9055_v51 = vld [vmem:[%s11287_s2 + $0x98] sm:$0xff]  }
   0xa   :  { %143 = vmatpush1.bf16.msra.mxu0 %v9044_v3 }
   0xb   :  { %144 = vmatprep.subr.bf16.mxu0 %v9402_v0 }
   0xe   :  { %145 = vmatpush1.bf16.msra.mxu0 %v9045_v4 }
   0xf   :  { %146 = vmatprep.subr.bf16.mxu0 %v9402_v0 }
  0x12   :  { %147 = vmatpush1.bf16.msra.mxu0 %v9046_v8  ;;  %v9553_v8 = vld [vmem:[%s11289_s3 + $0x68] ss:$0 sm:$0xff] }
  0x13   :  { %148 = vmatprep.subr.bf16.mxu0 %v9402_v0 }
  0x16   :  { %149 = vmatpush1.bf16.msra.mxu0 %v9047_v9 }
  0x17   :  { %150 = vmatprep.subr.bf16.mxu0 %v9402_v0 }
  0x1a   :  { %151 = vmatpush1.bf16.msra.mxu0 %v9048_v10 }
  0x1b   :  { %152 = vmatprep.subr.bf16.mxu0 %v9402_v0 }
  0x1e   :  { %153 = vmatpush1.bf16.msra.mxu0 %v9049_v11 }
  0x1f   :  { %154 = vmatprep.subr.bf16.mxu0 %v9402_v0 }
  0x22   :  { %155 = vmatpush1.bf16.msra.mxu0 %v9050_v12 }
  0x23   :  { %156 = vmatprep.subr.bf16.mxu0 %v9402_v0 }
  0x26   :  { %157 = vmatpush1.bf16.msra.mxu0 %v9051_v13 }
  0x27   :  { %158 = vmatprep.subr.bf16.mxu0 %v9402_v0 }
  0x2a   :  { %159 = vmatpush1.bf16.msra.mxu0 %v9052_v14 }
  0x2b   :  { %160 = vmatprep.subr.bf16.mxu0 %v9402_v0 }
  0x2e   :  { %161 = vmatpush1.bf16.msra.mxu0 %v9053_v15 }
  0x2f   :  { %8179 = vmatprep.subr.bf16.mxu0 %v9054_v50 }
  0x31   :  { %171 = vmatmul.mubr.bf16.vlgmr.msra.gmra.mrb[0].mxu0 %v50_v20 }
  0x32   :  { %7627 = vmatprep.mubr.msk.bf16.mxu0 %vm131_vm0, %v53_v21  ;;  %8180 = vmatpush3.bf16.msra.mxu0 %v9054_v50 }
  0x33   :  { %8181 = vmatprep.subr.bf16.mxu0 %v9055_v51 }
  0x36   :  { %8182 = vmatpush3.bf16.msra.mxu0 %v9055_v51 }
  0x39   :  { %179 = vmatmul.mubr.bf16.gmra.mrb[4].mxu0 %v52_v24 }
 0x104   :  { %v172_v26 = vpop.f32.mrb[0].mxu0 }
 0x105   :  { %v173_v28 = vadd.f32 %v7613_v25, %v172_v26  ;;  %v174_v29 = vpop.f32.mrb[1].mxu0 }
 0x106   :  { %v175_v30 = vpop.f32.mrb[2].mxu0 }
 0x107   :  { %v9512_v32 = vadd.f32 %v187_v27, %v173_v28  ;;  %v176_v33 = vadd.f32 %v7613_v25, %v175_v30  ;;  %v177_v34 = vpop.f32.mrb[3].mxu0  ;;  %v7629_v30 = vld [vmem:[%s11289_s3 + $0x30] ss:$0 sm:$0xff] }
 0x109   :  { %v9514_v35 = vadd.f32 %v188_v31, %v176_v33  ;;  %v196_v36 = vsel %vm195_vm1, %v9512_v32, 0.0 }
 0x10a   :  { %197 = vadd.xlane.f32.xlu0 %v196_v36 }
 0x10b   :  { %v199_v41 = vsel %vm195_vm1, %v9514_v35, 0.0 }
 0x10c   :  { %v180_v37 = vpop.f32.mrb[4].mxu0 }
 0x10d   :  { %v181_v39 = vadd.f32 %v7613_v25, %v180_v37  ;;  %v182_v40 = vpop.f32.mrb[5].mxu0 }
 0x10e   :  { %v183_v42 = vpop.f32.mrb[6].mxu0  ;;  %200 = vadd.xlane.f32.xlu0 %v199_v41 }
 0x10f   :  { %v9526_v44 = vadd.f32 %v189_v38, %v181_v39  ;;  %v184_v45 = vadd.f32 %v7613_v25, %v183_v42  ;;  %v185_v46 = vpop.f32.mrb[7].mxu0  ;;  %v7628_v25 = vld [vmem:[%s11289_s3 + $0x28] ss:$0 sm:$0xff] }
 0x111   :  { %v9528_v47 = vadd.f32 %v190_v43, %v184_v45  ;;  %v202_v48 = vsel %vm195_vm1, %v9526_v44, 0.0 }
 0x112   :  { %203 = vadd.xlane.f32.xlu1 %v202_v48 }
 0x113   :  { %v205_v49 = vsel %vm195_vm1, %v9528_v47, 0.0 }
 0x116   :  { %206 = vadd.xlane.f32.xlu1 %v205_v49 }
 0x197   :  { %v198_v52 = vpop.xlane.xlu0 %197 }
 0x198   :  { %v209_v53 = vmul.f32 0.03125, %v198_v52 }
 0x19a   :  { %v213_v54 = vsub.f32 %v9512_v32, %v209_v53 }
 0x19b   :  { %v201_v55 = vpop.xlane.xlu0 %200 }
 0x19c   :  { %v210_v56 = vmul.f32 0.03125, %v201_v55  ;;  %v217_v57 = vmul.f32 %v213_v54, %v213_v54 }
 0x19e   :  { %v214_v58 = vsub.f32 %v9514_v35, %v210_v56  ;;  %v221_v59 = vsel %vm195_vm1, %v217_v57, 0.0 }
 0x19f   :  { %v204_v60 = vpop.xlane.xlu1 %203  ;;  %222 = vadd.xlane.f32.xlu0 %v221_v59 }
 0x1a0   :  { %v211_v61 = vmul.f32 0.03125, %v204_v60  ;;  %v218_v62 = vmul.f32 %v214_v58, %v214_v58 }
 0x1a2   :  { %v215_v63 = vsub.f32 %v9526_v44, %v211_v61  ;;  %v224_v0 = vsel %vm195_vm1, %v218_v62, 0.0 }
 0x1a3   :  { %v207_v1 = vpop.xlane.xlu1 %206  ;;  %225 = vadd.xlane.f32.xlu1 %v224_v0 }
 0x1a4   :  { %v212_v2 = vmul.f32 0.03125, %v207_v1  ;;  %v219_v3 = vmul.f32 %v215_v63, %v215_v63 }
 0x1a6   :  { %v216_v4 = vsub.f32 %v9528_v47, %v212_v2  ;;  %v227_v5 = vsel %vm195_vm1, %v219_v3, 0.0 }
 0x1a7   :  { %228 = vadd.xlane.f32.xlu0 %v227_v5 }
 0x1a8   :  { %v220_v6 = vmul.f32 %v216_v4, %v216_v4 }
 0x1aa   :  { %v230_v7 = vsel %vm195_vm1, %v220_v6, 0.0 }
 0x1ab   :  { %231 = vadd.xlane.f32.xlu1 %v230_v7 }
 0x1bc   :  { %351 = vrot.lane.b32.xlu1 %v9055_v51, %s9403_s16 }
 0x1bd   :  { %349 = vrot.lane.b32.xlu0 %v9054_v50, %s9403_s16 }
 0x1c0   :  { %356 = vrot.lane.b32.xlu1 %v9553_v8, %s9403_s16 }
 0x1c1   :  { %410 = vrot.lane.b32.xlu0 %v9055_v51, %s9404_s19 }
 0x1c4   :  { %408 = vrot.lane.b32.xlu1 %v9054_v50, %s9404_s19 }
 0x22c   :  { %v223_v9 = vpop.xlane.xlu0 %222 }
 0x22d   :  { %v233_v10 = vmul.f32 0.03125, %v223_v9 }
 0x22f   :  { %v237_v11 = vadd.f32 1e-05, %v233_v10 }
 0x230   :  { %v226_v12 = vpop.xlane.xlu1 %225 }
 0x231   :  { %9088 = vrsqrt.f32 %v237_v11  ;;  %v234_v13 = vmul.f32 0.03125, %v226_v12 }
 0x233   :  { %v238_v14 = vadd.f32 1e-05, %v234_v13 }
 0x234   :  { %v229_v15 = vpop.xlane.xlu0 %228 }
 0x235   :  { %9090 = vrsqrt.f32 %v238_v14  ;;  %v235_v16 = vmul.f32 0.03125, %v229_v15 }
 0x237   :  { %v239_v17 = vadd.f32 1e-05, %v235_v16 }
 0x238   :  { %v232_v18 = vpop.xlane.xlu1 %231  ;;  %v350_v19 = vpop.permute.xlu0 %349 }
 0x239   :  { %9092 = vrsqrt.f32 %v239_v17  ;;  %v236_v20 = vmul.f32 0.03125, %v232_v18  ;;  %8187 = vmatprep.subr.bf16.mxu1 %v350_v19 }
 0x23a   :  { %8188 = vmatpush3.bf16.msra.mxu1 %v350_v19 }
 0x23b   :  { %v9089_v21 = vpop.eup %9088  ;;  %v240_v22 = vadd.f32 1e-05, %v236_v20 }
 0x23c   :  { %v352_v23 = vpop.permute.xlu1 %351  ;;  %v245_v24 = vmul.f32 %v9089_v21, %v213_v54  ;;  %v411_v49 = vpop.permute.xlu0 %410 }
 0x23d   :  { %9094 = vrsqrt.f32 %v240_v22  ;;  %8189 = vmatprep.subr.bf16.mxu1 %v352_v23 }
 0x23e   :  { %8190 = vmatpush3.bf16.msra.mxu1 %v352_v23  ;;  %v254_v28 = vmul.f32 %v7628_v25, %v245_v24 }
 0x23f   :  { %v9091_v26 = vpop.eup %9090 }
 0x240   :  { %v246_v27 = vmul.f32 %v9091_v26, %v214_v58  ;;  %v357_v29 = vpop.permute.xlu1 %356  ;;  %v263_v36 = vadd.f32 %v7629_v30, %v254_v28  ;;  %v9634_v26 = vld [vmem:[%s11289_s3 + $0x188] sm:$0xff] }
 0x242   :  { %v255_v31 = vmul.f32 %v7628_v25, %v246_v27 }
 0x243   :  { %v9093_v33 = vpop.eup %9092 }
 0x244   :  { %v247_v34 = vmul.f32 %v9093_v33, %v215_v63  ;;  %v264_v37 = vadd.f32 %v7629_v30, %v255_v31  ;;  %v409_v38 = vpop.permute.xlu1 %408 }
 0x245   :  { %8195 = vmatprep.subr.bf16.mxu1 %v409_v38 }
 0x246   :  { %v276_v39 = vpack.c.bf16 %v264_v37, %v263_v36  ;;  %v256_v42 = vmul.f32 %v7628_v25, %v247_v34  ;;  %v9645_v36 = vld [vmem:[%s11289_s3 + $0x180] sm:$0xff] }
 0x247   :  { %v9095_v40 = vpop.eup %9094 }
 0x248   :  { %v248_v41 = vmul.f32 %v9095_v40, %v216_v4  ;;  %8183 = vmatprep.mubr.msk.bf16.mxu0 %vm195_vm1, %v276_v39  ;;  %8191 = vmatprep.mubr.msk.bf16.mxu1 %vm195_vm1, %v276_v39  ;;  %v265_v45 = vadd.f32 %v7629_v30, %v256_v42 }
 0x24a   :  { %v257_v43 = vmul.f32 %v7628_v25, %v248_v41 }
 0x24c   :  { %v266_v46 = vadd.f32 %v7629_v30, %v257_v43  ;;  %v9654_v43 = vld [vmem:[%s11289_s3 + $0x190] sm:$0xff] }
 0x24e   :  { %v277_v48 = vpack.c.bf16 %v266_v46, %v265_v45 }
 0x250   :  { %8184 = vmatmul.mubr.msk.bf16.vlgmr.msra.gmra.mrb[8].mxu0 %vm195_vm1, %v277_v48  ;;  %8192 = vmatmul.mubr.msk.bf16.vlgmr.msra.gmra.mrb[0].mxu1 %vm195_vm1, %v277_v48 }
 0x251   :  { %8196 = vmatpush3.bf16.msra.mxu1 %v409_v38  ;;  %8199 = vmatprep.mubr.msk.bf16.mxu1 %vm195_vm1, %v276_v39 }
 0x252   :  { %8197 = vmatprep.subr.bf16.mxu1 %v411_v49 }
 0x255   :  { %8198 = vmatpush3.bf16.msra.mxu1 %v411_v49 }
 0x258   :  { %8200 = vmatmul.mubr.msk.bf16.vlgmr.msra.gmra.mrb[4].mxu1 %vm195_vm1, %v277_v48 }
 0x323   :  { %v8185_v50 = vpop.f32.mrb[8].mxu0  ;;  %v8193_v51 = vpop.f32.mrb[0].mxu1 }
 0x324   :  { %v334_v52 = vpop.f32.mrb[9].mxu0  ;;  %v393_v53 = vpop.f32.mrb[1].mxu1  ;;  %v343_v56 = vadd.f32 %v8185_v50, %v9553_v8  ;;  %v402_v57 = vadd.f32 %v8193_v51, %v357_v29 }
 0x325   :  { %v8186_v54 = vpop.f32.mrb[10].mxu0  ;;  %v8194_v55 = vpop.f32.mrb[2].mxu1  ;;  %v335_v62 = vadd.f32 %v9553_v8, %v334_v52  ;;  %v394_v63 = vadd.f32 %v393_v53, %v357_v29 }
 0x326   :  { %v346_v58 = vadd.f32 %v8186_v54, %v9553_v8  ;;  %v405_v59 = vadd.f32 %v8194_v55, %v357_v29  ;;  %v337_v60 = vpop.f32.mrb[11].mxu0  ;;  %v396_v61 = vpop.f32.mrb[3].mxu1 }
 0x327   :  { %v338_v0 = vadd.f32 %v9553_v8, %v337_v60  ;;  %v397_v1 = vadd.f32 %v396_v61, %v357_v29  ;;  %v9639_v29 = vld [vmem:[%s11289_s3 + $0x178] sm:$0xff] }
 0x328   :  { %v9575_v2 = vpack.c.bf16 %v346_v58, %v343_v56  ;;  %v9577_v3 = vpack.c.bf16 %v405_v59, %v402_v57 }
 0x329   :  { %v9579_v4 = vpack.c.bf16 %v338_v0, %v335_v62  ;;  %v9581_v5 = vpack.c.bf16 %v397_v1, %v394_v63 }
 0x32a   :  { %659 = vrot.lane.b32.xlu0 %v9577_v3, %s9405_s24  ;;  %v485_v12 = vsel %vm474_vm2, %v9577_v3, 0 }
 0x32b   :  { %657 = vrot.lane.b32.xlu1 %v9581_v5, %s9405_s24  ;;  %v9587_v6 = vpop.f32.mrb[4].mxu1  ;;  %9000 = vmatprep.subr.msk.bf16.mxu1 %vm474_vm2, %v9581_v5  ;;  %v482_v7 = vsel %vm474_vm2, %v9581_v5, 0 }
 0x32c   :  { %8207 = vmatprep.mubr.msk.bf16.mxu1 %vm474_vm2, %v9579_v4  ;;  %v9595_v9 = vpop.f32.mrb[5].mxu1  ;;  %8204 = vmatpush3.bf16.xpose.msra.mxu1 %v482_v7 }
 0x32d   :  { %v9597_v10 = vpop.f32.mrb[6].mxu1  ;;  %9001 = vmatprep.subr.msk.bf16.mxu1 %vm474_vm2, %v9577_v3 }
 0x32e   :  { %653 = vrot.lane.b32.xlu0 %v9575_v2, %s9405_s24  ;;  %v9603_v11 = vpop.f32.mrb[7].mxu1 }
 0x32f   :  { %651 = vrot.lane.b32.xlu1 %v9579_v4, %s9405_s24 }
 0x332   :  { %964 = vrot.lane.b32.xlu0 %v9577_v3, %s9406_s25 }
 0x333   :  { %962 = vrot.lane.b32.xlu1 %v9581_v5, %s9406_s25 }
 0x334   :  { %8206 = vmatpush3.bf16.xpose.msra.mxu1 %v485_v12 }
 0x336   :  { %960 = vrot.lane.b32.xlu0 %v9575_v2, %s9406_s25 }
 0x337   :  { %958 = vrot.lane.b32.xlu1 %v9579_v4, %s9406_s25 }
 0x33b   :  { %8208 = vmatmul.mubr.msk.bf16.vlgmr.msra.gmra.mrb[8].mxu1 %vm474_vm2, %v9575_v2 }
 0x39c   :  { %v660_v15 = vpop.permute.xlu0 %659 }
 0x39d   :  { %v658_v13 = vpop.permute.xlu1 %657  ;;  %v671_v17 = vsel %vm474_vm2, %v660_v15, 0 }
 0x39e   :  { %9002 = vmatprep.subr.msk.bf16.mxu0 %vm474_vm2, %v658_v13  ;;  %v668_v14 = vsel %vm474_vm2, %v658_v13, 0 }
 0x39f   :  { %8220 = vmatpush3.bf16.xpose.msra.mxu0 %v668_v14 }
 0x3a0   :  { %9003 = vmatprep.subr.msk.bf16.mxu0 %vm474_vm2, %v660_v15  ;;  %v654_v19 = vpop.permute.xlu0 %653 }
 0x3a1   :  { %v652_v16 = vpop.permute.xlu1 %651 }
 0x3a2   :  { %8223 = vmatprep.mubr.msk.bf16.mxu0 %vm474_vm2, %v652_v16 }
 0x3a4   :  { %v965_v22 = vpop.permute.xlu0 %964 }
 0x3a5   :  { %v963_v18 = vpop.permute.xlu1 %962  ;;  %v976_v23 = vsel %vm474_vm2, %v965_v22, 0 }
 0x3a6   :  { %v973_v21 = vsel %vm474_vm2, %v963_v18, 0 }
 0x3a7   :  { %8222 = vmatpush3.bf16.xpose.msra.mxu0 %v671_v17 }
 0x3a8   :  { %9006 = vmatprep.subr.msk.bf16.mxu0 %vm474_vm2, %v963_v18  ;;  %v961_v24 = vpop.permute.xlu0 %960 }
 0x3a9   :  { %v959_v20 = vpop.permute.xlu1 %958 }
 0x3ae   :  { %8224 = vmatmul.mubr.msk.bf16.vlgmr.msra.gmra.mrb[12].mxu0 %vm474_vm2, %v654_v19 }
 0x3af   :  { %8248 = vmatpush3.bf16.xpose.msra.mxu0 %v973_v21  ;;  %8251 = vmatprep.mubr.msk.bf16.mxu0 %vm474_vm2, %v959_v20 }
 0x3b0   :  { %9007 = vmatprep.subr.msk.bf16.mxu0 %vm474_vm2, %v965_v22 }
 0x3b7   :  { %8250 = vmatpush3.bf16.xpose.msra.mxu0 %v976_v23 }
 0x3be   :  { %8252 = vmatmul.mubr.msk.bf16.vlgmr.msra.gmra.mrb[16].mxu0 %vm474_vm2, %v961_v24 }
 0x40e   :  { %v8209_v25 = vpop.f32.mrb[8].mxu1 }
 0x40f   :  { %v538_v27 = vmul.f32 0.35355338, %v8209_v25  ;;  %v521_v28 = vpop.f32.mrb[9].mxu1 }
 0x410   :  { %v536_v30 = vmul.f32 0.35355338, %v521_v28  ;;  %v8210_v31 = vpop.f32.mrb[10].mxu1 }
 0x411   :  { %v524_v33 = vpop.f32.mrb[11].mxu1  ;;  %v542_v34 = vadd.f32 %v538_v27, %v9634_v26  ;;  %v539_v39 = vmul.f32 0.35355338, %v8210_v31 }
 0x412   :  { %v537_v37 = vmul.f32 0.35355338, %v524_v33  ;;  %v540_v38 = vadd.f32 %v536_v30, %v9639_v29 }
 0x413   :  { %v550_v40 = vsel %vm195_vm1, %v542_v34, -inf  ;;  %v543_v46 = vadd.f32 %v539_v39, %v9654_v43 }
 0x414   :  { %551 = vmax.xlane.f32.xlu0 %v550_v40  ;;  %v544_v41 = vsel %vm195_vm1, %v540_v38, -inf  ;;  %v541_v42 = vadd.f32 %v537_v37, %v9645_v36 }
 0x415   :  { %545 = vmax.xlane.f32.xlu1 %v544_v41  ;;  %v553_v48 = vsel %vm195_vm1, %v543_v46, -inf }
 0x416   :  { %v547_v45 = vsel %vm195_vm1, %v541_v42, -inf }
 0x418   :  { %548 = vmax.xlane.f32.xlu0 %v547_v45 }
 0x41c   :  { %554 = vmax.xlane.f32.xlu0 %v553_v48 }
 0x481   :  { %v8225_v49 = vpop.f32.mrb[12].mxu0 }
 0x482   :  { %v707_v50 = vpop.f32.mrb[13].mxu0  ;;  %v724_v51 = vmul.f32 0.35355338, %v8225_v49 }
 0x483   :  { %v722_v52 = vmul.f32 0.35355338, %v707_v50  ;;  %v8226_v53 = vpop.f32.mrb[14].mxu0 }
 0x484   :  { %v710_v54 = vpop.f32.mrb[15].mxu0  ;;  %v725_v55 = vmul.f32 0.35355338, %v8226_v53  ;;  %v728_v60 = vadd.f32 %v724_v51, %v9634_v26 }
 0x485   :  { %v723_v56 = vmul.f32 0.35355338, %v710_v54  ;;  %v726_v57 = vadd.f32 %v722_v52, %v9639_v29 }
 0x486   :  { %v729_v62 = vadd.f32 %v725_v55, %v9654_v43  ;;  %v736_v63 = vsel %vm195_vm1, %v728_v60, -inf }
 0x487   :  { %v730_v58 = vsel %vm195_vm1, %v726_v57, -inf  ;;  %v727_v59 = vadd.f32 %v723_v56, %v9645_v36 }
 0x488   :  { %731 = vmax.xlane.f32.xlu1 %v730_v58  ;;  %v739_v0 = vsel %vm195_vm1, %v729_v62, -inf }
 0x489   :  { %v733_v61 = vsel %vm195_vm1, %v727_v59, -inf }
 0x48a   :  { %734 = vmax.xlane.f32.xlu0 %v733_v61 }
 0x48c   :  { %737 = vmax.xlane.f32.xlu1 %v736_v63 }
 0x48e   :  { %740 = vmax.xlane.f32.xlu0 %v739_v0 }
 0x491   :  { %v9667_v1 = vpop.f32.mrb[16].mxu0 }
 0x492   :  { %v9669_v7 = vpop.f32.mrb[17].mxu0 }
 0x493   :  { %v9671_v12 = vpop.f32.mrb[18].mxu0 }
 0x494   :  { %v9673_v13 = vpop.f32.mrb[19].mxu0 }
 0x49d   :  { %414 = vrot.lane.b32.xlu1 %v9553_v8, %s9404_s19 }
 0x4a1   :  { %v552_v14 = vpop.xlane.xlu0 %551 }
 0x4a2   :  { %v558_v15 = vsub.f32 %v542_v34, %v552_v14  ;;  %v546_v16 = vpop.xlane.xlu1 %545 }
 0x4a3   :  { %v556_v17 = vsub.f32 %v540_v38, %v546_v16 }
 0x4a4   :  { %v564_v18 = vmul.f32 1.442695, %v558_v15 }
 0x4a5   :  { %v560_v19 = vmul.f32 1.442695, %v556_v17  ;;  %v549_v20 = vpop.xlane.xlu0 %548  ;;  %v1028_v17 = vmul.f32 0.35355338, %v9673_v13 }
 0x4a6   :  { %9096 = vpow2.f32 %v564_v18  ;;  %v557_v21 = vsub.f32 %v541_v42, %v549_v20 }
 0x4a7   :  { %9098 = vpow2.f32 %v560_v19 }
 0x4a8   :  { %v562_v24 = vmul.f32 1.442695, %v557_v21 }
 0x4a9   :  { %v555_v22 = vpop.xlane.xlu0 %554 }
 0x4aa   :  { %v559_v23 = vsub.f32 %v543_v46, %v555_v22 }
 0x4ac   :  { %v566_v25 = vmul.f32 1.442695, %v559_v23  ;;  %v9734_v23 = vadd.f32 %v1028_v17, %v9645_v36 }
 0x4ae   :  { %9100 = vpow2.f32 %v566_v25 }
 0x4af   :  { %9102 = vpow2.f32 %v562_v24 }
 0x4b0   :  { %v9677_v27 = vpop.eup %9096 }
 0x4b1   :  { %v574_v8 = vsel %vm195_vm1, %v9677_v27, 0.0  ;;  %v9681_v28 = vpop.eup %9098 }
 0x4b2   :  { %575 = vadd.xlane.f32.xlu0 %v574_v8  ;;  %v568_v30 = vsel %vm195_vm1, %v9681_v28, 0.0  ;;  %v1027_v8 = vmul.f32 0.35355338, %v9669_v7 }
 0x4b6   :  { %569 = vadd.xlane.f32.xlu0 %v568_v30  ;;  %v1031_v30 = vadd.f32 %v1027_v8, %v9639_v29 }
 0x4b8   :  { %v9685_v31 = vpop.eup %9100 }
 0x4b9   :  { %v577_v33 = vsel %vm195_vm1, %v9685_v31, 0.0  ;;  %v9689_v34 = vpop.eup %9102 }
 0x4ba   :  { %578 = vadd.xlane.f32.xlu0 %v577_v33  ;;  %v571_v37 = vsel %vm195_vm1, %v9689_v34, 0.0 }
 0x4be   :  { %572 = vadd.xlane.f32.xlu0 %v571_v37 }
 0x515   :  { %v732_v38 = vpop.xlane.xlu1 %731 }
 0x516   :  { %v742_v39 = vsub.f32 %v726_v57, %v732_v38 }
 0x517   :  { %v735_v40 = vpop.xlane.xlu0 %734 }
 0x518   :  { %v746_v41 = vmul.f32 1.442695, %v742_v39  ;;  %v743_v48 = vsub.f32 %v727_v59, %v735_v40 }
 0x519   :  { %v738_v42 = vpop.xlane.xlu1 %737 }
 0x51a   :  { %9104 = vpow2.f32 %v746_v41  ;;  %v744_v45 = vsub.f32 %v728_v60, %v738_v42  ;;  %v748_v57 = vmul.f32 1.442695, %v743_v48 }
 0x51b   :  { %v741_v46 = vpop.xlane.xlu0 %740 }
 0x51c   :  { %v750_v49 = vmul.f32 1.442695, %v744_v45  ;;  %v745_v50 = vsub.f32 %v729_v62, %v741_v46 }
 0x51d   :  { %v415_v51 = vpop.permute.xlu1 %414 }
 0x51e   :  { %9106 = vpow2.f32 %v750_v49  ;;  %v752_v52 = vmul.f32 1.442695, %v745_v50  ;;  %v452_v53 = vadd.f32 %v9595_v9, %v415_v51  ;;  %v460_v54 = vadd.f32 %v9587_v6, %v415_v51 }
 0x51f   :  { %v455_v55 = vadd.f32 %v9603_v11, %v415_v51  ;;  %v463_v56 = vadd.f32 %v9597_v10, %v415_v51 }
 0x520   :  { %9108 = vpow2.f32 %v752_v52 }
 0x521   :  { %v9697_v58 = vpack.c.bf16 %v455_v55, %v452_v53  ;;  %v9699_v60 = vpack.c.bf16 %v463_v56, %v460_v54  ;;  %9110 = vpow2.f32 %v748_v57 }
 0x523   :  { %8211 = vmatprep.subr.bf16.mxu1 %v9697_v58 }
 0x524   :  { %v9702_v59 = vpop.eup %9104  ;;  %8212 = vmatpush3.bf16.msra.mxu1 %v9697_v58 }
 0x525   :  { %8213 = vmatprep.subr.bf16.mxu1 %v9699_v60  ;;  %v754_v6 = vsel %vm195_vm1, %v9702_v59, 0.0 }
 0x526   :  { %755 = vadd.xlane.f32.xlu1 %v754_v6 }
 0x528   :  { %v9708_v9 = vpop.eup %9106  ;;  %8214 = vmatpush3.bf16.msra.mxu1 %v9699_v60 }
 0x529   :  { %v760_v10 = vsel %vm195_vm1, %v9708_v9, 0.0 }
 0x52a   :  { %v9713_v11 = vpop.eup %9108  ;;  %761 = vadd.xlane.f32.xlu0 %v760_v10 }
 0x52b   :  { %v763_v61 = vsel %vm195_vm1, %v9713_v11, 0.0  ;;  %v9717_v62 = vpop.eup %9110 }
 0x52c   :  { %v757_v63 = vsel %vm195_vm1, %v9717_v62, 0.0 }
 0x52e   :  { %764 = vadd.xlane.f32.xlu0 %v763_v61 }
 0x532   :  { %758 = vadd.xlane.f32.xlu0 %v757_v63 }
 0x537   :  { %780 = vrot.lane.b32.xlu1 %v9699_v60, %s9405_s24 }
 0x53f   :  { %v576_v0 = vpop.xlane.xlu0 %575 }
 0x543   :  { %v570_v14 = vpop.xlane.xlu0 %569 }
 0x547   :  { %v579_v15 = vpop.xlane.xlu0 %578 }
 0x548   :  { %778 = vrot.lane.b32.xlu0 %v9697_v58, %s9405_s24  ;;  %9112 = vrcp.f32 %v579_v15 }
 0x549   :  { %9114 = vrcp.f32 %v570_v14 }
 0x54a   :  { %9116 = vrcp.f32 %v576_v0 }
 0x54b   :  { %v573_v16 = vpop.xlane.xlu0 %572 }
 0x54c   :  { %9118 = vrcp.f32 %v573_v16  ;;  %1210 = vrot.lane.b32.xlu0 %v9581_v5, %s9407_s8 }
 0x550   :  { %1212 = vrot.lane.b32.xlu0 %v9577_v3, %s9407_s8 }
 0x552   :  { %v9113_v18 = vpop.eup %9112 }
 0x553   :  { %v9115_v19 = vpop.eup %9114  ;;  %v587_v22 = vmul.f32 %v9113_v18, %v9685_v31 }
 0x554   :  { %1206 = vrot.lane.b32.xlu0 %v9579_v4, %s9407_s8  ;;  %v9117_v20 = vpop.eup %9116  ;;  %v581_v24 = vmul.f32 %v9115_v19, %v9681_v28  ;;  %v1038_v4 = vsel %vm195_vm1, %v9734_v23, -inf  ;;  %v1029_v28 = vmul.f32 0.35355338, %v9667_v1 }
 0x555   :  { %v585_v3 = vmul.f32 %v9117_v20, %v9677_v27  ;;  %v1030_v27 = vmul.f32 0.35355338, %v9671_v12 }
 0x556   :  { %v9119_v21 = vpop.eup %9118  ;;  %v1033_v31 = vadd.f32 %v1029_v28, %v9634_v26 }
 0x557   :  { %v583_v5 = vmul.f32 %v9119_v21, %v9689_v34  ;;  %v589_v25 = vpack.c.bf16 %v587_v22, %v585_v3  ;;  %v1034_v34 = vadd.f32 %v1030_v27, %v9654_v43 }
 0x558   :  { %1208 = vrot.lane.b32.xlu0 %v9575_v2, %s9407_s8  ;;  %v1035_v2 = vsel %vm195_vm1, %v1031_v30, -inf  ;;  %v1041_v33 = vsel %vm195_vm1, %v1033_v31, -inf }
 0x559   :  { %v588_v13 = vpack.c.bf16 %v583_v5, %v581_v24  ;;  %v1044_v37 = vsel %vm195_vm1, %v1034_v34, -inf }
 0x55b   :  { %1039 = vmax.xlane.f32.xlu1 %v1038_v4  ;;  %8215 = vmatprep.mubr.msk.bf16.mxu1 %vm195_vm1, %v588_v13  ;;  %v467_v13 = vld [vmem:[%s11287_s2 + $0xa4] sm:$0xf] }
 0x55c   :  { %8216 = vmatmul.mubr.msk.bf16.vlgmr.msra.gmra.mrb[12].mxu1 %vm195_vm1, %v589_v25  ;;  %v849_v4 = vsel %vm847_vm3, %v467_v13, 0  ;;  %v466_v25 = vld [vmem:[%s11287_s2 + $0xa0] sm:$0xf] }
 0x577   :  { %1036 = vmax.xlane.f32.xlu0 %v1035_v2 }
 0x57b   :  { %1042 = vmax.xlane.f32.xlu0 %v1041_v33 }
 0x57f   :  { %1045 = vmax.xlane.f32.xlu0 %v1044_v37 }
 0x5b3   :  { %v756_v38 = vpop.xlane.xlu1 %755 }
 0x5b7   :  { %v762_v7 = vpop.xlane.xlu0 %761  ;;  %v781_v40 = vpop.permute.xlu1 %780 }
 0x5bb   :  { %v765_v1 = vpop.xlane.xlu0 %764 }
 0x5bc   :  { %9120 = vrcp.f32 %v765_v1 }
 0x5bd   :  { %9122 = vrcp.f32 %v756_v38 }
 0x5be   :  { %9124 = vrcp.f32 %v762_v7 }
 0x5bf   :  { %v759_v12 = vpop.xlane.xlu0 %758 }
 0x5c0   :  { %9126 = vrcp.f32 %v759_v12 }
 0x5c3   :  { %v779_v39 = vpop.permute.xlu0 %778 }
 0x5c4   :  { %8227 = vmatprep.subr.bf16.mxu1 %v779_v39 }
 0x5c5   :  { %8228 = vmatpush3.bf16.msra.mxu1 %v779_v39  ;;  %v907_v39 = vsel %vm847_vm3, %v466_v25, 0 }
 0x5c6   :  { %8229 = vmatprep.subr.bf16.mxu1 %v781_v40  ;;  %v9121_v41 = vpop.eup %9120 }
 0x5c7   :  { %v1211_v42 = vpop.permute.xlu0 %1210  ;;  %v9123_v45 = vpop.eup %9122  ;;  %v773_v50 = vmul.f32 %v9121_v41, %v9713_v11 }
 0x5c8   :  { %9009 = vmatprep.subr.msk.bf16.mxu0 %vm474_vm2, %v1211_v42  ;;  %v1221_v46 = vsel %vm474_vm2, %v1211_v42, 0  ;;  %v9125_v48 = vpop.eup %9124  ;;  %v767_v52 = vmul.f32 %v9123_v45, %v9702_v59 }
 0x5c9   :  { %8230 = vmatpush3.bf16.msra.mxu1 %v781_v40  ;;  %8270 = vmatpush3.bf16.xpose.msra.mxu0 %v1221_v46  ;;  %v771_v54 = vmul.f32 %v9125_v48, %v9708_v9 }
 0x5ca   :  { %v9127_v49 = vpop.eup %9126  ;;  %9004 = vmatprep.subr.msk.bf16.mxu1 %vm847_vm3, %v467_v13 }
 0x5cb   :  { %v1213_v51 = vpop.permute.xlu0 %1212  ;;  %v769_v53 = vmul.f32 %v9127_v49, %v9717_v62  ;;  %v775_v56 = vpack.c.bf16 %v773_v50, %v771_v54 }
 0x5cc   :  { %9010 = vmatprep.subr.msk.bf16.mxu0 %vm474_vm2, %v1213_v51  ;;  %v1224_v6 = vsel %vm474_vm2, %v1213_v51, 0 }
 0x5cd   :  { %v774_v55 = vpack.c.bf16 %v769_v53, %v767_v52 }
 0x5cf   :  { %8231 = vmatprep.mubr.msk.bf16.mxu1 %vm195_vm1, %v774_v55  ;;  %v1207_v57 = vpop.permute.xlu0 %1206 }
 0x5d0   :  { %8232 = vmatmul.mubr.msk.bf16.vlgmr.msra.gmra.mrb[16].mxu1 %vm195_vm1, %v775_v56  ;;  %8273 = vmatprep.mubr.msk.bf16.mxu0 %vm474_vm2, %v1207_v57 }
 0x5d1   :  { %8272 = vmatpush3.bf16.xpose.msra.mxu0 %v1224_v6  ;;  %8236 = vmatpush3.bf16.msra.mxu1 %v849_v4 }
 0x5d2   :  { %9005 = vmatprep.subr.msk.bf16.mxu1 %vm847_vm3, %v466_v25 }
 0x5d3   :  { %v1209_v10 = vpop.permute.xlu0 %1208 }
 0x5d8   :  { %8274 = vmatmul.mubr.msk.bf16.vlgmr.msra.gmra.mrb[20].mxu0 %vm474_vm2, %v1209_v10 }
 0x5e8   :  { %v1040_v9 = vpop.xlane.xlu1 %1039 }
 0x5e9   :  { %v1048_v63 = vsub.f32 %v9734_v23, %v1040_v9 }
 0x5eb   :  { %v1053_v17 = vmul.f32 1.442695, %v1048_v63 }
 0x604   :  { %v1037_v59 = vpop.xlane.xlu0 %1036 }
 0x605   :  { %v1047_v11 = vsub.f32 %v1031_v30, %v1037_v59 }
 0x607   :  { %v1051_v0 = vmul.f32 1.442695, %v1047_v11 }
 0x608   :  { %v1043_v61 = vpop.xlane.xlu0 %1042 }
 0x609   :  { %v1049_v62 = vsub.f32 %v1033_v31, %v1043_v61 }
 0x60b   :  { %v1055_v14 = vmul.f32 1.442695, %v1049_v62 }
 0x60c   :  { %v1046_v15 = vpop.xlane.xlu0 %1045 }
 0x60d   :  { %9128 = vpow2.f32 %v1055_v14  ;;  %v1050_v16 = vsub.f32 %v1034_v34, %v1046_v15 }
 0x60e   :  { %9130 = vpow2.f32 %v1051_v0 }
 0x60f   :  { %v1057_v18 = vmul.f32 1.442695, %v1050_v16 }
 0x611   :  { %9132 = vpow2.f32 %v1057_v18 }
 0x612   :  { %9134 = vpow2.f32 %v1053_v17  ;;  %v468_v17 = vld [vmem:[%s11287_s2 + $0xa8] sm:$0xf] }
 0x613   :  { %v1151_v18 = vsel %vm847_vm3, %v468_v17, 0 }
 0x617   :  { %v9767_v19 = vpop.eup %9128 }
 0x618   :  { %v1065_v20 = vsel %vm195_vm1, %v9767_v19, 0.0  ;;  %v9771_v21 = vpop.eup %9130 }
 0x619   :  { %1066 = vadd.xlane.f32.xlu1 %v1065_v20  ;;  %v1059_v23 = vsel %vm195_vm1, %v9771_v21, 0.0 }
 0x61b   :  { %v9773_v22 = vpop.eup %9132 }
 0x61c   :  { %v1068_v24 = vsel %vm195_vm1, %v9773_v22, 0.0  ;;  %v9779_v5 = vpop.eup %9134 }
 0x61d   :  { %1060 = vadd.xlane.f32.xlu1 %v1059_v23  ;;  %1069 = vadd.xlane.f32.xlu0 %v1068_v24  ;;  %v1062_v3 = vsel %vm195_vm1, %v9779_v5, 0.0 }
 0x621   :  { %1063 = vadd.xlane.f32.xlu0 %v1062_v3 }
 0x62e   :  { %1081 = vrot.lane.b32.xlu1 %v9697_v58, %s9406_s25 }
 0x62f   :  { %v8217_v8 = vpop.f32.mrb[12].mxu1 }
 0x630   :  { %v632_v28 = vpop.f32.mrb[13].mxu1 }
 0x631   :  { %v8218_v30 = vpop.f32.mrb[14].mxu1 }
 0x632   :  { %v648_v27 = vpack.c.bf16 %v8218_v30, %v8217_v8  ;;  %v635_v2 = vpop.f32.mrb[15].mxu1 }
 0x633   :  { %v647_v31 = vpack.c.bf16 %v635_v2, %v632_v28 }
 0x637   :  { %1083 = vrot.lane.b32.xlu0 %v9699_v60, %s9406_s25 }
 0x6a3   :  { %v8233_v33 = vpop.f32.mrb[16].mxu1 }
 0x6a4   :  { %v824_v34 = vpop.f32.mrb[17].mxu1 }
 0x6a5   :  { %v8234_v37 = vpop.f32.mrb[18].mxu1 }
 0x6a6   :  { %v840_v7 = vpack.c.bf16 %v8234_v37, %v8233_v33  ;;  %v827_v38 = vpop.f32.mrb[19].mxu1  ;;  %v1067_v1 = vpop.xlane.xlu1 %1066 }
 0x6a7   :  { %v839_v12 = vpack.c.bf16 %v827_v38, %v824_v34 }
 0x6a9   :  { %8237 = vmatprep.mubr.msk.bf16.mxu1 %vm474_vm2, %v839_v12 }
 0x6aa   :  { %8238 = vmatmul.mubr.msk.bf16.vlgmr.msra.gmra.mrb[20].mxu1 %vm474_vm2, %v840_v7  ;;  %v1061_v40 = vpop.xlane.xlu1 %1060  ;;  %v1070_v41 = vpop.xlane.xlu0 %1069 }
 0x6ab   :  { %8243 = vmatprep.mubr.msk.bf16.mxu1 %vm474_vm2, %v647_v31  ;;  %v8275_v42 = vpop.f32.mrb[20].mxu0  ;;  %8242 = vmatpush3.bf16.msra.mxu1 %v907_v39  ;;  %9136 = vrcp.f32 %v1070_v41 }
 0x6ac   :  { %v1260_v45 = vpop.f32.mrb[21].mxu0  ;;  %v1277_v46 = vmul.f32 0.35355338, %v8275_v42  ;;  %9138 = vrcp.f32 %v1061_v40 }
 0x6ad   :  { %v1275_v48 = vmul.f32 0.35355338, %v1260_v45  ;;  %v8276_v49 = vpop.f32.mrb[22].mxu0  ;;  %9140 = vrcp.f32 %v1067_v1 }
 0x6ae   :  { %v1263_v50 = vpop.f32.mrb[23].mxu0  ;;  %v1082_v51 = vpop.permute.xlu1 %1081  ;;  %v1278_v52 = vmul.f32 0.35355338, %v8276_v49  ;;  %v1281_v6 = vadd.f32 %v1277_v46, %v9634_v26 }
 0x6af   :  { %v1276_v53 = vmul.f32 0.35355338, %v1263_v50  ;;  %v1064_v54 = vpop.xlane.xlu0 %1063  ;;  %8255 = vmatprep.subr.bf16.mxu1 %v1082_v51  ;;  %v1279_v55 = vadd.f32 %v1275_v48, %v9639_v29 }
 0x6b0   :  { %9142 = vrcp.f32 %v1064_v54  ;;  %v1282_v59 = vadd.f32 %v1278_v52, %v9654_v43  ;;  %v1289_v11 = vsel %vm195_vm1, %v1281_v6, -inf }
 0x6b1   :  { %v1283_v56 = vsel %vm195_vm1, %v1279_v55, -inf  ;;  %v1280_v57 = vadd.f32 %v1276_v53, %v9645_v36 }
 0x6b2   :  { %1284 = vmax.xlane.f32.xlu1 %v1283_v56  ;;  %v1292_v61 = vsel %vm195_vm1, %v1282_v59, -inf }
 0x6b3   :  { %v1286_v10 = vsel %vm195_vm1, %v1280_v57, -inf  ;;  %v1084_v29 = vpop.permute.xlu0 %1083 }
 0x6b4   :  { %1287 = vmax.xlane.f32.xlu0 %v1286_v10 }
 0x6b5   :  { %v9137_v9 = vpop.eup %9136 }
 0x6b6   :  { %8244 = vmatmul.mubr.msk.bf16.vlgmr.msra.gmra.mrb[20].mxu1 %vm474_vm2, %v648_v27  ;;  %1290 = vmax.xlane.f32.xlu1 %v1289_v11  ;;  %v9139_v62 = vpop.eup %9138  ;;  %v1078_v63 = vmul.f32 %v9137_v9, %v9773_v22 }
 0x6b7   :  { %8256 = vmatpush3.bf16.msra.mxu1 %v1082_v51  ;;  %v9141_v26 = vpop.eup %9140  ;;  %v1072_v43 = vmul.f32 %v9139_v62, %v9771_v21 }
 0x6b8   :  { %8257 = vmatprep.subr.bf16.mxu1 %v1084_v29  ;;  %1293 = vmax.xlane.f32.xlu0 %v1292_v61  ;;  %v1076_v14 = vmul.f32 %v9141_v26, %v9767_v19 }
 0x6ba   :  { %v9143_v36 = vpop.eup %9142  ;;  %v1080_v16 = vpack.c.bf16 %v1078_v63, %v1076_v14  ;;  %v1826_v63 = vld [vmem:[%s11289_s3 + $0x118] sm:$0x3]  ;;  %v7663_v14 = vld [vmem:[%s11289_s3 + $0x70] ss:$0 sm:$0xff] }
 0x6bb   :  { %8258 = vmatpush3.bf16.msra.mxu1 %v1084_v29  ;;  %v1074_v0 = vmul.f32 %v9143_v36, %v9779_v5  ;;  %v1823_v36 = vld [vmem:[%s11290_s1] sm:$0xf] }
 0x6bc   :  { %9008 = vmatprep.subr.msk.bf16.mxu1 %vm847_vm3, %v468_v17 }
 0x6bd   :  { %v1079_v15 = vpack.c.bf16 %v1074_v0, %v1072_v43  ;;  %v1824_v43 = vmul.f32 2.0, %v1823_v36 }
 0x6bf   :  { %8259 = vmatprep.mubr.msk.bf16.mxu1 %vm195_vm1, %v1079_v15  ;;  %v7680_v0 = vadd.f32 -1.0, %v1824_v43 }
 0x6c0   :  { %8260 = vmatmul.mubr.msk.bf16.vlgmr.msra.gmra.mrb[24].mxu1 %vm195_vm1, %v1080_v16 }
 0x6c1   :  { %8264 = vmatpush3.bf16.msra.mxu1 %v1151_v18 }
 0x73f   :  { %v1285_v20 = vpop.xlane.xlu1 %1284 }
 0x740   :  { %v1295_v21 = vsub.f32 %v1279_v55, %v1285_v20 }
 0x741   :  { %v1288_v22 = vpop.xlane.xlu0 %1287 }
 0x742   :  { %v1296_v19 = vsub.f32 %v1280_v57, %v1288_v22  ;;  %v1299_v5 = vmul.f32 1.442695, %v1295_v21 }
 0x743   :  { %v1291_v23 = vpop.xlane.xlu1 %1290 }
 0x744   :  { %v1297_v24 = vsub.f32 %v1281_v6, %v1291_v23  ;;  %v1301_v25 = vmul.f32 1.442695, %v1296_v19  ;;  %v469_v6 = vld [vmem:[%s11287_s2 + $0xac] sm:$0xf] }
 0x745   :  { %v1294_v3 = vpop.xlane.xlu0 %1293  ;;  %v1399_v10 = vsel %vm847_vm3, %v469_v6, 0 }
 0x746   :  { %v1303_v13 = vmul.f32 1.442695, %v1297_v24  ;;  %v1298_v4 = vsub.f32 %v1282_v59, %v1294_v3  ;;  %v9408_v59 = vmov 0.0  }
 0x748   :  { %9144 = vpow2.f32 %v1303_v13  ;;  %v1305_v8 = vmul.f32 1.442695, %v1298_v4 }
 0x749   :  { %9146 = vpow2.f32 %v1299_v5 }
 0x74a   :  { %9148 = vpow2.f32 %v1305_v8 }
 0x74b   :  { %9150 = vpow2.f32 %v1301_v25  ;;  %v7683_v25 = vld [vmem:[%s11289_s3 + $0x120] ss:$0 sm:$0xff] }
 0x752   :  { %v9145_v28 = vpop.eup %9144 }
 0x753   :  { %v9147_v30 = vpop.eup %9146  ;;  %v1313_v27 = vsel %vm195_vm1, %v9145_v28, 0.0 }
 0x754   :  { %v9149_v2 = vpop.eup %9148  ;;  %1314 = vadd.xlane.f32.xlu1 %v1313_v27  ;;  %v1307_v34 = vsel %vm195_vm1, %v9147_v30, 0.0 }
 0x755   :  { %v1316_v31 = vsel %vm195_vm1, %v9149_v2, 0.0  ;;  %v9151_v33 = vpop.eup %9150 }
 0x756   :  { %1317 = vadd.xlane.f32.xlu0 %v1316_v31  ;;  %v1310_v37 = vsel %vm195_vm1, %v9151_v33, 0.0 }
 0x758   :  { %1308 = vadd.xlane.f32.xlu1 %v1307_v34 }
 0x75a   :  { %1311 = vadd.xlane.f32.xlu0 %v1310_v37 }
 0x769   :  { %1329 = vrot.lane.b32.xlu1 %v9697_v58, %s9407_s8 }
 0x770   :  { %1331 = vrot.lane.b32.xlu0 %v9699_v60, %s9407_s8 }
 0x793   :  { %v8261_v7 = vpop.f32.mrb[24].mxu1 }
 0x794   :  { %v1127_v38 = vpop.f32.mrb[25].mxu1 }
 0x795   :  { %v8262_v1 = vpop.f32.mrb[26].mxu1 }
 0x796   :  { %v1143_v12 = vpack.c.bf16 %v8262_v1, %v8261_v7  ;;  %v1130_v39 = vpop.f32.mrb[27].mxu1 }
 0x797   :  { %v1142_v40 = vpack.c.bf16 %v1130_v39, %v1127_v38  ;;  %v9410_v39 = vmov 683565275  }
 0x799   :  { %8265 = vmatprep.mubr.msk.bf16.mxu1 %vm474_vm2, %v1142_v40 }
 0x79a   :  { %8266 = vmatmul.mubr.msk.bf16.vlgmr.msra.gmra.mrb[20].mxu1 %vm474_vm2, %v1143_v12 }
 0x7e1   :  { %v1315_v41 = vpop.xlane.xlu1 %1314 }
 0x7e3   :  { %v1318_v42 = vpop.xlane.xlu0 %1317 }
 0x7e4   :  { %9152 = vrcp.f32 %v1318_v42 }
 0x7e5   :  { %v1309_v45 = vpop.xlane.xlu1 %1308 }
 0x7e6   :  { %9154 = vrcp.f32 %v1309_v45  ;;  %v9412_v45 = vmov 2131351028  }
 0x7e7   :  { %9156 = vrcp.f32 %v1315_v41  ;;  %v1312_v58 = vpop.xlane.xlu0 %1311  ;;  %v9411_v41 = vmov 2475754826  }
 0x7e8   :  { %9158 = vrcp.f32 %v1312_v58 }
 0x7e9   :  { %v1330_v46 = vpop.permute.xlu1 %1329 }
 0x7ea   :  { %8277 = vmatprep.subr.bf16.mxu1 %v1330_v46 }
 0x7eb   :  { %8278 = vmatpush3.bf16.msra.mxu1 %v1330_v46  ;;  %v1332_v60 = vpop.permute.xlu0 %1331  ;;  %v9413_v46 = vmov 2102212464  }
 0x7ec   :  { %8279 = vmatprep.subr.bf16.mxu1 %v1332_v60 }
 0x7ee   :  { %v9153_v48 = vpop.eup %9152 }
 0x7ef   :  { %8280 = vmatpush3.bf16.msra.mxu1 %v1332_v60  ;;  %v1326_v52 = vmul.f32 %v9153_v48, %v9149_v2  ;;  %v9414_v48 = vmov 920167782  }
 0x7f0   :  { %v9155_v49 = vpop.eup %9154  ;;  %9011 = vmatprep.subr.msk.bf16.mxu1 %vm847_vm3, %v469_v6 }
 0x7f1   :  { %v9157_v50 = vpop.eup %9156  ;;  %v1320_v53 = vmul.f32 %v9155_v49, %v9147_v30 }
 0x7f2   :  { %v9159_v51 = vpop.eup %9158  ;;  %v1324_v55 = vmul.f32 %v9157_v50, %v9145_v28 }
 0x7f3   :  { %v1322_v54 = vmul.f32 %v9159_v51, %v9151_v33 }
 0x7f4   :  { %v1328_v57 = vpack.c.bf16 %v1326_v52, %v1324_v55  ;;  %v9415_v55 = vmov 1326507024  }
 0x7f5   :  { %v1327_v56 = vpack.c.bf16 %v1322_v54, %v1320_v53 }
 0x7f7   :  { %8281 = vmatprep.mubr.msk.bf16.mxu1 %vm195_vm1, %v1327_v56 }
 0x7f8   :  { %8282 = vmatmul.mubr.msk.bf16.vlgmr.msra.gmra.mrb[28].mxu1 %vm195_vm1, %v1328_v57 }
 0x7f9   :  { %8286 = vmatpush3.bf16.msra.mxu1 %v1399_v10 }
 0x7fa   :  { %8311 = vmatprep.subr.mxu1 %v9408_v59 }
 0x8cb   :  { %v8283_v11 = vpop.f32.mrb[28].mxu1 }
 0x8cc   :  { %v1375_v9 = vpop.f32.mrb[29].mxu1 }
 0x8cd   :  { %v8284_v29 = vpop.f32.mrb[30].mxu1 }
 0x8ce   :  { %v1391_v61 = vpack.c.bf16 %v8284_v29, %v8283_v11  ;;  %v1378_v62 = vpop.f32.mrb[31].mxu1 }
 0x8cf   :  { %v1390_v26 = vpack.c.bf16 %v1378_v62, %v1375_v9 }
 0x8d1   :  { %8287 = vmatprep.mubr.msk.bf16.mxu1 %vm474_vm2, %v1390_v26 }
 0x8d2   :  { %8288 = vmatmul.mubr.msk.bf16.vlgmr.msra.gmra.mrb[20].mxu1 %vm474_vm2, %v1391_v61 }
 0x8d3   :  { %8312 = vmatpush3.msk.msra.mxu1 %vm1831_vm4, %v1826_v63  ;;  %8313 = vmatprep.mubr.msk.f32.mxu1 %vm9409_vm5, %v9408_v59 }
 0x8da   :  { %8314 = vmatmul.mubr.msk.f32.vlgmr.msra.gmra.mrb[32].mxu1 %vm1827_vm6, %v7680_v0 }
 0x9a5   :  { %v8289_v15 = vpop.f32.mrb[20].mxu1 }
 0x9a6   :  { %v1435_v16 = vpop.f32.mrb[21].mxu1  ;;  %v1461_v17 = vadd.f32 %v8289_v15, %v7663_v14 }
 0x9a7   :  { %v1459_v18 = vadd.f32 %v7663_v14, %v1435_v16  ;;  %v8290_v20 = vpop.f32.mrb[22].mxu1 }
 0x9a8   :  { %v1438_v21 = vpop.f32.mrb[23].mxu1  ;;  %v1462_v23 = vadd.f32 %v8290_v20, %v7663_v14  ;;  %v9857_v24 = vadd.f32 %v1461_v17, %v9526_v44 }
 0x9a9   :  { %v9854_v22 = vadd.f32 %v1459_v18, %v9512_v32  ;;  %v1460_v19 = vadd.f32 %v7663_v14, %v1438_v21 }
 0x9aa   :  { %v9865_v13 = vadd.f32 %v1462_v23, %v9528_v47  ;;  %v1473_v32 = vsel %vm195_vm1, %v9857_v24, 0.0 }
 0x9ab   :  { %v9860_v5 = vadd.f32 %v1460_v19, %v9514_v35  ;;  %v1467_v3 = vsel %vm195_vm1, %v9854_v22, 0.0 }
 0x9ac   :  { %1468 = vadd.xlane.f32.xlu1 %v1467_v3  ;;  %v1476_v44 = vsel %vm195_vm1, %v9865_v13, 0.0 }
 0x9ad   :  { %v1470_v4 = vsel %vm195_vm1, %v9860_v5, 0.0  ;;  %v1901_v35 = vpop.f32.mrb[32].mxu1 }
 0x9ae   :  { %1471 = vadd.xlane.f32.xlu0 %v1470_v4  ;;  %v1905_v8 = vmul.f32 6.2831855, %v1901_v35  ;;  %v8315_v28 = vpop.f32.mrb[33].mxu1 }
 0x9b0   :  { %1474 = vadd.xlane.f32.xlu1 %v1473_v32  ;;  %v9876_v47 = vadd.f32 %v7683_v25, %v1905_v8 }
 0x9b2   :  { %1477 = vadd.xlane.f32.xlu0 %v1476_v44  ;;  %v1915_v30 = vand.u32 2139095040, %v9876_v47  ;;  %v1912_v2 = vand.u32 2147483647, %v9876_v47  ;;  %vm1914_vm14 = vcmp.lt.s32.totalorder %v9876_v47, 0 }
 0x9b4   :  { %v1916_v27 = vshrl.u32 %v1915_v30, 23  ;;  %v1919_v34 = vand.u32 8388607, %v1912_v2  ;;  %vm1913_vm15 = vcmp.le.f32.partialorder %v1912_v2, 0.7853982 }
 0x9b6   :  { %v7684_v31 = vadd.s32 4294967169, %v1916_v27  ;;  %v1920_v38 = vor.u32 8388608, %v1919_v34 }
 0x9b8   :  { %v1922_v33 = vadd.s32 1, %v7684_v31  ;;  %v1960_v57 = vshll.u32 %v1920_v38, 8 }
 0x9ba   :  { %vm1923_vm7 = vcmp.gt.s32.totalorder %v1922_v33, 0 }
 0x9bb   :  { %v1924_v37 = vsel %vm1923_vm7, %v1922_v33, 0 }
 0x9bc   :  { %v1926_v7 = vand.u32 31, %v1924_v37  ;;  %v1925_v1 = vshrl.u32 %v1924_v37, 5 }
 0x9be   :  { %v1927_v12 = vsub.s32 32, %v1926_v7  ;;  %v1929_v40 = vshll.u32 %v9410_v39, %v1926_v7  ;;  %v1932_v42 = vshll.u32 %v9411_v41, %v1926_v7  ;;  %v1935_v58 = vshll.u32 %v9412_v45, %v1926_v7 }
 0x9bf   :  { %v1938_v60 = vshll.u32 %v9413_v46, %v1926_v7  ;;  %v1941_v49 = vshll.u32 %v9414_v48, %v1926_v7  ;;  %vm1944_vm8 = vcmp.lt.s32.totalorder %v1925_v1, 1  ;;  %vm1947_vm9 = vcmp.lt.s32.totalorder %v1925_v1, 4 }
 0x9c0   :  { %v1928_v50 = vshrl.u32 %v9410_v39, %v1927_v12  ;;  %v1930_v51 = vshrl.u32 %v9411_v41, %v1927_v12  ;;  %v1933_v52 = vshrl.u32 %v9412_v45, %v1927_v12  ;;  %v1936_v53 = vshrl.u32 %v9413_v46, %v1927_v12 }
 0x9c1   :  { %v1939_v54 = vshrl.u32 %v9414_v48, %v1927_v12  ;;  %v1942_v56 = vshrl.u32 %v9415_v55, %v1927_v12  ;;  %vm1945_vm10 = vcmp.lt.s32.totalorder %v1925_v1, 2  ;;  %vm1946_vm11 = vcmp.lt.s32.totalorder %v1925_v1, 3 }
 0x9c2   :  { %v1931_v6 = vor.u32 %v1930_v51, %v1929_v40  ;;  %v1934_v10 = vor.u32 %v1933_v52, %v1932_v42  ;;  %v1937_v11 = vor.u32 %v1936_v53, %v1935_v58 }
 0x9c3   :  { %v1940_v9 = vor.u32 %v1939_v54, %v1938_v60  ;;  %v1943_v29 = vor.u32 %v1942_v56, %v1941_v49 }
 0x9c4   :  { %v1948_v61 = vsel %vm1944_vm8, %v1928_v50, %v1931_v6  ;;  %v1949_v62 = vsel %vm1947_vm9, %v1937_v11, 2102212464  ;;  %v1952_v26 = vsel %vm1944_vm8, %v1931_v6, %v1934_v10  ;;  %v1956_v36 = vsel %vm1944_vm8, %v1934_v10, %v1937_v11 }
 0x9c5   :  { %v1950_v63 = vsel %vm1946_vm11, %v1934_v10, %v1949_v62  ;;  %v1953_v43 = vsel %vm1947_vm9, %v1940_v9, 920167782  ;;  %v1957_v0 = vsel %vm1947_vm9, %v1943_v29, 1326507024 }
 0x9c6   :  { %v1954_v14 = vsel %vm1946_vm11, %v1937_v11, %v1953_v43  ;;  %v1958_v15 = vsel %vm1946_vm11, %v1940_v9, %v1957_v0  ;;  %v1951_v16 = vsel %vm1945_vm10, %v1948_v61, %v1950_v63  ;;  %v2016_v11 = vld [vmem:[%s11289_s3 + $0x128] sm:$0xf]  ;;  %vm2035_vm11 = vcmask 31744  }
 0x9c7   :  { %v1955_v17 = vsel %vm1945_vm10, %v1952_v26, %v1954_v14  ;;  %v1959_v18 = vsel %vm1945_vm10, %v1956_v36, %v1958_v15  ;;  %v1967_v3 = vmul.u32 %v1960_v57, %v1951_v16  ;;  %vm2004_vm10 = vweird.f32 %v9876_v47 }
 0x9c8   :  { %v9882_v20 = vmul.u32.u64.low %v1960_v57, %v1959_v18  ;;  %v9883_v21 = vmul.u32.u64.high %v1960_v57, %v1959_v18, %v9882_v20  ;;  %v9885_v23 = vmul.u32.u64.low %v1960_v57, %v1955_v17  ;;  %v9886_v19 = vmul.u32.u64.high %v1960_v57, %v1955_v17, %v9885_v23 }
 0x9ca   :  { %vm1969_vm12 = vc.u32 %v9883_v21, %v9885_v23  ;;  %v1970_v4 = vadd.s32 1, %v9886_v19  ;;  %v1968_v34 = vadd.s32 %v9885_v23, %v9883_v21 }
 0x9cc   :  { %v1971_v32 = vsel %vm1969_vm12, %v1970_v4, %v9886_v19  ;;  %vm2348_vm12 = vcmask 113664  }
 0x9cd   :  { %v1972_v44 = vadd.s32 %v1971_v32, %v1967_v3 }
 0x9cf   :  { %v1973_v35 = vadd.s32 536870912, %v1972_v44 }
 0x9d1   :  { %v1974_v25 = vshrl.u32 %v1973_v35, 30  ;;  %v9056_v35 = vld [vmem:[%s11287_s2 + $0x60] sm:$0xff]  }
 0x9d2   :  { %8291 = vmatprep.subr.bf16.mxu0 %v9056_v35 }
 0x9d3   :  { %v1975_v8 = vshll.u32 %v1974_v25, 30  ;;  %v1998_v46 = vsub.s32 4, %v1974_v25  ;;  %8292 = vmatpush3.bf16.msra.mxu0 %v9056_v35 }
 0x9d5   :  { %v1976_v28 = vsub.s32 %v1972_v44, %v1975_v8  ;;  %v1999_v49 = vsel %vm1914_vm14, %v1998_v46, %v1974_v25  ;;  %v9057_v25 = vld [vmem:[%s11287_s2 + $0x68] sm:$0xff]  }
 0x9d6   :  { %v2001_v52 = vsel %vm1913_vm15, 0, %v1999_v49  ;;  %8293 = vmatprep.subr.bf16.mxu0 %v9057_v25  ;;  %v2033_v8 = vld [vmem:[%s11289_s3 + $0x168] sm:$0xff] }
 0x9d7   :  { %v1978_v30 = vsub.s32 0, %v1976_v28  ;;  %v2005_v53 = vadd.s32 3, %v2001_v52  ;;  %8294 = vmatpush3.bf16.msra.mxu0 %v9057_v25  ;;  %8318 = vmatprep.mubr.msk.f32.mxu1 %vm2035_vm11, %v2033_v8 }
 0x9d9   :  { %v7685_v27 = vmin.u32 %v1978_v30, %v1976_v28  ;;  %v2006_v54 = vand.u32 3, %v2005_v53  ;;  %v9926_v30 = vld [vmem:[%s11287_s2 + $0xb0] sm:$0xff]  }
 0x9db   :  { %v1980_v31 = vclz %v7685_v27  ;;  %vm2011_vm7 = vcmp.eq.s32.totalorder %v2006_v54, 2  ;;  %vm2008_vm8 = vcmp.eq.s32.totalorder %v2006_v54, 0  ;;  %vm2007_vm9 = vcmp.lt.s32.totalorder %v2006_v54, 2  ;;  %v9932_v27 = vld [vmem:[%s11287_s2 + $0xb8] sm:$0xff]  }
 0x9dd   :  { %v7686_v33 = vadd.s32 4294967294, %v1980_v31 }
 0x9df   :  { %vm7687_vm13 = vcmp.lt.s32.totalorder %v7686_v33, 0 }
 0x9e0   :  { %v1983_v37 = vsel %vm7687_vm13, 0, %v7686_v33  ;;  %vm2352_vm13 = vcmask 111616  }
 0x9e1   :  { %v1984_v7 = vsub.s32 32, %v1983_v37  ;;  %v1985_v38 = vshll.u32 %v1976_v28, %v1983_v37  ;;  %v1988_v1 = vsub.s32 4294967266, %v1983_v37  ;;  %v2034_v28 = vld [vmem:[%s11289_s3 + $0x170] sm:$0x3f] }
 0x9e3   :  { %v1986_v12 = vshrl.u32 %v1968_v34, %v1984_v7  ;;  %v1989_v39 = vadd.s32 127, %v1988_v1 }
 0x9e5   :  { %v1987_v40 = vor.u32 %v1986_v12, %v1985_v38  ;;  %v1990_v41 = vshll.u32 %v1989_v39, 23 }
 0x9e7   :  { %v1991_v42 = vor.u32 4788187, %v1990_v41  ;;  %v1994_v45 = vcvt.s32.f32 %v1987_v40 }
 0x9e9   :  { %v1992_v58 = vand.u32 2147483647, %v1991_v42 }
 0x9eb   :  { %v1995_v60 = vmul.f32 %v1994_v45, %v1992_v58  ;;  %v7664_v58 = vld [vmem:[%s11289_s3 + $0x38] ss:$0 sm:$0xff] }
 0x9ed   :  { %v1996_v48 = vxor.u32 2147483648, %v1995_v60 }
 0x9ef   :  { %v1997_v50 = vsel %vm1914_vm14, %v1996_v48, %v1995_v60  ;;  %vm2377_vm14 = vcmask 1046528  }
 0x9f0   :  { %v2000_v51 = vsel %vm1913_vm15, %v9876_v47, %v1997_v50  ;;  %vm3012_vm15 = vcmask 259072  }
 0x9f1   :  { %9160 = vcosq.f32 %v2000_v51 }
 0x9f2   :  { %9162 = vsinq.f32 %v2000_v51  ;;  %v7665_v51 = vld [vmem:[%s11289_s3 + $0x40] ss:$0 sm:$0xff] }
 0x9fb   :  { %v9161_v55 = vpop.eup %9160 }
 0x9fc   :  { %v9163_v56 = vpop.eup %9162  ;;  %v2012_v57 = vxor.u32 2147483648, %v9161_v55 }
 0x9fd   :  { %v2009_v6 = vxor.u32 2147483648, %v9163_v56 }
 0x9fe   :  { %v2013_v2 = vsel %vm2011_vm7, %v2012_v57, %v9163_v56 }
 0x9ff   :  { %v2010_v10 = vsel %vm2008_vm8, %v9161_v55, %v2009_v6 }
 0xa00   :  { %v2014_v9 = vsel %vm2007_vm9, %v2010_v10, %v2013_v2 }
 0xa01   :  { %v2015_v29 = vsel %vm2004_vm10, nan, %v2014_v9 }
 0xa02   :  { %v2017_v61 = vadd.f32 %v2016_v11, %v2015_v29 }
 0xa04   :  { %8316 = vmatprep.subr.msk.mxu1 %vm847_vm3, %v2017_v61 }
 0xa05   :  { %8317 = vmatpush3.msk.msra.mxu1 %vm847_vm3, %v2017_v61  ;;  %v9060_v61 = vld [vmem:[%s11287_s2 + $0x70] sm:$0xff]  }
 0xa06   :  { %8321 = vmatprep.subr.bf16.mxu1 %v9408_v59  ;;  %8319 = vmatmul.mubr.msk.f32.vlgmr.msra.gmra.mrb[34].mxu1 %vm2035_vm11, %v2034_v28 }
 0xa07   :  { %8322 = vmatpush3.bf16.msra.mxu1 %v9926_v30  ;;  %8325 = vmatprep.mubr.msk.bf16.mxu1 %vm9409_vm5, %v9408_v59 }
 0xa08   :  { %8323 = vmatprep.subr.bf16.mxu1 %v9408_v59  ;;  %8299 = vmatprep.subr.bf16.mxu0 %v9060_v61 }
 0xa0b   :  { %8324 = vmatpush3.bf16.msra.mxu1 %v9932_v27 }
 0xa0c   :  { %8337 = vmatprep.subr.bf16.mxu1 %v9408_v59 }
 0xa39   :  { %v1469_v62 = vpop.xlane.xlu1 %1468 }
 0xa3a   :  { %v1479_v26 = vmul.f32 0.03125, %v1469_v62  ;;  %v9061_v62 = vld [vmem:[%s11287_s2 + $0x78] sm:$0xff]  }
 0xa3b   :  { %v1472_v36 = vpop.xlane.xlu0 %1471 }
 0xa3c   :  { %v1483_v47 = vsub.f32 %v9854_v22, %v1479_v26  ;;  %v1480_v63 = vmul.f32 0.03125, %v1472_v36  ;;  %v9062_v26 = vld [vmem:[%s11287_s2 + $0x80] sm:$0xff]   ;;  %v9063_v36 = vld [vmem:[%s11287_s2 + $0x88] sm:$0xff]  }
 0xa3d   :  { %v1475_v43 = vpop.xlane.xlu1 %1474 }
 0xa3e   :  { %v1484_v0 = vsub.f32 %v9860_v5, %v1480_v63  ;;  %v1481_v14 = vmul.f32 0.03125, %v1475_v43  ;;  %v1487_v15 = vmul.f32 %v1483_v47, %v1483_v47 }
 0xa3f   :  { %v1478_v16 = vpop.xlane.xlu0 %1477 }
 0xa40   :  { %v1485_v17 = vsub.f32 %v9857_v24, %v1481_v14  ;;  %v1482_v18 = vmul.f32 0.03125, %v1478_v16  ;;  %v1491_v20 = vsel %vm195_vm1, %v1487_v15, 0.0  ;;  %v1488_v21 = vmul.f32 %v1484_v0, %v1484_v0 }
 0xa41   :  { %1492 = vadd.xlane.f32.xlu1 %v1491_v20 }
 0xa42   :  { %v1486_v23 = vsub.f32 %v9865_v13, %v1482_v18  ;;  %v1494_v19 = vsel %vm195_vm1, %v1488_v21, 0.0  ;;  %v1489_v3 = vmul.f32 %v1485_v17, %v1485_v17  ;;  %v7666_v18 = vld [vmem:[%s11289_s3 + $0x58] ss:$0 sm:$0xff] }
 0xa43   :  { %1495 = vadd.xlane.f32.xlu0 %v1494_v19 }
 0xa44   :  { %v1497_v4 = vsel %vm195_vm1, %v1489_v3, 0.0  ;;  %v1490_v32 = vmul.f32 %v1486_v23, %v1486_v23 }
 0xa45   :  { %1498 = vadd.xlane.f32.xlu1 %v1497_v4 }
 0xa46   :  { %v1500_v44 = vsel %vm195_vm1, %v1490_v32, 0.0 }
 0xa47   :  { %1501 = vadd.xlane.f32.xlu0 %v1500_v44 }
 0xa56   :  { %2190 = vrot.lane.b32.xlu1 %v9926_v30, %s9403_s16 }
 0xa5d   :  { %2192 = vrot.lane.b32.xlu0 %v9932_v27, %s9403_s16 }
 0xace   :  { %v1493_v31 = vpop.xlane.xlu1 %1492 }
 0xacf   :  { %v1503_v33 = vmul.f32 0.03125, %v1493_v31 }
 0xad0   :  { %v1496_v34 = vpop.xlane.xlu0 %1495 }
 0xad1   :  { %v1507_v37 = vadd.f32 1e-05, %v1503_v33  ;;  %v1504_v7 = vmul.f32 0.03125, %v1496_v34 }
 0xad2   :  { %v1499_v38 = vpop.xlane.xlu1 %1498 }
 0xad3   :  { %9164 = vrsqrt.f32 %v1507_v37  ;;  %v1508_v1 = vadd.f32 1e-05, %v1504_v7  ;;  %v1505_v12 = vmul.f32 0.03125, %v1499_v38 }
 0xad4   :  { %v1502_v39 = vpop.xlane.xlu0 %1501 }
 0xad5   :  { %9166 = vrsqrt.f32 %v1508_v1  ;;  %v1509_v40 = vadd.f32 1e-05, %v1505_v12  ;;  %v1506_v41 = vmul.f32 0.03125, %v1502_v39 }
 0xad7   :  { %9168 = vrsqrt.f32 %v1509_v40  ;;  %v1510_v42 = vadd.f32 1e-05, %v1506_v41 }
 0xad9   :  { %9170 = vrsqrt.f32 %v1510_v42  ;;  %v8320_v63 = vpop.f32.mrb[34].mxu1 }
 0xada   :  { %v2111_v14 = vpop.f32.mrb[35].mxu1 }
 0xadd   :  { %v9165_v45 = vpop.eup %9164 }
 0xade   :  { %v1515_v46 = vmul.f32 %v9165_v45, %v1483_v47  ;;  %v2032_v47 = vld [vmem:[%s11289_s3 + $0x160] sm:$0x3f] }
 0xadf   :  { %v9167_v60 = vpop.eup %9166  ;;  %v9968_v43 = vadd.f32 %v8320_v63, %v2032_v47 }
 0xae0   :  { %v1516_v48 = vmul.f32 %v9167_v60, %v1484_v0  ;;  %v1524_v49 = vmul.f32 %v7664_v58, %v1515_v46  ;;  %v2031_v0 = vld [vmem:[%s11289_s3 + $0x158] sm:$0xff] }
 0xae1   :  { %v9169_v50 = vpop.eup %9168  ;;  %v9974_v15 = vadd.f32 %v2111_v14, %v2031_v0 }
 0xae2   :  { %v1517_v52 = vmul.f32 %v9169_v50, %v1485_v17  ;;  %v1525_v53 = vmul.f32 %v7664_v58, %v1516_v48  ;;  %v1533_v56 = vadd.f32 %v7665_v51, %v1524_v49  ;;  %v9987_v17 = vld [vmem:[%s11289_s3 + $0x78] ss:$0 sm:$0xff] }
 0xae3   :  { %v9171_v54 = vpop.eup %9170  ;;  %v9978_v16 = vpack.c.bf16 %v9968_v43, %v9974_v15  ;;  %2197 = vrot.lane.b32.xlu1 %v9987_v17, %s9403_s16 }
 0xae4   :  { %v1518_v55 = vmul.f32 %v9171_v54, %v1486_v23  ;;  %v1534_v57 = vadd.f32 %v7665_v51, %v1525_v53  ;;  %v1526_v6 = vmul.f32 %v7664_v58, %v1517_v52 }
 0xae5   :  { %8326 = vmatmul.mubr.msk.bf16.vlgmr.msra.gmra.mrb[36].mxu1 %vm195_vm1, %v9978_v16 }
 0xae6   :  { %v1541_v2 = vpack.c.bf16 %v1534_v57, %v1533_v56  ;;  %v1527_v10 = vmul.f32 %v7664_v58, %v1518_v55  ;;  %v1535_v11 = vadd.f32 %v7665_v51, %v1526_v6  ;;  %8341 = vmatprep.mubr.msk.bf16.mxu1 %vm9409_vm5, %v9408_v59 }
 0xae8   :  { %8295 = vmatprep.mubr.msk.bf16.mxu0 %vm195_vm1, %v1541_v2  ;;  %v1536_v9 = vadd.f32 %v7665_v51, %v1527_v10 }
 0xaea   :  { %v1542_v29 = vpack.c.bf16 %v1536_v9, %v1535_v11 }
 0xaec   :  { %8296 = vmatmul.mubr.msk.bf16.vlgmr.msra.gmra.mrb[24].mxu0 %vm195_vm1, %v1542_v29 }
 0xaed   :  { %8300 = vmatpush3.bf16.msra.mxu0 %v9060_v61 }
 0xaee   :  { %8301 = vmatprep.subr.bf16.mxu0 %v9061_v62 }
 0xaf1   :  { %8302 = vmatpush3.bf16.msra.mxu0 %v9061_v62 }
 0xaf2   :  { %8303 = vmatprep.subr.bf16.mxu0 %v9062_v26 }
 0xaf5   :  { %8304 = vmatpush3.bf16.msra.mxu0 %v9062_v26  ;;  %v2191_v26 = vpop.permute.xlu1 %2190 }
 0xaf6   :  { %8305 = vmatprep.subr.bf16.mxu0 %v9063_v36 }
 0xaf9   :  { %8306 = vmatpush3.bf16.msra.mxu0 %v9063_v36  ;;  %v2193_v36 = vpop.permute.xlu0 %2192 }
 0xafa   :  { %8329 = vmatprep.subr.bf16.mxu0 %v9408_v59 }
 0xbb8   :  { %v2183_v47 = vpop.f32.mrb[36].mxu1 }
 0xbb9   :  { %v2184_v63 = vadd.f32 %v9987_v17, %v2183_v47  ;;  %v8327_v0 = vpop.f32.mrb[37].mxu1 }
 0xbba   :  { %v2186_v14 = vpop.f32.mrb[38].mxu1 }
 0xbbf   :  { %v8297_v20 = vpop.f32.mrb[24].mxu0 }
 0xbc0   :  { %v1609_v21 = vadd.f32 %v8297_v20, %v7666_v18  ;;  %v1600_v23 = vpop.f32.mrb[25].mxu0  ;;  %v8328_v20 = vpop.f32.mrb[39].mxu1 }
 0xbc1   :  { %v1601_v19 = vadd.f32 %v7666_v18, %v1600_v23  ;;  %v8298_v3 = vpop.f32.mrb[26].mxu0 }
 0xbc2   :  { %v1617_v4 = vmul.f32 %v1609_v21, %v1609_v21  ;;  %v1612_v32 = vadd.f32 %v8298_v3, %v7666_v18  ;;  %v1603_v44 = vpop.f32.mrb[27].mxu0 }
 0xbc3   :  { %v1615_v35 = vmul.f32 %v1601_v19, %v1601_v19  ;;  %v1604_v25 = vadd.f32 %v7666_v18, %v1603_v44  ;;  %v2187_v18 = vadd.f32 %v9987_v17, %v2186_v14 }
 0xbc4   :  { %v1621_v8 = vmul.f32 %v1617_v4, %v1609_v21  ;;  %v1618_v28 = vmul.f32 %v1612_v32, %v1612_v32 }
 0xbc5   :  { %v1619_v31 = vmul.f32 %v1615_v35, %v1601_v19  ;;  %v1616_v33 = vmul.f32 %v1604_v25, %v1604_v25 }
 0xbc6   :  { %v1625_v34 = vmul.f32 0.044715, %v1621_v8  ;;  %v1622_v37 = vmul.f32 %v1618_v28, %v1612_v32 }
 0xbc7   :  { %v1623_v7 = vmul.f32 0.044715, %v1619_v31  ;;  %v1620_v38 = vmul.f32 %v1616_v33, %v1604_v25 }
 0xbc8   :  { %v1629_v1 = vadd.f32 %v1625_v34, %v1609_v21  ;;  %v1626_v12 = vmul.f32 0.044715, %v1622_v37 }
 0xbc9   :  { %v1627_v39 = vadd.f32 %v1623_v7, %v1601_v19  ;;  %v1624_v40 = vmul.f32 0.044715, %v1620_v38 }
 0xbca   :  { %v1633_v41 = vmul.f32 0.7978846, %v1629_v1  ;;  %v1630_v42 = vadd.f32 %v1626_v12, %v1612_v32  ;;  %v10047_v12 = vld [vmem:[%s11289_s3 + $0x198] sm:$0xff] }
 0xbcb   :  { %v1631_v45 = vmul.f32 0.7978846, %v1627_v39  ;;  %v1628_v58 = vadd.f32 %v1624_v40, %v1604_v25 }
 0xbcc   :  { %9172 = vtanh.f32 %v1633_v41  ;;  %v1634_v46 = vmul.f32 0.7978846, %v1630_v42  ;;  %v10052_v42 = vld [vmem:[%s11289_s3 + $0x1a0] sm:$0x3f] }
 0xbcd   :  { %9174 = vtanh.f32 %v1631_v45  ;;  %v1632_v60 = vmul.f32 0.7978846, %v1628_v58 }
 0xbce   :  { %9176 = vtanh.f32 %v1634_v46 }
 0xbcf   :  { %9178 = vtanh.f32 %v1632_v60 }
 0xbd6   :  { %v9173_v48 = vpop.eup %9172 }
 0xbd7   :  { %v9175_v49 = vpop.eup %9174  ;;  %v1641_v50 = vadd.f32 1.0, %v9173_v48 }
 0xbd8   :  { %v9177_v51 = vpop.eup %9176  ;;  %v1639_v52 = vadd.f32 1.0, %v9175_v49 }
 0xbd9   :  { %v9179_v53 = vpop.eup %9178  ;;  %v1645_v54 = vmul.f32 0.5, %v1641_v50  ;;  %v1642_v55 = vadd.f32 1.0, %v9177_v51 }
 0xbda   :  { %v1643_v56 = vmul.f32 0.5, %v1639_v52  ;;  %v1640_v57 = vadd.f32 1.0, %v9179_v53 }
 0xbdb   :  { %v1646_v6 = vmul.f32 0.5, %v1642_v55  ;;  %v1649_v10 = vmul.f32 %v1645_v54, %v1609_v21  ;;  %v10006_v21 = vpack.c.bf16 %v2187_v18, %v2184_v63 }
 0xbdc   :  { %v1644_v2 = vmul.f32 0.5, %v1640_v57  ;;  %v1647_v9 = vmul.f32 %v1643_v56, %v1601_v19 }
 0xbdd   :  { %v1650_v11 = vmul.f32 %v1646_v6, %v1612_v32  ;;  %2424 = vrot.lane.b32.xlu0 %v10006_v21, %s9405_s24  ;;  %v2198_v32 = vpop.permute.xlu1 %2197 }
 0xbde   :  { %v1648_v29 = vmul.f32 %v1644_v2, %v1604_v25 }
 0xbdf   :  { %v1660_v61 = vpack.c.bf16 %v1650_v11, %v1649_v10 }
 0xbe0   :  { %v1659_v62 = vpack.c.bf16 %v1648_v29, %v1647_v9 }
 0xbe1   :  { %2243 = vrot.lane.b32.xlu0 %v9932_v27, %s9404_s19 }
 0xbe2   :  { %8307 = vmatprep.mubr.msk.bf16.mxu0 %vm131_vm0, %v1659_v62 }
 0xbe3   :  { %8308 = vmatmul.mubr.msk.bf16.vlgmr.msra.gmra.mrb[28].mxu0 %vm131_vm0, %v1660_v61 }
 0xbe4   :  { %8330 = vmatpush3.bf16.msra.mxu0 %v2191_v26  ;;  %8333 = vmatprep.mubr.msk.bf16.mxu0 %vm9409_vm5, %v9408_v59 }
 0xbe5   :  { %8331 = vmatprep.subr.bf16.mxu0 %v9408_v59 }
 0xbe8   :  { %8332 = vmatpush3.bf16.msra.mxu0 %v2193_v36 }
 0xbe9   :  { %8345 = vmatprep.subr.bf16.mxu0 %v9408_v59 }
 0xbeb   :  { %8334 = vmatmul.mubr.msk.bf16.vlgmr.msra.gmra.mrb[32].mxu0 %vm195_vm1, %v9978_v16 }
 0xbec   :  { %8347 = vmatprep.mubr.msk.bf16.mxu0 %vm9409_vm5, %v9408_v59 }
 0xc4f   :  { %v2425_v7 = vpop.permute.xlu0 %2424 }
 0xc53   :  { %v2244_v1 = vpop.permute.xlu0 %2243 }
 0xcb6   :  { %v10012_v23 = vpop.f32.mrb[28].mxu0 }
 0xcb7   :  { %v10014_v19 = vpop.f32.mrb[29].mxu0 }
 0xcb8   :  { %v10016_v3 = vpop.f32.mrb[30].mxu0 }
 0xcb9   :  { %v10018_v4 = vpop.f32.mrb[31].mxu0 }
 0xcbe   :  { %v2234_v44 = vpop.f32.mrb[32].mxu0 }
 0xcbf   :  { %v8335_v35 = vpop.f32.mrb[33].mxu0  ;;  %v2235_v8 = vadd.f32 %v2234_v44, %v2198_v32 }
 0xcc0   :  { %v2237_v25 = vpop.f32.mrb[34].mxu0 }
 0xcc1   :  { %v2238_v28 = vadd.f32 %v2237_v25, %v2198_v32  ;;  %v8336_v31 = vpop.f32.mrb[35].mxu0 }
 0xcc3   :  { %v10020_v33 = vpack.c.bf16 %v2238_v28, %v2235_v8 }
 0xcc5   :  { %2427 = vrot.lane.b32.xlu1 %v10020_v33, %s9405_s24  ;;  %v2301_v27 = vsel %vm474_vm2, %v10020_v33, 0 }
 0xcc6   :  { %8346 = vmatpush3.bf16.xpose.msra.mxu0 %v2301_v27 }
 0xcc7   :  { %8357 = vmatprep.subr.bf16.mxu0 %v9408_v59 }
 0xcc9   :  { %2241 = vrot.lane.b32.xlu1 %v9926_v30, %s9404_s19 }
 0xccd   :  { %8348 = vmatmul.mubr.msk.bf16.vlgmr.msra.gmra.mrb[36].mxu0 %vm474_vm2, %v10006_v21 }
 0xcce   :  { %8359 = vmatprep.mubr.msk.bf16.mxu0 %vm9409_vm5, %v9408_v59 }
 0xd37   :  { %v2428_v34 = vpop.permute.xlu1 %2427 }
 0xd38   :  { %v2433_v37 = vsel %vm474_vm2, %v2428_v34, 0 }
 0xd39   :  { %8358 = vmatpush3.bf16.xpose.msra.mxu0 %v2433_v37 }
 0xd3a   :  { %8369 = vmatprep.subr.bf16.mxu0 %v9408_v59 }
 0xd3b   :  { %v2242_v38 = vpop.permute.xlu1 %2241 }
 0xd3c   :  { %8338 = vmatpush3.bf16.msra.mxu1 %v2242_v38 }
 0xd3d   :  { %8339 = vmatprep.subr.bf16.mxu1 %v9408_v59 }
 0xd40   :  { %8340 = vmatpush3.bf16.msra.mxu1 %v2244_v1  ;;  %8360 = vmatmul.mubr.msk.bf16.vlgmr.msra.gmra.mrb[40].mxu0 %vm474_vm2, %v2425_v7 }
 0xd41   :  { %8351 = vmatprep.subr.bf16.mxu1 %v9408_v59  ;;  %8371 = vmatprep.mubr.msk.bf16.mxu0 %vm9409_vm5, %v9408_v59 }
 0xd43   :  { %8342 = vmatmul.mubr.msk.bf16.vlgmr.msra.gmra.mrb[40].mxu1 %vm195_vm1, %v9978_v16 }
 0xd44   :  { %8353 = vmatprep.mubr.msk.bf16.mxu1 %vm9409_vm5, %v9408_v59 }
 0xda0   :  { %v2337_v30 = vpop.f32.mrb[36].mxu0 }
 0xda1   :  { %v2344_v39 = vmul.f32 0.35355338, %v2337_v30  ;;  %v8349_v40 = vpop.f32.mrb[37].mxu0 }
 0xda2   :  { %v2340_v41 = vpop.f32.mrb[38].mxu0 }
 0xda3   :  { %v2345_v45 = vmul.f32 0.35355338, %v2340_v41  ;;  %v8350_v16 = vpop.f32.mrb[39].mxu0  ;;  %v2346_v58 = vadd.f32 %v2344_v39, %v10047_v12 }
 0xda5   :  { %v2349_v46 = vsel %vm2348_vm12, %v2346_v58, -inf  ;;  %v2347_v60 = vadd.f32 %v2345_v45, %v10052_v42 }
 0xda6   :  { %2350 = vmax.xlane.f32.xlu1 %v2349_v46  ;;  %v2292_v46 = vld [vmem:[%s11287_s2 + $0xc4] sm:$0xf] }
 0xda7   :  { %v2353_v48 = vsel %vm2352_vm13, %v2347_v60, -inf }
 0xda8   :  { %2354 = vmax.xlane.f32.xlu0 %v2353_v48 }
 0xe13   :  { %v2469_v49 = vpop.f32.mrb[40].mxu0 }
 0xe14   :  { %v2476_v50 = vmul.f32 0.35355338, %v2469_v49  ;;  %v8361_v51 = vpop.f32.mrb[41].mxu0 }
 0xe15   :  { %v2472_v52 = vpop.f32.mrb[42].mxu0 }
 0xe16   :  { %v2477_v53 = vmul.f32 0.35355338, %v2472_v52  ;;  %v2284_v54 = vpop.f32.mrb[40].mxu1  ;;  %v8362_v55 = vpop.f32.mrb[43].mxu0  ;;  %v2478_v56 = vadd.f32 %v2476_v50, %v10047_v12 }
 0xe17   :  { %v8343_v57 = vpop.f32.mrb[41].mxu1 }
 0xe18   :  { %v2287_v6 = vpop.f32.mrb[42].mxu1  ;;  %v2480_v2 = vsel %vm2348_vm12, %v2478_v56, -inf  ;;  %v2479_v10 = vadd.f32 %v2477_v53, %v10052_v42 }
 0xe19   :  { %2481 = vmax.xlane.f32.xlu0 %v2480_v2  ;;  %v8344_v11 = vpop.f32.mrb[43].mxu1 }
 0xe1a   :  { %v2483_v9 = vsel %vm2352_vm13, %v2479_v10, -inf }
 0xe1b   :  { %2484 = vmax.xlane.f32.xlu1 %v2483_v9 }
 0xe2f   :  { %2247 = vrot.lane.b32.xlu0 %v9987_v17, %s9404_s19 }
 0xe33   :  { %v2351_v29 = vpop.xlane.xlu1 %2350  ;;  %2650 = vrot.lane.b32.xlu0 %v10020_v33, %s9406_s25 }
 0xe34   :  { %v2356_v61 = vsub.f32 %v2346_v58, %v2351_v29 }
 0xe35   :  { %v2355_v62 = vpop.xlane.xlu0 %2354 }
 0xe36   :  { %v2358_v26 = vmul.f32 1.442695, %v2356_v61  ;;  %v2357_v36 = vsub.f32 %v2347_v60, %v2355_v62  ;;  %v2558_v60 = vsel %vm847_vm3, %v2292_v46, 0 }
 0xe37   :  { %2648 = vrot.lane.b32.xlu0 %v10006_v21, %s9406_s25  ;;  %8370 = vmatpush3.bf16.msra.mxu0 %v2558_v60 }
 0xe38   :  { %9180 = vpow2.f32 %v2358_v26  ;;  %v2360_v47 = vmul.f32 1.442695, %v2357_v36  ;;  %8381 = vmatprep.subr.bf16.mxu0 %v9408_v59 }
 0xe3a   :  { %9182 = vpow2.f32 %v2360_v47 }
 0xe42   :  { %v9181_v63 = vpop.eup %9180 }
 0xe43   :  { %v2362_v0 = vsel %vm2348_vm12, %v9181_v63, 0.0 }
 0xe44   :  { %v9183_v14 = vpop.eup %9182  ;;  %2363 = vadd.xlane.f32.xlu1 %v2362_v0 }
 0xe45   :  { %v2365_v17 = vsel %vm2352_vm13, %v9183_v14, 0.0 }
 0xe48   :  { %2366 = vadd.xlane.f32.xlu1 %v2365_v17 }
 0xea6   :  { %v2482_v18 = vpop.xlane.xlu0 %2481 }
 0xea7   :  { %v2486_v20 = vsub.f32 %v2478_v56, %v2482_v18 }
 0xea8   :  { %v2485_v32 = vpop.xlane.xlu1 %2484 }
 0xea9   :  { %v2488_v44 = vmul.f32 1.442695, %v2486_v20  ;;  %v2487_v35 = vsub.f32 %v2479_v10, %v2485_v32 }
 0xeaa   :  { %v2248_v25 = vpop.permute.xlu0 %2247 }
 0xeab   :  { %9184 = vpow2.f32 %v2488_v44  ;;  %v2490_v8 = vmul.f32 1.442695, %v2487_v35  ;;  %v2285_v28 = vadd.f32 %v2284_v54, %v2248_v25  ;;  %v2288_v31 = vadd.f32 %v2287_v6, %v2248_v25  ;;  %v2291_v54 = vld [vmem:[%s11287_s2 + $0xc0] sm:$0xf] }
 0xeac   :  { %v2605_v6 = vsel %vm847_vm3, %v2291_v54, 0 }
 0xead   :  { %9186 = vpow2.f32 %v2490_v8  ;;  %v10070_v27 = vpack.c.bf16 %v2288_v31, %v2285_v28 }
 0xeae   :  { %v2651_v26 = vpop.permute.xlu0 %2650 }
 0xeaf   :  { %v2379_v34 = vsel %vm2377_vm14, %v10070_v27, 0  ;;  %v2656_v0 = vsel %vm474_vm2, %v2651_v26, 0 }
 0xeb0   :  { %8352 = vmatpush3.bf16.msra.mxu1 %v2379_v34 }
 0xeb1   :  { %8363 = vmatprep.subr.bf16.mxu1 %v9408_v59 }
 0xeb5   :  { %v9185_v37 = vpop.eup %9184 }
 0xeb6   :  { %v2492_v7 = vsel %vm2348_vm12, %v9185_v37, 0.0 }
 0xeb7   :  { %v9187_v38 = vpop.eup %9186  ;;  %2493 = vadd.xlane.f32.xlu1 %v2492_v7 }
 0xeb8   :  { %v2495_v1 = vsel %vm2352_vm13, %v9187_v38, 0.0 }
 0xebb   :  { %2496 = vadd.xlane.f32.xlu1 %v2495_v1 }
 0xecc   :  { %2504 = vrot.lane.b32.xlu1 %v10070_v27, %s9405_s24 }
 0xed1   :  { %v2364_v30 = vpop.xlane.xlu1 %2363 }
 0xed2   :  { %9188 = vrcp.f32 %v2364_v30 }
 0xed5   :  { %v2367_v39 = vpop.xlane.xlu1 %2366 }
 0xed6   :  { %9190 = vrcp.f32 %v2367_v39 }
 0xedc   :  { %v9189_v40 = vpop.eup %9188 }
 0xedd   :  { %v2369_v45 = vmul.f32 %v9189_v40, %v9181_v63 }
 0xee0   :  { %v9191_v41 = vpop.eup %9190 }
 0xee1   :  { %v2371_v16 = vmul.f32 %v9191_v41, %v9183_v14  ;;  %v2649_v14 = vpop.permute.xlu0 %2648 }
 0xee3   :  { %v2372_v58 = vpack.c.bf16 %v2371_v16, %v2369_v45 }
 0xee5   :  { %8354 = vmatmul.mubr.msk.bf16.vlgmr.msra.gmra.mrb[44].mxu1 %vm2348_vm12, %v2372_v58 }
 0xee6   :  { %8365 = vmatprep.mubr.msk.bf16.mxu1 %vm9409_vm5, %v9408_v59 }
 0xf44   :  { %v2494_v48 = vpop.xlane.xlu1 %2493 }
 0xf45   :  { %9192 = vrcp.f32 %v2494_v48 }
 0xf48   :  { %v2497_v49 = vpop.xlane.xlu1 %2496 }
 0xf49   :  { %9194 = vrcp.f32 %v2497_v49 }
 0xf4c   :  { %v2505_v50 = vpop.permute.xlu1 %2504 }
 0xf4d   :  { %v2510_v51 = vsel %vm2377_vm14, %v2505_v50, 0 }
 0xf4e   :  { %8364 = vmatpush3.bf16.msra.mxu1 %v2510_v51 }
 0xf4f   :  { %8375 = vmatprep.subr.bf16.mxu1 %v9408_v59  ;;  %v9193_v52 = vpop.eup %9192 }
 0xf50   :  { %v2499_v55 = vmul.f32 %v9193_v52, %v9185_v37 }
 0xf53   :  { %v9195_v53 = vpop.eup %9194 }
 0xf54   :  { %v2501_v56 = vmul.f32 %v9195_v53, %v9187_v38 }
 0xf56   :  { %v2502_v57 = vpack.c.bf16 %v2501_v56, %v2499_v55 }
 0xf58   :  { %8366 = vmatmul.mubr.msk.bf16.vlgmr.msra.gmra.mrb[48].mxu1 %vm2348_vm12, %v2502_v57 }
 0xf59   :  { %8376 = vmatpush3.bf16.msra.mxu1 %v2605_v6  ;;  %8377 = vmatprep.mubr.msk.bf16.mxu1 %vm9409_vm5, %v9408_v59 }
 0xf5a   :  { %8387 = vmatprep.subr.bf16.mxu1 %v9408_v59 }
 0xfb8   :  { %v2415_v2 = vpop.f32.mrb[44].mxu1 }
 0xfb9   :  { %v8355_v10 = vpop.f32.mrb[45].mxu1 }
 0xfba   :  { %v2418_v11 = vpop.f32.mrb[46].mxu1 }
 0xfbb   :  { %v2422_v9 = vpack.c.bf16 %v2418_v11, %v2415_v2  ;;  %v8356_v29 = vpop.f32.mrb[47].mxu1 }
 0xfbd   :  { %8378 = vmatmul.mubr.msk.bf16.vlgmr.msra.gmra.mrb[52].mxu1 %vm474_vm2, %v2422_v9 }
 0xfbe   :  { %8389 = vmatprep.mubr.msk.bf16.mxu1 %vm9409_vm5, %v9408_v59 }
0x102b   :  { %v2546_v61 = vpop.f32.mrb[48].mxu1 }
0x102c   :  { %v8367_v62 = vpop.f32.mrb[49].mxu1 }
0x102d   :  { %v2549_v36 = vpop.f32.mrb[50].mxu1 }
0x102e   :  { %v2553_v47 = vpack.c.bf16 %v2549_v36, %v2546_v61  ;;  %v8368_v63 = vpop.f32.mrb[51].mxu1  ;;  %v2293_v61 = vld [vmem:[%s11287_s2 + $0xc8] sm:$0xf] }
0x102f   :  { %v2780_v62 = vsel %vm847_vm3, %v2293_v61, 0 }
0x1030   :  { %8372 = vmatmul.mubr.msk.bf16.vlgmr.msra.gmra.mrb[44].mxu0 %vm474_vm2, %v2553_v47 }
0x1031   :  { %8382 = vmatpush3.bf16.xpose.msra.mxu0 %v2656_v0  ;;  %8383 = vmatprep.mubr.msk.bf16.mxu0 %vm9409_vm5, %v9408_v59 }
0x1032   :  { %8393 = vmatprep.subr.bf16.mxu0 %v9408_v59 }
0x1038   :  { %8384 = vmatmul.mubr.msk.bf16.vlgmr.msra.gmra.mrb[48].mxu0 %vm474_vm2, %v2649_v14 }
0x1039   :  { %8395 = vmatprep.mubr.msk.bf16.mxu0 %vm9409_vm5, %v9408_v59  ;;  %8394 = vmatpush3.bf16.msra.mxu0 %v2780_v62 }
0x103a   :  { %8405 = vmatprep.subr.bf16.mxu0 %v9408_v59 }
0x1090   :  { %v2641_v17 = vpop.f32.mrb[52].mxu1 }
0x1091   :  { %v8379_v18 = vpop.f32.mrb[53].mxu1 }
0x1092   :  { %v2644_v20 = vpop.f32.mrb[54].mxu1 }
0x1093   :  { %v8380_v32 = vpop.f32.mrb[55].mxu1 }
0x1103   :  { %v2594_v44 = vpop.f32.mrb[44].mxu0 }
0x1104   :  { %v10108_v35 = vadd.f32 %v2641_v17, %v2594_v44  ;;  %v8373_v25 = vpop.f32.mrb[45].mxu0 }
0x1105   :  { %v2597_v8 = vpop.f32.mrb[46].mxu0 }
0x1106   :  { %v10110_v28 = vadd.f32 %v2644_v20, %v2597_v8  ;;  %v8374_v31 = vpop.f32.mrb[47].mxu0 }
0x110b   :  { %v2692_v34 = vpop.f32.mrb[48].mxu0 }
0x110c   :  { %v2699_v37 = vmul.f32 0.35355338, %v2692_v34  ;;  %v8385_v7 = vpop.f32.mrb[49].mxu0 }
0x110d   :  { %v2695_v38 = vpop.f32.mrb[50].mxu0 }
0x110e   :  { %v2701_v1 = vadd.f32 %v2699_v37, %v10047_v12  ;;  %v2700_v30 = vmul.f32 0.35355338, %v2695_v38  ;;  %v8386_v39 = vpop.f32.mrb[51].mxu0 }
0x1110   :  { %v2703_v40 = vsel %vm2348_vm12, %v2701_v1, -inf  ;;  %v2702_v41 = vadd.f32 %v2700_v30, %v10052_v42 }
0x1111   :  { %2704 = vmax.xlane.f32.xlu0 %v2703_v40 }
0x1112   :  { %v2706_v45 = vsel %vm2352_vm13, %v2702_v41, -inf }
0x1113   :  { %2707 = vmax.xlane.f32.xlu1 %v2706_v45 }
0x1124   :  { %2827 = vrot.lane.b32.xlu1 %v10020_v33, %s9407_s8 }
0x1128   :  { %2825 = vrot.lane.b32.xlu1 %v10006_v21, %s9407_s8 }
0x119e   :  { %v2705_v16 = vpop.xlane.xlu0 %2704 }
0x119f   :  { %v2709_v58 = vsub.f32 %v2701_v1, %v2705_v16  ;;  %v7677_v16 = vld [vmem:[%s11289_s3 + $0x60] ss:$0 sm:$0xff] }
0x11a0   :  { %v2708_v46 = vpop.xlane.xlu1 %2707 }
0x11a1   :  { %v2711_v60 = vmul.f32 1.442695, %v2709_v58  ;;  %v2710_v48 = vsub.f32 %v2702_v41, %v2708_v46  ;;  %v1740_v41 = vadd.f32 %v10014_v19, %v9854_v22  ;;  %v1741_v46 = vadd.f32 %v10018_v4, %v9860_v5 }
0x11a3   :  { %9196 = vpow2.f32 %v2711_v60  ;;  %v2713_v49 = vmul.f32 1.442695, %v2710_v48  ;;  %v1749_v58 = vadd.f32 %v7677_v16, %v1740_v41  ;;  %v1742_v48 = vadd.f32 %v10012_v23, %v9857_v24 }
0x11a4   :  { %v2828_v10 = vpop.permute.xlu1 %2827 }
0x11a5   :  { %9198 = vpow2.f32 %v2713_v49  ;;  %v2833_v9 = vsel %vm474_vm2, %v2828_v10, 0  ;;  %v1750_v49 = vadd.f32 %v7677_v16, %v1741_v46  ;;  %v1753_v22 = vsel %vm195_vm1, %v1749_v58, 0.0 }
0x11a6   :  { %v1751_v19 = vadd.f32 %v7677_v16, %v1742_v48  ;;  %v10200_v48 = vld [vmem:[%s11287_s2 + $0xd8] sm:$0xff]  }
0x11a8   :  { %v2826_v29 = vpop.permute.xlu1 %2825  ;;  %v1759_v5 = vsel %vm195_vm1, %v1751_v19, 0.0 }
0x11ad   :  { %v9197_v50 = vpop.eup %9196 }
0x11ae   :  { %v2715_v51 = vsel %vm2348_vm12, %v9197_v50, 0.0 }
0x11af   :  { %v9199_v52 = vpop.eup %9198  ;;  %2716 = vadd.xlane.f32.xlu0 %v2715_v51  ;;  %v1756_v51 = vsel %vm195_vm1, %v1750_v49, 0.0 }
0x11b0   :  { %v2718_v53 = vsel %vm2352_vm13, %v9199_v52, 0.0 }
0x11b3   :  { %2719 = vadd.xlane.f32.xlu0 %v2718_v53 }
0x11c9   :  { %2726 = vrot.lane.b32.xlu0 %v10070_v27, %s9406_s25 }
0x123c   :  { %v2717_v21 = vpop.xlane.xlu0 %2716 }
0x123d   :  { %9200 = vrcp.f32 %v2717_v21 }
0x1240   :  { %v2720_v33 = vpop.xlane.xlu0 %2719 }
0x1241   :  { %9202 = vrcp.f32 %v2720_v33 }
0x1244   :  { %v2727_v54 = vpop.permute.xlu0 %2726 }
0x1245   :  { %v2732_v55 = vsel %vm2377_vm14, %v2727_v54, 0 }
0x1246   :  { %8388 = vmatpush3.bf16.msra.mxu1 %v2732_v55 }
0x1247   :  { %8399 = vmatprep.subr.bf16.mxu1 %v9408_v59  ;;  %v9201_v56 = vpop.eup %9200 }
0x1248   :  { %v2722_v6 = vmul.f32 %v9201_v56, %v9197_v50  ;;  %v1743_v50 = vadd.f32 %v10016_v3, %v9865_v13 }
0x124b   :  { %v9203_v57 = vpop.eup %9202 }
0x124c   :  { %v2724_v2 = vmul.f32 %v9203_v57, %v9199_v52  ;;  %v1752_v52 = vadd.f32 %v7677_v16, %v1743_v50 }
0x124e   :  { %v2725_v11 = vpack.c.bf16 %v2724_v2, %v2722_v6  ;;  %v1762_v4 = vsel %vm195_vm1, %v1752_v52, 0.0 }
0x1250   :  { %8390 = vmatmul.mubr.msk.bf16.vlgmr.msra.gmra.mrb[56].mxu1 %vm2348_vm12, %v2725_v11 }
0x1251   :  { %8400 = vmatpush3.bf16.xpose.msra.mxu1 %v2833_v9  ;;  %8401 = vmatprep.mubr.msk.bf16.mxu1 %vm9409_vm5, %v9408_v59 }
0x1252   :  { %8411 = vmatprep.subr.bf16.mxu1 %v9408_v59 }
0x1258   :  { %8402 = vmatmul.mubr.msk.bf16.vlgmr.msra.gmra.mrb[60].mxu1 %vm474_vm2, %v2826_v29 }
0x1259   :  { %8413 = vmatprep.mubr.msk.bf16.mxu1 %vm9409_vm5, %v9408_v59 }
0x1323   :  { %v2768_v26 = vpop.f32.mrb[56].mxu1 }
0x1324   :  { %v8391_v36 = vpop.f32.mrb[57].mxu1 }
0x1325   :  { %v2771_v47 = vpop.f32.mrb[58].mxu1 }
0x1326   :  { %v2775_v63 = vpack.c.bf16 %v2771_v47, %v2768_v26  ;;  %v8392_v0 = vpop.f32.mrb[59].mxu1 }
0x1328   :  { %8396 = vmatmul.mubr.msk.bf16.vlgmr.msra.gmra.mrb[52].mxu0 %vm474_vm2, %v2775_v63  ;;  %v7710_v63 = vld [vmem:[%s11289_s3 + $0x80] ss:$0 sm:$0xff] }
0x1329   :  { %8407 = vmatprep.mubr.msk.bf16.mxu0 %vm9409_vm5, %v9408_v59 }
0x132b   :  { %v2869_v14 = vpop.f32.mrb[60].mxu1 }
0x132c   :  { %v2876_v17 = vmul.f32 0.35355338, %v2869_v14  ;;  %v8403_v18 = vpop.f32.mrb[61].mxu1 }
0x132d   :  { %v2872_v20 = vpop.f32.mrb[62].mxu1 }
0x132e   :  { %v2878_v32 = vadd.f32 %v2876_v17, %v10047_v12  ;;  %v2877_v44 = vmul.f32 0.35355338, %v2872_v20  ;;  %v8404_v25 = vpop.f32.mrb[63].mxu1 }
0x1330   :  { %v2880_v8 = vsel %vm2348_vm12, %v2878_v32, -inf  ;;  %v2879_v31 = vadd.f32 %v2877_v44, %v10052_v42 }
0x1331   :  { %2881 = vmax.xlane.f32.xlu0 %v2880_v8 }
0x1332   :  { %v2883_v34 = vsel %vm2352_vm13, %v2879_v31, -inf }
0x1333   :  { %2884 = vmax.xlane.f32.xlu1 %v2883_v34 }
0x1344   :  { %2903 = vrot.lane.b32.xlu1 %v10070_v27, %s9407_s8 }
0x13be   :  { %v2882_v37 = vpop.xlane.xlu0 %2881 }
0x13bf   :  { %v2886_v7 = vsub.f32 %v2878_v32, %v2882_v37 }
0x13c0   :  { %v2885_v38 = vpop.xlane.xlu1 %2884 }
0x13c1   :  { %v2888_v1 = vmul.f32 1.442695, %v2886_v7  ;;  %v2887_v30 = vsub.f32 %v2879_v31, %v2885_v38 }
0x13c3   :  { %9204 = vpow2.f32 %v2888_v1  ;;  %v2890_v12 = vmul.f32 1.442695, %v2887_v30 }
0x13c4   :  { %v2904_v39 = vpop.permute.xlu1 %2903 }
0x13c5   :  { %9206 = vpow2.f32 %v2890_v12  ;;  %v2909_v40 = vsel %vm2377_vm14, %v2904_v39, 0 }
0x13c6   :  { %8406 = vmatpush3.bf16.msra.mxu0 %v2909_v40 }
0x13c7   :  { %8417 = vmatprep.subr.bf16.mxu0 %v9408_v59 }
0x13cd   :  { %v9205_v42 = vpop.eup %9204 }
0x13ce   :  { %v2892_v27 = vsel %vm2348_vm12, %v9205_v42, 0.0 }
0x13cf   :  { %v9207_v45 = vpop.eup %9206  ;;  %2893 = vadd.xlane.f32.xlu0 %v2892_v27 }
0x13d0   :  { %v2895_v60 = vsel %vm2352_vm13, %v9207_v45, 0.0 }
0x13d3   :  { %2896 = vadd.xlane.f32.xlu0 %v2895_v60  ;;  %v9064_v60 = vld [vmem:[%s11287_s2 + $0xd0] sm:$0xff]  }
0x13d7   :  { %1754 = vadd.xlane.f32.xlu0 %v1753_v22 }
0x13db   :  { %1757 = vadd.xlane.f32.xlu0 %v1756_v51 }
0x13df   :  { %1760 = vadd.xlane.f32.xlu0 %v1759_v5 }
0x13e3   :  { %1763 = vadd.xlane.f32.xlu0 %v1762_v4 }
0x13fb   :  { %v2816_v53 = vpop.f32.mrb[52].mxu0 }
0x13fc   :  { %v2823_v24 = vadd.f32 %v2816_v53, %v10108_v35  ;;  %v8397_v23 = vpop.f32.mrb[53].mxu0  ;;  %v2294_v35 = vld [vmem:[%s11287_s2 + $0xcc] sm:$0xf] }
0x13fd   :  { %v2819_v21 = vpop.f32.mrb[54].mxu0 }
0x13fe   :  { %v2824_v33 = vadd.f32 %v2819_v21, %v10110_v28  ;;  %v8398_v54 = vpop.f32.mrb[55].mxu0  ;;  %v2957_v28 = vsel %vm847_vm3, %v2294_v35, 0 }
0x13ff   :  { %8412 = vmatpush3.bf16.msra.mxu1 %v2957_v28  ;;  %v7678_v28 = vld [vmem:[%s11289_s3 + $0x48] ss:$0 sm:$0xff] }
0x145c   :  { %v2894_v55 = vpop.xlane.xlu0 %2893 }
0x145d   :  { %9208 = vrcp.f32 %v2894_v55 }
0x1460   :  { %v2897_v13 = vpop.xlane.xlu0 %2896 }
0x1461   :  { %9210 = vrcp.f32 %v2897_v13 }
0x1464   :  { %v1755_v62 = vpop.xlane.xlu0 %1754 }
0x1465   :  { %v1765_v36 = vmul.f32 0.03125, %v1755_v62 }
0x1467   :  { %v9209_v3 = vpop.eup %9208  ;;  %v10180_v20 = vsub.f32 %v1749_v58, %v1765_v36  ;;  %v7688_v36 = vld [vmem:[%s11289_s3 + $0x130] ss:$0 sm:$0xff] }
0x1468   :  { %v2899_v57 = vmul.f32 %v9209_v3, %v9205_v42  ;;  %v1758_v26 = vpop.xlane.xlu0 %1757 }
0x1469   :  { %v1766_v32 = vmul.f32 0.03125, %v1758_v26  ;;  %v1773_v1 = vmul.f32 %v10180_v20, %v10180_v20 }
0x146b   :  { %v9211_v56 = vpop.eup %9210  ;;  %v1770_v37 = vsub.f32 %v1750_v49, %v1766_v32  ;;  %v1777_v40 = vsel %vm195_vm1, %v1773_v1, 0.0 }
0x146c   :  { %v2901_v6 = vmul.f32 %v9211_v56, %v9207_v45  ;;  %v1761_v17 = vpop.xlane.xlu0 %1760 }
0x146d   :  { %v1767_v7 = vmul.f32 0.03125, %v1761_v17  ;;  %v1774_v42 = vmul.f32 %v1770_v37, %v1770_v37 }
0x146e   :  { %v2902_v2 = vpack.c.bf16 %v2901_v6, %v2899_v57 }
0x146f   :  { %v1771_v12 = vsub.f32 %v1751_v19, %v1767_v7  ;;  %v1780_v27 = vsel %vm195_vm1, %v1774_v42, 0.0  ;;  %v10244_v7 = vld [vmem:[%s11289_s3 + $0x88] ss:$0 sm:$0xff] }
0x1470   :  { %8408 = vmatmul.mubr.msk.bf16.vlgmr.msra.gmra.mrb[56].mxu0 %vm2348_vm12, %v2902_v2  ;;  %v1764_v30 = vpop.xlane.xlu0 %1763 }
0x1471   :  { %8421 = vmatprep.mubr.msk.bf16.mxu0 %vm9409_vm5, %v9408_v59  ;;  %v1768_v39 = vmul.f32 0.03125, %v1764_v30  ;;  %v1775_v45 = vmul.f32 %v1771_v12, %v1771_v12  ;;  %8418 = vmatpush3.bf16.msra.mxu0 %v9064_v60 }
0x1472   :  { %8419 = vmatprep.subr.bf16.mxu0 %v9408_v59 }
0x1473   :  { %v10187_v41 = vsub.f32 %v1752_v52, %v1768_v39  ;;  %v1783_v16 = vsel %vm195_vm1, %v1775_v45, 0.0 }
0x1475   :  { %v1776_v58 = vmul.f32 %v10187_v41, %v10187_v41  ;;  %8420 = vmatpush3.bf16.msra.mxu0 %v10200_v48 }
0x1477   :  { %v1786_v46 = vsel %vm195_vm1, %v1776_v58, 0.0 }
0x1543   :  { %v2945_v10 = vpop.f32.mrb[56].mxu0 }
0x1544   :  { %v8409_v11 = vpop.f32.mrb[57].mxu0 }
0x1545   :  { %v2948_v9 = vpop.f32.mrb[58].mxu0 }
0x1546   :  { %v2952_v29 = vpack.c.bf16 %v2948_v9, %v2945_v10  ;;  %v8410_v61 = vpop.f32.mrb[59].mxu0  ;;  %v7679_v9 = vld [vmem:[%s11289_s3 + $0x50] ss:$0 sm:$0xff] }
0x1548   :  { %8414 = vmatmul.mubr.msk.bf16.vlgmr.msra.gmra.mrb[64].mxu1 %vm474_vm2, %v2952_v29 }
0x161b   :  { %v2993_v47 = vpop.f32.mrb[64].mxu1 }
0x161c   :  { %v3000_v0 = vadd.f32 %v2993_v47, %v2823_v24  ;;  %v8415_v14 = vpop.f32.mrb[65].mxu1 }
0x161d   :  { %v2996_v18 = vpop.f32.mrb[66].mxu1 }
0x161e   :  { %v3001_v44 = vadd.f32 %v2996_v18, %v2824_v33  ;;  %v8416_v25 = vpop.f32.mrb[67].mxu1  ;;  %v3007_v8 = vadd.f32 %v7710_v63, %v3000_v0  ;;  %v2018_v18 = vld [vmem:[%s11289_s3 + $0x138] sm:$0xff] }
0x1620   :  { %v3008_v31 = vadd.f32 %v7710_v63, %v3001_v44  ;;  %v3009_v34 = vsel %vm195_vm1, %v3007_v8, 0.0 }
0x1621   :  { %3010 = vadd.xlane.f32.xlu1 %v3009_v34 }
0x1622   :  { %v3013_v38 = vsel %vm3012_vm15, %v3008_v31, 0.0 }
0x1623   :  { %3014 = vadd.xlane.f32.xlu0 %v3013_v38 }
0x1627   :  { %1778 = vadd.xlane.f32.xlu0 %v1777_v40 }
0x162b   :  { %1781 = vadd.xlane.f32.xlu0 %v1780_v27 }
0x162f   :  { %1784 = vadd.xlane.f32.xlu0 %v1783_v16 }
0x1632   :  { %3128 = vrot.lane.b32.xlu1 %v10200_v48, %s9403_s16 }
0x1633   :  { %1787 = vadd.xlane.f32.xlu0 %v1786_v46 }
0x1636   :  { %3193 = vrot.lane.b32.xlu1 %v9064_v60, %s9404_s19 }
0x16ae   :  { %v3011_v49 = vpop.xlane.xlu1 %3010 }
0x16af   :  { %v3016_v22 = vmul.f32 0.03125, %v3011_v49  ;;  %v2021_v49 = vld [vmem:[%s11289_s3 + $0x150] sm:$0xff] }
0x16b0   :  { %v3015_v19 = vpop.xlane.xlu0 %3014 }
0x16b1   :  { %v10207_v50 = vsub.f32 %v3007_v8, %v3016_v22  ;;  %v3017_v51 = vmul.f32 0.03125, %v3015_v19 }
0x16b2   :  { %v3129_v39 = vpop.permute.xlu1 %3128 }
0x16b3   :  { %v10209_v52 = vsub.f32 %v3008_v31, %v3017_v51  ;;  %v3020_v5 = vmul.f32 %v10207_v50, %v10207_v50 }
0x16b4   :  { %v1779_v4 = vpop.xlane.xlu0 %1778 }
0x16b5   :  { %v1789_v53 = vmul.f32 0.03125, %v1779_v4  ;;  %v3022_v24 = vsel %vm195_vm1, %v3020_v5, 0.0  ;;  %v3021_v23 = vmul.f32 %v10209_v52, %v10209_v52  ;;  %v7711_v5 = vld [vmem:[%s11289_s3 + $0xb8] ss:$0 sm:$0xff] }
0x16b6   :  { %3023 = vadd.xlane.f32.xlu0 %v3022_v24  ;;  %v3194_v42 = vpop.permute.xlu1 %3193 }
0x16b7   :  { %v1793_v21 = vadd.f32 1e-05, %v1789_v53  ;;  %v3025_v55 = vsel %vm3012_vm15, %v3021_v23, 0.0  ;;  %8433 = vmatprep.subr.bf16.mxu0 %v3194_v42 }
0x16b8   :  { %v1782_v33 = vpop.xlane.xlu0 %1781 }
0x16b9   :  { %9212 = vrsqrt.f32 %v1793_v21  ;;  %v1790_v54 = vmul.f32 0.03125, %v1782_v33  ;;  %v7712_v21 = vld [vmem:[%s11289_s3 + $0xc0] ss:$0 sm:$0xff] }
0x16ba   :  { %3026 = vadd.xlane.f32.xlu0 %v3025_v55 }
0x16bb   :  { %v1794_v13 = vadd.f32 1e-05, %v1790_v54 }
0x16bc   :  { %v1785_v3 = vpop.xlane.xlu0 %1784 }
0x16bd   :  { %9214 = vrsqrt.f32 %v1794_v13  ;;  %v1791_v56 = vmul.f32 0.03125, %v1785_v3 }
0x16bf   :  { %v1795_v57 = vadd.f32 1e-05, %v1791_v56 }
0x16c0   :  { %v1788_v6 = vpop.xlane.xlu0 %1787 }
0x16c1   :  { %9216 = vrsqrt.f32 %v1795_v57  ;;  %v1792_v2 = vmul.f32 0.03125, %v1788_v6 }
0x16c3   :  { %v9213_v35 = vpop.eup %9212  ;;  %v1796_v10 = vadd.f32 1e-05, %v1792_v2 }
0x16c4   :  { %v1801_v11 = vmul.f32 %v9213_v35, %v10180_v20  ;;  %v2019_v20 = vld [vmem:[%s11289_s3 + $0x140] sm:$0xff] }
0x16c5   :  { %9218 = vrsqrt.f32 %v1796_v10 }
0x16c6   :  { %v1810_v29 = vmul.f32 %v7678_v28, %v1801_v11 }
0x16c7   :  { %v9215_v61 = vpop.eup %9214 }
0x16c8   :  { %v1802_v62 = vmul.f32 %v9215_v61, %v1770_v37  ;;  %v1819_v26 = vadd.f32 %v7679_v9, %v1810_v29 }
0x16ca   :  { %v1811_v47 = vmul.f32 %v7678_v28, %v1802_v62  ;;  %v10227_v17 = vadd.f32 %v7688_v36, %v1819_v26 }
0x16cb   :  { %v9217_v63 = vpop.eup %9216 }
0x16cc   :  { %v1803_v0 = vmul.f32 %v9217_v63, %v1771_v12  ;;  %v1820_v14 = vadd.f32 %v7679_v9, %v1811_v47  ;;  %v3052_v34 = vadd.f32 %v10227_v17, %v2018_v18 }
0x16ce   :  { %v1812_v32 = vmul.f32 %v7678_v28, %v1803_v0  ;;  %v10235_v44 = vadd.f32 %v7688_v36, %v1820_v14 }
0x16cf   :  { %v9219_v25 = vpop.eup %9218 }
0x16d0   :  { %v1821_v8 = vadd.f32 %v7679_v9, %v1812_v32  ;;  %v1804_v31 = vmul.f32 %v9219_v25, %v10187_v41  ;;  %v3053_v37 = vadd.f32 %v10235_v44, %v2019_v20  ;;  %3126 = vrot.lane.b32.xlu0 %v9064_v60, %s9403_s16  ;;  %v3191_v6 = vpack.c.bf16 %v10235_v44, %v10227_v17 }
0x16d2   :  { %v1813_v38 = vmul.f32 %v7678_v28, %v1804_v31  ;;  %v10246_v1 = vpack.c.bf16 %v3053_v37, %v3052_v34  ;;  %v10248_v30 = vadd.f32 %v7688_v36, %v1821_v8 }
0x16d4   :  { %v1822_v12 = vadd.f32 %v7679_v9, %v1813_v38  ;;  %8429 = vmatprep.mubr.msk.bf16.mxu1 %vm195_vm1, %v10246_v1  ;;  %3133 = vrot.lane.b32.xlu0 %v10244_v7, %s9403_s16 }
0x16d6   :  { %v10254_v40 = vadd.f32 %v7688_v36, %v1822_v12  ;;  %v10320_v12 = vld [vmem:[%s11289_s3 + $0x1a8] sm:$0xff] }
0x16d8   :  { %3195 = vrot.lane.b32.xlu0 %v10200_v48, %s9404_s19  ;;  %v2020_v48 = vld [vmem:[%s11289_s3 + $0x148] sm:$0xff]  ;;  %v3055_v22 = vadd.f32 %v10254_v40, %v2021_v49 }
0x16d9   :  { %v3054_v19 = vadd.f32 %v10248_v30, %v2020_v48 }
0x16db   :  { %v10269_v4 = vpack.c.bf16 %v3055_v22, %v3054_v19 }
0x1743   :  { %v3024_v41 = vpop.xlane.xlu0 %3023 }
0x1744   :  { %v3028_v27 = vmul.f32 0.03125, %v3024_v41 }
0x1746   :  { %v3030_v45 = vadd.f32 1e-05, %v3028_v27  ;;  %v10325_v27 = vld [vmem:[%s11289_s3 + $0x1b0] sm:$0x3f] }
0x1747   :  { %v3027_v16 = vpop.xlane.xlu0 %3026 }
0x1748   :  { %9220 = vrsqrt.f32 %v3030_v45  ;;  %v3029_v58 = vmul.f32 0.03125, %v3027_v16 }
0x174a   :  { %v3031_v46 = vadd.f32 1e-05, %v3029_v58 }
0x174b   :  { %v3127_v60 = vpop.permute.xlu0 %3126 }
0x174c   :  { %9222 = vrsqrt.f32 %v3031_v46  ;;  %8425 = vmatprep.subr.bf16.mxu1 %v3127_v60 }
0x174d   :  { %8426 = vmatpush3.bf16.msra.mxu1 %v3127_v60 }
0x174e   :  { %8427 = vmatprep.subr.bf16.mxu1 %v3129_v39 }
0x174f   :  { %v3134_v13 = vpop.permute.xlu0 %3133 }
0x1751   :  { %8428 = vmatpush3.bf16.msra.mxu1 %v3129_v39 }
0x1752   :  { %v9221_v51 = vpop.eup %9220  ;;  %8441 = vmatprep.subr.bf16.mxu1 %v9408_v59 }
0x1753   :  { %v3034_v53 = vmul.f32 %v9221_v51, %v10207_v50  ;;  %v3196_v2 = vpop.permute.xlu0 %3195 }
0x1754   :  { %8430 = vmatmul.mubr.msk.bf16.vlgmr.msra.gmra.mrb[68].mxu1 %vm195_vm1, %v10269_v4 }
0x1755   :  { %v3041_v24 = vmul.f32 %v7711_v5, %v3034_v53  ;;  %8445 = vmatprep.mubr.msk.bf16.mxu1 %vm9409_vm5, %v9408_v59 }
0x1756   :  { %v9223_v23 = vpop.eup %9222 }
0x1757   :  { %v3035_v33 = vmul.f32 %v9223_v23, %v10209_v52  ;;  %v10281_v55 = vadd.f32 %v7712_v21, %v3041_v24  ;;  %v3192_v52 = vpack.c.bf16 %v10254_v40, %v10248_v30 }
0x1759   :  { %v3042_v54 = vmul.f32 %v7711_v5, %v3035_v33  ;;  %v3050_v50 = vadd.f32 %v10281_v55, %v9974_v15 }
0x175b   :  { %v10283_v3 = vadd.f32 %v7712_v21, %v3042_v54 }
0x175d   :  { %v3051_v56 = vadd.f32 %v10283_v3, %v9968_v43 }
0x175f   :  { %v3063_v57 = vpack.c.bf16 %v3051_v56, %v3050_v50 }
0x1761   :  { %8422 = vmatmul.mubr.msk.bf16.vlgmr.msra.gmra.mrb[60].mxu0 %vm195_vm1, %v3063_v57 }
0x1762   :  { %8434 = vmatpush3.bf16.msra.mxu0 %v3194_v42  ;;  %8437 = vmatprep.mubr.msk.bf16.mxu0 %vm195_vm1, %v3191_v6 }
0x1763   :  { %8435 = vmatprep.subr.bf16.mxu0 %v3196_v2 }
0x1766   :  { %8436 = vmatpush3.bf16.msra.mxu0 %v3196_v2 }
0x1767   :  { %8449 = vmatprep.subr.bf16.mxu0 %v9408_v59 }
0x1769   :  { %8438 = vmatmul.mubr.msk.bf16.vlgmr.msra.gmra.mrb[64].mxu0 %vm195_vm1, %v3192_v52 }
0x176a   :  { %8453 = vmatprep.mubr.msk.bf16.mxu0 %vm9409_vm5, %v9408_v59 }
0x1827   :  { %v8431_v35 = vpop.f32.mrb[68].mxu1 }
0x1828   :  { %v3176_v28 = vpop.f32.mrb[69].mxu1  ;;  %v3185_v11 = vadd.f32 %v8431_v35, %v3134_v13 }
0x1829   :  { %v8432_v10 = vpop.f32.mrb[70].mxu1  ;;  %v3177_v61 = vadd.f32 %v3176_v28, %v3134_v13 }
0x182a   :  { %v3188_v9 = vadd.f32 %v8432_v10, %v3134_v13  ;;  %v3179_v29 = vpop.f32.mrb[71].mxu1 }
0x182b   :  { %v3180_v62 = vadd.f32 %v3179_v29, %v3134_v13 }
0x182c   :  { %v10299_v26 = vpack.c.bf16 %v3188_v9, %v3185_v11 }
0x182d   :  { %v10301_v36 = vpack.c.bf16 %v3180_v62, %v3177_v61 }
0x182e   :  { %v3271_v25 = vsel %vm474_vm2, %v10299_v26, 0 }
0x182f   :  { %v3268_v47 = vsel %vm474_vm2, %v10301_v36, 0 }
0x1830   :  { %8442 = vmatpush3.bf16.xpose.msra.mxu1 %v3268_v47 }
0x1831   :  { %8443 = vmatprep.subr.bf16.mxu1 %v9408_v59 }
0x1834   :  { %v3117_v63 = vpop.f32.mrb[60].mxu0 }
0x1835   :  { %v8423_v0 = vpop.f32.mrb[61].mxu0  ;;  %v3118_v18 = vadd.f32 %v10244_v7, %v3117_v63 }
0x1836   :  { %v3120_v14 = vpop.f32.mrb[62].mxu0 }
0x1837   :  { %v3121_v20 = vadd.f32 %v10244_v7, %v3120_v14  ;;  %v8424_v32 = vpop.f32.mrb[63].mxu0  ;;  %v3257_v14 = vld [vmem:[%s11287_s2 + $0xe0] sm:$0xf] }
0x1838   :  { %8444 = vmatpush3.bf16.xpose.msra.mxu1 %v3271_v25 }
0x1839   :  { %v10310_v8 = vpack.c.bf16 %v3121_v20, %v3118_v18  ;;  %8465 = vmatprep.subr.bf16.mxu1 %v9408_v59  ;;  %v3578_v18 = vsel %vm847_vm3, %v3257_v14, 0 }
0x183c   :  { %v8439_v31 = vpop.f32.mrb[64].mxu0 }
0x183d   :  { %v3242_v34 = vpop.f32.mrb[65].mxu0 }
0x183e   :  { %v8440_v37 = vpop.f32.mrb[66].mxu0 }
0x183f   :  { %v3245_v38 = vpop.f32.mrb[67].mxu0  ;;  %8446 = vmatmul.mubr.msk.bf16.vlgmr.msra.gmra.mrb[72].mxu1 %vm474_vm2, %v10310_v8 }
0x1840   :  { %8469 = vmatprep.mubr.msk.bf16.mxu1 %vm9409_vm5, %v9408_v59 }
0x1912   :  { %v3307_v39 = vpop.f32.mrb[72].mxu1 }
0x1913   :  { %v3314_v42 = vmul.f32 0.35355338, %v3307_v39  ;;  %v8447_v41 = vpop.f32.mrb[73].mxu1 }
0x1914   :  { %v3310_v45 = vpop.f32.mrb[74].mxu1 }
0x1915   :  { %v3316_v16 = vadd.f32 %v3314_v42, %v10320_v12  ;;  %v3315_v58 = vmul.f32 0.35355338, %v3310_v45  ;;  %v8448_v46 = vpop.f32.mrb[75].mxu1 }
0x1917   :  { %v3317_v60 = vadd.f32 %v3315_v58, %v10325_v27  ;;  %v3318_v49 = vsel %vm195_vm1, %v3316_v16, -inf }
0x1918   :  { %3319 = vmax.xlane.f32.xlu1 %v3318_v49 }
0x1919   :  { %v3321_v48 = vsel %vm3012_vm15, %v3317_v60, -inf }
0x191a   :  { %3322 = vmax.xlane.f32.xlu0 %v3321_v48 }
0x1929   :  { %3393 = vrot.lane.b32.xlu1 %v10301_v36, %s9405_s24 }
0x19a5   :  { %v3320_v22 = vpop.xlane.xlu1 %3319 }
0x19a6   :  { %v3324_v19 = vsub.f32 %v3316_v16, %v3320_v22 }
0x19a7   :  { %v3323_v51 = vpop.xlane.xlu0 %3322 }
0x19a8   :  { %v3326_v5 = vmul.f32 1.442695, %v3324_v19  ;;  %v3325_v53 = vsub.f32 %v3317_v60, %v3323_v51 }
0x19a9   :  { %v3394_v13 = vpop.permute.xlu1 %3393 }
0x19aa   :  { %9224 = vpow2.f32 %v3326_v5  ;;  %v3328_v24 = vmul.f32 1.442695, %v3325_v53  ;;  %v3401_v62 = vsel %vm474_vm2, %v3394_v13, 0 }
0x19ac   :  { %9226 = vpow2.f32 %v3328_v24 }
0x19b4   :  { %v9225_v23 = vpop.eup %9224 }
0x19b5   :  { %v3330_v21 = vsel %vm195_vm1, %v9225_v23, 0.0 }
0x19b6   :  { %v9227_v33 = vpop.eup %9226  ;;  %3331 = vadd.xlane.f32.xlu0 %v3330_v21 }
0x19b7   :  { %v3333_v54 = vsel %vm3012_vm15, %v9227_v33, 0.0 }
0x19b8   :  { %3334 = vadd.xlane.f32.xlu1 %v3333_v54 }
0x19c9   :  { %3395 = vrot.lane.b32.xlu1 %v10299_v26, %s9405_s24 }
0x19cc   :  { %3199 = vrot.lane.b32.xlu0 %v10244_v7, %s9404_s19 }
0x19d0   :  { %3389 = vrot.lane.b32.xlu0 %v10310_v8, %s9405_s24 }
0x1a43   :  { %v3332_v50 = vpop.xlane.xlu0 %3331 }
0x1a44   :  { %9228 = vrcp.f32 %v3332_v50 }
0x1a45   :  { %v3335_v56 = vpop.xlane.xlu1 %3334 }
0x1a46   :  { %9230 = vrcp.f32 %v3335_v56 }
0x1a47   :  { %v3200_v57 = vpop.permute.xlu0 %3199 }
0x1a48   :  { %v3243_v6 = vadd.f32 %v3242_v34, %v3200_v57  ;;  %v3251_v2 = vadd.f32 %v8439_v31, %v3200_v57  ;;  %v3246_v52 = vadd.f32 %v3245_v38, %v3200_v57  ;;  %v3254_v35 = vadd.f32 %v8440_v37, %v3200_v57 }
0x1a49   :  { %v3396_v47 = vpop.permute.xlu1 %3395 }
0x1a4a   :  { %v10341_v28 = vpack.c.bf16 %v3246_v52, %v3243_v6  ;;  %v10343_v10 = vpack.c.bf16 %v3254_v35, %v3251_v2  ;;  %v3404_v63 = vsel %vm474_vm2, %v3396_v47, 0 }
0x1a4b   :  { %v3390_v0 = vpop.permute.xlu0 %3389 }
0x1a4c   :  { %8450 = vmatpush3.bf16.msra.mxu0 %v10341_v28 }
0x1a4d   :  { %8451 = vmatprep.subr.bf16.mxu0 %v9408_v59 }
0x1a4e   :  { %v9229_v7 = vpop.eup %9228 }
0x1a4f   :  { %v3337_v9 = vmul.f32 %v9229_v7, %v9225_v23 }
0x1a50   :  { %v9231_v11 = vpop.eup %9230  ;;  %8452 = vmatpush3.bf16.msra.mxu0 %v10343_v10 }
0x1a51   :  { %v3339_v29 = vmul.f32 %v9231_v11, %v9227_v33  ;;  %8457 = vmatprep.subr.bf16.mxu0 %v9408_v59 }
0x1a53   :  { %v3340_v61 = vpack.c.bf16 %v3339_v29, %v3337_v9 }
0x1a55   :  { %8454 = vmatmul.mubr.msk.bf16.vlgmr.msra.gmra.mrb[68].mxu0 %vm195_vm1, %v3340_v61 }
0x1a56   :  { %8461 = vmatprep.mubr.msk.bf16.mxu0 %vm9409_vm5, %v9408_v59 }
0x1a59   :  { %8458 = vmatpush3.bf16.xpose.msra.mxu0 %v3401_v62 }
0x1a5a   :  { %8459 = vmatprep.subr.bf16.mxu0 %v9408_v59 }
0x1a61   :  { %8460 = vmatpush3.bf16.xpose.msra.mxu0 %v3404_v63 }
0x1a62   :  { %8479 = vmatprep.subr.bf16.mxu0 %v9408_v59 }
0x1a68   :  { %8462 = vmatmul.mubr.msk.bf16.vlgmr.msra.gmra.mrb[72].mxu0 %vm474_vm2, %v3390_v0 }
0x1a69   :  { %8481 = vmatprep.mubr.msk.bf16.mxu0 %vm9409_vm5, %v9408_v59  ;;  %8480 = vmatpush3.bf16.msra.mxu0 %v3578_v18 }
0x1a6a   :  { %8493 = vmatprep.subr.bf16.mxu0 %v9408_v59 }
0x1b28   :  { %v3380_v20 = vpop.f32.mrb[68].mxu0 }
0x1b29   :  { %v8455_v32 = vpop.f32.mrb[69].mxu0 }
0x1b2a   :  { %v3383_v25 = vpop.f32.mrb[70].mxu0 }
0x1b2b   :  { %v3387_v31 = vpack.c.bf16 %v3383_v25, %v3380_v20  ;;  %v8456_v34 = vpop.f32.mrb[71].mxu0 }
0x1b2d   :  { %8482 = vmatmul.mubr.msk.bf16.vlgmr.msra.gmra.mrb[76].mxu0 %vm474_vm2, %v3387_v31 }
0x1b2e   :  { %8497 = vmatprep.mubr.msk.bf16.mxu0 %vm9409_vm5, %v9408_v59 }
0x1b3b   :  { %v3440_v37 = vpop.f32.mrb[72].mxu0 }
0x1b3c   :  { %v3447_v38 = vmul.f32 0.35355338, %v3440_v37  ;;  %v8463_v39 = vpop.f32.mrb[73].mxu0 }
0x1b3d   :  { %v3443_v42 = vpop.f32.mrb[74].mxu0 }
0x1b3e   :  { %v3449_v41 = vadd.f32 %v3447_v38, %v10320_v12  ;;  %v3448_v45 = vmul.f32 0.35355338, %v3443_v42  ;;  %v8464_v16 = vpop.f32.mrb[75].mxu0 }
0x1b40   :  { %v3450_v58 = vadd.f32 %v3448_v45, %v10325_v27  ;;  %v3451_v46 = vsel %vm195_vm1, %v3449_v41, -inf }
0x1b41   :  { %3452 = vmax.xlane.f32.xlu1 %v3451_v46 }
0x1b42   :  { %v3454_v60 = vsel %vm3012_vm15, %v3450_v58, -inf }
0x1b43   :  { %3455 = vmax.xlane.f32.xlu0 %v3454_v60 }
0x1bce   :  { %v3453_v49 = vpop.xlane.xlu1 %3452 }
0x1bcf   :  { %v3457_v48 = vsub.f32 %v3449_v41, %v3453_v49 }
0x1bd0   :  { %v3456_v22 = vpop.xlane.xlu0 %3455 }
0x1bd1   :  { %v3459_v19 = vmul.f32 1.442695, %v3457_v48  ;;  %v3458_v51 = vsub.f32 %v3450_v58, %v3456_v22 }
0x1bd3   :  { %9232 = vpow2.f32 %v3459_v19  ;;  %v3461_v5 = vmul.f32 1.442695, %v3458_v51 }
0x1bd5   :  { %9234 = vpow2.f32 %v3461_v5 }
0x1bdd   :  { %v9233_v53 = vpop.eup %9232 }
0x1bde   :  { %v3463_v24 = vsel %vm195_vm1, %v9233_v53, 0.0 }
0x1bdf   :  { %v9235_v23 = vpop.eup %9234  ;;  %3464 = vadd.xlane.f32.xlu0 %v3463_v24 }
0x1be0   :  { %v3466_v21 = vsel %vm3012_vm15, %v9235_v23, 0.0 }
0x1be1   :  { %3467 = vadd.xlane.f32.xlu1 %v3466_v21 }
0x1bf2   :  { %3478 = vrot.lane.b32.xlu1 %v10343_v10, %s9405_s24 }
0x1bf5   :  { %3476 = vrot.lane.b32.xlu0 %v10341_v28, %s9405_s24 }
0x1bf6   :  { %3623 = vrot.lane.b32.xlu1 %v10301_v36, %s9406_s25 }
0x1bf9   :  { %3625 = vrot.lane.b32.xlu0 %v10299_v26, %s9406_s25 }
0x1bfa   :  { %3621 = vrot.lane.b32.xlu1 %v10310_v8, %s9406_s25 }
0x1bfd   :  { %3806 = vrot.lane.b32.xlu0 %v10301_v36, %s9407_s8 }
0x1bfe   :  { %3808 = vrot.lane.b32.xlu1 %v10299_v26, %s9407_s8 }
0x1c00   :  { %v3614_v33 = vpop.f32.mrb[76].mxu0 }
0x1c01   :  { %3804 = vrot.lane.b32.xlu0 %v10310_v8, %s9407_s8  ;;  %v8483_v54 = vpop.f32.mrb[77].mxu0  ;;  %v3258_v8 = vld [vmem:[%s11287_s2 + $0xe4] sm:$0xf] }
0x1c02   :  { %v3617_v13 = vpop.f32.mrb[78].mxu0  ;;  %v3531_v11 = vsel %vm847_vm3, %v3258_v8, 0 }
0x1c03   :  { %v8484_v50 = vpop.f32.mrb[79].mxu0 }
0x1c6c   :  { %v3465_v56 = vpop.xlane.xlu0 %3464 }
0x1c6d   :  { %9236 = vrcp.f32 %v3465_v56 }
0x1c6e   :  { %v3468_v57 = vpop.xlane.xlu1 %3467 }
0x1c6f   :  { %9238 = vrcp.f32 %v3468_v57 }
0x1c70   :  { %v3477_v6 = vpop.permute.xlu0 %3476 }
0x1c71   :  { %8466 = vmatpush3.bf16.msra.mxu1 %v3477_v6 }
0x1c72   :  { %8467 = vmatprep.subr.bf16.mxu1 %v9408_v59  ;;  %v3479_v2 = vpop.permute.xlu1 %3478 }
0x1c74   :  { %v3626_v14 = vpop.permute.xlu0 %3625 }
0x1c75   :  { %8468 = vmatpush3.bf16.msra.mxu1 %v3479_v2  ;;  %v3634_v18 = vsel %vm474_vm2, %v3626_v14, 0 }
0x1c76   :  { %8473 = vmatprep.subr.bf16.mxu1 %v9408_v59  ;;  %v3624_v61 = vpop.permute.xlu1 %3623 }
0x1c77   :  { %v9237_v26 = vpop.eup %9236  ;;  %v3631_v0 = vsel %vm474_vm2, %v3624_v61, 0 }
0x1c78   :  { %v3470_v52 = vmul.f32 %v9237_v26, %v9233_v53  ;;  %v3807_v20 = vpop.permute.xlu0 %3806 }
0x1c79   :  { %v9239_v36 = vpop.eup %9238  ;;  %v3814_v25 = vsel %vm474_vm2, %v3807_v20, 0 }
0x1c7a   :  { %v3472_v35 = vmul.f32 %v9239_v36, %v9235_v23  ;;  %v3622_v32 = vpop.permute.xlu1 %3621 }
0x1c7c   :  { %v3473_v7 = vpack.c.bf16 %v3472_v35, %v3470_v52  ;;  %v3805_v37 = vpop.permute.xlu0 %3804 }
0x1c7e   :  { %8470 = vmatmul.mubr.msk.bf16.vlgmr.msra.gmra.mrb[76].mxu1 %vm195_vm1, %v3473_v7  ;;  %v3809_v31 = vpop.permute.xlu1 %3808 }
0x1c7f   :  { %8474 = vmatpush3.bf16.msra.mxu1 %v3531_v11  ;;  %8475 = vmatprep.mubr.msk.bf16.mxu1 %vm9409_vm5, %v9408_v59  ;;  %v3817_v34 = vsel %vm474_vm2, %v3809_v31, 0 }
0x1c80   :  { %8485 = vmatprep.subr.bf16.mxu1 %v9408_v59 }
0x1d51   :  { %v3519_v9 = vpop.f32.mrb[76].mxu1 }
0x1d52   :  { %v8471_v29 = vpop.f32.mrb[77].mxu1 }
0x1d53   :  { %v3522_v62 = vpop.f32.mrb[78].mxu1 }
0x1d54   :  { %v3526_v47 = vpack.c.bf16 %v3522_v62, %v3519_v9  ;;  %v8472_v63 = vpop.f32.mrb[79].mxu1 }
0x1d56   :  { %8476 = vmatmul.mubr.msk.bf16.vlgmr.msra.gmra.mrb[80].mxu1 %vm474_vm2, %v3526_v47 }
0x1d57   :  { %8486 = vmatpush3.bf16.xpose.msra.mxu1 %v3631_v0  ;;  %8489 = vmatprep.mubr.msk.bf16.mxu1 %vm9409_vm5, %v9408_v59 }
0x1d58   :  { %8487 = vmatprep.subr.bf16.mxu1 %v9408_v59 }
0x1d5f   :  { %8488 = vmatpush3.bf16.xpose.msra.mxu1 %v3634_v18 }
0x1d60   :  { %8507 = vmatprep.subr.bf16.mxu1 %v9408_v59 }
0x1d66   :  { %8490 = vmatmul.mubr.msk.bf16.vlgmr.msra.gmra.mrb[84].mxu1 %vm474_vm2, %v3622_v32 }
0x1d67   :  { %8508 = vmatpush3.bf16.xpose.msra.mxu1 %v3814_v25  ;;  %8511 = vmatprep.mubr.msk.bf16.mxu1 %vm9409_vm5, %v9408_v59 }
0x1d68   :  { %8509 = vmatprep.subr.bf16.mxu1 %v9408_v59 }
0x1d6f   :  { %8510 = vmatpush3.bf16.xpose.msra.mxu1 %v3817_v34 }
0x1d70   :  { %8529 = vmatprep.subr.bf16.mxu1 %v9408_v59 }
0x1d76   :  { %8512 = vmatmul.mubr.msk.bf16.vlgmr.msra.gmra.mrb[88].mxu1 %vm474_vm2, %v3805_v37 }
0x1d77   :  { %8533 = vmatprep.mubr.msk.bf16.mxu1 %vm9409_vm5, %v9408_v59 }
0x1e29   :  { %v3567_v38 = vpop.f32.mrb[80].mxu1 }
0x1e2a   :  { %v10416_v39 = vadd.f32 %v3614_v33, %v3567_v38  ;;  %v8477_v42 = vpop.f32.mrb[81].mxu1 }
0x1e2b   :  { %v3570_v41 = vpop.f32.mrb[82].mxu1 }
0x1e2c   :  { %v10418_v45 = vadd.f32 %v3617_v13, %v3570_v41  ;;  %v8478_v16 = vpop.f32.mrb[83].mxu1 }
0x1e39   :  { %v3670_v58 = vpop.f32.mrb[84].mxu1 }
0x1e3a   :  { %v3677_v46 = vmul.f32 0.35355338, %v3670_v58  ;;  %v8491_v60 = vpop.f32.mrb[85].mxu1  ;;  %v3259_v58 = vld [vmem:[%s11287_s2 + $0xe8] sm:$0xf] }
0x1e3b   :  { %v3673_v49 = vpop.f32.mrb[86].mxu1 }
0x1e3c   :  { %v3679_v48 = vadd.f32 %v3677_v46, %v10320_v12  ;;  %v3678_v22 = vmul.f32 0.35355338, %v3673_v49  ;;  %v8492_v19 = vpop.f32.mrb[87].mxu1  ;;  %v3759_v46 = vsel %vm847_vm3, %v3259_v58, 0  ;;  %v9070_v58 = vld [vmem:[%s11287_s2 + $0x140] sm:$0xff]  }
0x1e3e   :  { %v3680_v51 = vadd.f32 %v3678_v22, %v10325_v27  ;;  %v3681_v5 = vsel %vm195_vm1, %v3679_v48, -inf }
0x1e3f   :  { %3682 = vmax.xlane.f32.xlu1 %v3681_v5 }
0x1e40   :  { %v3684_v53 = vsel %vm3012_vm15, %v3680_v51, -inf }
0x1e41   :  { %3685 = vmax.xlane.f32.xlu0 %v3684_v53 }
0x1e49   :  { %v3853_v24 = vpop.f32.mrb[88].mxu1 }
0x1e4a   :  { %v8513_v23 = vpop.f32.mrb[89].mxu1  ;;  %v3860_v35 = vmul.f32 0.35355338, %v3853_v24 }
0x1e4b   :  { %v3856_v21 = vpop.f32.mrb[90].mxu1 }
0x1e4c   :  { %v8514_v33 = vpop.f32.mrb[91].mxu1  ;;  %v3861_v52 = vmul.f32 0.35355338, %v3856_v21  ;;  %v3862_v11 = vadd.f32 %v3860_v35, %v10320_v12 }
0x1e4e   :  { %v3863_v7 = vadd.f32 %v3861_v52, %v10325_v27  ;;  %v3864_v29 = vsel %vm195_vm1, %v3862_v11, -inf }
0x1e50   :  { %v3867_v9 = vsel %vm3012_vm15, %v3863_v7, -inf }
0x1ecc   :  { %v3683_v54 = vpop.xlane.xlu1 %3682 }
0x1ecd   :  { %v3687_v13 = vsub.f32 %v3679_v48, %v3683_v54  ;;  %v3260_v54 = vld [vmem:[%s11287_s2 + $0xec] sm:$0xf] }
0x1ece   :  { %v3686_v50 = vpop.xlane.xlu0 %3685 }
0x1ecf   :  { %v3689_v56 = vmul.f32 1.442695, %v3687_v13  ;;  %v3688_v57 = vsub.f32 %v3680_v51, %v3686_v50  ;;  %v3942_v13 = vsel %vm847_vm3, %v3260_v54, 0 }
0x1ed1   :  { %9240 = vpow2.f32 %v3689_v56  ;;  %v3691_v6 = vmul.f32 1.442695, %v3688_v57 }
0x1ed3   :  { %9242 = vpow2.f32 %v3691_v6 }
0x1edb   :  { %v9241_v2 = vpop.eup %9240 }
0x1edc   :  { %v3693_v26 = vsel %vm195_vm1, %v9241_v2, 0.0 }
0x1edd   :  { %v9243_v36 = vpop.eup %9242  ;;  %3694 = vadd.xlane.f32.xlu0 %v3693_v26 }
0x1ede   :  { %v3696_v8 = vsel %vm3012_vm15, %v9243_v36, 0.0 }
0x1edf   :  { %3697 = vadd.xlane.f32.xlu1 %v3696_v8 }
0x1ef0   :  { %3706 = vrot.lane.b32.xlu1 %v10343_v10, %s9406_s25 }
0x1ef3   :  { %3704 = vrot.lane.b32.xlu0 %v10341_v28, %s9406_s25 }
0x1f12   :  { %3868 = vmax.xlane.f32.xlu0 %v3867_v9 }
0x1f14   :  { %3865 = vmax.xlane.f32.xlu1 %v3864_v29 }
0x1f6a   :  { %v3695_v61 = vpop.xlane.xlu0 %3694 }
0x1f6b   :  { %9244 = vrcp.f32 %v3695_v61 }
0x1f6c   :  { %v3698_v62 = vpop.xlane.xlu1 %3697 }
0x1f6d   :  { %9246 = vrcp.f32 %v3698_v62 }
0x1f6e   :  { %v3705_v47 = vpop.permute.xlu0 %3704 }
0x1f6f   :  { %8494 = vmatpush3.bf16.msra.mxu0 %v3705_v47 }
0x1f70   :  { %8495 = vmatprep.subr.bf16.mxu0 %v9408_v59  ;;  %v3707_v63 = vpop.permute.xlu1 %3706 }
0x1f73   :  { %8496 = vmatpush3.bf16.msra.mxu0 %v3707_v63 }
0x1f74   :  { %8501 = vmatprep.subr.bf16.mxu0 %v9408_v59 }
0x1f75   :  { %v9245_v27 = vpop.eup %9244 }
0x1f76   :  { %v3700_v0 = vmul.f32 %v9245_v27, %v9241_v2 }
0x1f77   :  { %v9247_v12 = vpop.eup %9246 }
0x1f78   :  { %v3702_v14 = vmul.f32 %v9247_v12, %v9243_v36 }
0x1f7a   :  { %v3703_v18 = vpack.c.bf16 %v3702_v14, %v3700_v0 }
0x1f7c   :  { %8498 = vmatmul.mubr.msk.bf16.vlgmr.msra.gmra.mrb[80].mxu0 %vm195_vm1, %v3703_v18 }
0x1f7d   :  { %8503 = vmatprep.mubr.msk.bf16.mxu0 %vm9409_vm5, %v9408_v59  ;;  %8502 = vmatpush3.bf16.msra.mxu0 %v3759_v46  ;;  %v9071_v46 = vld [vmem:[%s11287_s2 + $0x148] sm:$0xff]  }
0x1f7e   :  { %8515 = vmatprep.subr.bf16.mxu0 %v9408_v59 }
0x1f9f   :  { %v3869_v20 = vpop.xlane.xlu0 %3868 }
0x1fa0   :  { %v3871_v32 = vsub.f32 %v3863_v7, %v3869_v20 }
0x1fa1   :  { %v3866_v25 = vpop.xlane.xlu1 %3865 }
0x1fa2   :  { %v3874_v31 = vmul.f32 1.442695, %v3871_v32  ;;  %v3870_v34 = vsub.f32 %v3862_v11, %v3866_v25 }
0x1fa4   :  { %9248 = vpow2.f32 %v3874_v31  ;;  %v3872_v37 = vmul.f32 1.442695, %v3870_v34 }
0x1fa6   :  { %9250 = vpow2.f32 %v3872_v37 }
0x1fae   :  { %v9249_v38 = vpop.eup %9248 }
0x1faf   :  { %v3879_v42 = vsel %vm3012_vm15, %v9249_v38, 0.0 }
0x1fb0   :  { %v9251_v41 = vpop.eup %9250  ;;  %3880 = vadd.xlane.f32.xlu1 %v3879_v42 }
0x1fb1   :  { %v3876_v16 = vsel %vm195_vm1, %v9251_v41, 0.0 }
0x1fb2   :  { %3877 = vadd.xlane.f32.xlu0 %v3876_v16  ;;  %v10487_v16 = vld [vmem:[%s11287_s2 + $0xf0] sm:$0xff]  }
0x1fc1   :  { %3889 = vrot.lane.b32.xlu1 %v10343_v10, %s9407_s8 }
0x1fc8   :  { %3887 = vrot.lane.b32.xlu0 %v10341_v28, %s9407_s8 }
0x203d   :  { %v3881_v49 = vpop.xlane.xlu1 %3880 }
0x203f   :  { %v3878_v60 = vpop.xlane.xlu0 %3877 }
0x2040   :  { %9252 = vrcp.f32 %v3878_v60 }
0x2041   :  { %9254 = vrcp.f32 %v3881_v49  ;;  %v3890_v21 = vpop.permute.xlu1 %3889 }
0x2043   :  { %v3888_v28 = vpop.permute.xlu0 %3887 }
0x204a   :  { %v9253_v5 = vpop.eup %9252 }
0x204b   :  { %v9255_v53 = vpop.eup %9254  ;;  %v3883_v24 = vmul.f32 %v9253_v5, %v9251_v41  ;;  %v9067_v41 = vld [vmem:[%s11287_s2 + $0x138] sm:$0xff]   ;;  %v7734_v5 = vld [vmem:[%s11289_s3 + $0xc8] ss:$0 sm:$0xff] }
0x204c   :  { %v3885_v23 = vmul.f32 %v9255_v53, %v9249_v38 }
0x204e   :  { %v3886_v33 = vpack.c.bf16 %v3885_v23, %v3883_v24 }
0x204f   :  { %v3747_v48 = vpop.f32.mrb[80].mxu0 }
0x2050   :  { %v8499_v22 = vpop.f32.mrb[81].mxu0 }
0x2051   :  { %v3750_v19 = vpop.f32.mrb[82].mxu0 }
0x2052   :  { %v3754_v10 = vpack.c.bf16 %v3750_v19, %v3747_v48  ;;  %v8500_v51 = vpop.f32.mrb[83].mxu0 }
0x2054   :  { %8504 = vmatmul.mubr.msk.bf16.vlgmr.msra.gmra.mrb[84].mxu0 %vm474_vm2, %v3754_v10 }
0x2055   :  { %8516 = vmatpush3.bf16.msra.mxu0 %v3888_v28  ;;  %8519 = vmatprep.mubr.msk.bf16.mxu0 %vm9409_vm5, %v9408_v59 }
0x2056   :  { %8517 = vmatprep.subr.bf16.mxu0 %v9408_v59 }
0x2059   :  { %8518 = vmatpush3.bf16.msra.mxu0 %v3890_v21  ;;  %v7735_v21 = vld [vmem:[%s11289_s3 + $0xd0] ss:$0 sm:$0xff] }
0x205a   :  { %8523 = vmatprep.subr.bf16.mxu0 %v9408_v59 }
0x205c   :  { %8520 = vmatmul.mubr.msk.bf16.vlgmr.msra.gmra.mrb[88].mxu0 %vm195_vm1, %v3886_v33 }
0x205d   :  { %8525 = vmatprep.mubr.msk.bf16.mxu0 %vm9409_vm5, %v9408_v59  ;;  %8524 = vmatpush3.bf16.msra.mxu0 %v3942_v13 }
0x205e   :  { %8537 = vmatprep.subr.bf16.mxu0 %v9408_v59 }
0x2127   :  { %v3795_v50 = vpop.f32.mrb[84].mxu0 }
0x2128   :  { %v3802_v56 = vadd.f32 %v3795_v50, %v10416_v39  ;;  %v8505_v57 = vpop.f32.mrb[85].mxu0  ;;  %v7733_v39 = vld [vmem:[%s11289_s3 + $0x90] ss:$0 sm:$0xff] }
0x2129   :  { %v3798_v6 = vpop.f32.mrb[86].mxu0  ;;  %v9072_v57 = vld [vmem:[%s11287_s2 + $0x150] sm:$0xff]  }
0x212a   :  { %v3803_v2 = vadd.f32 %v3798_v6, %v10418_v45  ;;  %v8506_v26 = vpop.f32.mrb[87].mxu0 }
0x212f   :  { %v3930_v36 = vpop.f32.mrb[88].mxu0 }
0x2130   :  { %v8521_v8 = vpop.f32.mrb[89].mxu0 }
0x2131   :  { %v3933_v52 = vpop.f32.mrb[90].mxu0 }
0x2132   :  { %v3937_v35 = vpack.c.bf16 %v3933_v52, %v3930_v36  ;;  %v8522_v7 = vpop.f32.mrb[91].mxu0 }
0x2134   :  { %8526 = vmatmul.mubr.msk.bf16.vlgmr.msra.gmra.mrb[92].mxu0 %vm474_vm2, %v3937_v35 }
0x2135   :  { %8545 = vmatprep.mubr.msk.bf16.mxu0 %vm9409_vm5, %v9408_v59  ;;  %8538 = vmatpush3.bf16.msra.mxu0 %v9070_v58 }
0x2136   :  { %8539 = vmatprep.subr.bf16.mxu0 %v9408_v59 }
0x2139   :  { %8540 = vmatpush3.bf16.msra.mxu0 %v9071_v46 }
0x213a   :  { %8541 = vmatprep.subr.bf16.mxu0 %v9408_v59 }
0x213d   :  { %8542 = vmatpush3.bf16.msra.mxu0 %v9072_v57  ;;  %v7747_v57 = vld [vmem:[%s11289_s3 + $0xe0] ss:$0 sm:$0xff] }
0x213e   :  { %8543 = vmatprep.subr.bf16.mxu0 %v9408_v59 }
0x2207   :  { %v3978_v11 = vpop.f32.mrb[92].mxu0 }
0x2208   :  { %v3985_v9 = vadd.f32 %v3978_v11, %v3802_v56  ;;  %v8527_v29 = vpop.f32.mrb[93].mxu0  ;;  %v10507_v56 = vld [vmem:[%s11287_s2 + $0xf8] sm:$0xff]  }
0x2209   :  { %v3981_v61 = vpop.f32.mrb[94].mxu0 }
0x220a   :  { %v3992_v45 = vadd.f32 %v7733_v39, %v3985_v9  ;;  %v3986_v62 = vadd.f32 %v3981_v61, %v3803_v2  ;;  %v8528_v47 = vpop.f32.mrb[95].mxu0  ;;  %v10534_v9 = vld [vmem:[%s11289_s3 + $0x98] ss:$0 sm:$0xff] }
0x220c   :  { %v3993_v63 = vadd.f32 %v7733_v39, %v3986_v62  ;;  %v3994_v27 = vadd.f32 %v3992_v45, %v10281_v55 }
0x220e   :  { %v3996_v12 = vsel %vm195_vm1, %v3994_v27, 0.0  ;;  %v3995_v0 = vadd.f32 %v3993_v63, %v10283_v3  ;;  %v9066_v3 = vld [vmem:[%s11287_s2 + $0x130] sm:$0xff]  }
0x220f   :  { %3997 = vadd.xlane.f32.xlu1 %v3996_v12  ;;  %8530 = vmatpush3.bf16.msra.mxu1 %v9066_v3 }
0x2210   :  { %v3999_v14 = vsel %vm3012_vm15, %v3995_v0, 0.0  ;;  %8531 = vmatprep.subr.bf16.mxu1 %v9408_v59 }
0x2211   :  { %4000 = vadd.xlane.f32.xlu0 %v3999_v14  ;;  %v7740_v14 = vld [vmem:[%s11289_s3 + $0x110] ss:$0 sm:$0xff] }
0x2213   :  { %8532 = vmatpush3.bf16.msra.mxu1 %v9067_v41 }
0x2214   :  { %8549 = vmatprep.subr.bf16.mxu1 %v10487_v16 }
0x229c   :  { %v3998_v18 = vpop.xlane.xlu1 %3997 }
0x229d   :  { %v4002_v20 = vmul.f32 0.03125, %v3998_v18 }
0x229e   :  { %v4001_v32 = vpop.xlane.xlu0 %4000 }
0x229f   :  { %v4004_v25 = vsub.f32 %v3994_v27, %v4002_v20  ;;  %v4003_v31 = vmul.f32 0.03125, %v4001_v32 }
0x22a1   :  { %v4005_v34 = vsub.f32 %v3995_v0, %v4003_v31  ;;  %v4006_v37 = vmul.f32 %v4004_v25, %v4004_v25 }
0x22a3   :  { %v4008_v38 = vsel %vm195_vm1, %v4006_v37, 0.0  ;;  %v4007_v42 = vmul.f32 %v4005_v34, %v4005_v34 }
0x22a4   :  { %4009 = vadd.xlane.f32.xlu0 %v4008_v38 }
0x22a5   :  { %v4011_v55 = vsel %vm3012_vm15, %v4007_v42, 0.0 }
0x22a6   :  { %4012 = vadd.xlane.f32.xlu1 %v4011_v55 }
0x2331   :  { %v4010_v60 = vpop.xlane.xlu0 %4009 }
0x2332   :  { %v4014_v49 = vmul.f32 0.03125, %v4010_v60 }
0x2333   :  { %v4013_v48 = vpop.xlane.xlu1 %4012 }
0x2334   :  { %v4016_v22 = vadd.f32 1e-05, %v4014_v49  ;;  %v4015_v19 = vmul.f32 0.03125, %v4013_v48 }
0x2336   :  { %9256 = vrsqrt.f32 %v4016_v22  ;;  %v4017_v10 = vadd.f32 1e-05, %v4015_v19 }
0x2338   :  { %9258 = vrsqrt.f32 %v4017_v10 }
0x2340   :  { %v9257_v51 = vpop.eup %9256 }
0x2341   :  { %v4020_v28 = vmul.f32 %v9257_v51, %v4004_v25 }
0x2342   :  { %v9259_v53 = vpop.eup %9258 }
0x2343   :  { %v4027_v24 = vmul.f32 %v7734_v5, %v4020_v28  ;;  %v4021_v23 = vmul.f32 %v9259_v53, %v4005_v34 }
0x2345   :  { %v4028_v33 = vmul.f32 %v7734_v5, %v4021_v23  ;;  %v4034_v54 = vadd.f32 %v7735_v21, %v4027_v24 }
0x2347   :  { %v4035_v13 = vadd.f32 %v7735_v21, %v4028_v33 }
0x2349   :  { %v4040_v50 = vpack.c.bf16 %v4035_v13, %v4034_v54 }
0x234b   :  { %8534 = vmatmul.mubr.msk.bf16.vlgmr.msra.gmra.mrb[92].mxu1 %vm195_vm1, %v4040_v50 }
0x234c   :  { %8550 = vmatpush3.bf16.msra.mxu1 %v10487_v16  ;;  %8553 = vmatprep.mubr.msk.bf16.mxu1 %vm195_vm1, %v10246_v1  ;;  %v9073_v1 = vld [vmem:[%s11287_s2 + $0x158] sm:$0xff]  }
0x234d   :  { %8551 = vmatprep.subr.bf16.mxu1 %v10507_v56  ;;  %8544 = vmatpush3.bf16.msra.mxu0 %v9073_v1 }
0x234e   :  { %8565 = vmatprep.subr.bf16.mxu0 %v9408_v59 }
0x2350   :  { %8552 = vmatpush3.bf16.msra.mxu1 %v10507_v56 }
0x2351   :  { %8557 = vmatprep.subr.bf16.mxu1 %v9408_v59 }
0x2353   :  { %8554 = vmatmul.mubr.msk.bf16.vlgmr.msra.gmra.mrb[96].mxu1 %vm195_vm1, %v10269_v4  ;;  %v7736_v4 = vld [vmem:[%s11289_s3 + $0x108] ss:$0 sm:$0xff] }
0x2354   :  { %8561 = vmatprep.mubr.msk.bf16.mxu1 %vm9409_vm5, %v9408_v59 }
0x241e   :  { %v4095_v6 = vpop.f32.mrb[92].mxu1 }
0x241f   :  { %v4096_v2 = vadd.f32 %v7736_v4, %v4095_v6  ;;  %v8535_v26 = vpop.f32.mrb[93].mxu1 }
0x2420   :  { %v4098_v36 = vpop.f32.mrb[94].mxu1 }
0x2421   :  { %v4099_v8 = vadd.f32 %v7736_v4, %v4098_v36  ;;  %v8536_v52 = vpop.f32.mrb[95].mxu1  ;;  %v4102_v35 = vmax.f32 %v4096_v2, 0.0 }
0x2423   :  { %v4103_v7 = vmax.f32 %v4099_v8, 0.0 }
0x2425   :  { %v4112_v11 = vpack.c.bf16 %v4103_v7, %v4102_v35 }
0x2426   :  { %v8555_v39 = vpop.f32.mrb[96].mxu1 }
0x2427   :  { %8546 = vmatmul.mubr.msk.bf16.vlgmr.msra.gmra.mrb[96].mxu0 %vm131_vm0, %v4112_v11  ;;  %v4289_v29 = vpop.f32.mrb[97].mxu1  ;;  %v4298_v45 = vadd.f32 %v8555_v39, %v10534_v9 }
0x2428   :  { %v8556_v61 = vpop.f32.mrb[98].mxu1  ;;  %8569 = vmatprep.mubr.msk.bf16.mxu0 %vm9409_vm5, %v9408_v59  ;;  %v4290_v63 = vadd.f32 %v10534_v9, %v4289_v29 }
0x2429   :  { %v4301_v62 = vadd.f32 %v8556_v61, %v10534_v9  ;;  %v4292_v47 = vpop.f32.mrb[99].mxu1 }
0x242a   :  { %v4293_v27 = vadd.f32 %v10534_v9, %v4292_v47 }
0x242b   :  { %v10543_v12 = vpack.c.bf16 %v4301_v62, %v4298_v45 }
0x242c   :  { %v10545_v0 = vpack.c.bf16 %v4293_v27, %v4290_v63 }
0x24fa   :  { %v4179_v18 = vpop.f32.mrb[96].mxu0 }
0x24fb   :  { %v4180_v20 = vadd.f32 %v7740_v14, %v4179_v18  ;;  %v8547_v32 = vpop.f32.mrb[97].mxu0 }
0x24fc   :  { %v4182_v25 = vpop.f32.mrb[98].mxu0  ;;  %v10610_v32 = vld [vmem:[%s11289_s3 + $0x1b8] sm:$0xff] }
0x24fd   :  { %v4186_v31 = vadd.f32 %v4180_v20, %v4034_v54  ;;  %v4183_v34 = vadd.f32 %v7740_v14, %v4182_v25  ;;  %v8548_v37 = vpop.f32.mrb[99].mxu0 }
0x24fe   :  { %v10615_v37 = vld [vmem:[%s11289_s3 + $0x1d0] sm:$0xff] }
0x24ff   :  { %v4187_v38 = vadd.f32 %v4183_v34, %v4035_v13  ;;  %v4188_v42 = vsel %vm195_vm1, %v4186_v31, 0.0  ;;  %v7746_v13 = vld [vmem:[%s11289_s3 + $0xd8] ss:$0 sm:$0xff] }
0x2500   :  { %4189 = vadd.xlane.f32.xlu0 %v4188_v42  ;;  %v10620_v42 = vld [vmem:[%s11289_s3 + $0x1c0] sm:$0xff] }
0x2501   :  { %v4191_v55 = vsel %vm3012_vm15, %v4187_v38, 0.0 }
0x2502   :  { %4192 = vadd.xlane.f32.xlu1 %v4191_v55 }
0x258d   :  { %v4190_v3 = vpop.xlane.xlu0 %4189 }
0x258e   :  { %v4194_v41 = vmul.f32 0.03125, %v4190_v3 }
0x258f   :  { %v4193_v58 = vpop.xlane.xlu1 %4192 }
0x2590   :  { %v4196_v46 = vsub.f32 %v4186_v31, %v4194_v41  ;;  %v4195_v60 = vmul.f32 0.03125, %v4193_v58 }
0x2592   :  { %v4197_v49 = vsub.f32 %v4187_v38, %v4195_v60  ;;  %v4198_v48 = vmul.f32 %v4196_v46, %v4196_v46 }
0x2594   :  { %v4200_v22 = vsel %vm195_vm1, %v4198_v48, 0.0  ;;  %v4199_v19 = vmul.f32 %v4197_v49, %v4197_v49 }
0x2595   :  { %4201 = vadd.xlane.f32.xlu0 %v4200_v22 }
0x2596   :  { %v4203_v10 = vsel %vm3012_vm15, %v4199_v19, 0.0 }
0x2597   :  { %4204 = vadd.xlane.f32.xlu1 %v4203_v10 }
0x25a8   :  { %4307 = vrot.lane.b32.xlu1 %v10507_v56, %s9403_s16 }
0x25ab   :  { %4305 = vrot.lane.b32.xlu0 %v10487_v16, %s9403_s16 }
0x25ac   :  { %4312 = vrot.lane.b32.xlu1 %v10534_v9, %s9403_s16 }
0x25b0   :  { %4595 = vrot.lane.b32.xlu1 %v10545_v0, %s9405_s24 }
0x25b4   :  { %4360 = vrot.lane.b32.xlu1 %v10487_v16, %s9404_s19 }
0x2622   :  { %v4202_v51 = vpop.xlane.xlu0 %4201 }
0x2623   :  { %v4206_v5 = vmul.f32 0.03125, %v4202_v51 }
0x2624   :  { %v4205_v28 = vpop.xlane.xlu1 %4204 }
0x2625   :  { %v4208_v53 = vadd.f32 1e-05, %v4206_v5  ;;  %v4207_v24 = vmul.f32 0.03125, %v4205_v28 }
0x2626   :  { %v4306_v23 = vpop.permute.xlu0 %4305 }
0x2627   :  { %9260 = vrsqrt.f32 %v4208_v53  ;;  %v4209_v21 = vadd.f32 1e-05, %v4207_v24  ;;  %8558 = vmatpush3.bf16.msra.mxu1 %v4306_v23 }
0x2628   :  { %8559 = vmatprep.subr.bf16.mxu1 %v9408_v59  ;;  %v4308_v33 = vpop.permute.xlu1 %4307 }
0x2629   :  { %9262 = vrsqrt.f32 %v4209_v21 }
0x262b   :  { %8560 = vmatpush3.bf16.msra.mxu1 %v4308_v33 }
0x262c   :  { %v4313_v35 = vpop.permute.xlu1 %4312 }
0x2630   :  { %v4596_v7 = vpop.permute.xlu1 %4595 }
0x2631   :  { %v9261_v54 = vpop.eup %9260 }
0x2632   :  { %v4212_v16 = vmul.f32 %v9261_v54, %v4196_v46  ;;  %v10626_v46 = vld [vmem:[%s11289_s3 + $0x1c8] sm:$0xff] }
0x2633   :  { %v9263_v50 = vpop.eup %9262 }
0x2634   :  { %v4219_v1 = vmul.f32 %v7746_v13, %v4212_v16  ;;  %v4213_v4 = vmul.f32 %v9263_v50, %v4197_v49  ;;  %v4361_v11 = vpop.permute.xlu1 %4360 }
0x2635   :  { %8566 = vmatpush3.bf16.msra.mxu0 %v4361_v11 }
0x2636   :  { %v10571_v6 = vadd.f32 %v7747_v57, %v4219_v1  ;;  %v4220_v2 = vmul.f32 %v7746_v13, %v4213_v4  ;;  %8567 = vmatprep.subr.bf16.mxu0 %v9408_v59 }
0x2638   :  { %v10573_v26 = vadd.f32 %v7747_v57, %v4220_v2  ;;  %v4228_v36 = vadd.f32 %v10571_v6, %v9974_v15 }
0x263a   :  { %v4229_v8 = vadd.f32 %v10573_v26, %v9968_v43  ;;  %v4359_v20 = vpack.c.bf16 %v10573_v26, %v10571_v6 }
0x263c   :  { %v10579_v52 = vpack.c.bf16 %v4229_v8, %v4228_v36 }
0x263e   :  { %8562 = vmatmul.mubr.msk.bf16.vlgmr.msra.gmra.mrb[100].mxu1 %vm195_vm1, %v10579_v52 }
0x263f   :  { %8575 = vmatprep.mubr.msk.bf16.mxu1 %vm474_vm2, %v10545_v0 }
0x2711   :  { %v4352_v39 = vpop.f32.mrb[100].mxu1 }
0x2712   :  { %v8563_v29 = vpop.f32.mrb[101].mxu1  ;;  %v4353_v61 = vadd.f32 %v4352_v39, %v4313_v35 }
0x2713   :  { %v4355_v15 = vpop.f32.mrb[102].mxu1 }
0x2714   :  { %v4356_v45 = vadd.f32 %v4355_v15, %v4313_v35  ;;  %v8564_v43 = vpop.f32.mrb[103].mxu1 }
0x2716   :  { %v10586_v62 = vpack.c.bf16 %v4356_v45, %v4353_v61 }
0x2718   :  { %4600 = vrot.lane.b32.xlu0 %v10586_v62, %s9405_s24  ;;  %9012 = vmatprep.subr.msk.bf16.mxu1 %vm474_vm2, %v10586_v62  ;;  %v4427_v47 = vsel %vm474_vm2, %v10586_v62, 0 }
0x2719   :  { %8574 = vmatpush3.bf16.xpose.msra.mxu1 %v4427_v47 }
0x271c   :  { %4597 = vrot.lane.b32.xlu0 %v10543_v12, %s9405_s24 }
0x2720   :  { %4362 = vrot.lane.b32.xlu0 %v10507_v56, %s9404_s19  ;;  %8576 = vmatmul.mubr.msk.bf16.vlgmr.msra.gmra.mrb[104].mxu1 %vm474_vm2, %v10543_v12 }
0x2721   :  { %8587 = vmatprep.mubr.msk.bf16.mxu1 %vm474_vm2, %v4596_v7 }
0x278a   :  { %v4601_v63 = vpop.permute.xlu0 %4600 }
0x278b   :  { %v4609_v27 = vsel %vm474_vm2, %v4601_v63, 0  ;;  %9014 = vmatprep.subr.msk.bf16.mxu1 %vm474_vm2, %v4601_v63 }
0x278c   :  { %8586 = vmatpush3.bf16.xpose.msra.mxu1 %v4609_v27 }
0x278e   :  { %v4598_v14 = vpop.permute.xlu0 %4597 }
0x2792   :  { %v4363_v18 = vpop.permute.xlu0 %4362 }
0x2793   :  { %8568 = vmatpush3.bf16.msra.mxu0 %v4363_v18  ;;  %8588 = vmatmul.mubr.msk.bf16.vlgmr.msra.gmra.mrb[108].mxu1 %vm474_vm2, %v4598_v14 }
0x2796   :  { %8570 = vmatmul.mubr.msk.bf16.vlgmr.msra.gmra.mrb[100].mxu0 %vm195_vm1, %v4359_v20 }
0x27f3   :  { %v8577_v56 = vpop.f32.mrb[104].mxu1 }
0x27f4   :  { %v4463_v25 = vpop.f32.mrb[105].mxu1  ;;  %v4480_v3 = vmul.f32 0.35355338, %v8577_v56 }
0x27f5   :  { %v4478_v31 = vmul.f32 0.35355338, %v4463_v25  ;;  %v8578_v34 = vpop.f32.mrb[106].mxu1 }
0x27f6   :  { %v4481_v38 = vmul.f32 0.35355338, %v8578_v34  ;;  %v4466_v55 = vpop.f32.mrb[107].mxu1  ;;  %v4484_v22 = vadd.f32 %v4480_v3, %v10626_v46 }
0x27f7   :  { %v4482_v41 = vadd.f32 %v4478_v31, %v10610_v32  ;;  %v4479_v58 = vmul.f32 0.35355338, %v4466_v55 }
0x27f8   :  { %v4485_v60 = vadd.f32 %v4481_v38, %v10615_v37  ;;  %v4492_v51 = vsel %vm2348_vm12, %v4484_v22, -inf }
0x27f9   :  { %v4483_v49 = vadd.f32 %v4479_v58, %v10620_v42  ;;  %v4486_v48 = vsel %vm2348_vm12, %v4482_v41, -inf }
0x27fa   :  { %4487 = vmax.xlane.f32.xlu1 %v4486_v48  ;;  %v4495_v10 = vsel %vm2348_vm12, %v4485_v60, -inf }
0x27fb   :  { %v4489_v19 = vsel %vm2348_vm12, %v4483_v49, -inf }
0x27fc   :  { %4490 = vmax.xlane.f32.xlu0 %v4489_v19 }
0x27fe   :  { %4496 = vmax.xlane.f32.xlu1 %v4495_v10 }
0x2800   :  { %4493 = vmax.xlane.f32.xlu0 %v4492_v51 }
0x2866   :  { %v8589_v5 = vpop.f32.mrb[108].mxu1 }
0x2867   :  { %v4645_v28 = vpop.f32.mrb[109].mxu1  ;;  %v4662_v53 = vmul.f32 0.35355338, %v8589_v5 }
0x2868   :  { %v4660_v24 = vmul.f32 0.35355338, %v4645_v28  ;;  %v8590_v23 = vpop.f32.mrb[110].mxu1 }
0x2869   :  { %v10635_v21 = vpop.f32.mrb[100].mxu0  ;;  %v4648_v33 = vpop.f32.mrb[111].mxu1  ;;  %v4663_v13 = vmul.f32 0.35355338, %v8590_v23  ;;  %v4666_v1 = vadd.f32 %v4662_v53, %v10626_v46 }
0x286a   :  { %v4664_v54 = vadd.f32 %v4660_v24, %v10610_v32  ;;  %v4661_v16 = vmul.f32 0.35355338, %v4648_v33  ;;  %v8571_v50 = vpop.f32.mrb[101].mxu0 }
0x286b   :  { %v4409_v57 = vpop.f32.mrb[102].mxu0  ;;  %v4667_v8 = vadd.f32 %v4663_v13, %v10615_v37  ;;  %v4674_v7 = vsel %vm2348_vm12, %v4666_v1, -inf }
0x286c   :  { %v4665_v4 = vadd.f32 %v4661_v16, %v10620_v42  ;;  %v8572_v2 = vpop.f32.mrb[103].mxu0  ;;  %v4668_v36 = vsel %vm2348_vm12, %v4664_v54, -inf }
0x286d   :  { %4669 = vmax.xlane.f32.xlu0 %v4668_v36  ;;  %v4677_v11 = vsel %vm2348_vm12, %v4667_v8, -inf }
0x286e   :  { %v4671_v35 = vsel %vm2348_vm12, %v4665_v4, -inf }
0x286f   :  { %4672 = vmax.xlane.f32.xlu1 %v4671_v35 }
0x2871   :  { %4675 = vmax.xlane.f32.xlu0 %v4674_v7 }
0x2873   :  { %4678 = vmax.xlane.f32.xlu1 %v4677_v11 }
0x2887   :  { %v4488_v39 = vpop.xlane.xlu1 %4487  ;;  %4366 = vrot.lane.b32.xlu0 %v10534_v9, %s9404_s19 }
0x2888   :  { %v4498_v15 = vsub.f32 %v4482_v41, %v4488_v39 }
0x2889   :  { %v4491_v29 = vpop.xlane.xlu0 %4490 }
0x288a   :  { %v4502_v47 = vmul.f32 1.442695, %v4498_v15  ;;  %v4499_v14 = vsub.f32 %v4483_v49, %v4491_v29 }
0x288b   :  { %v4497_v61 = vpop.xlane.xlu1 %4496 }
0x288c   :  { %v4501_v63 = vsub.f32 %v4485_v60, %v4497_v61  ;;  %v4504_v20 = vmul.f32 1.442695, %v4499_v14 }
0x288d   :  { %v4494_v45 = vpop.xlane.xlu0 %4493 }
0x288e   :  { %v4500_v43 = vsub.f32 %v4484_v22, %v4494_v45  ;;  %v4508_v18 = vmul.f32 1.442695, %v4501_v63 }
0x2890   :  { %v4506_v27 = vmul.f32 1.442695, %v4500_v43 }
0x2892   :  { %9264 = vpow2.f32 %v4506_v27 }
0x2893   :  { %9266 = vpow2.f32 %v4502_v47 }
0x2894   :  { %9268 = vpow2.f32 %v4508_v18 }
0x2895   :  { %9270 = vpow2.f32 %v4504_v20 }
0x289c   :  { %v10647_v56 = vpop.eup %9264 }
0x289d   :  { %v4516_v9 = vsel %vm2348_vm12, %v10647_v56, 0.0  ;;  %v9267_v25 = vpop.eup %9266 }
0x289e   :  { %4517 = vadd.xlane.f32.xlu1 %v4516_v9  ;;  %v4510_v31 = vsel %vm2348_vm12, %v9267_v25, 0.0  ;;  %v9269_v34 = vpop.eup %9268 }
0x289f   :  { %v4519_v38 = vsel %vm2348_vm12, %v9269_v34, 0.0  ;;  %v9271_v55 = vpop.eup %9270 }
0x28a0   :  { %v4513_v3 = vsel %vm2348_vm12, %v9271_v55, 0.0 }
0x28a2   :  { %4511 = vadd.xlane.f32.xlu1 %v4510_v31 }
0x28a6   :  { %4520 = vadd.xlane.f32.xlu1 %v4519_v38 }
0x28aa   :  { %4514 = vadd.xlane.f32.xlu1 %v4513_v3 }
0x28fa   :  { %v4670_v41 = vpop.xlane.xlu0 %4669 }
0x28fb   :  { %v4680_v58 = vsub.f32 %v4664_v54, %v4670_v41 }
0x28fc   :  { %v4673_v60 = vpop.xlane.xlu1 %4672 }
0x28fd   :  { %v4684_v49 = vmul.f32 1.442695, %v4680_v58  ;;  %v4681_v48 = vsub.f32 %v4665_v4, %v4673_v60 }
0x28fe   :  { %v4676_v22 = vpop.xlane.xlu0 %4675 }
0x28ff   :  { %9272 = vpow2.f32 %v4684_v49  ;;  %v4686_v19 = vmul.f32 1.442695, %v4681_v48  ;;  %v4682_v10 = vsub.f32 %v4666_v1, %v4676_v22 }
0x2900   :  { %v4679_v51 = vpop.xlane.xlu1 %4678 }
0x2901   :  { %9274 = vpow2.f32 %v4686_v19  ;;  %v4688_v5 = vmul.f32 1.442695, %v4682_v10  ;;  %v4683_v28 = vsub.f32 %v4667_v8, %v4679_v51 }
0x2902   :  { %v4367_v53 = vpop.permute.xlu0 %4366 }
0x2903   :  { %9276 = vpow2.f32 %v4688_v5  ;;  %v4690_v24 = vmul.f32 1.442695, %v4683_v28  ;;  %v4407_v23 = vadd.f32 %v10635_v21, %v4367_v53  ;;  %v4410_v33 = vadd.f32 %v4409_v57, %v4367_v53  ;;  %v4414_v28 = vld [vmem:[%s11287_s2 + $0x104] sm:$0xf] }
0x2904   :  { %9016 = vmatprep.subr.msk.bf16.mxu1 %vm847_vm3, %v4414_v28  ;;  %v4784_v53 = vsel %vm847_vm3, %v4414_v28, 0 }
0x2905   :  { %9278 = vpow2.f32 %v4690_v24  ;;  %v10655_v13 = vpack.c.bf16 %v4410_v33, %v4407_v23  ;;  %8598 = vmatpush3.bf16.msra.mxu1 %v4784_v53  ;;  %v4413_v24 = vld [vmem:[%s11287_s2 + $0x100] sm:$0xf] }
0x2906   :  { %9017 = vmatprep.subr.msk.bf16.mxu1 %vm847_vm3, %v4413_v24 }
0x2907   :  { %9013 = vmatprep.subr.msk.bf16.mxu0 %vm2377_vm14, %v10655_v13  ;;  %v4540_v54 = vsel %vm2377_vm14, %v10655_v13, 0 }
0x2908   :  { %8580 = vmatpush3.bf16.msra.mxu0 %v4540_v54 }
0x2909   :  { %v9273_v16 = vpop.eup %9272 }
0x290a   :  { %v4692_v50 = vsel %vm2348_vm12, %v9273_v16, 0.0 }
0x290b   :  { %v9275_v1 = vpop.eup %9274  ;;  %4693 = vadd.xlane.f32.xlu1 %v4692_v50 }
0x290c   :  { %v4695_v4 = vsel %vm2348_vm12, %v9275_v1, 0.0 }
0x290d   :  { %v9277_v2 = vpop.eup %9276  ;;  %4696 = vadd.xlane.f32.xlu0 %v4695_v4 }
0x290e   :  { %v4698_v21 = vsel %vm2348_vm12, %v9277_v2, 0.0 }
0x290f   :  { %v9279_v57 = vpop.eup %9278  ;;  %4699 = vadd.xlane.f32.xlu1 %v4698_v21 }
0x2910   :  { %v4701_v36 = vsel %vm2348_vm12, %v9279_v57, 0.0 }
0x2913   :  { %4702 = vadd.xlane.f32.xlu1 %v4701_v36 }
0x2923   :  { %4895 = vrot.lane.b32.xlu0 %v10543_v12, %s9406_s25 }
0x2924   :  { %4715 = vrot.lane.b32.xlu1 %v10655_v13, %s9405_s24 }
0x2928   :  { %4897 = vrot.lane.b32.xlu1 %v10586_v62, %s9406_s25 }
0x292b   :  { %v4518_v8 = vpop.xlane.xlu1 %4517 }
0x292c   :  { %4893 = vrot.lane.b32.xlu1 %v10545_v0, %s9406_s25 }
0x292f   :  { %v4512_v35 = vpop.xlane.xlu1 %4511 }
0x2933   :  { %v4521_v7 = vpop.xlane.xlu1 %4520 }
0x2934   :  { %9280 = vrcp.f32 %v4521_v7 }
0x2935   :  { %9282 = vrcp.f32 %v4512_v35  ;;  %v4842_v35 = vsel %vm847_vm3, %v4413_v24, 0 }
0x2936   :  { %9284 = vrcp.f32 %v4518_v8 }
0x2937   :  { %v4515_v11 = vpop.xlane.xlu1 %4514 }
0x2938   :  { %9286 = vrcp.f32 %v4515_v11 }
0x293e   :  { %v9281_v39 = vpop.eup %9280 }
0x293f   :  { %v9283_v29 = vpop.eup %9282  ;;  %v4529_v45 = vmul.f32 %v9281_v39, %v9269_v34 }
0x2940   :  { %v9285_v15 = vpop.eup %9284  ;;  %v4523_v43 = vmul.f32 %v9283_v29, %v9267_v25 }
0x2941   :  { %v4527_v63 = vmul.f32 %v9285_v15, %v10647_v56 }
0x2942   :  { %v9287_v61 = vpop.eup %9286 }
0x2943   :  { %v4525_v47 = vmul.f32 %v9287_v61, %v9271_v55  ;;  %v4531_v14 = vpack.c.bf16 %v4529_v45, %v4527_v63 }
0x2945   :  { %v4530_v27 = vpack.c.bf16 %v4525_v47, %v4523_v43 }
0x2947   :  { %8581 = vmatprep.mubr.msk.bf16.mxu0 %vm2348_vm12, %v4530_v27 }
0x2948   :  { %8582 = vmatmul.mubr.msk.bf16.vlgmr.msra.gmra.mrb[104].mxu0 %vm2348_vm12, %v4531_v14 }
0x2998   :  { %v4694_v18 = vpop.xlane.xlu1 %4693 }
0x2999   :  { %9288 = vrcp.f32 %v4694_v18 }
0x299a   :  { %v4697_v20 = vpop.xlane.xlu0 %4696 }
0x299b   :  { %9290 = vrcp.f32 %v4697_v20 }
0x299c   :  { %v4700_v9 = vpop.xlane.xlu1 %4699 }
0x299d   :  { %9292 = vrcp.f32 %v4700_v9 }
0x299e   :  { %v4896_v5 = vpop.permute.xlu0 %4895 }
0x29a0   :  { %v4703_v31 = vpop.xlane.xlu1 %4702 }
0x29a1   :  { %9294 = vrcp.f32 %v4703_v31 }
0x29a3   :  { %v9289_v38 = vpop.eup %9288 }
0x29a4   :  { %v4716_v34 = vpop.permute.xlu1 %4715  ;;  %v4705_v56 = vmul.f32 %v9289_v38, %v9273_v16 }
0x29a5   :  { %v9291_v25 = vpop.eup %9290  ;;  %v4724_v55 = vsel %vm2377_vm14, %v4716_v34, 0  ;;  %9015 = vmatprep.subr.msk.bf16.mxu0 %vm2377_vm14, %v4716_v34 }
0x29a6   :  { %8592 = vmatpush3.bf16.msra.mxu0 %v4724_v55  ;;  %v4707_v3 = vmul.f32 %v9291_v25, %v9275_v1 }
0x29a7   :  { %v9293_v60 = vpop.eup %9292 }
0x29a8   :  { %v4898_v41 = vpop.permute.xlu1 %4897  ;;  %v4712_v58 = vpack.c.bf16 %v4707_v3, %v4705_v56  ;;  %v4709_v48 = vmul.f32 %v9293_v60, %v9277_v2 }
0x29a9   :  { %9018 = vmatprep.subr.msk.bf16.mxu0 %vm474_vm2, %v4898_v41  ;;  %v4906_v10 = vsel %vm474_vm2, %v4898_v41, 0 }
0x29aa   :  { %8593 = vmatprep.mubr.msk.bf16.mxu0 %vm2348_vm12, %v4712_v58 }
0x29ab   :  { %v9295_v49 = vpop.eup %9294 }
0x29ac   :  { %v4711_v22 = vmul.f32 %v9295_v49, %v9279_v57  ;;  %v4894_v51 = vpop.permute.xlu1 %4893 }
0x29ae   :  { %v4713_v19 = vpack.c.bf16 %v4711_v22, %v4709_v48 }
0x29b0   :  { %8594 = vmatmul.mubr.msk.bf16.vlgmr.msra.gmra.mrb[108].mxu0 %vm2348_vm12, %v4713_v19 }
0x29b1   :  { %8610 = vmatpush3.bf16.xpose.msra.mxu0 %v4906_v10  ;;  %8611 = vmatprep.mubr.msk.bf16.mxu0 %vm474_vm2, %v4894_v51 }
0x29b8   :  { %8612 = vmatmul.mubr.msk.bf16.vlgmr.msra.gmra.mrb[112].mxu0 %vm474_vm2, %v4896_v5 }
0x2a1b   :  { %v8583_v23 = vpop.f32.mrb[104].mxu0 }
0x2a1c   :  { %v4576_v33 = vpop.f32.mrb[105].mxu0 }
0x2a1d   :  { %v8584_v54 = vpop.f32.mrb[106].mxu0 }
0x2a1e   :  { %v4592_v16 = vpack.c.bf16 %v8584_v54, %v8583_v23  ;;  %v4579_v50 = vpop.f32.mrb[107].mxu0 }
0x2a1f   :  { %v4591_v1 = vpack.c.bf16 %v4579_v50, %v4576_v33 }
0x2a83   :  { %v8595_v4 = vpop.f32.mrb[108].mxu0 }
0x2a84   :  { %v4760_v2 = vpop.f32.mrb[109].mxu0 }
0x2a85   :  { %v8596_v21 = vpop.f32.mrb[110].mxu0 }
0x2a86   :  { %v4776_v57 = vpack.c.bf16 %v8596_v21, %v8595_v4  ;;  %v4763_v36 = vpop.f32.mrb[111].mxu0 }
0x2a87   :  { %v4775_v8 = vpack.c.bf16 %v4763_v36, %v4760_v2 }
0x2a89   :  { %8599 = vmatprep.mubr.msk.bf16.mxu1 %vm474_vm2, %v4775_v8 }
0x2a8a   :  { %8600 = vmatmul.mubr.msk.bf16.vlgmr.msra.gmra.mrb[112].mxu1 %vm474_vm2, %v4776_v57 }
0x2a8b   :  { %8605 = vmatprep.mubr.msk.bf16.mxu1 %vm474_vm2, %v4591_v1  ;;  %v8613_v7 = vpop.f32.mrb[112].mxu0  ;;  %8604 = vmatpush3.bf16.msra.mxu1 %v4842_v35 }
0x2a8c   :  { %v4942_v11 = vpop.f32.mrb[113].mxu0  ;;  %v4959_v39 = vmul.f32 0.35355338, %v8613_v7 }
0x2a8d   :  { %v4957_v29 = vmul.f32 0.35355338, %v4942_v11  ;;  %v8614_v15 = vpop.f32.mrb[114].mxu0 }
0x2a8e   :  { %v4945_v61 = vpop.f32.mrb[115].mxu0  ;;  %v4963_v47 = vadd.f32 %v4959_v39, %v10626_v46  ;;  %v4960_v63 = vmul.f32 0.35355338, %v8614_v15  ;;  %v10729_v15 = vld [vmem:[%s11287_s2 + $0x110] sm:$0xff]  }
0x2a8f   :  { %v4961_v45 = vadd.f32 %v4957_v29, %v10610_v32  ;;  %v4958_v43 = vmul.f32 0.35355338, %v4945_v61 }
0x2a90   :  { %v4964_v20 = vadd.f32 %v4960_v63, %v10615_v37  ;;  %v4971_v9 = vsel %vm2348_vm12, %v4963_v47, -inf }
0x2a91   :  { %v4962_v27 = vadd.f32 %v4958_v43, %v10620_v42  ;;  %v4965_v14 = vsel %vm2348_vm12, %v4961_v45, -inf  ;;  %v4415_v43 = vld [vmem:[%s11287_s2 + $0x108] sm:$0xf] }
0x2a92   :  { %4966 = vmax.xlane.f32.xlu1 %v4965_v14  ;;  %v4974_v31 = vsel %vm2348_vm12, %v4964_v20, -inf  ;;  %9020 = vmatprep.subr.msk.bf16.mxu1 %vm847_vm3, %v4415_v43 }
0x2a93   :  { %v4968_v18 = vsel %vm2348_vm12, %v4962_v27, -inf }
0x2a94   :  { %4969 = vmax.xlane.f32.xlu0 %v4968_v18 }
0x2a96   :  { %4972 = vmax.xlane.f32.xlu1 %v4971_v9  ;;  %8606 = vmatmul.mubr.msk.bf16.vlgmr.msra.gmra.mrb[112].mxu1 %vm474_vm2, %v4592_v16 }
0x2a9a   :  { %4975 = vmax.xlane.f32.xlu1 %v4974_v31 }
0x2b1f   :  { %v4967_v38 = vpop.xlane.xlu1 %4966 }
0x2b20   :  { %v4977_v34 = vsub.f32 %v4961_v45, %v4967_v38  ;;  %v10736_v45 = vld [vmem:[%s11287_s2 + $0x118] sm:$0xff]  }
0x2b21   :  { %v4970_v55 = vpop.xlane.xlu0 %4969 }
0x2b22   :  { %v4981_v25 = vmul.f32 1.442695, %v4977_v34  ;;  %v4978_v41 = vsub.f32 %v4962_v27, %v4970_v55 }
0x2b23   :  { %v4973_v56 = vpop.xlane.xlu1 %4972 }
0x2b24   :  { %9296 = vpow2.f32 %v4981_v25  ;;  %v4979_v3 = vsub.f32 %v4963_v47, %v4973_v56  ;;  %v4983_v48 = vmul.f32 1.442695, %v4978_v41  ;;  %v5080_v47 = vsel %vm847_vm3, %v4415_v43, 0 }
0x2b25   :  { %8622 = vmatpush3.bf16.msra.mxu1 %v5080_v47 }
0x2b26   :  { %v4985_v58 = vmul.f32 1.442695, %v4979_v3 }
0x2b27   :  { %v4976_v60 = vpop.xlane.xlu1 %4975 }
0x2b28   :  { %9298 = vpow2.f32 %v4985_v58  ;;  %v4980_v49 = vsub.f32 %v4964_v20, %v4976_v60 }
0x2b2a   :  { %v4987_v22 = vmul.f32 1.442695, %v4980_v49 }
0x2b2c   :  { %9300 = vpow2.f32 %v4987_v22  ;;  %v10759_v22 = vld [vmem:[%s11289_s3 + $0xa8] ss:$0 sm:$0xff] }
0x2b2d   :  { %9302 = vpow2.f32 %v4983_v48 }
0x2b2e   :  { %v9297_v19 = vpop.eup %9296 }
0x2b2f   :  { %v4989_v10 = vsel %vm2348_vm12, %v9297_v19, 0.0 }
0x2b30   :  { %4990 = vadd.xlane.f32.xlu1 %v4989_v10 }
0x2b32   :  { %v9299_v51 = vpop.eup %9298 }
0x2b33   :  { %v4995_v5 = vsel %vm2348_vm12, %v9299_v51, 0.0 }
0x2b34   :  { %4996 = vadd.xlane.f32.xlu0 %v4995_v5 }
0x2b36   :  { %v9301_v28 = vpop.eup %9300 }
0x2b37   :  { %v4998_v53 = vsel %vm2348_vm12, %v9301_v28, 0.0  ;;  %v9303_v24 = vpop.eup %9302 }
0x2b38   :  { %4999 = vadd.xlane.f32.xlu1 %v4998_v53  ;;  %v4992_v23 = vsel %vm2348_vm12, %v9303_v24, 0.0 }
0x2b3c   :  { %4993 = vadd.xlane.f32.xlu1 %v4992_v23 }
0x2b4a   :  { %5011 = vrot.lane.b32.xlu0 %v10655_v13, %s9406_s25 }
0x2b4d   :  { %5139 = vrot.lane.b32.xlu1 %v10586_v62, %s9407_s8 }
0x2b4e   :  { %5137 = vrot.lane.b32.xlu0 %v10543_v12, %s9407_s8 }
0x2b51   :  { %5135 = vrot.lane.b32.xlu1 %v10545_v0, %s9407_s8 }
0x2bbd   :  { %v4991_v33 = vpop.xlane.xlu1 %4990 }
0x2bc1   :  { %v4997_v54 = vpop.xlane.xlu0 %4996 }
0x2bc5   :  { %v5000_v16 = vpop.xlane.xlu1 %4999  ;;  %v5012_v50 = vpop.permute.xlu0 %5011 }
0x2bc6   :  { %v5020_v1 = vsel %vm2377_vm14, %v5012_v50, 0  ;;  %9019 = vmatprep.subr.msk.bf16.mxu0 %vm2377_vm14, %v5012_v50  ;;  %9304 = vrcp.f32 %v5000_v16 }
0x2bc7   :  { %8616 = vmatpush3.bf16.msra.mxu0 %v5020_v1  ;;  %9306 = vrcp.f32 %v4991_v33 }
0x2bc8   :  { %9308 = vrcp.f32 %v4997_v54 }
0x2bc9   :  { %v4994_v4 = vpop.xlane.xlu1 %4993  ;;  %v5138_v61 = vpop.permute.xlu0 %5137 }
0x2bca   :  { %9310 = vrcp.f32 %v4994_v4 }
0x2bcd   :  { %v5140_v62 = vpop.permute.xlu1 %5139 }
0x2bce   :  { %9021 = vmatprep.subr.msk.bf16.mxu0 %vm474_vm2, %v5140_v62  ;;  %v5148_v39 = vsel %vm474_vm2, %v5140_v62, 0 }
0x2bd0   :  { %v9305_v12 = vpop.eup %9304 }
0x2bd1   :  { %v9307_v2 = vpop.eup %9306  ;;  %v5008_v57 = vmul.f32 %v9305_v12, %v9301_v28  ;;  %v5136_v29 = vpop.permute.xlu1 %5135 }
0x2bd2   :  { %v9309_v0 = vpop.eup %9308  ;;  %v5002_v36 = vmul.f32 %v9307_v2, %v9297_v19 }
0x2bd3   :  { %v5006_v35 = vmul.f32 %v9309_v0, %v9299_v51 }
0x2bd4   :  { %v9311_v21 = vpop.eup %9310 }
0x2bd5   :  { %v5004_v8 = vmul.f32 %v9311_v21, %v9303_v24  ;;  %v5010_v11 = vpack.c.bf16 %v5008_v57, %v5006_v35 }
0x2bd7   :  { %v5009_v7 = vpack.c.bf16 %v5004_v8, %v5002_v36 }
0x2bd9   :  { %8617 = vmatprep.mubr.msk.bf16.mxu0 %vm2348_vm12, %v5009_v7 }
0x2bda   :  { %8618 = vmatmul.mubr.msk.bf16.vlgmr.msra.gmra.mrb[116].mxu0 %vm2348_vm12, %v5010_v11 }
0x2bdb   :  { %8628 = vmatpush3.bf16.xpose.msra.mxu0 %v5148_v39  ;;  %8629 = vmatprep.mubr.msk.bf16.mxu0 %vm474_vm2, %v5136_v29 }
0x2bdc   :  { %8645 = vmatprep.subr.bf16.mxu0 %v9408_v59 }
0x2be2   :  { %8630 = vmatmul.mubr.msk.bf16.vlgmr.msra.gmra.mrb[120].mxu0 %vm474_vm2, %v5138_v61 }
0x2be3   :  { %8646 = vmatpush3.bf16.msra.mxu0 %v10729_v15  ;;  %8649 = vmatprep.mubr.msk.bf16.mxu0 %vm9409_vm5, %v9408_v59 }
0x2be4   :  { %8647 = vmatprep.subr.bf16.mxu0 %v9408_v59 }
0x2be7   :  { %8648 = vmatpush3.bf16.msra.mxu0 %v10736_v45 }
0x2bea   :  { %8650 = vmatmul.mubr.msk.bf16.vlgmr.msra.gmra.mrb[124].mxu0 %vm195_vm1, %v10579_v52 }
0x2cad   :  { %v8619_v63 = vpop.f32.mrb[116].mxu0 }
0x2cae   :  { %v5056_v27 = vpop.f32.mrb[117].mxu0 }
0x2caf   :  { %v8620_v14 = vpop.f32.mrb[118].mxu0 }
0x2cb0   :  { %v5072_v18 = vpack.c.bf16 %v8620_v14, %v8619_v63  ;;  %v5059_v20 = vpop.f32.mrb[119].mxu0 }
0x2cb1   :  { %v5071_v9 = vpack.c.bf16 %v5059_v20, %v5056_v27 }
0x2cb3   :  { %8623 = vmatprep.mubr.msk.bf16.mxu1 %vm474_vm2, %v5071_v9 }
0x2cb4   :  { %8624 = vmatmul.mubr.msk.bf16.vlgmr.msra.gmra.mrb[112].mxu1 %vm474_vm2, %v5072_v18 }
0x2cb5   :  { %v8631_v52 = vpop.f32.mrb[120].mxu0 }
0x2cb6   :  { %v5184_v31 = vpop.f32.mrb[121].mxu0  ;;  %v5201_v56 = vmul.f32 0.35355338, %v8631_v52 }
0x2cb7   :  { %v5199_v38 = vmul.f32 0.35355338, %v5184_v31  ;;  %v8632_v34 = vpop.f32.mrb[122].mxu0 }
0x2cb8   :  { %v5202_v25 = vmul.f32 0.35355338, %v8632_v34  ;;  %v5187_v55 = vpop.f32.mrb[123].mxu0  ;;  %v5205_v48 = vadd.f32 %v5201_v56, %v10626_v46 }
0x2cb9   :  { %v5203_v3 = vadd.f32 %v5199_v38, %v10610_v32  ;;  %v5200_v41 = vmul.f32 0.35355338, %v5187_v55  ;;  %v4416_v55 = vld [vmem:[%s11287_s2 + $0x10c] sm:$0xf] }
0x2cba   :  { %v5206_v58 = vadd.f32 %v5202_v25, %v10615_v37  ;;  %v5213_v46 = vsel %vm2348_vm12, %v5205_v48, -inf  ;;  %v5322_v56 = vsel %vm847_vm3, %v4416_v55, 0 }
0x2cbb   :  { %v5204_v60 = vadd.f32 %v5200_v41, %v10620_v42  ;;  %v5207_v49 = vsel %vm2348_vm12, %v5203_v3, -inf }
0x2cbc   :  { %5208 = vmax.xlane.f32.xlu1 %v5207_v49  ;;  %v5216_v37 = vsel %vm2348_vm12, %v5206_v58, -inf }
0x2cbd   :  { %v5519_v19 = vpop.f32.mrb[124].mxu0  ;;  %v5210_v10 = vsel %vm2348_vm12, %v5204_v60, -inf }
0x2cbe   :  { %v8651_v51 = vpop.f32.mrb[125].mxu0  ;;  %5211 = vmax.xlane.f32.xlu0 %v5210_v10  ;;  %v5520_v42 = vadd.f32 %v10759_v22, %v5519_v19  ;;  %v7779_v19 = vld [vmem:[%s11289_s3 + $0xa0] ss:$0 sm:$0xff] }
0x2cbf   :  { %v5522_v32 = vpop.f32.mrb[126].mxu0 }
0x2cc0   :  { %v5523_v5 = vadd.f32 %v10759_v22, %v5522_v32  ;;  %5217 = vmax.xlane.f32.xlu1 %v5216_v37  ;;  %v8652_v28 = vpop.f32.mrb[127].mxu0 }
0x2cc2   :  { %v10766_v53 = vpack.c.bf16 %v5523_v5, %v5520_v42  ;;  %5214 = vmax.xlane.f32.xlu0 %v5213_v46 }
0x2d49   :  { %v5209_v24 = vpop.xlane.xlu1 %5208 }
0x2d4a   :  { %v5219_v16 = vsub.f32 %v5203_v3, %v5209_v24 }
0x2d4b   :  { %v5212_v23 = vpop.xlane.xlu0 %5211 }
0x2d4c   :  { %v5220_v33 = vsub.f32 %v5204_v60, %v5212_v23  ;;  %v5223_v2 = vmul.f32 1.442695, %v5219_v16 }
0x2d4d   :  { %v5218_v54 = vpop.xlane.xlu1 %5217 }
0x2d4e   :  { %v5225_v50 = vmul.f32 1.442695, %v5220_v33  ;;  %v5222_v1 = vsub.f32 %v5206_v58, %v5218_v54 }
0x2d4f   :  { %v5215_v4 = vpop.xlane.xlu0 %5214 }
0x2d50   :  { %9312 = vpow2.f32 %v5225_v50  ;;  %v5229_v62 = vmul.f32 1.442695, %v5222_v1  ;;  %v5221_v12 = vsub.f32 %v5205_v48, %v5215_v4 }
0x2d52   :  { %9314 = vpow2.f32 %v5229_v62  ;;  %v5227_v0 = vmul.f32 1.442695, %v5221_v12 }
0x2d54   :  { %9316 = vpow2.f32 %v5227_v0 }
0x2d55   :  { %9318 = vpow2.f32 %v5223_v2 }
0x2d5a   :  { %v9313_v21 = vpop.eup %9312 }
0x2d5b   :  { %v5234_v57 = vsel %vm2348_vm12, %v9313_v21, 0.0 }
0x2d5c   :  { %v9315_v36 = vpop.eup %9314  ;;  %5235 = vadd.xlane.f32.xlu1 %v5234_v57 }
0x2d5d   :  { %v5240_v35 = vsel %vm2348_vm12, %v9315_v36, 0.0 }
0x2d5e   :  { %v9317_v8 = vpop.eup %9316 }
0x2d5f   :  { %v5237_v7 = vsel %vm2348_vm12, %v9317_v8, 0.0  ;;  %v9319_v11 = vpop.eup %9318 }
0x2d60   :  { %5241 = vadd.xlane.f32.xlu1 %v5240_v35  ;;  %5238 = vadd.xlane.f32.xlu0 %v5237_v7  ;;  %v5231_v39 = vsel %vm2348_vm12, %v9319_v11, 0.0 }
0x2d64   :  { %5232 = vadd.xlane.f32.xlu0 %v5231_v39 }
0x2d7a   :  { %5253 = vrot.lane.b32.xlu0 %v10655_v13, %s9407_s8 }
0x2de9   :  { %v5236_v29 = vpop.xlane.xlu1 %5235 }
0x2ded   :  { %v5242_v61 = vpop.xlane.xlu1 %5241  ;;  %v5239_v43 = vpop.xlane.xlu0 %5238 }
0x2dee   :  { %9320 = vrcp.f32 %v5242_v61 }
0x2def   :  { %9322 = vrcp.f32 %v5239_v43 }
0x2df0   :  { %9324 = vrcp.f32 %v5236_v29 }
0x2df1   :  { %v5233_v47 = vpop.xlane.xlu0 %5232 }
0x2df2   :  { %9326 = vrcp.f32 %v5233_v47 }
0x2df5   :  { %v5254_v63 = vpop.permute.xlu0 %5253 }
0x2df6   :  { %v5262_v27 = vsel %vm2377_vm14, %v5254_v63, 0  ;;  %9022 = vmatprep.subr.msk.bf16.mxu1 %vm2377_vm14, %v5254_v63 }
0x2df7   :  { %8634 = vmatpush3.bf16.msra.mxu1 %v5262_v27 }
0x2df8   :  { %v9321_v14 = vpop.eup %9320  ;;  %9023 = vmatprep.subr.msk.bf16.mxu1 %vm847_vm3, %v4416_v55 }
0x2df9   :  { %v9323_v18 = vpop.eup %9322  ;;  %v5250_v52 = vmul.f32 %v9321_v14, %v9315_v36 }
0x2dfa   :  { %v9325_v20 = vpop.eup %9324  ;;  %v5248_v13 = vmul.f32 %v9323_v18, %v9317_v8 }
0x2dfb   :  { %v5246_v38 = vmul.f32 %v9325_v20, %v9313_v21 }
0x2dfc   :  { %v9327_v9 = vpop.eup %9326  ;;  %v5252_v25 = vpack.c.bf16 %v5250_v52, %v5248_v13 }
0x2dfd   :  { %v5244_v31 = vmul.f32 %v9327_v9, %v9319_v11 }
0x2dff   :  { %v5251_v34 = vpack.c.bf16 %v5246_v38, %v5244_v31 }
0x2e01   :  { %8635 = vmatprep.mubr.msk.bf16.mxu1 %vm2348_vm12, %v5251_v34 }
0x2e02   :  { %8636 = vmatmul.mubr.msk.bf16.vlgmr.msra.gmra.mrb[116].mxu1 %vm2348_vm12, %v5252_v25 }
0x2e03   :  { %8640 = vmatpush3.bf16.msra.mxu1 %v5322_v56 }
0x2ed5   :  { %v8637_v3 = vpop.f32.mrb[116].mxu1 }
0x2ed6   :  { %v5298_v41 = vpop.f32.mrb[117].mxu1 }
0x2ed7   :  { %v8638_v58 = vpop.f32.mrb[118].mxu1 }
0x2ed8   :  { %v5314_v60 = vpack.c.bf16 %v8638_v58, %v8637_v3  ;;  %v5301_v49 = vpop.f32.mrb[119].mxu1 }
0x2ed9   :  { %v5313_v48 = vpack.c.bf16 %v5301_v49, %v5298_v41 }
0x2edb   :  { %8641 = vmatprep.mubr.msk.bf16.mxu1 %vm474_vm2, %v5313_v48  ;;  %v7780_v48 = vld [vmem:[%s11289_s3 + $0xe8] ss:$0 sm:$0xff] }
0x2edc   :  { %8642 = vmatmul.mubr.msk.bf16.vlgmr.msra.gmra.mrb[112].mxu1 %vm474_vm2, %v5314_v60 }
0x2faf   :  { %v8643_v10 = vpop.f32.mrb[112].mxu1 }
0x2fb0   :  { %v5384_v51 = vadd.f32 %v8643_v10, %v7779_v19  ;;  %v5358_v32 = vpop.f32.mrb[113].mxu1 }
0x2fb1   :  { %v5382_v37 = vadd.f32 %v7779_v19, %v5358_v32  ;;  %v8644_v42 = vpop.f32.mrb[114].mxu1 }
0x2fb2   :  { %v5388_v5 = vadd.f32 %v5384_v51, %v10248_v30  ;;  %v5361_v28 = vpop.f32.mrb[115].mxu1  ;;  %v5385_v33 = vadd.f32 %v8644_v42, %v7779_v19 }
0x2fb3   :  { %v5386_v46 = vadd.f32 %v5382_v37, %v10227_v17  ;;  %v5383_v24 = vadd.f32 %v7779_v19, %v5361_v28  ;;  %v7781_v28 = vld [vmem:[%s11289_s3 + $0xf0] ss:$0 sm:$0xff] }
0x2fb4   :  { %v5396_v23 = vsel %vm195_vm1, %v5388_v5, 0.0  ;;  %v5389_v50 = vadd.f32 %v5385_v33, %v10254_v40 }
0x2fb5   :  { %5397 = vadd.xlane.f32.xlu1 %v5396_v23  ;;  %v5387_v54 = vadd.f32 %v5383_v24, %v10235_v44  ;;  %v5390_v16 = vsel %vm195_vm1, %v5386_v46, 0.0 }
0x2fb6   :  { %v5399_v30 = vsel %vm195_vm1, %v5389_v50, 0.0 }
0x2fb7   :  { %v5393_v1 = vsel %vm195_vm1, %v5387_v54, 0.0 }
0x2fb9   :  { %5391 = vadd.xlane.f32.xlu1 %v5390_v16  ;;  %v9396_v16 = vld [vmem:[%s11289_s3 + $0x150] sm:$0xff] }
0x2fbd   :  { %5394 = vadd.xlane.f32.xlu1 %v5393_v1 }
0x2fc1   :  { %5400 = vadd.xlane.f32.xlu1 %v5399_v30  ;;  %v9397_v30 = vld [vmem:[%s11289_s3 + $0x138] sm:$0xff] }
0x2fd2   :  { %5528 = vrot.lane.b32.xlu1 %v10729_v15, %s9403_s16 }
0x3042   :  { %v5398_v17 = vpop.xlane.xlu1 %5397 }
0x3043   :  { %v5404_v4 = vmul.f32 0.03125, %v5398_v17 }
0x3045   :  { %v5408_v62 = vsub.f32 %v5388_v5, %v5404_v4  ;;  %v9398_v4 = vld [vmem:[%s11289_s3 + $0x140] sm:$0xff] }
0x3046   :  { %v5392_v12 = vpop.xlane.xlu1 %5391 }
0x3047   :  { %v5402_v2 = vmul.f32 0.03125, %v5392_v12  ;;  %v5412_v44 = vmul.f32 %v5408_v62, %v5408_v62 }
0x3049   :  { %v5406_v0 = vsub.f32 %v5386_v46, %v5402_v2  ;;  %v5420_v21 = vsel %vm195_vm1, %v5412_v44, 0.0  ;;  %v9399_v2 = vld [vmem:[%s11289_s3 + $0x148] sm:$0xff] }
0x304a   :  { %5421 = vadd.xlane.f32.xlu0 %v5420_v21  ;;  %v5395_v40 = vpop.xlane.xlu1 %5394 }
0x304b   :  { %v5410_v57 = vmul.f32 %v5406_v0, %v5406_v0  ;;  %v5403_v36 = vmul.f32 0.03125, %v5395_v40 }
0x304d   :  { %v5414_v8 = vsel %vm195_vm1, %v5410_v57, 0.0  ;;  %v5407_v11 = vsub.f32 %v5387_v54, %v5403_v36 }
0x304e   :  { %5415 = vadd.xlane.f32.xlu1 %v5414_v8  ;;  %v5401_v35 = vpop.xlane.xlu1 %5400 }
0x304f   :  { %v5405_v7 = vmul.f32 0.03125, %v5401_v35  ;;  %v5411_v47 = vmul.f32 %v5407_v11, %v5407_v11 }
0x3051   :  { %v5409_v39 = vsub.f32 %v5389_v50, %v5405_v7  ;;  %v5417_v63 = vsel %vm195_vm1, %v5411_v47, 0.0 }
0x3052   :  { %v5529_v29 = vpop.permute.xlu1 %5528 }
0x3053   :  { %v5413_v61 = vmul.f32 %v5409_v39, %v5409_v39  ;;  %8653 = vmatprep.subr.bf16.mxu0 %v5529_v29 }
0x3054   :  { %8654 = vmatpush3.bf16.msra.mxu0 %v5529_v29 }
0x3055   :  { %v5423_v43 = vsel %vm195_vm1, %v5413_v61, 0.0 }
0x3056   :  { %5424 = vadd.xlane.f32.xlu1 %v5423_v43 }
0x305a   :  { %5418 = vadd.xlane.f32.xlu1 %v5417_v63 }
0x3060   :  { %5595 = vrot.lane.b32.xlu0 %v10729_v15, %s9404_s19 }
0x306b   :  { %5530 = vrot.lane.b32.xlu1 %v10736_v45, %s9403_s16 }
0x306f   :  { %5535 = vrot.lane.b32.xlu1 %v10759_v22, %s9403_s16 }
0x3073   :  { %5597 = vrot.lane.b32.xlu1 %v10736_v45, %s9404_s19 }
0x30d7   :  { %v5422_v27 = vpop.xlane.xlu0 %5421 }
0x30d8   :  { %v5428_v9 = vmul.f32 0.03125, %v5422_v27 }
0x30da   :  { %v5432_v13 = vadd.f32 1e-05, %v5428_v9 }
0x30db   :  { %v5416_v14 = vpop.xlane.xlu1 %5415  ;;  %v5596_v18 = vpop.permute.xlu0 %5595 }
0x30dc   :  { %v5426_v20 = vmul.f32 0.03125, %v5416_v14  ;;  %8661 = vmatprep.subr.bf16.mxu1 %v5596_v18 }
0x30dd   :  { %8662 = vmatpush3.bf16.msra.mxu1 %v5596_v18 }
0x30de   :  { %v5430_v52 = vadd.f32 1e-05, %v5426_v20 }
0x30e0   :  { %9328 = vrsqrt.f32 %v5430_v52 }
0x30e1   :  { %9330 = vrsqrt.f32 %v5432_v13 }
0x30e3   :  { %v5425_v31 = vpop.xlane.xlu1 %5424 }
0x30e4   :  { %v5429_v15 = vmul.f32 0.03125, %v5425_v31  ;;  %v10861_v31 = vld [vmem:[%s11289_s3 + $0x1a8] sm:$0xff] }
0x30e6   :  { %v5433_v38 = vadd.f32 1e-05, %v5429_v15 }
0x30e7   :  { %v5419_v34 = vpop.xlane.xlu1 %5418 }
0x30e8   :  { %9332 = vrsqrt.f32 %v5433_v38  ;;  %v5427_v25 = vmul.f32 0.03125, %v5419_v34 }
0x30ea   :  { %v5431_v55 = vadd.f32 1e-05, %v5427_v25  ;;  %v9329_v45 = vpop.eup %9328  ;;  %v10867_v25 = vld [vmem:[%s11289_s3 + $0x1b0] sm:$0x3f] }
0x30eb   :  { %v5531_v56 = vpop.permute.xlu1 %5530  ;;  %v9331_v3 = vpop.eup %9330  ;;  %v5438_v58 = vmul.f32 %v9329_v45, %v5406_v0 }
0x30ec   :  { %9334 = vrsqrt.f32 %v5431_v55  ;;  %8655 = vmatprep.subr.bf16.mxu0 %v5531_v56  ;;  %v5440_v49 = vmul.f32 %v9331_v3, %v5408_v62 }
0x30ed   :  { %8656 = vmatpush3.bf16.msra.mxu0 %v5531_v56  ;;  %v5447_v32 = vmul.f32 %v7780_v48, %v5438_v58 }
0x30ee   :  { %8669 = vmatprep.subr.bf16.mxu0 %v9408_v59  ;;  %v5449_v42 = vmul.f32 %v7780_v48, %v5440_v49 }
0x30ef   :  { %v5536_v41 = vpop.permute.xlu1 %5535  ;;  %v5456_v23 = vadd.f32 %v7781_v28, %v5447_v32 }
0x30f0   :  { %v5458_v33 = vadd.f32 %v7781_v28, %v5449_v42 }
0x30f1   :  { %v5460_v17 = vadd.f32 %v9397_v30, %v5456_v23 }
0x30f2   :  { %v9333_v60 = vpop.eup %9332  ;;  %v5462_v44 = vadd.f32 %v9399_v2, %v5458_v33 }
0x30f3   :  { %v5441_v19 = vmul.f32 %v9333_v60, %v5409_v39  ;;  %v5598_v10 = vpop.permute.xlu1 %5597 }
0x30f4   :  { %8663 = vmatprep.subr.bf16.mxu1 %v5598_v10 }
0x30f5   :  { %v5450_v51 = vmul.f32 %v7780_v48, %v5441_v19  ;;  %8664 = vmatpush3.bf16.msra.mxu1 %v5598_v10 }
0x30f6   :  { %v9335_v37 = vpop.eup %9334  ;;  %8677 = vmatprep.subr.bf16.mxu1 %v9408_v59 }
0x30f7   :  { %v5439_v5 = vmul.f32 %v9335_v37, %v5407_v11  ;;  %v5459_v46 = vadd.f32 %v7781_v28, %v5450_v51 }
0x30f9   :  { %v5448_v24 = vmul.f32 %v7780_v48, %v5439_v5  ;;  %v5463_v50 = vadd.f32 %v9396_v16, %v5459_v46  ;;  %v10829_v12 = vpack.c.bf16 %v5459_v46, %v5458_v33 }
0x30fb   :  { %v5457_v54 = vadd.f32 %v7781_v28, %v5448_v24  ;;  %v5527_v21 = vpack.c.bf16 %v5463_v50, %v5462_v44 }
0x30fd   :  { %v10821_v1 = vpack.c.bf16 %v5457_v54, %v5456_v23  ;;  %v5461_v62 = vadd.f32 %v9398_v4, %v5457_v54 }
0x30ff   :  { %8665 = vmatprep.mubr.msk.bf16.mxu1 %vm195_vm1, %v10821_v1  ;;  %v5526_v0 = vpack.c.bf16 %v5461_v62, %v5460_v17 }
0x3100   :  { %8666 = vmatmul.mubr.msk.bf16.vlgmr.msra.gmra.mrb[120].mxu1 %vm195_vm1, %v10829_v12 }
0x3101   :  { %8657 = vmatprep.mubr.msk.bf16.mxu0 %vm195_vm1, %v5526_v0  ;;  %8681 = vmatprep.mubr.msk.bf16.mxu1 %vm9409_vm5, %v9408_v59 }
0x3102   :  { %8658 = vmatmul.mubr.msk.bf16.vlgmr.msra.gmra.mrb[128].mxu0 %vm195_vm1, %v5527_v21  ;;  %v5659_v21 = vld [vmem:[%s11287_s2 + $0x120] sm:$0xf] }
0x3103   :  { %8673 = vmatprep.mubr.msk.bf16.mxu0 %vm9409_vm5, %v9408_v59 }
0x31d3   :  { %v8667_v40 = vpop.f32.mrb[120].mxu1 }
0x31d4   :  { %v5644_v57 = vpop.f32.mrb[121].mxu1 }
0x31d5   :  { %v8659_v36 = vpop.f32.mrb[128].mxu0  ;;  %v8668_v8 = vpop.f32.mrb[122].mxu1 }
0x31d6   :  { %v5578_v35 = vpop.f32.mrb[129].mxu0  ;;  %v5647_v7 = vpop.f32.mrb[123].mxu1  ;;  %v5587_v39 = vadd.f32 %v8659_v36, %v5536_v41 }
0x31d7   :  { %v8660_v11 = vpop.f32.mrb[130].mxu0  ;;  %v5579_v43 = vadd.f32 %v5578_v35, %v5536_v41 }
0x31d8   :  { %v5590_v29 = vadd.f32 %v8660_v11, %v5536_v41  ;;  %v5581_v61 = vpop.f32.mrb[131].mxu0 }
0x31d9   :  { %v5582_v47 = vadd.f32 %v5581_v61, %v5536_v41 }
0x31da   :  { %v10844_v63 = vpack.c.bf16 %v5590_v29, %v5587_v39 }
0x31db   :  { %v10846_v27 = vpack.c.bf16 %v5582_v47, %v5579_v43 }
0x31dc   :  { %v5673_v18 = vsel %vm474_vm2, %v10844_v63, 0 }
0x31dd   :  { %v5670_v14 = vsel %vm474_vm2, %v10846_v27, 0 }
0x31de   :  { %8670 = vmatpush3.bf16.xpose.msra.mxu0 %v5670_v14 }
0x31df   :  { %8671 = vmatprep.subr.bf16.mxu0 %v9408_v59 }
0x31e6   :  { %8672 = vmatpush3.bf16.xpose.msra.mxu0 %v5673_v18 }
0x31e7   :  { %8693 = vmatprep.subr.bf16.mxu0 %v9408_v59 }
0x31ed   :  { %8674 = vmatmul.mubr.msk.bf16.vlgmr.msra.gmra.mrb[132].mxu0 %vm474_vm2, %v10766_v53 }
0x31ee   :  { %8697 = vmatprep.mubr.msk.bf16.mxu0 %vm9409_vm5, %v9408_v59 }
0x32c0   :  { %v5709_v20 = vpop.f32.mrb[132].mxu0 }
0x32c1   :  { %v5716_v9 = vmul.f32 0.35355338, %v5709_v20  ;;  %v8675_v52 = vpop.f32.mrb[133].mxu0 }
0x32c2   :  { %v5712_v13 = vpop.f32.mrb[134].mxu0 }
0x32c3   :  { %v5718_v15 = vadd.f32 %v10861_v31, %v5716_v9  ;;  %v5717_v38 = vmul.f32 0.35355338, %v5712_v13  ;;  %v8676_v34 = vpop.f32.mrb[135].mxu0 }
0x32c5   :  { %v5719_v55 = vadd.f32 %v10867_v25, %v5717_v38  ;;  %v5720_v56 = vsel %vm195_vm1, %v5718_v15, -inf }
0x32c6   :  { %5721 = vmax.xlane.f32.xlu1 %v5720_v56 }
0x32c7   :  { %v5723_v45 = vsel %vm3012_vm15, %v5719_v55, -inf }
0x32c8   :  { %5724 = vmax.xlane.f32.xlu0 %v5723_v45 }
0x32d7   :  { %5601 = vrot.lane.b32.xlu1 %v10759_v22, %s9404_s19 }
0x32de   :  { %5795 = vrot.lane.b32.xlu0 %v10846_v27, %s9405_s24 }
0x3353   :  { %v5722_v3 = vpop.xlane.xlu1 %5721 }
0x3354   :  { %v5726_v41 = vsub.f32 %v5718_v15, %v5722_v3 }
0x3355   :  { %v5725_v58 = vpop.xlane.xlu0 %5724 }
0x3356   :  { %v5728_v60 = vmul.f32 1.442695, %v5726_v41  ;;  %v5727_v49 = vsub.f32 %v5719_v55, %v5725_v58 }
0x3357   :  { %v5602_v48 = vpop.permute.xlu1 %5601 }
0x3358   :  { %9336 = vpow2.f32 %v5728_v60  ;;  %v5730_v19 = vmul.f32 1.442695, %v5727_v49  ;;  %v5645_v10 = vadd.f32 %v5644_v57, %v5602_v48  ;;  %v5653_v51 = vadd.f32 %v8667_v40, %v5602_v48 }
0x3359   :  { %v5648_v32 = vadd.f32 %v5647_v7, %v5602_v48  ;;  %v5656_v37 = vadd.f32 %v8668_v8, %v5602_v48  ;;  %v5796_v17 = vpop.permute.xlu0 %5795  ;;  %v5980_v40 = vsel %vm847_vm3, %v5659_v21, 0  ;;  %v9076_v21 = vld [vmem:[%s11287_s2 + $0x160] sm:$0xff]  }
0x335a   :  { %9338 = vpow2.f32 %v5730_v19  ;;  %v5803_v62 = vsel %vm474_vm2, %v5796_v17, 0 }
0x335b   :  { %v10876_v42 = vpack.c.bf16 %v5648_v32, %v5645_v10  ;;  %v10878_v5 = vpack.c.bf16 %v5656_v37, %v5653_v51 }
0x335d   :  { %8678 = vmatpush3.bf16.msra.mxu1 %v10876_v42 }
0x335e   :  { %8679 = vmatprep.subr.bf16.mxu1 %v9408_v59 }
0x3361   :  { %8680 = vmatpush3.bf16.msra.mxu1 %v10878_v5 }
0x3362   :  { %v9337_v22 = vpop.eup %9336  ;;  %8685 = vmatprep.subr.bf16.mxu1 %v9408_v59 }
0x3363   :  { %v5732_v28 = vsel %vm195_vm1, %v9337_v22, 0.0 }
0x3364   :  { %v9339_v46 = vpop.eup %9338  ;;  %5733 = vadd.xlane.f32.xlu1 %v5732_v28 }
0x3365   :  { %v5735_v24 = vsel %vm3012_vm15, %v9339_v46, 0.0 }
0x3368   :  { %5736 = vadd.xlane.f32.xlu1 %v5735_v24 }
0x3379   :  { %5797 = vrot.lane.b32.xlu1 %v10844_v63, %s9405_s24 }
0x337d   :  { %5791 = vrot.lane.b32.xlu1 %v10766_v53, %s9405_s24 }
0x33f1   :  { %v5734_v23 = vpop.xlane.xlu1 %5733 }
0x33f2   :  { %9340 = vrcp.f32 %v5734_v23 }
0x33f5   :  { %v5737_v33 = vpop.xlane.xlu1 %5736 }
0x33f6   :  { %9342 = vrcp.f32 %v5737_v33 }
0x33f9   :  { %v5798_v2 = vpop.permute.xlu1 %5797 }
0x33fa   :  { %v5806_v44 = vsel %vm474_vm2, %v5798_v2, 0 }
0x33fc   :  { %v9341_v54 = vpop.eup %9340 }
0x33fd   :  { %v5739_v50 = vmul.f32 %v9341_v54, %v9337_v22  ;;  %v5792_v0 = vpop.permute.xlu1 %5791 }
0x3400   :  { %v9343_v16 = vpop.eup %9342 }
0x3401   :  { %v5741_v30 = vmul.f32 %v9343_v16, %v9339_v46 }
0x3403   :  { %v5742_v4 = vpack.c.bf16 %v5741_v30, %v5739_v50 }
0x3405   :  { %8682 = vmatmul.mubr.msk.bf16.vlgmr.msra.gmra.mrb[124].mxu1 %vm195_vm1, %v5742_v4 }
0x3406   :  { %8686 = vmatpush3.bf16.xpose.msra.mxu1 %v5803_v62  ;;  %8689 = vmatprep.mubr.msk.bf16.mxu1 %vm9409_vm5, %v9408_v59 }
0x3407   :  { %8687 = vmatprep.subr.bf16.mxu1 %v9408_v59 }
0x340e   :  { %8688 = vmatpush3.bf16.xpose.msra.mxu1 %v5806_v44 }
0x340f   :  { %8707 = vmatprep.subr.bf16.mxu1 %v9408_v59 }
0x3415   :  { %8690 = vmatmul.mubr.msk.bf16.vlgmr.msra.gmra.mrb[128].mxu1 %vm474_vm2, %v5792_v0 }
0x3416   :  { %8709 = vmatprep.mubr.msk.bf16.mxu1 %vm9409_vm5, %v9408_v59  ;;  %8708 = vmatpush3.bf16.msra.mxu1 %v5980_v40 }
0x3417   :  { %8721 = vmatprep.subr.bf16.mxu1 %v9408_v59 }
0x34d8   :  { %v5782_v57 = vpop.f32.mrb[124].mxu1 }
0x34d9   :  { %v8683_v36 = vpop.f32.mrb[125].mxu1 }
0x34da   :  { %v5785_v8 = vpop.f32.mrb[126].mxu1 }
0x34db   :  { %v5789_v35 = vpack.c.bf16 %v5785_v8, %v5782_v57  ;;  %v8684_v7 = vpop.f32.mrb[127].mxu1  ;;  %v9077_v57 = vld [vmem:[%s11287_s2 + $0x168] sm:$0xff]  }
0x34dd   :  { %8710 = vmatmul.mubr.msk.bf16.vlgmr.msra.gmra.mrb[132].mxu1 %vm474_vm2, %v5789_v35 }
0x34de   :  { %8725 = vmatprep.mubr.msk.bf16.mxu1 %vm9409_vm5, %v9408_v59 }
0x34e8   :  { %v5842_v11 = vpop.f32.mrb[128].mxu1 }
0x34e9   :  { %v5849_v39 = vmul.f32 0.35355338, %v5842_v11  ;;  %v8691_v29 = vpop.f32.mrb[129].mxu1 }
0x34ea   :  { %v5845_v61 = vpop.f32.mrb[130].mxu1 }
0x34eb   :  { %v5851_v43 = vadd.f32 %v10861_v31, %v5849_v39  ;;  %v5850_v47 = vmul.f32 0.35355338, %v5845_v61  ;;  %v8692_v14 = vpop.f32.mrb[131].mxu1 }
0x34ed   :  { %v5852_v18 = vadd.f32 %v10867_v25, %v5850_v47  ;;  %v5853_v20 = vsel %vm195_vm1, %v5851_v43, -inf }
0x34ee   :  { %5854 = vmax.xlane.f32.xlu1 %v5853_v20 }
0x34ef   :  { %v5856_v9 = vsel %vm3012_vm15, %v5852_v18, -inf }
0x34f0   :  { %5857 = vmax.xlane.f32.xlu0 %v5856_v9 }
0x34ff   :  { %5878 = vrot.lane.b32.xlu1 %v10876_v42, %s9405_s24 }
0x3503   :  { %6025 = vrot.lane.b32.xlu1 %v10846_v27, %s9406_s25 }
0x3507   :  { %6027 = vrot.lane.b32.xlu1 %v10844_v63, %s9406_s25 }
0x350b   :  { %6023 = vrot.lane.b32.xlu1 %v10766_v53, %s9406_s25 }
0x350f   :  { %6210 = vrot.lane.b32.xlu1 %v10844_v63, %s9407_s8 }
0x357b   :  { %v5855_v52 = vpop.xlane.xlu1 %5854 }
0x357c   :  { %v5859_v13 = vsub.f32 %v5851_v43, %v5855_v52 }
0x357d   :  { %v5858_v15 = vpop.xlane.xlu0 %5857 }
0x357e   :  { %v5861_v38 = vmul.f32 1.442695, %v5859_v13  ;;  %v5860_v34 = vsub.f32 %v5852_v18, %v5858_v15 }
0x357f   :  { %v5879_v55 = vpop.permute.xlu1 %5878 }
0x3580   :  { %9344 = vpow2.f32 %v5861_v38  ;;  %v5863_v56 = vmul.f32 1.442695, %v5860_v34  ;;  %8694 = vmatpush3.bf16.msra.mxu0 %v5879_v55 }
0x3581   :  { %8695 = vmatprep.subr.bf16.mxu0 %v9408_v59 }
0x3582   :  { %9346 = vpow2.f32 %v5863_v56 }
0x3583   :  { %v6026_v33 = vpop.permute.xlu1 %6025 }
0x3584   :  { %v6033_v30 = vsel %vm474_vm2, %v6026_v33, 0 }
0x3587   :  { %v6028_v17 = vpop.permute.xlu1 %6027 }
0x3588   :  { %v6036_v4 = vsel %vm474_vm2, %v6028_v17, 0 }
0x358a   :  { %v9345_v45 = vpop.eup %9344 }
0x358b   :  { %v5865_v3 = vsel %vm195_vm1, %v9345_v45, 0.0  ;;  %v6024_v2 = vpop.permute.xlu1 %6023 }
0x358c   :  { %v9347_v41 = vpop.eup %9346  ;;  %5866 = vadd.xlane.f32.xlu0 %v5865_v3 }
0x358d   :  { %v5868_v58 = vsel %vm3012_vm15, %v9347_v41, 0.0 }
0x358f   :  { %v6211_v0 = vpop.permute.xlu1 %6210 }
0x3590   :  { %5869 = vadd.xlane.f32.xlu0 %v5868_v58  ;;  %v6219_v40 = vsel %vm474_vm2, %v6211_v0, 0 }
0x35a6   :  { %5880 = vrot.lane.b32.xlu0 %v10878_v5, %s9405_s24 }
0x35aa   :  { %6208 = vrot.lane.b32.xlu0 %v10846_v27, %s9407_s8  ;;  %v5660_v27 = vld [vmem:[%s11287_s2 + $0x124] sm:$0xf] }
0x35ab   :  { %v5933_v46 = vsel %vm847_vm3, %v5660_v27, 0 }
0x35ae   :  { %6206 = vrot.lane.b32.xlu0 %v10766_v53, %s9407_s8 }
0x35b0   :  { %v6016_v63 = vpop.f32.mrb[132].mxu1 }
0x35b1   :  { %v8711_v60 = vpop.f32.mrb[133].mxu1 }
0x35b2   :  { %v6019_v49 = vpop.f32.mrb[134].mxu1 }
0x35b3   :  { %v8712_v48 = vpop.f32.mrb[135].mxu1 }
0x3619   :  { %v5867_v19 = vpop.xlane.xlu0 %5866 }
0x361a   :  { %9348 = vrcp.f32 %v5867_v19 }
0x361d   :  { %v5870_v10 = vpop.xlane.xlu0 %5869 }
0x361e   :  { %9350 = vrcp.f32 %v5870_v10 }
0x3621   :  { %v5881_v51 = vpop.permute.xlu0 %5880 }
0x3622   :  { %8696 = vmatpush3.bf16.msra.mxu0 %v5881_v51 }
0x3623   :  { %8701 = vmatprep.subr.bf16.mxu0 %v9408_v59 }
0x3624   :  { %v9349_v32 = vpop.eup %9348 }
0x3625   :  { %v5872_v22 = vmul.f32 %v9349_v32, %v9345_v45  ;;  %v6209_v62 = vpop.permute.xlu0 %6208 }
0x3626   :  { %v6216_v44 = vsel %vm474_vm2, %v6209_v62, 0 }
0x3628   :  { %v9351_v37 = vpop.eup %9350 }
0x3629   :  { %v5874_v53 = vmul.f32 %v9351_v37, %v9347_v41  ;;  %v6207_v36 = vpop.permute.xlu0 %6206 }
0x362b   :  { %v5875_v28 = vpack.c.bf16 %v5874_v53, %v5872_v22 }
0x362d   :  { %8698 = vmatmul.mubr.msk.bf16.vlgmr.msra.gmra.mrb[136].mxu0 %vm195_vm1, %v5875_v28 }
0x362e   :  { %8702 = vmatpush3.bf16.msra.mxu0 %v5933_v46  ;;  %8703 = vmatprep.mubr.msk.bf16.mxu0 %vm9409_vm5, %v9408_v59 }
0x362f   :  { %8713 = vmatprep.subr.bf16.mxu0 %v9408_v59 }
0x3700   :  { %v5921_v24 = vpop.f32.mrb[136].mxu0 }
0x3701   :  { %v8699_v23 = vpop.f32.mrb[137].mxu0 }
0x3702   :  { %v5924_v54 = vpop.f32.mrb[138].mxu0 }
0x3703   :  { %v5928_v16 = vpack.c.bf16 %v5924_v54, %v5921_v24  ;;  %v8700_v50 = vpop.f32.mrb[139].mxu0 }
0x3705   :  { %8704 = vmatmul.mubr.msk.bf16.vlgmr.msra.gmra.mrb[140].mxu0 %vm474_vm2, %v5928_v16 }
0x3706   :  { %8714 = vmatpush3.bf16.xpose.msra.mxu0 %v6033_v30  ;;  %8717 = vmatprep.mubr.msk.bf16.mxu0 %vm9409_vm5, %v9408_v59 }
0x3707   :  { %8715 = vmatprep.subr.bf16.mxu0 %v9408_v59 }
0x370e   :  { %8716 = vmatpush3.bf16.xpose.msra.mxu0 %v6036_v4 }
0x370f   :  { %8735 = vmatprep.subr.bf16.mxu0 %v9408_v59 }
0x3715   :  { %8718 = vmatmul.mubr.msk.bf16.vlgmr.msra.gmra.mrb[144].mxu0 %vm474_vm2, %v6024_v2 }
0x3716   :  { %8736 = vmatpush3.bf16.xpose.msra.mxu0 %v6216_v44  ;;  %8739 = vmatprep.mubr.msk.bf16.mxu0 %vm9409_vm5, %v9408_v59 }
0x3717   :  { %8737 = vmatprep.subr.bf16.mxu0 %v9408_v59 }
0x371e   :  { %8738 = vmatpush3.bf16.xpose.msra.mxu0 %v6219_v40 }
0x371f   :  { %8757 = vmatprep.subr.bf16.mxu0 %v9076_v21 }
0x3725   :  { %8740 = vmatmul.mubr.msk.bf16.vlgmr.msra.gmra.mrb[148].mxu0 %vm474_vm2, %v6207_v36  ;;  %v5661_v36 = vld [vmem:[%s11287_s2 + $0x128] sm:$0xf] }
0x3726   :  { %8758 = vmatpush3.bf16.msra.mxu0 %v9076_v21  ;;  %8761 = vmatprep.mubr.msk.bf16.mxu0 %vm195_vm1, %v10821_v1 }
0x3727   :  { %8759 = vmatprep.subr.bf16.mxu0 %v9077_v57 }
0x372a   :  { %8760 = vmatpush3.bf16.msra.mxu0 %v9077_v57 }
0x372d   :  { %8762 = vmatmul.mubr.msk.bf16.vlgmr.msra.gmra.mrb[152].mxu0 %vm195_vm1, %v10829_v12 }
0x37d8   :  { %v5969_v8 = vpop.f32.mrb[140].mxu0 }
0x37d9   :  { %v10964_v35 = vadd.f32 %v6016_v63, %v5969_v8  ;;  %v8705_v7 = vpop.f32.mrb[141].mxu0  ;;  %v6161_v8 = vsel %vm847_vm3, %v5661_v36, 0 }
0x37da   :  { %v5972_v11 = vpop.f32.mrb[142].mxu0 }
0x37db   :  { %v10966_v39 = vadd.f32 %v6019_v49, %v5972_v11  ;;  %v8706_v29 = vpop.f32.mrb[143].mxu0 }
0x37e8   :  { %v6072_v61 = vpop.f32.mrb[144].mxu0 }
0x37e9   :  { %v6079_v43 = vmul.f32 0.35355338, %v6072_v61  ;;  %v8719_v47 = vpop.f32.mrb[145].mxu0 }
0x37ea   :  { %v6075_v14 = vpop.f32.mrb[146].mxu0 }
0x37eb   :  { %v6081_v18 = vadd.f32 %v10861_v31, %v6079_v43  ;;  %v6080_v1 = vmul.f32 0.35355338, %v6075_v14  ;;  %v8720_v20 = vpop.f32.mrb[147].mxu0 }
0x37ed   :  { %v6082_v9 = vadd.f32 %v10867_v25, %v6080_v1  ;;  %v6083_v12 = vsel %vm195_vm1, %v6081_v18, -inf }
0x37ee   :  { %6084 = vmax.xlane.f32.xlu1 %v6083_v12 }
0x37ef   :  { %v6086_v52 = vsel %vm3012_vm15, %v6082_v9, -inf }
0x37f0   :  { %6087 = vmax.xlane.f32.xlu0 %v6086_v52 }
0x37f8   :  { %v6255_v13 = vpop.f32.mrb[148].mxu0 }
0x37f9   :  { %v8741_v15 = vpop.f32.mrb[149].mxu0  ;;  %v6262_v41 = vmul.f32 0.35355338, %v6255_v13  ;;  %v5662_v13 = vld [vmem:[%s11287_s2 + $0x12c] sm:$0xf] }
0x37fa   :  { %v6258_v38 = vpop.f32.mrb[150].mxu0  ;;  %v6344_v15 = vsel %vm847_vm3, %v5662_v13, 0 }
0x37fb   :  { %v8742_v34 = vpop.f32.mrb[151].mxu0  ;;  %v6264_v58 = vadd.f32 %v10861_v31, %v6262_v41  ;;  %v6263_v24 = vmul.f32 0.35355338, %v6258_v38  ;;  %v6508_v38 = vld [vmem:[%s11289_s3 + $0x1f8] sm:$0xff] }
0x37fc   :  { %v6509_v34 = vld [vmem:[%s11289_s3 + $0x200] sm:$0xff] }
0x37fd   :  { %v6266_v63 = vsel %vm195_vm1, %v6264_v58, -inf  ;;  %v6265_v33 = vadd.f32 %v10867_v25, %v6263_v24  ;;  %v11024_v41 = vpack.c.bf16 %v6509_v34, %v6508_v38 }
0x37ff   :  { %6106 = vrot.lane.b32.xlu1 %v10876_v42, %s9406_s25  ;;  %v6269_v16 = vsel %vm3012_vm15, %v6265_v33, -inf }
0x3800   :  { %v10974_v55 = vpop.f32.mrb[152].mxu0 }
0x3801   :  { %v10976_v56 = vpop.f32.mrb[153].mxu0 }
0x3802   :  { %v10978_v45 = vpop.f32.mrb[154].mxu0 }
0x3803   :  { %v10980_v3 = vpop.f32.mrb[155].mxu0 }
0x3823   :  { %6267 = vmax.xlane.f32.xlu1 %v6266_v63 }
0x387b   :  { %v6085_v60 = vpop.xlane.xlu1 %6084 }
0x387c   :  { %v6089_v49 = vsub.f32 %v6081_v18, %v6085_v60 }
0x387d   :  { %v6088_v48 = vpop.xlane.xlu0 %6087 }
0x387e   :  { %v6091_v19 = vmul.f32 1.442695, %v6089_v49  ;;  %v6090_v10 = vsub.f32 %v6082_v9, %v6088_v48 }
0x387f   :  { %v6107_v51 = vpop.permute.xlu1 %6106 }
0x3880   :  { %9352 = vpow2.f32 %v6091_v19  ;;  %v6093_v32 = vmul.f32 1.442695, %v6090_v10  ;;  %8722 = vmatpush3.bf16.msra.mxu1 %v6107_v51  ;;  %v6510_v51 = vld [vmem:[%s11289_s3 + $0x208] sm:$0xff] }
0x3881   :  { %8723 = vmatprep.subr.bf16.mxu1 %v9408_v59 }
0x3882   :  { %9354 = vpow2.f32 %v6093_v32  ;;  %v6511_v32 = vld [vmem:[%s11289_s3 + $0x210] sm:$0xff] }
0x388a   :  { %v9353_v37 = vpop.eup %9352 }
0x388b   :  { %v6095_v27 = vsel %vm195_vm1, %v9353_v37, 0.0 }
0x388c   :  { %v9355_v22 = vpop.eup %9354  ;;  %6096 = vadd.xlane.f32.xlu0 %v6095_v27 }
0x388d   :  { %v6098_v31 = vsel %vm3012_vm15, %v9355_v22, 0.0 }
0x3890   :  { %6099 = vadd.xlane.f32.xlu0 %v6098_v31 }
0x38a6   :  { %6108 = vrot.lane.b32.xlu0 %v10878_v5, %s9406_s25 }
0x38b0   :  { %v6268_v53 = vpop.xlane.xlu1 %6267 }
0x38b1   :  { %v6272_v28 = vsub.f32 %v6264_v58, %v6268_v53  ;;  %v8916_v53 = vpack.c.bf16 %v6511_v32, %v6510_v51 }
0x38b3   :  { %v6274_v46 = vmul.f32 1.442695, %v6272_v28  ;;  %v6512_v28 = vld [vmem:[%s11289_s3 + $0x218] sm:$0xff] }
0x38b5   :  { %9356 = vpow2.f32 %v6274_v46  ;;  %v6513_v46 = vld [vmem:[%s11289_s3 + $0x220] sm:$0xff] }
0x38b6   :  { %v8920_v24 = vpack.c.bf16 %v6513_v46, %v6512_v28 }
0x38bf   :  { %v9357_v23 = vpop.eup %9356 }
0x38c0   :  { %v6278_v54 = vsel %vm195_vm1, %v9357_v23, 0.0 }
0x38c1   :  { %6279 = vadd.xlane.f32.xlu1 %v6278_v54 }
0x38c5   :  { %6270 = vmax.xlane.f32.xlu0 %v6269_v16 }
0x38d2   :  { %6289 = vrot.lane.b32.xlu1 %v10876_v42, %s9407_s8 }
0x3919   :  { %v6097_v50 = vpop.xlane.xlu0 %6096 }
0x391a   :  { %9358 = vrcp.f32 %v6097_v50 }
0x391d   :  { %v6100_v30 = vpop.xlane.xlu0 %6099 }
0x391e   :  { %9360 = vrcp.f32 %v6100_v30  ;;  %v6617_v30 = vld [vmem:[%s11289_s3 + $0x238] sm:$0xf] }
0x391f   :  { %8787 = vmatprep.subr.msk.mxu0 %vm847_vm3, %v6617_v30 }
0x3920   :  { %8788 = vmatpush3.msk.msra.mxu0 %vm847_vm3, %v6617_v30 }
0x3921   :  { %v6109_v17 = vpop.permute.xlu0 %6108  ;;  %8929 = vmatprep.subr.bf16.mxu0 %v11024_v41 }
0x3922   :  { %8724 = vmatpush3.bf16.msra.mxu1 %v6109_v17 }
0x3923   :  { %8729 = vmatprep.subr.bf16.mxu1 %v9408_v59 }
0x3924   :  { %v9359_v4 = vpop.eup %9358 }
0x3925   :  { %v6102_v25 = vmul.f32 %v9359_v4, %v9353_v37  ;;  %v7805_v37 = vld [vmem:[%s11289_s3 + $0x1d8] ss:$0 sm:$0xff] }
0x3926   :  { %v6497_v54 = vadd.f32 %v7805_v37, %v10980_v3  ;;  %v11059_v16 = vadd.f32 %v10974_v55, %v7805_v37  ;;  %v11065_v50 = vadd.f32 %v10978_v45, %v7805_v37  ;;  %v7802_v45 = vld [vmem:[%s11289_s3 + $0xb0] ss:$0 sm:$0xff] }
0x3928   :  { %v9361_v62 = vpop.eup %9360 }
0x3929   :  { %v6104_v2 = vmul.f32 %v9361_v62, %v9355_v22 }
0x392b   :  { %v6105_v44 = vpack.c.bf16 %v6104_v2, %v6102_v25 }
0x392d   :  { %8726 = vmatmul.mubr.msk.bf16.vlgmr.msra.gmra.mrb[136].mxu1 %vm195_vm1, %v6105_v44 }
0x392e   :  { %8731 = vmatprep.mubr.msk.bf16.mxu1 %vm9409_vm5, %v9408_v59  ;;  %8730 = vmatpush3.bf16.msra.mxu1 %v6161_v8 }
0x392f   :  { %8743 = vmatprep.subr.bf16.mxu1 %v9408_v59 }
0x394e   :  { %v6280_v11 = vpop.xlane.xlu1 %6279 }
0x3952   :  { %v6271_v0 = vpop.xlane.xlu0 %6270 }
0x3953   :  { %v6273_v42 = vsub.f32 %v6265_v33, %v6271_v0 }
0x3955   :  { %v6276_v21 = vmul.f32 1.442695, %v6273_v42 }
0x3957   :  { %9362 = vpow2.f32 %v6276_v21 }
0x3961   :  { %v9363_v40 = vpop.eup %9362 }
0x3962   :  { %v6281_v57 = vsel %vm3012_vm15, %v9363_v40, 0.0 }
0x3963   :  { %6282 = vadd.xlane.f32.xlu0 %v6281_v57 }
0x3979   :  { %6291 = vrot.lane.b32.xlu0 %v10878_v5, %s9407_s8  ;;  %v6290_v5 = vpop.permute.xlu1 %6289 }
0x39f0   :  { %v6283_v7 = vpop.xlane.xlu0 %6282 }
0x39f1   :  { %9364 = vrcp.f32 %v6283_v7 }
0x39f2   :  { %9366 = vrcp.f32 %v6280_v11 }
0x39f4   :  { %v6292_v12 = vpop.permute.xlu0 %6291 }
0x39fb   :  { %v9365_v18 = vpop.eup %9364 }
0x39fc   :  { %v9367_v1 = vpop.eup %9366  ;;  %v6287_v20 = vmul.f32 %v9365_v18, %v9363_v40 }
0x39fd   :  { %v6285_v9 = vmul.f32 %v9367_v1, %v9357_v23  ;;  %v6515_v23 = vld [vmem:[%s11289_s3 + $0x230] sm:$0xff] }
0x39ff   :  { %v6288_v52 = vpack.c.bf16 %v6287_v20, %v6285_v9 }
0x3a00   :  { %v6149_v29 = vpop.f32.mrb[136].mxu1 }
0x3a01   :  { %v8727_v61 = vpop.f32.mrb[137].mxu1 }
0x3a02   :  { %v6152_v43 = vpop.f32.mrb[138].mxu1 }
0x3a03   :  { %v6156_v47 = vpack.c.bf16 %v6152_v43, %v6149_v29  ;;  %v8728_v14 = vpop.f32.mrb[139].mxu1 }
0x3a05   :  { %8732 = vmatmul.mubr.msk.bf16.vlgmr.msra.gmra.mrb[140].mxu1 %vm474_vm2, %v6156_v47 }
0x3a06   :  { %8744 = vmatpush3.bf16.msra.mxu1 %v6290_v5  ;;  %8747 = vmatprep.mubr.msk.bf16.mxu1 %vm9409_vm5, %v9408_v59 }
0x3a07   :  { %8745 = vmatprep.subr.bf16.mxu1 %v9408_v59 }
0x3a0a   :  { %8746 = vmatpush3.bf16.msra.mxu1 %v6292_v12 }
0x3a0b   :  { %8751 = vmatprep.subr.bf16.mxu1 %v9408_v59 }
0x3a0d   :  { %8748 = vmatmul.mubr.msk.bf16.vlgmr.msra.gmra.mrb[144].mxu1 %vm195_vm1, %v6288_v52 }
0x3a0e   :  { %8753 = vmatprep.mubr.msk.bf16.mxu1 %vm9409_vm5, %v9408_v59  ;;  %8752 = vmatpush3.bf16.msra.mxu1 %v6344_v15 }
0x3a0f   :  { %8913 = vmatprep.subr.bf16.mxu1 %v11024_v41 }
0x3ad8   :  { %v6197_v58 = vpop.f32.mrb[140].mxu1 }
0x3ad9   :  { %v6204_v63 = vadd.f32 %v6197_v58, %v10964_v35  ;;  %v8733_v60 = vpop.f32.mrb[141].mxu1  ;;  %v9078_v58 = vld [vmem:[%s11287_s2 + $0x190] sm:$0xff]  }
0x3ada   :  { %v6200_v49 = vpop.f32.mrb[142].mxu1 }
0x3adb   :  { %v6205_v48 = vadd.f32 %v6200_v49, %v10966_v39  ;;  %v8734_v19 = vpop.f32.mrb[143].mxu1  ;;  %v11039_v39 = vadd.f32 %v7805_v37, %v10976_v56  ;;  %v6514_v56 = vld [vmem:[%s11289_s3 + $0x228] sm:$0xff] }
0x3adc   :  { %v8924_v33 = vpack.c.bf16 %v6515_v23, %v6514_v56 }
0x3ae0   :  { %v6332_v10 = vpop.f32.mrb[144].mxu1 }
0x3ae1   :  { %v8749_v27 = vpop.f32.mrb[145].mxu1 }
0x3ae2   :  { %v6335_v35 = vpop.f32.mrb[146].mxu1 }
0x3ae3   :  { %v6339_v22 = vpack.c.bf16 %v6335_v35, %v6332_v10  ;;  %v8750_v31 = vpop.f32.mrb[147].mxu1  ;;  %v9079_v10 = vld [vmem:[%s11287_s2 + $0x198] sm:$0xff]  }
0x3ae5   :  { %8754 = vmatmul.mubr.msk.bf16.vlgmr.msra.gmra.mrb[148].mxu1 %vm474_vm2, %v6339_v22 }
0x3ae6   :  { %8915 = vmatpush3.bf16.msra.mxu1 %v11024_v41  ;;  %8781 = vmatprep.mubr.msk.f32.mxu1 %vm131_vm0, %v11039_v39 }
0x3ae7   :  { %8917 = vmatprep.subr.bf16.mxu1 %v8916_v53 }
0x3aea   :  { %8919 = vmatpush3.bf16.msra.mxu1 %v8916_v53 }
0x3aeb   :  { %8921 = vmatprep.subr.bf16.mxu1 %v8920_v24 }
0x3aee   :  { %8923 = vmatpush3.bf16.msra.mxu1 %v8920_v24 }
0x3aef   :  { %8925 = vmatprep.subr.bf16.mxu1 %v8924_v33 }
0x3af2   :  { %8927 = vmatpush3.bf16.msra.mxu1 %v8924_v33 }
0x3af3   :  { %8817 = vmatprep.subr.msk.mxu1 %vm847_vm3, %v6617_v30 }
0x3af5   :  { %8782 = vmatmul.mubr.msk.f32.vlgmr.msra.gmra.mrb[152].mxu1 %vm131_vm0, %v6497_v54 }
0x3af6   :  { %8784 = vmatprep.mubr.msk.f32.mxu1 %vm131_vm0, %v11059_v16  ;;  %8818 = vmatpush3.msk.msra.mxu1 %vm847_vm3, %v6617_v30  ;;  %vm7122_vm3 = vcmask 1040384  }
0x3af9   :  { %8785 = vmatmul.mubr.msk.f32.gmra.mrb[154].mxu1 %vm131_vm0, %v11065_v50 }
0x3bb8   :  { %v6380_v55 = vpop.f32.mrb[148].mxu1 }
0x3bb9   :  { %v6387_v3 = vadd.f32 %v6380_v55, %v6204_v63  ;;  %v8755_v17 = vpop.f32.mrb[149].mxu1 }
0x3bba   :  { %v6383_v4 = vpop.f32.mrb[150].mxu1  ;;  %v9081_v17 = vld [vmem:[%s11287_s2 + $0x1a8] sm:$0xff]  }
0x3bbb   :  { %v6394_v62 = vadd.f32 %v7802_v45, %v6387_v3  ;;  %v6388_v25 = vadd.f32 %v6383_v4, %v6205_v48  ;;  %v8756_v2 = vpop.f32.mrb[151].mxu1  ;;  %v9080_v3 = vld [vmem:[%s11287_s2 + $0x1a0] sm:$0xff]  }
0x3bbd   :  { %v6395_v44 = vadd.f32 %v7802_v45, %v6388_v25  ;;  %v6396_v0 = vadd.f32 %v6394_v62, %v10571_v6 }
0x3bbf   :  { %v6398_v42 = vsel %vm195_vm1, %v6396_v0, 0.0  ;;  %v6397_v21 = vadd.f32 %v6395_v44, %v10573_v26 }
0x3bc0   :  { %6399 = vadd.xlane.f32.xlu1 %v6398_v42 }
0x3bc1   :  { %v6401_v40 = vsel %vm3012_vm15, %v6397_v21, 0.0 }
0x3bc2   :  { %6402 = vadd.xlane.f32.xlu0 %v6401_v40  ;;  %v7837_v40 = vld [vmem:[%s11289_s3 + $0x2e8] ss:$0 sm:$0xff] }
0x3bc8   :  { %v8783_v57 = vpop.f32.mrb[152].mxu1 }
0x3bc9   :  { %v6594_v36 = vpop.f32.mrb[153].mxu1  ;;  %v6614_v7 = vmul.f32 0.0625, %v8783_v57 }
0x3bca   :  { %v6613_v8 = vmul.f32 0.0625, %v6594_v36 }
0x3bcc   :  { %v8786_v11 = vpop.f32.mrb[154].mxu1  ;;  %8789 = vmatprep.mubr.msk.f32.mxu0 %vm2035_vm11, %v6613_v8 }
0x3bcd   :  { %v6604_v29 = vpop.f32.mrb[155].mxu1  ;;  %8790 = vmatmul.mubr.msk.f32.vlgmr.msra.gmra.mrb[156].mxu0 %vm2035_vm11, %v6614_v7  ;;  %v6616_v6 = vmul.f32 0.0625, %v8786_v11 }
0x3bce   :  { %v6615_v61 = vmul.f32 0.0625, %v6604_v29  ;;  %8931 = vmatpush3.bf16.msra.mxu0 %v11024_v41 }
0x3bcf   :  { %8933 = vmatprep.subr.bf16.mxu0 %v8916_v53 }
0x3bd0   :  { %8792 = vmatprep.mubr.msk.f32.mxu0 %vm2035_vm11, %v6615_v61 }
0x3bd1   :  { %8793 = vmatmul.mubr.msk.f32.gmra.mrb[158].mxu0 %vm2035_vm11, %v6616_v6  ;;  %v9082_v6 = vld [vmem:[%s11287_s2 + $0x170] sm:$0xff]  }
0x3bd2   :  { %8935 = vmatpush3.bf16.msra.mxu0 %v8916_v53  ;;  %8825 = vmatprep.subr.bf16.mxu1 %v9082_v6 }
0x3bd3   :  { %8937 = vmatprep.subr.bf16.mxu0 %v8920_v24 }
0x3bd6   :  { %8939 = vmatpush3.bf16.msra.mxu0 %v8920_v24  ;;  %v7804_v24 = vld [vmem:[%s11289_s3 + $0x100] ss:$0 sm:$0xff] }
0x3bd7   :  { %8941 = vmatprep.subr.bf16.mxu0 %v8924_v33 }
0x3bda   :  { %8943 = vmatpush3.bf16.msra.mxu0 %v8924_v33 }
0x3bdb   :  { %8837 = vmatprep.subr.bf16.mxu0 %v9408_v59 }
0x3c4d   :  { %v6400_v26 = vpop.xlane.xlu1 %6399 }
0x3c4e   :  { %v6404_v43 = vmul.f32 0.03125, %v6400_v26  ;;  %v9083_v26 = vld [vmem:[%s11287_s2 + $0x178] sm:$0xff]  }
0x3c4f   :  { %v6403_v47 = vpop.xlane.xlu0 %6402 }
0x3c50   :  { %v6406_v14 = vsub.f32 %v6396_v0, %v6404_v43  ;;  %v6405_v18 = vmul.f32 0.03125, %v6403_v47  ;;  %v9084_v43 = vld [vmem:[%s11287_s2 + $0x180] sm:$0xff]   ;;  %v9085_v47 = vld [vmem:[%s11287_s2 + $0x188] sm:$0xff]  }
0x3c52   :  { %v6407_v5 = vsub.f32 %v6397_v21, %v6405_v18  ;;  %v6408_v1 = vmul.f32 %v6406_v14, %v6406_v14 }
0x3c54   :  { %v6410_v20 = vsel %vm195_vm1, %v6408_v1, 0.0  ;;  %v6409_v9 = vmul.f32 %v6407_v5, %v6407_v5 }
0x3c55   :  { %6411 = vadd.xlane.f32.xlu1 %v6410_v20 }
0x3c56   :  { %v6413_v12 = vsel %vm3012_vm15, %v6409_v9, 0.0 }
0x3c57   :  { %6414 = vadd.xlane.f32.xlu0 %v6413_v12 }
0x3ca0   :  { %v8791_v52 = vpop.f32.mrb[156].mxu0 }
0x3ca1   :  { %v11092_v13 = vsub.f32 %v6497_v54, %v8791_v52  ;;  %v6699_v15 = vpop.f32.mrb[157].mxu0 }
0x3ca2   :  { %v11095_v38 = vsub.f32 %v11039_v39, %v6699_v15  ;;  %v7803_v39 = vld [vmem:[%s11289_s3 + $0xf8] ss:$0 sm:$0xff] }
0x3ca3   :  { %v6723_v63 = vmul.f32 %v11092_v13, %v11092_v13 }
0x3ca4   :  { %v6722_v34 = vmul.f32 %v11095_v38, %v11095_v38  ;;  %v8794_v41 = vpop.f32.mrb[158].mxu0 }
0x3ca5   :  { %v11105_v60 = vsub.f32 %v11065_v50, %v8794_v41  ;;  %v6709_v49 = vpop.f32.mrb[159].mxu0 }
0x3ca6   :  { %v11108_v48 = vsub.f32 %v11059_v16, %v6709_v49  ;;  %8811 = vmatprep.mubr.msk.f32.mxu0 %vm131_vm0, %v6722_v34  ;;  %v7828_v34 = vld [vmem:[%s11289_s3 + $0x1e0] ss:$0 sm:$0xff] }
0x3ca7   :  { %8812 = vmatmul.mubr.msk.f32.vlgmr.msra.gmra.mrb[160].mxu0 %vm131_vm0, %v6723_v63  ;;  %v6725_v51 = vmul.f32 %v11105_v60, %v11105_v60  ;;  %v7829_v63 = vld [vmem:[%s11289_s3 + $0x1e8] ss:$0 sm:$0xff] }
0x3ca8   :  { %v6724_v19 = vmul.f32 %v11108_v48, %v11108_v48  ;;  %8838 = vmatpush3.bf16.msra.mxu0 %v9078_v58 }
0x3ca9   :  { %8839 = vmatprep.subr.bf16.mxu0 %v9408_v59 }
0x3caa   :  { %8814 = vmatprep.mubr.msk.f32.mxu0 %vm131_vm0, %v6724_v19 }
0x3cab   :  { %8815 = vmatmul.mubr.msk.f32.gmra.mrb[162].mxu0 %vm131_vm0, %v6725_v51 }
0x3cac   :  { %8840 = vmatpush3.bf16.msra.mxu0 %v9079_v10  ;;  %8841 = vmatprep.mubr.msk.bf16.mxu0 %vm9409_vm5, %v9408_v59 }
0x3cad   :  { %8845 = vmatprep.subr.bf16.mxu0 %v9408_v59 }
0x3ce2   :  { %v6412_v32 = vpop.xlane.xlu1 %6411 }
0x3ce3   :  { %v6416_v37 = vmul.f32 0.03125, %v6412_v32 }
0x3ce4   :  { %v6415_v27 = vpop.xlane.xlu0 %6414 }
0x3ce5   :  { %v6418_v35 = vadd.f32 1e-05, %v6416_v37  ;;  %v6417_v22 = vmul.f32 0.03125, %v6415_v27 }
0x3ce7   :  { %9368 = vrsqrt.f32 %v6418_v35  ;;  %v6419_v31 = vadd.f32 1e-05, %v6417_v22 }
0x3ce9   :  { %9370 = vrsqrt.f32 %v6419_v31 }
0x3cf1   :  { %v9369_v53 = vpop.eup %9368 }
0x3cf2   :  { %v6422_v28 = vmul.f32 %v9369_v53, %v6406_v14 }
0x3cf3   :  { %v9371_v46 = vpop.eup %9370 }
0x3cf4   :  { %v6429_v56 = vmul.f32 %v7803_v39, %v6422_v28  ;;  %v6423_v23 = vmul.f32 %v9371_v46, %v6407_v5 }
0x3cf6   :  { %v6436_v33 = vadd.f32 %v7804_v24, %v6429_v56  ;;  %v6430_v54 = vmul.f32 %v7803_v39, %v6423_v23 }
0x3cf8   :  { %v6437_v16 = vadd.f32 %v7804_v24, %v6430_v54  ;;  %v7117_v50 = vrot.slane %v6436_v33, 1 }
0x3cfa   :  { %v7120_v30 = vrot.slane %v6437_v16, 7 }
0x3cfc   :  { %v7123_v55 = vsel %vm7122_vm3, %v7117_v50, %v7120_v30 }
0x3cfd   :  { %v7128_v45 = vpack.c.bf16 %v7123_v55, %v7123_v55 }
0x3cff   :  { %8842 = vmatmul.mubr.msk.bf16.vlgmr.msra.gmra.mrb[164].mxu0 %vm195_vm1, %v7128_v45 }
0x3d00   :  { %8849 = vmatprep.mubr.msk.bf16.mxu0 %vm9409_vm5, %v9408_v59  ;;  %8846 = vmatpush3.bf16.msra.mxu0 %v9080_v3 }
0x3d01   :  { %8847 = vmatprep.subr.bf16.mxu0 %v9408_v59 }
0x3d04   :  { %8848 = vmatpush3.bf16.msra.mxu0 %v9081_v17 }
0x3d05   :  { %8861 = vmatprep.subr.mxu0 %v9408_v59 }
0x3d7a   :  { %v8813_v4 = vpop.f32.mrb[160].mxu0 }
0x3d7b   :  { %v6804_v62 = vpop.f32.mrb[161].mxu0  ;;  %v6824_v2 = vmul.f32 0.0625, %v8813_v4 }
0x3d7c   :  { %v6823_v25 = vmul.f32 0.0625, %v6804_v62 }
0x3d7e   :  { %v8816_v44 = vpop.f32.mrb[162].mxu0  ;;  %8819 = vmatprep.mubr.msk.f32.mxu1 %vm2035_vm11, %v6823_v25 }
0x3d7f   :  { %v6814_v0 = vpop.f32.mrb[163].mxu0  ;;  %8820 = vmatmul.mubr.msk.f32.vlgmr.msra.gmra.mrb[156].mxu1 %vm2035_vm11, %v6824_v2  ;;  %v6826_v21 = vmul.f32 0.0625, %v8816_v44 }
0x3d80   :  { %v6825_v42 = vmul.f32 0.0625, %v6814_v0  ;;  %8826 = vmatpush3.bf16.msra.mxu1 %v9082_v6 }
0x3d81   :  { %8827 = vmatprep.subr.bf16.mxu1 %v9083_v26 }
0x3d82   :  { %8822 = vmatprep.mubr.msk.f32.mxu1 %vm2035_vm11, %v6825_v42 }
0x3d83   :  { %8823 = vmatmul.mubr.msk.f32.gmra.mrb[158].mxu1 %vm2035_vm11, %v6826_v21 }
0x3d84   :  { %8828 = vmatpush3.bf16.msra.mxu1 %v9083_v26 }
0x3d85   :  { %8829 = vmatprep.subr.bf16.mxu1 %v9084_v43 }
0x3d88   :  { %8830 = vmatpush3.bf16.msra.mxu1 %v9084_v43 }
0x3d89   :  { %8831 = vmatprep.subr.bf16.mxu1 %v9085_v47 }
0x3d8c   :  { %8832 = vmatpush3.bf16.msra.mxu1 %v9085_v47 }
0x3d8d   :  { %8853 = vmatprep.subr.bf16.mxu1 %v9408_v59 }
0x3dd2   :  { %v7183_v57 = vpop.f32.mrb[164].mxu0 }
0x3dd3   :  { %v7184_v36 = vadd.f32 %v7837_v40, %v7183_v57  ;;  %v8843_v8 = vpop.f32.mrb[165].mxu0 }
0x3dd4   :  { %v7186_v7 = vpop.f32.mrb[166].mxu0 }
0x3dd5   :  { %v7189_v11 = vmax.f32 %v7184_v36, 0.0  ;;  %v8844_v29 = vpop.f32.mrb[167].mxu0 }
0x3dd7   :  { %v7194_v61 = vpack.c.bf16 %v7189_v11, %v7189_v11 }
0x3dd9   :  { %8850 = vmatmul.mubr.msk.bf16.vlgmr.msra.gmra.mrb[168].mxu0 %vm195_vm1, %v7194_v61 }
0x3dda   :  { %8863 = vmatprep.mubr.msk.f32.mxu0 %vm9409_vm5, %v9408_v59 }
0x3e52   :  { %v8821_v14 = vpop.f32.mrb[156].mxu1 }
0x3e53   :  { %v6911_v18 = vadd.f32 1e-06, %v8821_v14  ;;  %v6905_v5 = vpop.f32.mrb[157].mxu1  ;;  %v9086_v14 = vld [vmem:[%s11287_s2 + $0x1b0] sm:$0xff]  }
0x3e54   :  { %v6906_v1 = vadd.f32 1e-06, %v6905_v5  ;;  %v9087_v5 = vld [vmem:[%s11287_s2 + $0x1b8] sm:$0xff]  }
0x3e55   :  { %9372 = vrsqrt.f32 %v6911_v18 }
0x3e56   :  { %9374 = vrsqrt.f32 %v6906_v1  ;;  %v8824_v20 = vpop.f32.mrb[158].mxu1  ;;  %v7841_v1 = vld [vmem:[%s11289_s3 + $0x2f0] ss:$0 sm:$0xff] }
0x3e57   :  { %v6921_v9 = vadd.f32 1e-06, %v8824_v20  ;;  %v6915_v12 = vpop.f32.mrb[159].mxu1 }
0x3e58   :  { %v6916_v52 = vadd.f32 1e-06, %v6915_v12 }
0x3e59   :  { %9376 = vrsqrt.f32 %v6921_v9 }
0x3e5a   :  { %9378 = vrsqrt.f32 %v6916_v52 }
0x3e5f   :  { %v9373_v15 = vpop.eup %9372 }
0x3e60   :  { %v9375_v41 = vpop.eup %9374  ;;  %v6929_v58 = vmul.f32 %v9373_v15, %v11092_v13 }
0x3e61   :  { %v6928_v49 = vmul.f32 %v9375_v41, %v11095_v38 }
0x3e62   :  { %v6938_v19 = vmul.f32 %v7828_v34, %v6929_v58  ;;  %v7321_v58 = vld [vmem:[%s11289_s3 + $0x2c0] sm:$0xff] }
0x3e63   :  { %v9377_v10 = vpop.eup %9376  ;;  %v6937_v51 = vmul.f32 %v7828_v34, %v6928_v49  ;;  %8862 = vmatpush3.msra.mxu0 %v7321_v58 }
0x3e64   :  { %v9379_v32 = vpop.eup %9378  ;;  %v6947_v37 = vadd.f32 %v7829_v63, %v6938_v19  ;;  %v6931_v27 = vmul.f32 %v9377_v10, %v11105_v60  ;;  %v7845_v10 = vld [vmem:[%s11289_s3 + $0x2f8] ss:$0 sm:$0xff] }
0x3e65   :  { %v6946_v35 = vadd.f32 %v7829_v63, %v6937_v51  ;;  %v6930_v22 = vmul.f32 %v9379_v32, %v11108_v48 }
0x3e66   :  { %v6940_v31 = vmul.f32 %v7828_v34, %v6931_v27  ;;  %v6951_v53 = vmul.f32 %v6947_v37, %v6947_v37 }
0x3e67   :  { %v6939_v39 = vmul.f32 %v7828_v34, %v6930_v22  ;;  %v6950_v13 = vmul.f32 %v6946_v35, %v6946_v35  ;;  %v7395_v22 = vld [vmem:[%s11289_s3 + $0x2c8] sm:$0xff] }
0x3e68   :  { %v6949_v28 = vadd.f32 %v7829_v63, %v6940_v31  ;;  %v6955_v46 = vmul.f32 %v6951_v53, %v6947_v37  ;;  %v7503_v31 = vld [vmem:[%s11289_s3 + $0x240] sm:$0xff]  ;;  %v7504_v53 = vld [vmem:[%s11289_s3 + $0x248] sm:$0xff] }
0x3e69   :  { %v6948_v24 = vadd.f32 %v7829_v63, %v6939_v39  ;;  %v6954_v56 = vmul.f32 %v6950_v13, %v6946_v35  ;;  %v7505_v39 = vld [vmem:[%s11289_s3 + $0x250] sm:$0xff]  ;;  %v8944_v13 = vpack.c.bf16 %v7504_v53, %v7503_v31 }
0x3e6a   :  { %v6953_v23 = vmul.f32 %v6949_v28, %v6949_v28  ;;  %v6959_v38 = vmul.f32 0.044715, %v6955_v46 }
0x3e6b   :  { %v6952_v33 = vmul.f32 %v6948_v24, %v6948_v24  ;;  %v6958_v54 = vmul.f32 0.044715, %v6954_v56  ;;  %v7508_v56 = vld [vmem:[%s11289_s3 + $0x268] sm:$0xff] }
0x3e6c   :  { %v6957_v16 = vmul.f32 %v6953_v23, %v6949_v28  ;;  %v6963_v50 = vadd.f32 %v6959_v38, %v6947_v37  ;;  %v7509_v38 = vld [vmem:[%s11289_s3 + $0x270] sm:$0xff] }
0x3e6d   :  { %v6956_v30 = vmul.f32 %v6952_v33, %v6948_v24  ;;  %v6962_v55 = vadd.f32 %v6958_v54, %v6946_v35  ;;  %v7510_v33 = vld [vmem:[%s11289_s3 + $0x278] sm:$0xff] }
0x3e6e   :  { %v6961_v60 = vmul.f32 0.044715, %v6957_v16  ;;  %v6967_v45 = vmul.f32 0.7978846, %v6963_v50  ;;  %v8956_v54 = vpack.c.bf16 %v7510_v33, %v7509_v38  ;;  %v7511_v16 = vld [vmem:[%s11289_s3 + $0x280] sm:$0xff]  ;;  %v7512_v50 = vld [vmem:[%s11289_s3 + $0x288] sm:$0xff] }
0x3e6f   :  { %v6960_v3 = vmul.f32 0.044715, %v6956_v30  ;;  %v6966_v48 = vmul.f32 0.7978846, %v6962_v55  ;;  %v8960_v30 = vpack.c.bf16 %v7512_v50, %v7511_v16  ;;  %v7513_v55 = vld [vmem:[%s11289_s3 + $0x290] sm:$0xff] }
0x3e70   :  { %v6965_v17 = vadd.f32 %v6961_v60, %v6949_v28  ;;  %9380 = vtanh.f32 %v6967_v45  ;;  %v7514_v60 = vld [vmem:[%s11289_s3 + $0x298] sm:$0xff] }
0x3e71   :  { %v6964_v4 = vadd.f32 %v6960_v3, %v6948_v24  ;;  %9382 = vtanh.f32 %v6966_v48  ;;  %v8964_v45 = vpack.c.bf16 %v7514_v60, %v7513_v55  ;;  %v7515_v3 = vld [vmem:[%s11289_s3 + $0x2a0] sm:$0xff]  ;;  %v7516_v48 = vld [vmem:[%s11289_s3 + $0x2a8] sm:$0xff] }
0x3e72   :  { %v6969_v62 = vmul.f32 0.7978846, %v6965_v17  ;;  %v8968_v17 = vpack.c.bf16 %v7516_v48, %v7515_v3 }
0x3e73   :  { %v6968_v25 = vmul.f32 0.7978846, %v6964_v4 }
0x3e74   :  { %9384 = vtanh.f32 %v6969_v62  ;;  %v7396_v62 = vld [vmem:[%s11289_s3 + $0x2d0] sm:$0xff] }
0x3e75   :  { %9386 = vtanh.f32 %v6968_v25 }
0x3e7a   :  { %v9381_v2 = vpop.eup %9380 }
0x3e7b   :  { %v9383_v44 = vpop.eup %9382  ;;  %v6975_v0 = vadd.f32 1.0, %v9381_v2  ;;  %v7397_v2 = vld [vmem:[%s11289_s3 + $0x2d8] sm:$0xff] }
0x3e7c   :  { %v6974_v42 = vadd.f32 1.0, %v9383_v44  ;;  %v7398_v44 = vld [vmem:[%s11289_s3 + $0x2e0] sm:$0xff] }
0x3e7d   :  { %v6979_v21 = vmul.f32 0.5, %v6975_v0  ;;  %v7517_v0 = vld [vmem:[%s11289_s3 + $0x2b0] sm:$0xff] }
0x3e7e   :  { %v9385_v40 = vpop.eup %9384  ;;  %v6978_v57 = vmul.f32 0.5, %v6974_v42  ;;  %v7518_v42 = vld [vmem:[%s11289_s3 + $0x2b8] sm:$0xff] }
0x3e7f   :  { %v9387_v36 = vpop.eup %9386  ;;  %v6983_v8 = vmul.f32 %v6979_v21, %v6947_v37  ;;  %v6977_v7 = vadd.f32 1.0, %v9385_v40  ;;  %v8972_v21 = vpack.c.bf16 %v7518_v42, %v7517_v0  ;;  %v7830_v40 = vld [vmem:[%s11289_s3 + $0x1f0] ss:$0 sm:$0xff] }
0x3e80   :  { %v6982_v11 = vmul.f32 %v6978_v57, %v6946_v35  ;;  %v6976_v29 = vadd.f32 1.0, %v9387_v36 }
0x3e81   :  { %v6981_v61 = vmul.f32 0.5, %v6977_v7 }
0x3e82   :  { %v6994_v6 = vpack.c.bf16 %v6983_v8, %v6982_v11  ;;  %v6980_v26 = vmul.f32 0.5, %v6976_v29 }
0x3e83   :  { %v6985_v43 = vmul.f32 %v6981_v61, %v6949_v28  ;;  %v7506_v28 = vld [vmem:[%s11289_s3 + $0x258] sm:$0xff] }
0x3e84   :  { %8833 = vmatprep.mubr.msk.bf16.mxu1 %vm131_vm0, %v6994_v6  ;;  %v6984_v47 = vmul.f32 %v6980_v26, %v6948_v24  ;;  %v8948_v46 = vpack.c.bf16 %v7506_v28, %v7505_v39  ;;  %v7507_v24 = vld [vmem:[%s11289_s3 + $0x260] sm:$0xff] }
0x3e85   :  { %v8952_v23 = vpack.c.bf16 %v7508_v56, %v7507_v24 }
0x3e86   :  { %v6995_v18 = vpack.c.bf16 %v6985_v43, %v6984_v47 }
0x3e88   :  { %8834 = vmatmul.mubr.msk.bf16.vlgmr.msra.gmra.mrb[160].mxu1 %vm131_vm0, %v6995_v18  ;;  %vm7604_vm0 = vcmask 130048  }
0x3e89   :  { %8854 = vmatpush3.bf16.msra.mxu1 %v9086_v14  ;;  %8857 = vmatprep.mubr.msk.bf16.mxu1 %vm9409_vm5, %v9408_v59 }
0x3e8a   :  { %8855 = vmatprep.subr.bf16.mxu1 %v9408_v59 }
0x3e8d   :  { %8856 = vmatpush3.bf16.msra.mxu1 %v9087_v5 }
0x3e8e   :  { %8945 = vmatprep.subr.bf16.mxu1 %v8944_v13 }
0x3eac   :  { %v7249_v20 = vpop.f32.mrb[168].mxu0 }
0x3ead   :  { %v7250_v9 = vadd.f32 %v7841_v1, %v7249_v20  ;;  %v8851_v12 = vpop.f32.mrb[169].mxu0 }
0x3eae   :  { %v7252_v52 = vpop.f32.mrb[170].mxu0 }
0x3eaf   :  { %v7255_v15 = vmax.f32 %v7250_v9, 0.0  ;;  %v8852_v34 = vpop.f32.mrb[171].mxu0 }
0x3eb1   :  { %v7260_v41 = vpack.c.bf16 %v7255_v15, %v7255_v15 }
0x3eb3   :  { %8858 = vmatmul.mubr.msk.bf16.vlgmr.msra.gmra.mrb[164].mxu1 %vm195_vm1, %v7260_v41 }
0x3eb4   :  { %8947 = vmatpush3.bf16.msra.mxu1 %v8944_v13 }
0x3eb5   :  { %8949 = vmatprep.subr.bf16.mxu1 %v8948_v46 }
0x3eb8   :  { %8951 = vmatpush3.bf16.msra.mxu1 %v8948_v46 }
0x3eb9   :  { %8953 = vmatprep.subr.bf16.mxu1 %v8952_v23 }
0x3ebc   :  { %8955 = vmatpush3.bf16.msra.mxu1 %v8952_v23 }
0x3ebd   :  { %8957 = vmatprep.subr.bf16.mxu1 %v8956_v54 }
0x3ec0   :  { %8959 = vmatpush3.bf16.msra.mxu1 %v8956_v54 }
0x3ec1   :  { %8961 = vmatprep.subr.bf16.mxu1 %v8960_v30 }
0x3ec4   :  { %8963 = vmatpush3.bf16.msra.mxu1 %v8960_v30 }
0x3ec5   :  { %8965 = vmatprep.subr.bf16.mxu1 %v8964_v45 }
0x3ec8   :  { %8967 = vmatpush3.bf16.msra.mxu1 %v8964_v45 }
0x3ec9   :  { %8969 = vmatprep.subr.bf16.mxu1 %v8968_v17 }
0x3ecc   :  { %8971 = vmatpush3.bf16.msra.mxu1 %v8968_v17 }
0x3ecd   :  { %8973 = vmatprep.subr.bf16.mxu1 %v8972_v21 }
0x3ed0   :  { %8975 = vmatpush3.bf16.msra.mxu1 %v8972_v21 }
0x3f5b   :  { %v11193_v59 = vpop.f32.mrb[160].mxu1 }
0x3f5c   :  { %v11195_v63 = vpop.f32.mrb[161].mxu1  ;;  %v7074_v11 = vadd.f32 %v11193_v59, %v7830_v40 }
0x3f5d   :  { %v11197_v49 = vpop.f32.mrb[162].mxu1  ;;  %v7066_v36 = vadd.f32 %v7830_v40, %v11195_v63 }
0x3f5e   :  { %v7068_v19 = vpop.f32.mrb[163].mxu1  ;;  %v7077_v8 = vadd.f32 %v11197_v49, %v7830_v40  ;;  %v7082_v26 = vmul.f32 %v7074_v11, %v7074_v11 }
0x3f5f   :  { %v7069_v57 = vadd.f32 %v7830_v40, %v7068_v19  ;;  %v7080_v29 = vmul.f32 %v7066_v36, %v7066_v36 }
0x3f60   :  { %v7083_v61 = vmul.f32 %v7077_v8, %v7077_v8  ;;  %v7086_v18 = vmul.f32 %v7082_v26, %v7074_v11 }
0x3f61   :  { %v7081_v7 = vmul.f32 %v7069_v57, %v7069_v57  ;;  %v7084_v43 = vmul.f32 %v7080_v29, %v7066_v36 }
0x3f62   :  { %v7087_v47 = vmul.f32 %v7083_v61, %v7077_v8  ;;  %v7090_v9 = vmul.f32 0.044715, %v7086_v18 }
0x3f63   :  { %v7085_v6 = vmul.f32 %v7081_v7, %v7069_v57  ;;  %v7088_v5 = vmul.f32 0.044715, %v7084_v43 }
0x3f64   :  { %v7091_v1 = vmul.f32 0.044715, %v7087_v47  ;;  %v7094_v34 = vadd.f32 %v7090_v9, %v7074_v11 }
0x3f65   :  { %v7089_v14 = vmul.f32 0.044715, %v7085_v6  ;;  %v7092_v12 = vadd.f32 %v7088_v5, %v7066_v36 }
0x3f66   :  { %v7095_v52 = vadd.f32 %v7091_v1, %v7077_v8  ;;  %v7098_v59 = vmul.f32 0.7978846, %v7094_v34 }
0x3f67   :  { %v7093_v20 = vadd.f32 %v7089_v14, %v7069_v57  ;;  %v7096_v41 = vmul.f32 0.7978846, %v7092_v12 }
0x3f68   :  { %v7099_v58 = vmul.f32 0.7978846, %v7095_v52 }
0x3f69   :  { %v7097_v15 = vmul.f32 0.7978846, %v7093_v20 }
0x3f6b   :  { %9388 = vtanh.f32 %v7097_v15 }
0x3f6c   :  { %9390 = vtanh.f32 %v7096_v41 }
0x3f6d   :  { %9392 = vtanh.f32 %v7099_v58 }
0x3f6e   :  { %9394 = vtanh.f32 %v7098_v59 }
0x3f75   :  { %v9389_v63 = vpop.eup %9388 }
0x3f76   :  { %v9391_v49 = vpop.eup %9390  ;;  %v7105_v19 = vadd.f32 1.0, %v9389_v63 }
0x3f86   :  { %v7315_v51 = vpop.f32.mrb[164].mxu1 }
0x3f87   :  { %v7316_v32 = vadd.f32 %v7845_v10, %v7315_v51  ;;  %v8859_v37 = vpop.f32.mrb[165].mxu1  ;;  %v9393_v10 = vpop.eup %9392  ;;  %v7104_v51 = vadd.f32 1.0, %v9391_v49 }
0x3f88   :  { %v7318_v27 = vpop.f32.mrb[166].mxu1  ;;  %v7109_v37 = vmul.f32 0.5, %v7105_v19 }
0x3f89   :  { %v8860_v35 = vpop.f32.mrb[167].mxu1  ;;  %8864 = vmatmul.mubr.msk.f32.vlgmr.msra.gmra.mrb[172].mxu0 %vm474_vm2, %v7316_v32  ;;  %v9395_v32 = vpop.eup %9394  ;;  %v7107_v27 = vadd.f32 1.0, %v9393_v10 }
0x3f8a   :  { %8868 = vmatprep.mubr.msk.f32.mxu0 %vm1827_vm6, %v7395_v22  ;;  %v7108_v35 = vmul.f32 0.5, %v7104_v51  ;;  %v7106_v22 = vadd.f32 1.0, %v9395_v32  ;;  %v7113_v31 = vmul.f32 %v7109_v37, %v7069_v57 }
0x3f8b   :  { %v7111_v53 = vmul.f32 0.5, %v7107_v27 }
0x3f8c   :  { %v7112_v13 = vmul.f32 %v7108_v35, %v7066_v36  ;;  %v7110_v28 = vmul.f32 0.5, %v7106_v22 }
0x3f8d   :  { %v7115_v23 = vmul.f32 %v7111_v53, %v7077_v8 }
0x3f8e   :  { %v7114_v33 = vmul.f32 %v7110_v28, %v7074_v11 }
0x405c   :  { %v7391_v4 = vpop.f32.mrb[172].mxu0 }
0x405d   :  { %v8865_v25 = vpop.f32.mrb[173].mxu0  ;;  %8866 = vmatprep.subr.msk.mxu0 %vm1831_vm4, %v7391_v4 }
0x405e   :  { %8867 = vmatpush3.msk.msra.mxu0 %vm1831_vm4, %v7391_v4 }
0x405f   :  { %8869 = vmatmul.mubr.msk.f32.vlgmr.msra.gmra.mrb[174].mxu0 %vm1827_vm6, %v7396_v62 }
0x4060   :  { %8871 = vmatprep.mubr.msk.f32.mxu0 %vm1827_vm6, %v7397_v2 }
0x4063   :  { %8872 = vmatmul.mubr.msk.f32.gmra.mrb[176].mxu0 %vm1827_vm6, %v7398_v44 }
0x4132   :  { %v8870_v39 = vpop.f32.mrb[174].mxu0 }
0x4133   :  { %v7500_v46 = vmul.f32 %v8870_v39, %v7113_v31  ;;  %v7480_v24 = vpop.f32.mrb[175].mxu0 }
0x4134   :  { %v7499_v56 = vmul.f32 %v7480_v24, %v7112_v13 }
0x4136   :  { %v8873_v38 = vpop.f32.mrb[176].mxu0  ;;  %8906 = vmatprep.mubr.f32.mxu1 %v7499_v56 }
0x4137   :  { %v7502_v54 = vmul.f32 %v8873_v38, %v7115_v23  ;;  %v7490_v16 = vpop.f32.mrb[177].mxu0  ;;  %8907 = vmatmul.mubr.f32.vlgmr.msra.gmra.mrb[168].mxu1 %v7500_v46 }
0x4138   :  { %v7501_v50 = vmul.f32 %v7490_v16, %v7114_v33 }
0x413a   :  { %8909 = vmatprep.mubr.f32.mxu1 %v7501_v50 }
0x413b   :  { %8910 = vmatmul.mubr.f32.gmra.mrb[170].mxu1 %v7502_v54 }
0x420a   :  { %v8908_v30 = vpop.f32.mrb[168].mxu1 }
0x420b   :  { %7606 = vst.msk [vmem:[%s11291_s4 + $0x8] sm:$0xff] %vm7604_vm0, %v8908_v30  ;;  %v7585_v55 = vpop.f32.mrb[169].mxu1 }
0x420c   :  { %7605 = vst.msk [vmem:[%s11291_s4] sm:$0xff] %vm7604_vm0, %v7585_v55 }
0x420e   :  { %v8911_v60 = vpop.f32.mrb[170].mxu1 }
0x420f   :  { %7608 = vst.msk [vmem:[%s11291_s4 + $0x18] sm:$0xff] %vm7604_vm0, %v8911_v60  ;;  %v7595_v45 = vpop.f32.mrb[171].mxu1 }
0x4210   :  { %7607 = vst.msk [vmem:[%s11291_s4 + $0x10] sm:$0xff] %vm7604_vm0, %v7595_v45 }

</bundles_post_ra>
